<compile_context>
chip_gen: v6e
topology: v6e:2x2x1
jax: 0.10.0
libtpu: 0.0.40
codegen_flags: <defaults>
</compile_context>

<pallas_src>
import functools
import math

import jax
import jax.numpy as jnp
from jax.experimental import pallas as pl
from jax.experimental.pallas import tpu as pltpu


def _round_up(x, m):
    return (x + m - 1) // m * m


def _slab_geometry(H, W, K):
    P = K // 2
    Hp, Wp = H + 2 * P, W + 2 * P
    F = Hp * Wp                      # flattened padded-image length
    L = _round_up(F, 128)            # lane-dense slab length
    margin = P * Wp + P              # max |tap shift| in flat coordinates
    return P, Hp, Wp, F, L, margin


def _resblock_kernel(x_ref, mask_ref, w1_ref, b1_ref, w2_ref, b2_ref, o_ref,
                     *, C, K, Wp, L, margin, res_scale):
    """Fused ResBlock body for a pack of Bblk images (pixels-on-lanes slabs).

    x_ref   : (Bblk, C, L)    input slabs; lane j == padded-grid pixel j for
                              j < Hp*Wp (halo pixels are zero), zero beyond.
    mask_ref: (1, 1, L)       1.0 on interior (non-halo) pixels, else 0.
    w*_ref  : (K*K*C, C, 1)   VMEM weight columns: row (dy*K+dx)*C + ci holds
                              the length-C_out vector w[:, ci, dy, dx].
    b*_ref  : (C, 1)          bias columns.
    o_ref   : (Bblk, C, L)    output slabs, same format as x_ref (chainable).
    """
    Bblk = x_ref.shape[0]
    x = x_ref[...].astype(jnp.float32)                     # (Bblk, C, L)
    mask = mask_ref[...]                                   # (1, 1, L)

    def conv(v, w_ref, b_ref):
        # Zero-extend the slab by `margin` lanes each side so every conv tap is
        # a static in-register lane shift (no scratch stores / reloads).
        zpad = jnp.zeros((Bblk, C, margin), jnp.float32)
        ve = jnp.concatenate([zpad, v, zpad], axis=-1)     # (Bblk, C, L+2*margin)
        acc = jnp.zeros((Bblk, C, L), jnp.float32)
        for dy in range(K):                                # static, fully unrolled
            for dx in range(K):
                base = dy * Wp + dx
                tap = ve[:, :, base:base + L]              # (Bblk, C, L), hoisted per tap
                for ci in range(C):
                    row = tap[:, ci:ci + 1, :]             # (Bblk, 1, L)
                    wcol = w_ref[(dy * K + dx) * C + ci]   # (C, 1)
                    # One broadcast FMA per (tap, ci), vectorized over C_out.
                    acc = acc + wcol[None, :, :].astype(jnp.float32) * row
        return acc + b_ref[...].astype(jnp.float32)[None, :, :]

    # conv1 + ReLU; the interior mask realizes conv2's SAME zero padding.
    y1 = jnp.maximum(conv(x, w1_ref, b1_ref), 0.0) * mask
    # conv2, residual scale + add; mask again so the output is a valid slab.
    y2 = conv(y1, w2_ref, b2_ref)
    o_ref[...] = ((y2 * res_scale + x) * mask).astype(o_ref.dtype)


def to_slab(x_nchw, K):
    """(B,C,H,W) -> (B,C,L) pixels-on-lanes slab with SAME zero padding baked in."""
    B, C, H, W = x_nchw.shape
    P, Hp, Wp, F, L, _ = _slab_geometry(H, W, K)
    xp = jnp.pad(x_nchw, ((0, 0), (0, 0), (P, P), (P, P)))
    return jnp.pad(xp.reshape(B, C, F), ((0, 0), (0, 0), (0, L - F)))


def from_slab(slab, H, W, K):
    B, C, _ = slab.shape
    P, Hp, Wp, F, _, _ = _slab_geometry(H, W, K)
    return slab[:, :, :F].reshape(B, C, Hp, Wp)[:, :, P:P + H, P:P + W]


def resblock_slab(slab, w1, b1, w2, b2, *, H, W, res_scale=1.0, block_batch=None):
    """ResBlock on slab-format activations; output is again slab format, so a
    stack of ResBlocks pays the NCHW<->slab conversion once per network."""
    B, C, L = slab.shape
    K = w1.shape[-1]
    P, Hp, Wp, F, L_expect, margin = _slab_geometry(H, W, K)
    assert L == L_expect, (L, L_expect)

    if C > 8:
        # TODO(synk): MXU NHWC per-tap-matmul path for large n_feats.
        raise NotImplementedError("VPU ResBlock path targets small n_feats")

    if block_batch is None:
        # Largest divisor of B with block_batch*C <= 8: fills sublanes while
        # keeping the fully-unrolled taps spill-free in the 64-vreg file.
        block_batch = 1
        for cand in range(1, B + 1):
            if B % cand == 0 and cand * C <= 8:
                block_batch = cand
    assert B % block_batch == 0, (B, block_batch)

    # Interior-pixel mask on the padded grid (also zeroes the >= F lane tail).
    j = jnp.arange(L, dtype=jnp.int32)
    r, c = j // Wp, j % Wp
    mask = ((r >= P) & (r < P + H) & (c >= P) & (c < P + W))
    mask = mask.astype(jnp.float32).reshape(1, 1, L)

    # Weight columns (K*K*C_in, C_out, 1): row (dy*K+dx)*C+ci -> w[:, ci, dy, dx].
    def expand_w(w):
        return jnp.transpose(w, (2, 3, 1, 0)).reshape(K * K * C, C, 1).astype(jnp.float32)

    w1e, w2e = expand_w(w1), expand_w(w2)
    b1e = b1.reshape(C, 1).astype(jnp.float32)
    b2e = b2.reshape(C, 1).astype(jnp.float32)

    kernel = functools.partial(_resblock_kernel, C=C, K=K, Wp=Wp, L=L,
                               margin=margin, res_scale=float(res_scale))

    def full_spec(shape):
        return pl.BlockSpec(shape, lambda g: (0,) * len(shape))

    return pl.pallas_call(
        kernel,
        out_shape=jax.ShapeDtypeStruct((B, C, L), slab.dtype),
        grid=(B // block_batch,),
        in_specs=[
            pl.BlockSpec((block_batch, C, L), lambda g: (g, 0, 0)),  # slabs
            full_spec((1, 1, L)),                                    # mask
            full_spec((K * K * C, C, 1)),                            # w1 columns
            full_spec((C, 1)),                                       # b1
            full_spec((K * K * C, C, 1)),                            # w2 columns
            full_spec((C, 1)),                                       # b2
        ],
        out_specs=pl.BlockSpec((block_batch, C, L), lambda g: (g, 0, 0)),
        compiler_params=pltpu.CompilerParams(
            # TODO(synk): pltpu.CORE_PARALLEL on v7x for a guaranteed 2-TC split.
            dimension_semantics=("parallel",),
            vmem_limit_bytes=32 * 1024 * 1024),
    )(slab, mask, w1e, b1e, w2e, b2e)


def resblock_pallas(x_nchw, w1, b1, w2, b2, *, res_scale=1.0):
    """ResBlock forward. x: (B,C,H,W); w: (C,C,K,K) OIHW; b: (C,)."""
    B, C, H, W = x_nchw.shape
    K = w1.shape[-1]
    # TODO(synk): in a full EDSR stack keep activations in slab format (and in
    # bf16 on v6e/v7x) across all blocks so this pad/unpad is paid once.
    slab = to_slab(x_nchw.astype(jnp.float32), K)
    out = resblock_slab(slab, w1, b1, w2, b2, H=H, W=W, res_scale=res_scale)
    return from_slab(out, H, W, K)


def resblock_ref(x_nchw, w1, b1, w2, b2, *, res_scale=1.0):
    """Pure-JAX reference matching the PyTorch module (bn=False, act=ReLU)."""
    dn = jax.lax.conv_dimension_numbers(x_nchw.shape, w1.shape,
                                        ('NCHW', 'OIHW', 'NCHW'))
    y = jax.lax.conv_general_dilated(x_nchw, w1, (1, 1), 'SAME',
                                     dimension_numbers=dn)
    y = y + b1[None, :, None, None]
    y = jnp.maximum(y, 0.0)
    y = jax.lax.conv_general_dilated(y, w2, (1, 1), 'SAME',
                                     dimension_numbers=dn)
    y = y + b2[None, :, None, None]
    return y * res_scale + x_nchw


if __name__ == "__main__":
    # Small shapes consistent with the module: n_feats=4, kernel_size=3.
    B, C, H, W, K = 2, 4, 16, 16, 3
    res_scale = 1.0  # PyTorch default

    key = jax.random.PRNGKey(0)
    k1, k2, k3, k4, k5 = jax.random.split(key, 5)

    fan_in = C * K * K
    bound = 1.0 / math.sqrt(fan_in)
    x = jax.random.normal(k1, (B, C, H, W), jnp.float32)
    w1 = jax.random.uniform(k2, (C, C, K, K), jnp.float32, -bound, bound)
    b1 = jax.random.uniform(k3, (C,), jnp.float32, -bound, bound)
    w2 = jax.random.uniform(k4, (C, C, K, K), jnp.float32, -bound, bound)
    b2 = jax.random.uniform(k5, (C,), jnp.float32, -bound, bound)

    fwd = jax.jit(functools.partial(resblock_pallas, res_scale=res_scale))
    out = jax.block_until_ready(fwd(x, w1, b1, w2, b2))

    ref = resblock_ref(x, w1, b1, w2, b2, res_scale=res_scale)
    assert out.shape == (B, C, H, W), out.shape
    max_err = float(jnp.max(jnp.abs(out - ref)))
    assert jnp.allclose(out, ref, atol=1e-4, rtol=1e-4), max_err

    print("KERNEL_OK")
</pallas_src>

<mosaic_0001>
module attributes {stable_mosaic.version = 11 : i64} {
  func.func @_resblock_kernel(%arg0: i32, %arg1: memref<2x4x384xf32, #tpu.memory_space<vmem>>, %arg2: memref<1x1x384xf32, #tpu.memory_space<vmem>>, %arg3: memref<36x4x1xf32, #tpu.memory_space<vmem>>, %arg4: memref<4x1xf32, #tpu.memory_space<vmem>>, %arg5: memref<36x4x1xf32, #tpu.memory_space<vmem>>, %arg6: memref<4x1xf32, #tpu.memory_space<vmem>>, %arg7: memref<2x4x384xf32, #tpu.memory_space<vmem>>) attributes {dimension_semantics = [#tpu.dimension_semantics<parallel>], iteration_bounds = array<i64: 1>, scalar_prefetch = 0 : i64, scratch_operands = 0 : i64, tpu.core_type = #tpu.core_type<tc>, window_params = [{transform_indices = @transform_0, window_bounds = array<i64: 2, 4, 384>}, {pipeline_mode = #tpu.pipeline_mode<synchronous>, transform_indices = @transform_1, window_bounds = array<i64: 1, 1, 384>}, {pipeline_mode = #tpu.pipeline_mode<synchronous>, transform_indices = @transform_2, window_bounds = array<i64: 36, 4, 1>}, {pipeline_mode = #tpu.pipeline_mode<synchronous>, transform_indices = @transform_3, window_bounds = array<i64: 4, 1>}, {pipeline_mode = #tpu.pipeline_mode<synchronous>, transform_indices = @transform_4, window_bounds = array<i64: 36, 4, 1>}, {pipeline_mode = #tpu.pipeline_mode<synchronous>, transform_indices = @transform_5, window_bounds = array<i64: 4, 1>}, {transform_indices = @transform_6, window_bounds = array<i64: 2, 4, 384>}]} {
    %c0 = arith.constant 0 : index
    %c0_0 = arith.constant 0 : index
    %c0_1 = arith.constant 0 : index
    %0 = vector.load %arg1[%c0, %c0_0, %c0_1] : memref<2x4x384xf32, #tpu.memory_space<vmem>>, vector<2x4x384xf32>
    %c0_2 = arith.constant 0 : index
    %c0_3 = arith.constant 0 : index
    %c0_4 = arith.constant 0 : index
    %1 = vector.load %arg2[%c0_2, %c0_3, %c0_4] : memref<1x1x384xf32, #tpu.memory_space<vmem>>, vector<1x1x384xf32>
    %cst = arith.constant 0.000000e+00 : f32
    %2 = vector.broadcast %cst : f32 to vector<2x4x19xf32>
    %3 = tpu.concatenate %2, %0, %2 in 2 : vector<2x4x19xf32>, vector<2x4x384xf32>, vector<2x4x19xf32> -> vector<2x4x422xf32>
    %cst_5 = arith.constant 0.000000e+00 : f32
    %4 = vector.broadcast %cst_5 : f32 to vector<2x4x384xf32>
    %5 = vector.extract_strided_slice %3 {offsets = [0, 0, 0], sizes = [2, 4, 384], strides = [1, 1, 1]} : vector<2x4x422xf32> to vector<2x4x384xf32>
    %6 = vector.extract_strided_slice %5 {offsets = [0, 0, 0], sizes = [2, 1, 384], strides = [1, 1, 1]} : vector<2x4x384xf32> to vector<2x1x384xf32>
    %c0_6 = arith.constant 0 : index
    %c0_7 = arith.constant 0 : index
    %c0_8 = arith.constant 0 : index
    %7 = vector.load %arg3[%c0_6, %c0_7, %c0_8] : memref<36x4x1xf32, #tpu.memory_space<vmem>>, vector<1x4x1xf32>
    %8 = vector.shape_cast %7 : vector<1x4x1xf32> to vector<4x1xf32>
    %9 = vector.shape_cast %8 : vector<4x1xf32> to vector<1x4x1xf32>
    %10 = vector.broadcast %9 : vector<1x4x1xf32> to vector<2x4x384xf32>
    %11 = vector.broadcast %6 : vector<2x1x384xf32> to vector<2x4x384xf32>
    %12 = arith.mulf %10, %11 : vector<2x4x384xf32>
    %13 = arith.addf %4, %12 : vector<2x4x384xf32>
    %14 = vector.extract_strided_slice %5 {offsets = [0, 1, 0], sizes = [2, 1, 384], strides = [1, 1, 1]} : vector<2x4x384xf32> to vector<2x1x384xf32>
    %c1 = arith.constant 1 : index
    %c0_9 = arith.constant 0 : index
    %c0_10 = arith.constant 0 : index
    %15 = vector.load %arg3[%c1, %c0_9, %c0_10] : memref<36x4x1xf32, #tpu.memory_space<vmem>>, vector<1x4x1xf32>
    %16 = vector.shape_cast %15 : vector<1x4x1xf32> to vector<4x1xf32>
    %17 = vector.shape_cast %16 : vector<4x1xf32> to vector<1x4x1xf32>
    %18 = vector.broadcast %17 : vector<1x4x1xf32> to vector<2x4x384xf32>
    %19 = vector.broadcast %14 : vector<2x1x384xf32> to vector<2x4x384xf32>
    %20 = arith.mulf %18, %19 : vector<2x4x384xf32>
    %21 = arith.addf %13, %20 : vector<2x4x384xf32>
    %22 = vector.extract_strided_slice %5 {offsets = [0, 2, 0], sizes = [2, 1, 384], strides = [1, 1, 1]} : vector<2x4x384xf32> to vector<2x1x384xf32>
    %c2 = arith.constant 2 : index
    %c0_11 = arith.constant 0 : index
    %c0_12 = arith.constant 0 : index
    %23 = vector.load %arg3[%c2, %c0_11, %c0_12] : memref<36x4x1xf32, #tpu.memory_space<vmem>>, vector<1x4x1xf32>
    %24 = vector.shape_cast %23 : vector<1x4x1xf32> to vector<4x1xf32>
    %25 = vector.shape_cast %24 : vector<4x1xf32> to vector<1x4x1xf32>
    %26 = vector.broadcast %25 : vector<1x4x1xf32> to vector<2x4x384xf32>
    %27 = vector.broadcast %22 : vector<2x1x384xf32> to vector<2x4x384xf32>
    %28 = arith.mulf %26, %27 : vector<2x4x384xf32>
    %29 = arith.addf %21, %28 : vector<2x4x384xf32>
    %30 = vector.extract_strided_slice %5 {offsets = [0, 3, 0], sizes = [2, 1, 384], strides = [1, 1, 1]} : vector<2x4x384xf32> to vector<2x1x384xf32>
    %c3 = arith.constant 3 : index
    %c0_13 = arith.constant 0 : index
    %c0_14 = arith.constant 0 : index
    %31 = vector.load %arg3[%c3, %c0_13, %c0_14] : memref<36x4x1xf32, #tpu.memory_space<vmem>>, vector<1x4x1xf32>
    %32 = vector.shape_cast %31 : vector<1x4x1xf32> to vector<4x1xf32>
    %33 = vector.shape_cast %32 : vector<4x1xf32> to vector<1x4x1xf32>
    %34 = vector.broadcast %33 : vector<1x4x1xf32> to vector<2x4x384xf32>
    %35 = vector.broadcast %30 : vector<2x1x384xf32> to vector<2x4x384xf32>
    %36 = arith.mulf %34, %35 : vector<2x4x384xf32>
    %37 = arith.addf %29, %36 : vector<2x4x384xf32>
    %38 = vector.extract_strided_slice %3 {offsets = [0, 0, 1], sizes = [2, 4, 384], strides = [1, 1, 1]} : vector<2x4x422xf32> to vector<2x4x384xf32>
    %39 = vector.extract_strided_slice %38 {offsets = [0, 0, 0], sizes = [2, 1, 384], strides = [1, 1, 1]} : vector<2x4x384xf32> to vector<2x1x384xf32>
    %c4 = arith.constant 4 : index
    %c0_15 = arith.constant 0 : index
    %c0_16 = arith.constant 0 : index
    %40 = vector.load %arg3[%c4, %c0_15, %c0_16] : memref<36x4x1xf32, #tpu.memory_space<vmem>>, vector<1x4x1xf32>
    %41 = vector.shape_cast %40 : vector<1x4x1xf32> to vector<4x1xf32>
    %42 = vector.shape_cast %41 : vector<4x1xf32> to vector<1x4x1xf32>
    %43 = vector.broadcast %42 : vector<1x4x1xf32> to vector<2x4x384xf32>
    %44 = vector.broadcast %39 : vector<2x1x384xf32> to vector<2x4x384xf32>
    %45 = arith.mulf %43, %44 : vector<2x4x384xf32>
    %46 = arith.addf %37, %45 : vector<2x4x384xf32>
    %47 = vector.extract_strided_slice %38 {offsets = [0, 1, 0], sizes = [2, 1, 384], strides = [1, 1, 1]} : vector<2x4x384xf32> to vector<2x1x384xf32>
    %c5 = arith.constant 5 : index
    %c0_17 = arith.constant 0 : index
    %c0_18 = arith.constant 0 : index
    %48 = vector.load %arg3[%c5, %c0_17, %c0_18] : memref<36x4x1xf32, #tpu.memory_space<vmem>>, vector<1x4x1xf32>
    %49 = vector.shape_cast %48 : vector<1x4x1xf32> to vector<4x1xf32>
    %50 = vector.shape_cast %49 : vector<4x1xf32> to vector<1x4x1xf32>
    %51 = vector.broadcast %50 : vector<1x4x1xf32> to vector<2x4x384xf32>
    %52 = vector.broadcast %47 : vector<2x1x384xf32> to vector<2x4x384xf32>
    %53 = arith.mulf %51, %52 : vector<2x4x384xf32>
    %54 = arith.addf %46, %53 : vector<2x4x384xf32>
    %55 = vector.extract_strided_slice %38 {offsets = [0, 2, 0], sizes = [2, 1, 384], strides = [1, 1, 1]} : vector<2x4x384xf32> to vector<2x1x384xf32>
    %c6 = arith.constant 6 : index
    %c0_19 = arith.constant 0 : index
    %c0_20 = arith.constant 0 : index
    %56 = vector.load %arg3[%c6, %c0_19, %c0_20] : memref<36x4x1xf32, #tpu.memory_space<vmem>>, vector<1x4x1xf32>
    %57 = vector.shape_cast %56 : vector<1x4x1xf32> to vector<4x1xf32>
    %58 = vector.shape_cast %57 : vector<4x1xf32> to vector<1x4x1xf32>
    %59 = vector.broadcast %58 : vector<1x4x1xf32> to vector<2x4x384xf32>
    %60 = vector.broadcast %55 : vector<2x1x384xf32> to vector<2x4x384xf32>
    %61 = arith.mulf %59, %60 : vector<2x4x384xf32>
    %62 = arith.addf %54, %61 : vector<2x4x384xf32>
    %63 = vector.extract_strided_slice %38 {offsets = [0, 3, 0], sizes = [2, 1, 384], strides = [1, 1, 1]} : vector<2x4x384xf32> to vector<2x1x384xf32>
    %c7 = arith.constant 7 : index
    %c0_21 = arith.constant 0 : index
    %c0_22 = arith.constant 0 : index
    %64 = vector.load %arg3[%c7, %c0_21, %c0_22] : memref<36x4x1xf32, #tpu.memory_space<vmem>>, vector<1x4x1xf32>
    %65 = vector.shape_cast %64 : vector<1x4x1xf32> to vector<4x1xf32>
    %66 = vector.shape_cast %65 : vector<4x1xf32> to vector<1x4x1xf32>
    %67 = vector.broadcast %66 : vector<1x4x1xf32> to vector<2x4x384xf32>
    %68 = vector.broadcast %63 : vector<2x1x384xf32> to vector<2x4x384xf32>
    %69 = arith.mulf %67, %68 : vector<2x4x384xf32>
    %70 = arith.addf %62, %69 : vector<2x4x384xf32>
    %71 = vector.extract_strided_slice %3 {offsets = [0, 0, 2], sizes = [2, 4, 384], strides = [1, 1, 1]} : vector<2x4x422xf32> to vector<2x4x384xf32>
    %72 = vector.extract_strided_slice %71 {offsets = [0, 0, 0], sizes = [2, 1, 384], strides = [1, 1, 1]} : vector<2x4x384xf32> to vector<2x1x384xf32>
    %c8 = arith.constant 8 : index
    %c0_23 = arith.constant 0 : index
    %c0_24 = arith.constant 0 : index
    %73 = vector.load %arg3[%c8, %c0_23, %c0_24] : memref<36x4x1xf32, #tpu.memory_space<vmem>>, vector<1x4x1xf32>
    %74 = vector.shape_cast %73 : vector<1x4x1xf32> to vector<4x1xf32>
    %75 = vector.shape_cast %74 : vector<4x1xf32> to vector<1x4x1xf32>
    %76 = vector.broadcast %75 : vector<1x4x1xf32> to vector<2x4x384xf32>
    %77 = vector.broadcast %72 : vector<2x1x384xf32> to vector<2x4x384xf32>
    %78 = arith.mulf %76, %77 : vector<2x4x384xf32>
    %79 = arith.addf %70, %78 : vector<2x4x384xf32>
    %80 = vector.extract_strided_slice %71 {offsets = [0, 1, 0], sizes = [2, 1, 384], strides = [1, 1, 1]} : vector<2x4x384xf32> to vector<2x1x384xf32>
    %c9 = arith.constant 9 : index
    %c0_25 = arith.constant 0 : index
    %c0_26 = arith.constant 0 : index
    %81 = vector.load %arg3[%c9, %c0_25, %c0_26] : memref<36x4x1xf32, #tpu.memory_space<vmem>>, vector<1x4x1xf32>
    %82 = vector.shape_cast %81 : vector<1x4x1xf32> to vector<4x1xf32>
    %83 = vector.shape_cast %82 : vector<4x1xf32> to vector<1x4x1xf32>
    %84 = vector.broadcast %83 : vector<1x4x1xf32> to vector<2x4x384xf32>
    %85 = vector.broadcast %80 : vector<2x1x384xf32> to vector<2x4x384xf32>
    %86 = arith.mulf %84, %85 : vector<2x4x384xf32>
    %87 = arith.addf %79, %86 : vector<2x4x384xf32>
    %88 = vector.extract_strided_slice %71 {offsets = [0, 2, 0], sizes = [2, 1, 384], strides = [1, 1, 1]} : vector<2x4x384xf32> to vector<2x1x384xf32>
    %c10 = arith.constant 10 : index
    %c0_27 = arith.constant 0 : index
    %c0_28 = arith.constant 0 : index
    %89 = vector.load %arg3[%c10, %c0_27, %c0_28] : memref<36x4x1xf32, #tpu.memory_space<vmem>>, vector<1x4x1xf32>
    %90 = vector.shape_cast %89 : vector<1x4x1xf32> to vector<4x1xf32>
    %91 = vector.shape_cast %90 : vector<4x1xf32> to vector<1x4x1xf32>
    %92 = vector.broadcast %91 : vector<1x4x1xf32> to vector<2x4x384xf32>
    %93 = vector.broadcast %88 : vector<2x1x384xf32> to vector<2x4x384xf32>
    %94 = arith.mulf %92, %93 : vector<2x4x384xf32>
    %95 = arith.addf %87, %94 : vector<2x4x384xf32>
    %96 = vector.extract_strided_slice %71 {offsets = [0, 3, 0], sizes = [2, 1, 384], strides = [1, 1, 1]} : vector<2x4x384xf32> to vector<2x1x384xf32>
    %c11 = arith.constant 11 : index
    %c0_29 = arith.constant 0 : index
    %c0_30 = arith.constant 0 : index
    %97 = vector.load %arg3[%c11, %c0_29, %c0_30] : memref<36x4x1xf32, #tpu.memory_space<vmem>>, vector<1x4x1xf32>
    %98 = vector.shape_cast %97 : vector<1x4x1xf32> to vector<4x1xf32>
    %99 = vector.shape_cast %98 : vector<4x1xf32> to vector<1x4x1xf32>
    %100 = vector.broadcast %99 : vector<1x4x1xf32> to vector<2x4x384xf32>
    %101 = vector.broadcast %96 : vector<2x1x384xf32> to vector<2x4x384xf32>
    %102 = arith.mulf %100, %101 : vector<2x4x384xf32>
    %103 = arith.addf %95, %102 : vector<2x4x384xf32>
    %104 = vector.extract_strided_slice %3 {offsets = [0, 0, 18], sizes = [2, 4, 384], strides = [1, 1, 1]} : vector<2x4x422xf32> to vector<2x4x384xf32>
    %105 = vector.extract_strided_slice %104 {offsets = [0, 0, 0], sizes = [2, 1, 384], strides = [1, 1, 1]} : vector<2x4x384xf32> to vector<2x1x384xf32>
    %c12 = arith.constant 12 : index
    %c0_31 = arith.constant 0 : index
    %c0_32 = arith.constant 0 : index
    %106 = vector.load %arg3[%c12, %c0_31, %c0_32] : memref<36x4x1xf32, #tpu.memory_space<vmem>>, vector<1x4x1xf32>
    %107 = vector.shape_cast %106 : vector<1x4x1xf32> to vector<4x1xf32>
    %108 = vector.shape_cast %107 : vector<4x1xf32> to vector<1x4x1xf32>
    %109 = vector.broadcast %108 : vector<1x4x1xf32> to vector<2x4x384xf32>
    %110 = vector.broadcast %105 : vector<2x1x384xf32> to vector<2x4x384xf32>
    %111 = arith.mulf %109, %110 : vector<2x4x384xf32>
    %112 = arith.addf %103, %111 : vector<2x4x384xf32>
    %113 = vector.extract_strided_slice %104 {offsets = [0, 1, 0], sizes = [2, 1, 384], strides = [1, 1, 1]} : vector<2x4x384xf32> to vector<2x1x384xf32>
    %c13 = arith.constant 13 : index
    %c0_33 = arith.constant 0 : index
    %c0_34 = arith.constant 0 : index
    %114 = vector.load %arg3[%c13, %c0_33, %c0_34] : memref<36x4x1xf32, #tpu.memory_space<vmem>>, vector<1x4x1xf32>
    %115 = vector.shape_cast %114 : vector<1x4x1xf32> to vector<4x1xf32>
    %116 = vector.shape_cast %115 : vector<4x1xf32> to vector<1x4x1xf32>
    %117 = vector.broadcast %116 : vector<1x4x1xf32> to vector<2x4x384xf32>
    %118 = vector.broadcast %113 : vector<2x1x384xf32> to vector<2x4x384xf32>
    %119 = arith.mulf %117, %118 : vector<2x4x384xf32>
    %120 = arith.addf %112, %119 : vector<2x4x384xf32>
    %121 = vector.extract_strided_slice %104 {offsets = [0, 2, 0], sizes = [2, 1, 384], strides = [1, 1, 1]} : vector<2x4x384xf32> to vector<2x1x384xf32>
    %c14 = arith.constant 14 : index
    %c0_35 = arith.constant 0 : index
    %c0_36 = arith.constant 0 : index
    %122 = vector.load %arg3[%c14, %c0_35, %c0_36] : memref<36x4x1xf32, #tpu.memory_space<vmem>>, vector<1x4x1xf32>
    %123 = vector.shape_cast %122 : vector<1x4x1xf32> to vector<4x1xf32>
    %124 = vector.shape_cast %123 : vector<4x1xf32> to vector<1x4x1xf32>
    %125 = vector.broadcast %124 : vector<1x4x1xf32> to vector<2x4x384xf32>
    %126 = vector.broadcast %121 : vector<2x1x384xf32> to vector<2x4x384xf32>
    %127 = arith.mulf %125, %126 : vector<2x4x384xf32>
    %128 = arith.addf %120, %127 : vector<2x4x384xf32>
    %129 = vector.extract_strided_slice %104 {offsets = [0, 3, 0], sizes = [2, 1, 384], strides = [1, 1, 1]} : vector<2x4x384xf32> to vector<2x1x384xf32>
    %c15 = arith.constant 15 : index
    %c0_37 = arith.constant 0 : index
    %c0_38 = arith.constant 0 : index
    %130 = vector.load %arg3[%c15, %c0_37, %c0_38] : memref<36x4x1xf32, #tpu.memory_space<vmem>>, vector<1x4x1xf32>
    %131 = vector.shape_cast %130 : vector<1x4x1xf32> to vector<4x1xf32>
    %132 = vector.shape_cast %131 : vector<4x1xf32> to vector<1x4x1xf32>
    %133 = vector.broadcast %132 : vector<1x4x1xf32> to vector<2x4x384xf32>
    %134 = vector.broadcast %129 : vector<2x1x384xf32> to vector<2x4x384xf32>
    %135 = arith.mulf %133, %134 : vector<2x4x384xf32>
    %136 = arith.addf %128, %135 : vector<2x4x384xf32>
    %137 = vector.extract_strided_slice %3 {offsets = [0, 0, 19], sizes = [2, 4, 384], strides = [1, 1, 1]} : vector<2x4x422xf32> to vector<2x4x384xf32>
    %138 = vector.extract_strided_slice %137 {offsets = [0, 0, 0], sizes = [2, 1, 384], strides = [1, 1, 1]} : vector<2x4x384xf32> to vector<2x1x384xf32>
    %c16 = arith.constant 16 : index
    %c0_39 = arith.constant 0 : index
    %c0_40 = arith.constant 0 : index
    %139 = vector.load %arg3[%c16, %c0_39, %c0_40] : memref<36x4x1xf32, #tpu.memory_space<vmem>>, vector<1x4x1xf32>
    %140 = vector.shape_cast %139 : vector<1x4x1xf32> to vector<4x1xf32>
    %141 = vector.shape_cast %140 : vector<4x1xf32> to vector<1x4x1xf32>
    %142 = vector.broadcast %141 : vector<1x4x1xf32> to vector<2x4x384xf32>
    %143 = vector.broadcast %138 : vector<2x1x384xf32> to vector<2x4x384xf32>
    %144 = arith.mulf %142, %143 : vector<2x4x384xf32>
    %145 = arith.addf %136, %144 : vector<2x4x384xf32>
    %146 = vector.extract_strided_slice %137 {offsets = [0, 1, 0], sizes = [2, 1, 384], strides = [1, 1, 1]} : vector<2x4x384xf32> to vector<2x1x384xf32>
    %c17 = arith.constant 17 : index
    %c0_41 = arith.constant 0 : index
    %c0_42 = arith.constant 0 : index
    %147 = vector.load %arg3[%c17, %c0_41, %c0_42] : memref<36x4x1xf32, #tpu.memory_space<vmem>>, vector<1x4x1xf32>
    %148 = vector.shape_cast %147 : vector<1x4x1xf32> to vector<4x1xf32>
    %149 = vector.shape_cast %148 : vector<4x1xf32> to vector<1x4x1xf32>
    %150 = vector.broadcast %149 : vector<1x4x1xf32> to vector<2x4x384xf32>
    %151 = vector.broadcast %146 : vector<2x1x384xf32> to vector<2x4x384xf32>
    %152 = arith.mulf %150, %151 : vector<2x4x384xf32>
    %153 = arith.addf %145, %152 : vector<2x4x384xf32>
    %154 = vector.extract_strided_slice %137 {offsets = [0, 2, 0], sizes = [2, 1, 384], strides = [1, 1, 1]} : vector<2x4x384xf32> to vector<2x1x384xf32>
    %c18 = arith.constant 18 : index
    %c0_43 = arith.constant 0 : index
    %c0_44 = arith.constant 0 : index
    %155 = vector.load %arg3[%c18, %c0_43, %c0_44] : memref<36x4x1xf32, #tpu.memory_space<vmem>>, vector<1x4x1xf32>
    %156 = vector.shape_cast %155 : vector<1x4x1xf32> to vector<4x1xf32>
    %157 = vector.shape_cast %156 : vector<4x1xf32> to vector<1x4x1xf32>
    %158 = vector.broadcast %157 : vector<1x4x1xf32> to vector<2x4x384xf32>
    %159 = vector.broadcast %154 : vector<2x1x384xf32> to vector<2x4x384xf32>
    %160 = arith.mulf %158, %159 : vector<2x4x384xf32>
    %161 = arith.addf %153, %160 : vector<2x4x384xf32>
    %162 = vector.extract_strided_slice %137 {offsets = [0, 3, 0], sizes = [2, 1, 384], strides = [1, 1, 1]} : vector<2x4x384xf32> to vector<2x1x384xf32>
    %c19 = arith.constant 19 : index
    %c0_45 = arith.constant 0 : index
    %c0_46 = arith.constant 0 : index
    %163 = vector.load %arg3[%c19, %c0_45, %c0_46] : memref<36x4x1xf32, #tpu.memory_space<vmem>>, vector<1x4x1xf32>
    %164 = vector.shape_cast %163 : vector<1x4x1xf32> to vector<4x1xf32>
    %165 = vector.shape_cast %164 : vector<4x1xf32> to vector<1x4x1xf32>
    %166 = vector.broadcast %165 : vector<1x4x1xf32> to vector<2x4x384xf32>
    %167 = vector.broadcast %162 : vector<2x1x384xf32> to vector<2x4x384xf32>
    %168 = arith.mulf %166, %167 : vector<2x4x384xf32>
    %169 = arith.addf %161, %168 : vector<2x4x384xf32>
    %170 = vector.extract_strided_slice %3 {offsets = [0, 0, 20], sizes = [2, 4, 384], strides = [1, 1, 1]} : vector<2x4x422xf32> to vector<2x4x384xf32>
    %171 = vector.extract_strided_slice %170 {offsets = [0, 0, 0], sizes = [2, 1, 384], strides = [1, 1, 1]} : vector<2x4x384xf32> to vector<2x1x384xf32>
    %c20 = arith.constant 20 : index
    %c0_47 = arith.constant 0 : index
    %c0_48 = arith.constant 0 : index
    %172 = vector.load %arg3[%c20, %c0_47, %c0_48] : memref<36x4x1xf32, #tpu.memory_space<vmem>>, vector<1x4x1xf32>
    %173 = vector.shape_cast %172 : vector<1x4x1xf32> to vector<4x1xf32>
    %174 = vector.shape_cast %173 : vector<4x1xf32> to vector<1x4x1xf32>
    %175 = vector.broadcast %174 : vector<1x4x1xf32> to vector<2x4x384xf32>
    %176 = vector.broadcast %171 : vector<2x1x384xf32> to vector<2x4x384xf32>
    %177 = arith.mulf %175, %176 : vector<2x4x384xf32>
    %178 = arith.addf %169, %177 : vector<2x4x384xf32>
    %179 = vector.extract_strided_slice %170 {offsets = [0, 1, 0], sizes = [2, 1, 384], strides = [1, 1, 1]} : vector<2x4x384xf32> to vector<2x1x384xf32>
    %c21 = arith.constant 21 : index
    %c0_49 = arith.constant 0 : index
    %c0_50 = arith.constant 0 : index
    %180 = vector.load %arg3[%c21, %c0_49, %c0_50] : memref<36x4x1xf32, #tpu.memory_space<vmem>>, vector<1x4x1xf32>
    %181 = vector.shape_cast %180 : vector<1x4x1xf32> to vector<4x1xf32>
    %182 = vector.shape_cast %181 : vector<4x1xf32> to vector<1x4x1xf32>
    %183 = vector.broadcast %182 : vector<1x4x1xf32> to vector<2x4x384xf32>
    %184 = vector.broadcast %179 : vector<2x1x384xf32> to vector<2x4x384xf32>
    %185 = arith.mulf %183, %184 : vector<2x4x384xf32>
    %186 = arith.addf %178, %185 : vector<2x4x384xf32>
    %187 = vector.extract_strided_slice %170 {offsets = [0, 2, 0], sizes = [2, 1, 384], strides = [1, 1, 1]} : vector<2x4x384xf32> to vector<2x1x384xf32>
    %c22 = arith.constant 22 : index
    %c0_51 = arith.constant 0 : index
    %c0_52 = arith.constant 0 : index
    %188 = vector.load %arg3[%c22, %c0_51, %c0_52] : memref<36x4x1xf32, #tpu.memory_space<vmem>>, vector<1x4x1xf32>
    %189 = vector.shape_cast %188 : vector<1x4x1xf32> to vector<4x1xf32>
    %190 = vector.shape_cast %189 : vector<4x1xf32> to vector<1x4x1xf32>
    %191 = vector.broadcast %190 : vector<1x4x1xf32> to vector<2x4x384xf32>
    %192 = vector.broadcast %187 : vector<2x1x384xf32> to vector<2x4x384xf32>
    %193 = arith.mulf %191, %192 : vector<2x4x384xf32>
    %194 = arith.addf %186, %193 : vector<2x4x384xf32>
    %195 = vector.extract_strided_slice %170 {offsets = [0, 3, 0], sizes = [2, 1, 384], strides = [1, 1, 1]} : vector<2x4x384xf32> to vector<2x1x384xf32>
    %c23 = arith.constant 23 : index
    %c0_53 = arith.constant 0 : index
    %c0_54 = arith.constant 0 : index
    %196 = vector.load %arg3[%c23, %c0_53, %c0_54] : memref<36x4x1xf32, #tpu.memory_space<vmem>>, vector<1x4x1xf32>
    %197 = vector.shape_cast %196 : vector<1x4x1xf32> to vector<4x1xf32>
    %198 = vector.shape_cast %197 : vector<4x1xf32> to vector<1x4x1xf32>
    %199 = vector.broadcast %198 : vector<1x4x1xf32> to vector<2x4x384xf32>
    %200 = vector.broadcast %195 : vector<2x1x384xf32> to vector<2x4x384xf32>
    %201 = arith.mulf %199, %200 : vector<2x4x384xf32>
    %202 = arith.addf %194, %201 : vector<2x4x384xf32>
    %203 = vector.extract_strided_slice %3 {offsets = [0, 0, 36], sizes = [2, 4, 384], strides = [1, 1, 1]} : vector<2x4x422xf32> to vector<2x4x384xf32>
    %204 = vector.extract_strided_slice %203 {offsets = [0, 0, 0], sizes = [2, 1, 384], strides = [1, 1, 1]} : vector<2x4x384xf32> to vector<2x1x384xf32>
    %c24 = arith.constant 24 : index
    %c0_55 = arith.constant 0 : index
    %c0_56 = arith.constant 0 : index
    %205 = vector.load %arg3[%c24, %c0_55, %c0_56] : memref<36x4x1xf32, #tpu.memory_space<vmem>>, vector<1x4x1xf32>
    %206 = vector.shape_cast %205 : vector<1x4x1xf32> to vector<4x1xf32>
    %207 = vector.shape_cast %206 : vector<4x1xf32> to vector<1x4x1xf32>
    %208 = vector.broadcast %207 : vector<1x4x1xf32> to vector<2x4x384xf32>
    %209 = vector.broadcast %204 : vector<2x1x384xf32> to vector<2x4x384xf32>
    %210 = arith.mulf %208, %209 : vector<2x4x384xf32>
    %211 = arith.addf %202, %210 : vector<2x4x384xf32>
    %212 = vector.extract_strided_slice %203 {offsets = [0, 1, 0], sizes = [2, 1, 384], strides = [1, 1, 1]} : vector<2x4x384xf32> to vector<2x1x384xf32>
    %c25 = arith.constant 25 : index
    %c0_57 = arith.constant 0 : index
    %c0_58 = arith.constant 0 : index
    %213 = vector.load %arg3[%c25, %c0_57, %c0_58] : memref<36x4x1xf32, #tpu.memory_space<vmem>>, vector<1x4x1xf32>
    %214 = vector.shape_cast %213 : vector<1x4x1xf32> to vector<4x1xf32>
    %215 = vector.shape_cast %214 : vector<4x1xf32> to vector<1x4x1xf32>
    %216 = vector.broadcast %215 : vector<1x4x1xf32> to vector<2x4x384xf32>
    %217 = vector.broadcast %212 : vector<2x1x384xf32> to vector<2x4x384xf32>
    %218 = arith.mulf %216, %217 : vector<2x4x384xf32>
    %219 = arith.addf %211, %218 : vector<2x4x384xf32>
    %220 = vector.extract_strided_slice %203 {offsets = [0, 2, 0], sizes = [2, 1, 384], strides = [1, 1, 1]} : vector<2x4x384xf32> to vector<2x1x384xf32>
    %c26 = arith.constant 26 : index
    %c0_59 = arith.constant 0 : index
    %c0_60 = arith.constant 0 : index
    %221 = vector.load %arg3[%c26, %c0_59, %c0_60] : memref<36x4x1xf32, #tpu.memory_space<vmem>>, vector<1x4x1xf32>
    %222 = vector.shape_cast %221 : vector<1x4x1xf32> to vector<4x1xf32>
    %223 = vector.shape_cast %222 : vector<4x1xf32> to vector<1x4x1xf32>
    %224 = vector.broadcast %223 : vector<1x4x1xf32> to vector<2x4x384xf32>
    %225 = vector.broadcast %220 : vector<2x1x384xf32> to vector<2x4x384xf32>
    %226 = arith.mulf %224, %225 : vector<2x4x384xf32>
    %227 = arith.addf %219, %226 : vector<2x4x384xf32>
    %228 = vector.extract_strided_slice %203 {offsets = [0, 3, 0], sizes = [2, 1, 384], strides = [1, 1, 1]} : vector<2x4x384xf32> to vector<2x1x384xf32>
    %c27 = arith.constant 27 : index
    %c0_61 = arith.constant 0 : index
    %c0_62 = arith.constant 0 : index
    %229 = vector.load %arg3[%c27, %c0_61, %c0_62] : memref<36x4x1xf32, #tpu.memory_space<vmem>>, vector<1x4x1xf32>
    %230 = vector.shape_cast %229 : vector<1x4x1xf32> to vector<4x1xf32>
    %231 = vector.shape_cast %230 : vector<4x1xf32> to vector<1x4x1xf32>
    %232 = vector.broadcast %231 : vector<1x4x1xf32> to vector<2x4x384xf32>
    %233 = vector.broadcast %228 : vector<2x1x384xf32> to vector<2x4x384xf32>
    %234 = arith.mulf %232, %233 : vector<2x4x384xf32>
    %235 = arith.addf %227, %234 : vector<2x4x384xf32>
    %236 = vector.extract_strided_slice %3 {offsets = [0, 0, 37], sizes = [2, 4, 384], strides = [1, 1, 1]} : vector<2x4x422xf32> to vector<2x4x384xf32>
    %237 = vector.extract_strided_slice %236 {offsets = [0, 0, 0], sizes = [2, 1, 384], strides = [1, 1, 1]} : vector<2x4x384xf32> to vector<2x1x384xf32>
    %c28 = arith.constant 28 : index
    %c0_63 = arith.constant 0 : index
    %c0_64 = arith.constant 0 : index
    %238 = vector.load %arg3[%c28, %c0_63, %c0_64] : memref<36x4x1xf32, #tpu.memory_space<vmem>>, vector<1x4x1xf32>
    %239 = vector.shape_cast %238 : vector<1x4x1xf32> to vector<4x1xf32>
    %240 = vector.shape_cast %239 : vector<4x1xf32> to vector<1x4x1xf32>
    %241 = vector.broadcast %240 : vector<1x4x1xf32> to vector<2x4x384xf32>
    %242 = vector.broadcast %237 : vector<2x1x384xf32> to vector<2x4x384xf32>
    %243 = arith.mulf %241, %242 : vector<2x4x384xf32>
    %244 = arith.addf %235, %243 : vector<2x4x384xf32>
    %245 = vector.extract_strided_slice %236 {offsets = [0, 1, 0], sizes = [2, 1, 384], strides = [1, 1, 1]} : vector<2x4x384xf32> to vector<2x1x384xf32>
    %c29 = arith.constant 29 : index
    %c0_65 = arith.constant 0 : index
    %c0_66 = arith.constant 0 : index
    %246 = vector.load %arg3[%c29, %c0_65, %c0_66] : memref<36x4x1xf32, #tpu.memory_space<vmem>>, vector<1x4x1xf32>
    %247 = vector.shape_cast %246 : vector<1x4x1xf32> to vector<4x1xf32>
    %248 = vector.shape_cast %247 : vector<4x1xf32> to vector<1x4x1xf32>
    %249 = vector.broadcast %248 : vector<1x4x1xf32> to vector<2x4x384xf32>
    %250 = vector.broadcast %245 : vector<2x1x384xf32> to vector<2x4x384xf32>
    %251 = arith.mulf %249, %250 : vector<2x4x384xf32>
    %252 = arith.addf %244, %251 : vector<2x4x384xf32>
    %253 = vector.extract_strided_slice %236 {offsets = [0, 2, 0], sizes = [2, 1, 384], strides = [1, 1, 1]} : vector<2x4x384xf32> to vector<2x1x384xf32>
    %c30 = arith.constant 30 : index
    %c0_67 = arith.constant 0 : index
    %c0_68 = arith.constant 0 : index
    %254 = vector.load %arg3[%c30, %c0_67, %c0_68] : memref<36x4x1xf32, #tpu.memory_space<vmem>>, vector<1x4x1xf32>
    %255 = vector.shape_cast %254 : vector<1x4x1xf32> to vector<4x1xf32>
    %256 = vector.shape_cast %255 : vector<4x1xf32> to vector<1x4x1xf32>
    %257 = vector.broadcast %256 : vector<1x4x1xf32> to vector<2x4x384xf32>
    %258 = vector.broadcast %253 : vector<2x1x384xf32> to vector<2x4x384xf32>
    %259 = arith.mulf %257, %258 : vector<2x4x384xf32>
    %260 = arith.addf %252, %259 : vector<2x4x384xf32>
    %261 = vector.extract_strided_slice %236 {offsets = [0, 3, 0], sizes = [2, 1, 384], strides = [1, 1, 1]} : vector<2x4x384xf32> to vector<2x1x384xf32>
    %c31 = arith.constant 31 : index
    %c0_69 = arith.constant 0 : index
    %c0_70 = arith.constant 0 : index
    %262 = vector.load %arg3[%c31, %c0_69, %c0_70] : memref<36x4x1xf32, #tpu.memory_space<vmem>>, vector<1x4x1xf32>
    %263 = vector.shape_cast %262 : vector<1x4x1xf32> to vector<4x1xf32>
    %264 = vector.shape_cast %263 : vector<4x1xf32> to vector<1x4x1xf32>
    %265 = vector.broadcast %264 : vector<1x4x1xf32> to vector<2x4x384xf32>
    %266 = vector.broadcast %261 : vector<2x1x384xf32> to vector<2x4x384xf32>
    %267 = arith.mulf %265, %266 : vector<2x4x384xf32>
    %268 = arith.addf %260, %267 : vector<2x4x384xf32>
    %269 = vector.extract_strided_slice %3 {offsets = [0, 0, 38], sizes = [2, 4, 384], strides = [1, 1, 1]} : vector<2x4x422xf32> to vector<2x4x384xf32>
    %270 = vector.extract_strided_slice %269 {offsets = [0, 0, 0], sizes = [2, 1, 384], strides = [1, 1, 1]} : vector<2x4x384xf32> to vector<2x1x384xf32>
    %c32 = arith.constant 32 : index
    %c0_71 = arith.constant 0 : index
    %c0_72 = arith.constant 0 : index
    %271 = vector.load %arg3[%c32, %c0_71, %c0_72] : memref<36x4x1xf32, #tpu.memory_space<vmem>>, vector<1x4x1xf32>
    %272 = vector.shape_cast %271 : vector<1x4x1xf32> to vector<4x1xf32>
    %273 = vector.shape_cast %272 : vector<4x1xf32> to vector<1x4x1xf32>
    %274 = vector.broadcast %273 : vector<1x4x1xf32> to vector<2x4x384xf32>
    %275 = vector.broadcast %270 : vector<2x1x384xf32> to vector<2x4x384xf32>
    %276 = arith.mulf %274, %275 : vector<2x4x384xf32>
    %277 = arith.addf %268, %276 : vector<2x4x384xf32>
    %278 = vector.extract_strided_slice %269 {offsets = [0, 1, 0], sizes = [2, 1, 384], strides = [1, 1, 1]} : vector<2x4x384xf32> to vector<2x1x384xf32>
    %c33 = arith.constant 33 : index
    %c0_73 = arith.constant 0 : index
    %c0_74 = arith.constant 0 : index
    %279 = vector.load %arg3[%c33, %c0_73, %c0_74] : memref<36x4x1xf32, #tpu.memory_space<vmem>>, vector<1x4x1xf32>
    %280 = vector.shape_cast %279 : vector<1x4x1xf32> to vector<4x1xf32>
    %281 = vector.shape_cast %280 : vector<4x1xf32> to vector<1x4x1xf32>
    %282 = vector.broadcast %281 : vector<1x4x1xf32> to vector<2x4x384xf32>
    %283 = vector.broadcast %278 : vector<2x1x384xf32> to vector<2x4x384xf32>
    %284 = arith.mulf %282, %283 : vector<2x4x384xf32>
    %285 = arith.addf %277, %284 : vector<2x4x384xf32>
    %286 = vector.extract_strided_slice %269 {offsets = [0, 2, 0], sizes = [2, 1, 384], strides = [1, 1, 1]} : vector<2x4x384xf32> to vector<2x1x384xf32>
    %c34 = arith.constant 34 : index
    %c0_75 = arith.constant 0 : index
    %c0_76 = arith.constant 0 : index
    %287 = vector.load %arg3[%c34, %c0_75, %c0_76] : memref<36x4x1xf32, #tpu.memory_space<vmem>>, vector<1x4x1xf32>
    %288 = vector.shape_cast %287 : vector<1x4x1xf32> to vector<4x1xf32>
    %289 = vector.shape_cast %288 : vector<4x1xf32> to vector<1x4x1xf32>
    %290 = vector.broadcast %289 : vector<1x4x1xf32> to vector<2x4x384xf32>
    %291 = vector.broadcast %286 : vector<2x1x384xf32> to vector<2x4x384xf32>
    %292 = arith.mulf %290, %291 : vector<2x4x384xf32>
    %293 = arith.addf %285, %292 : vector<2x4x384xf32>
    %294 = vector.extract_strided_slice %269 {offsets = [0, 3, 0], sizes = [2, 1, 384], strides = [1, 1, 1]} : vector<2x4x384xf32> to vector<2x1x384xf32>
    %c35 = arith.constant 35 : index
    %c0_77 = arith.constant 0 : index
    %c0_78 = arith.constant 0 : index
    %295 = vector.load %arg3[%c35, %c0_77, %c0_78] : memref<36x4x1xf32, #tpu.memory_space<vmem>>, vector<1x4x1xf32>
    %296 = vector.shape_cast %295 : vector<1x4x1xf32> to vector<4x1xf32>
    %297 = vector.shape_cast %296 : vector<4x1xf32> to vector<1x4x1xf32>
    %298 = vector.broadcast %297 : vector<1x4x1xf32> to vector<2x4x384xf32>
    %299 = vector.broadcast %294 : vector<2x1x384xf32> to vector<2x4x384xf32>
    %300 = arith.mulf %298, %299 : vector<2x4x384xf32>
    %301 = arith.addf %293, %300 : vector<2x4x384xf32>
    %c0_79 = arith.constant 0 : index
    %c0_80 = arith.constant 0 : index
    %302 = vector.load %arg4[%c0_79, %c0_80] : memref<4x1xf32, #tpu.memory_space<vmem>>, vector<4x1xf32>
    %303 = vector.shape_cast %302 : vector<4x1xf32> to vector<1x4x1xf32>
    %304 = vector.broadcast %303 : vector<1x4x1xf32> to vector<2x4x384xf32>
    %305 = arith.addf %301, %304 : vector<2x4x384xf32>
    %cst_81 = arith.constant 0.000000e+00 : f32
    %306 = vector.broadcast %cst_81 : f32 to vector<2x4x384xf32>
    %307 = arith.maximumf %305, %306 : vector<2x4x384xf32>
    %308 = vector.broadcast %1 : vector<1x1x384xf32> to vector<2x4x384xf32>
    %309 = arith.mulf %307, %308 : vector<2x4x384xf32>
    %cst_82 = arith.constant 0.000000e+00 : f32
    %310 = vector.broadcast %cst_82 : f32 to vector<2x4x19xf32>
    %311 = tpu.concatenate %310, %309, %310 in 2 : vector<2x4x19xf32>, vector<2x4x384xf32>, vector<2x4x19xf32> -> vector<2x4x422xf32>
    %cst_83 = arith.constant 0.000000e+00 : f32
    %312 = vector.broadcast %cst_83 : f32 to vector<2x4x384xf32>
    %313 = vector.extract_strided_slice %311 {offsets = [0, 0, 0], sizes = [2, 4, 384], strides = [1, 1, 1]} : vector<2x4x422xf32> to vector<2x4x384xf32>
    %314 = vector.extract_strided_slice %313 {offsets = [0, 0, 0], sizes = [2, 1, 384], strides = [1, 1, 1]} : vector<2x4x384xf32> to vector<2x1x384xf32>
    %c0_84 = arith.constant 0 : index
    %c0_85 = arith.constant 0 : index
    %c0_86 = arith.constant 0 : index
    %315 = vector.load %arg5[%c0_84, %c0_85, %c0_86] : memref<36x4x1xf32, #tpu.memory_space<vmem>>, vector<1x4x1xf32>
    %316 = vector.shape_cast %315 : vector<1x4x1xf32> to vector<4x1xf32>
    %317 = vector.shape_cast %316 : vector<4x1xf32> to vector<1x4x1xf32>
    %318 = vector.broadcast %317 : vector<1x4x1xf32> to vector<2x4x384xf32>
    %319 = vector.broadcast %314 : vector<2x1x384xf32> to vector<2x4x384xf32>
    %320 = arith.mulf %318, %319 : vector<2x4x384xf32>
    %321 = arith.addf %312, %320 : vector<2x4x384xf32>
    %322 = vector.extract_strided_slice %313 {offsets = [0, 1, 0], sizes = [2, 1, 384], strides = [1, 1, 1]} : vector<2x4x384xf32> to vector<2x1x384xf32>
    %c1_87 = arith.constant 1 : index
    %c0_88 = arith.constant 0 : index
    %c0_89 = arith.constant 0 : index
    %323 = vector.load %arg5[%c1_87, %c0_88, %c0_89] : memref<36x4x1xf32, #tpu.memory_space<vmem>>, vector<1x4x1xf32>
    %324 = vector.shape_cast %323 : vector<1x4x1xf32> to vector<4x1xf32>
    %325 = vector.shape_cast %324 : vector<4x1xf32> to vector<1x4x1xf32>
    %326 = vector.broadcast %325 : vector<1x4x1xf32> to vector<2x4x384xf32>
    %327 = vector.broadcast %322 : vector<2x1x384xf32> to vector<2x4x384xf32>
    %328 = arith.mulf %326, %327 : vector<2x4x384xf32>
    %329 = arith.addf %321, %328 : vector<2x4x384xf32>
    %330 = vector.extract_strided_slice %313 {offsets = [0, 2, 0], sizes = [2, 1, 384], strides = [1, 1, 1]} : vector<2x4x384xf32> to vector<2x1x384xf32>
    %c2_90 = arith.constant 2 : index
    %c0_91 = arith.constant 0 : index
    %c0_92 = arith.constant 0 : index
    %331 = vector.load %arg5[%c2_90, %c0_91, %c0_92] : memref<36x4x1xf32, #tpu.memory_space<vmem>>, vector<1x4x1xf32>
    %332 = vector.shape_cast %331 : vector<1x4x1xf32> to vector<4x1xf32>
    %333 = vector.shape_cast %332 : vector<4x1xf32> to vector<1x4x1xf32>
    %334 = vector.broadcast %333 : vector<1x4x1xf32> to vector<2x4x384xf32>
    %335 = vector.broadcast %330 : vector<2x1x384xf32> to vector<2x4x384xf32>
    %336 = arith.mulf %334, %335 : vector<2x4x384xf32>
    %337 = arith.addf %329, %336 : vector<2x4x384xf32>
    %338 = vector.extract_strided_slice %313 {offsets = [0, 3, 0], sizes = [2, 1, 384], strides = [1, 1, 1]} : vector<2x4x384xf32> to vector<2x1x384xf32>
    %c3_93 = arith.constant 3 : index
    %c0_94 = arith.constant 0 : index
    %c0_95 = arith.constant 0 : index
    %339 = vector.load %arg5[%c3_93, %c0_94, %c0_95] : memref<36x4x1xf32, #tpu.memory_space<vmem>>, vector<1x4x1xf32>
    %340 = vector.shape_cast %339 : vector<1x4x1xf32> to vector<4x1xf32>
    %341 = vector.shape_cast %340 : vector<4x1xf32> to vector<1x4x1xf32>
    %342 = vector.broadcast %341 : vector<1x4x1xf32> to vector<2x4x384xf32>
    %343 = vector.broadcast %338 : vector<2x1x384xf32> to vector<2x4x384xf32>
    %344 = arith.mulf %342, %343 : vector<2x4x384xf32>
    %345 = arith.addf %337, %344 : vector<2x4x384xf32>
    %346 = vector.extract_strided_slice %311 {offsets = [0, 0, 1], sizes = [2, 4, 384], strides = [1, 1, 1]} : vector<2x4x422xf32> to vector<2x4x384xf32>
    %347 = vector.extract_strided_slice %346 {offsets = [0, 0, 0], sizes = [2, 1, 384], strides = [1, 1, 1]} : vector<2x4x384xf32> to vector<2x1x384xf32>
    %c4_96 = arith.constant 4 : index
    %c0_97 = arith.constant 0 : index
    %c0_98 = arith.constant 0 : index
    %348 = vector.load %arg5[%c4_96, %c0_97, %c0_98] : memref<36x4x1xf32, #tpu.memory_space<vmem>>, vector<1x4x1xf32>
    %349 = vector.shape_cast %348 : vector<1x4x1xf32> to vector<4x1xf32>
    %350 = vector.shape_cast %349 : vector<4x1xf32> to vector<1x4x1xf32>
    %351 = vector.broadcast %350 : vector<1x4x1xf32> to vector<2x4x384xf32>
    %352 = vector.broadcast %347 : vector<2x1x384xf32> to vector<2x4x384xf32>
    %353 = arith.mulf %351, %352 : vector<2x4x384xf32>
    %354 = arith.addf %345, %353 : vector<2x4x384xf32>
    %355 = vector.extract_strided_slice %346 {offsets = [0, 1, 0], sizes = [2, 1, 384], strides = [1, 1, 1]} : vector<2x4x384xf32> to vector<2x1x384xf32>
    %c5_99 = arith.constant 5 : index
    %c0_100 = arith.constant 0 : index
    %c0_101 = arith.constant 0 : index
    %356 = vector.load %arg5[%c5_99, %c0_100, %c0_101] : memref<36x4x1xf32, #tpu.memory_space<vmem>>, vector<1x4x1xf32>
    %357 = vector.shape_cast %356 : vector<1x4x1xf32> to vector<4x1xf32>
    %358 = vector.shape_cast %357 : vector<4x1xf32> to vector<1x4x1xf32>
    %359 = vector.broadcast %358 : vector<1x4x1xf32> to vector<2x4x384xf32>
    %360 = vector.broadcast %355 : vector<2x1x384xf32> to vector<2x4x384xf32>
    %361 = arith.mulf %359, %360 : vector<2x4x384xf32>
    %362 = arith.addf %354, %361 : vector<2x4x384xf32>
    %363 = vector.extract_strided_slice %346 {offsets = [0, 2, 0], sizes = [2, 1, 384], strides = [1, 1, 1]} : vector<2x4x384xf32> to vector<2x1x384xf32>
    %c6_102 = arith.constant 6 : index
    %c0_103 = arith.constant 0 : index
    %c0_104 = arith.constant 0 : index
    %364 = vector.load %arg5[%c6_102, %c0_103, %c0_104] : memref<36x4x1xf32, #tpu.memory_space<vmem>>, vector<1x4x1xf32>
    %365 = vector.shape_cast %364 : vector<1x4x1xf32> to vector<4x1xf32>
    %366 = vector.shape_cast %365 : vector<4x1xf32> to vector<1x4x1xf32>
    %367 = vector.broadcast %366 : vector<1x4x1xf32> to vector<2x4x384xf32>
    %368 = vector.broadcast %363 : vector<2x1x384xf32> to vector<2x4x384xf32>
    %369 = arith.mulf %367, %368 : vector<2x4x384xf32>
    %370 = arith.addf %362, %369 : vector<2x4x384xf32>
    %371 = vector.extract_strided_slice %346 {offsets = [0, 3, 0], sizes = [2, 1, 384], strides = [1, 1, 1]} : vector<2x4x384xf32> to vector<2x1x384xf32>
    %c7_105 = arith.constant 7 : index
    %c0_106 = arith.constant 0 : index
    %c0_107 = arith.constant 0 : index
    %372 = vector.load %arg5[%c7_105, %c0_106, %c0_107] : memref<36x4x1xf32, #tpu.memory_space<vmem>>, vector<1x4x1xf32>
    %373 = vector.shape_cast %372 : vector<1x4x1xf32> to vector<4x1xf32>
    %374 = vector.shape_cast %373 : vector<4x1xf32> to vector<1x4x1xf32>
    %375 = vector.broadcast %374 : vector<1x4x1xf32> to vector<2x4x384xf32>
    %376 = vector.broadcast %371 : vector<2x1x384xf32> to vector<2x4x384xf32>
    %377 = arith.mulf %375, %376 : vector<2x4x384xf32>
    %378 = arith.addf %370, %377 : vector<2x4x384xf32>
    %379 = vector.extract_strided_slice %311 {offsets = [0, 0, 2], sizes = [2, 4, 384], strides = [1, 1, 1]} : vector<2x4x422xf32> to vector<2x4x384xf32>
    %380 = vector.extract_strided_slice %379 {offsets = [0, 0, 0], sizes = [2, 1, 384], strides = [1, 1, 1]} : vector<2x4x384xf32> to vector<2x1x384xf32>
    %c8_108 = arith.constant 8 : index
    %c0_109 = arith.constant 0 : index
    %c0_110 = arith.constant 0 : index
    %381 = vector.load %arg5[%c8_108, %c0_109, %c0_110] : memref<36x4x1xf32, #tpu.memory_space<vmem>>, vector<1x4x1xf32>
    %382 = vector.shape_cast %381 : vector<1x4x1xf32> to vector<4x1xf32>
    %383 = vector.shape_cast %382 : vector<4x1xf32> to vector<1x4x1xf32>
    %384 = vector.broadcast %383 : vector<1x4x1xf32> to vector<2x4x384xf32>
    %385 = vector.broadcast %380 : vector<2x1x384xf32> to vector<2x4x384xf32>
    %386 = arith.mulf %384, %385 : vector<2x4x384xf32>
    %387 = arith.addf %378, %386 : vector<2x4x384xf32>
    %388 = vector.extract_strided_slice %379 {offsets = [0, 1, 0], sizes = [2, 1, 384], strides = [1, 1, 1]} : vector<2x4x384xf32> to vector<2x1x384xf32>
    %c9_111 = arith.constant 9 : index
    %c0_112 = arith.constant 0 : index
    %c0_113 = arith.constant 0 : index
    %389 = vector.load %arg5[%c9_111, %c0_112, %c0_113] : memref<36x4x1xf32, #tpu.memory_space<vmem>>, vector<1x4x1xf32>
    %390 = vector.shape_cast %389 : vector<1x4x1xf32> to vector<4x1xf32>
    %391 = vector.shape_cast %390 : vector<4x1xf32> to vector<1x4x1xf32>
    %392 = vector.broadcast %391 : vector<1x4x1xf32> to vector<2x4x384xf32>
    %393 = vector.broadcast %388 : vector<2x1x384xf32> to vector<2x4x384xf32>
    %394 = arith.mulf %392, %393 : vector<2x4x384xf32>
    %395 = arith.addf %387, %394 : vector<2x4x384xf32>
    %396 = vector.extract_strided_slice %379 {offsets = [0, 2, 0], sizes = [2, 1, 384], strides = [1, 1, 1]} : vector<2x4x384xf32> to vector<2x1x384xf32>
    %c10_114 = arith.constant 10 : index
    %c0_115 = arith.constant 0 : index
    %c0_116 = arith.constant 0 : index
    %397 = vector.load %arg5[%c10_114, %c0_115, %c0_116] : memref<36x4x1xf32, #tpu.memory_space<vmem>>, vector<1x4x1xf32>
    %398 = vector.shape_cast %397 : vector<1x4x1xf32> to vector<4x1xf32>
    %399 = vector.shape_cast %398 : vector<4x1xf32> to vector<1x4x1xf32>
    %400 = vector.broadcast %399 : vector<1x4x1xf32> to vector<2x4x384xf32>
    %401 = vector.broadcast %396 : vector<2x1x384xf32> to vector<2x4x384xf32>
    %402 = arith.mulf %400, %401 : vector<2x4x384xf32>
    %403 = arith.addf %395, %402 : vector<2x4x384xf32>
    %404 = vector.extract_strided_slice %379 {offsets = [0, 3, 0], sizes = [2, 1, 384], strides = [1, 1, 1]} : vector<2x4x384xf32> to vector<2x1x384xf32>
    %c11_117 = arith.constant 11 : index
    %c0_118 = arith.constant 0 : index
    %c0_119 = arith.constant 0 : index
    %405 = vector.load %arg5[%c11_117, %c0_118, %c0_119] : memref<36x4x1xf32, #tpu.memory_space<vmem>>, vector<1x4x1xf32>
    %406 = vector.shape_cast %405 : vector<1x4x1xf32> to vector<4x1xf32>
    %407 = vector.shape_cast %406 : vector<4x1xf32> to vector<1x4x1xf32>
    %408 = vector.broadcast %407 : vector<1x4x1xf32> to vector<2x4x384xf32>
    %409 = vector.broadcast %404 : vector<2x1x384xf32> to vector<2x4x384xf32>
    %410 = arith.mulf %408, %409 : vector<2x4x384xf32>
    %411 = arith.addf %403, %410 : vector<2x4x384xf32>
    %412 = vector.extract_strided_slice %311 {offsets = [0, 0, 18], sizes = [2, 4, 384], strides = [1, 1, 1]} : vector<2x4x422xf32> to vector<2x4x384xf32>
    %413 = vector.extract_strided_slice %412 {offsets = [0, 0, 0], sizes = [2, 1, 384], strides = [1, 1, 1]} : vector<2x4x384xf32> to vector<2x1x384xf32>
    %c12_120 = arith.constant 12 : index
    %c0_121 = arith.constant 0 : index
    %c0_122 = arith.constant 0 : index
    %414 = vector.load %arg5[%c12_120, %c0_121, %c0_122] : memref<36x4x1xf32, #tpu.memory_space<vmem>>, vector<1x4x1xf32>
    %415 = vector.shape_cast %414 : vector<1x4x1xf32> to vector<4x1xf32>
    %416 = vector.shape_cast %415 : vector<4x1xf32> to vector<1x4x1xf32>
    %417 = vector.broadcast %416 : vector<1x4x1xf32> to vector<2x4x384xf32>
    %418 = vector.broadcast %413 : vector<2x1x384xf32> to vector<2x4x384xf32>
    %419 = arith.mulf %417, %418 : vector<2x4x384xf32>
    %420 = arith.addf %411, %419 : vector<2x4x384xf32>
    %421 = vector.extract_strided_slice %412 {offsets = [0, 1, 0], sizes = [2, 1, 384], strides = [1, 1, 1]} : vector<2x4x384xf32> to vector<2x1x384xf32>
    %c13_123 = arith.constant 13 : index
    %c0_124 = arith.constant 0 : index
    %c0_125 = arith.constant 0 : index
    %422 = vector.load %arg5[%c13_123, %c0_124, %c0_125] : memref<36x4x1xf32, #tpu.memory_space<vmem>>, vector<1x4x1xf32>
    %423 = vector.shape_cast %422 : vector<1x4x1xf32> to vector<4x1xf32>
    %424 = vector.shape_cast %423 : vector<4x1xf32> to vector<1x4x1xf32>
    %425 = vector.broadcast %424 : vector<1x4x1xf32> to vector<2x4x384xf32>
    %426 = vector.broadcast %421 : vector<2x1x384xf32> to vector<2x4x384xf32>
    %427 = arith.mulf %425, %426 : vector<2x4x384xf32>
    %428 = arith.addf %420, %427 : vector<2x4x384xf32>
    %429 = vector.extract_strided_slice %412 {offsets = [0, 2, 0], sizes = [2, 1, 384], strides = [1, 1, 1]} : vector<2x4x384xf32> to vector<2x1x384xf32>
    %c14_126 = arith.constant 14 : index
    %c0_127 = arith.constant 0 : index
    %c0_128 = arith.constant 0 : index
    %430 = vector.load %arg5[%c14_126, %c0_127, %c0_128] : memref<36x4x1xf32, #tpu.memory_space<vmem>>, vector<1x4x1xf32>
    %431 = vector.shape_cast %430 : vector<1x4x1xf32> to vector<4x1xf32>
    %432 = vector.shape_cast %431 : vector<4x1xf32> to vector<1x4x1xf32>
    %433 = vector.broadcast %432 : vector<1x4x1xf32> to vector<2x4x384xf32>
    %434 = vector.broadcast %429 : vector<2x1x384xf32> to vector<2x4x384xf32>
    %435 = arith.mulf %433, %434 : vector<2x4x384xf32>
    %436 = arith.addf %428, %435 : vector<2x4x384xf32>
    %437 = vector.extract_strided_slice %412 {offsets = [0, 3, 0], sizes = [2, 1, 384], strides = [1, 1, 1]} : vector<2x4x384xf32> to vector<2x1x384xf32>
    %c15_129 = arith.constant 15 : index
    %c0_130 = arith.constant 0 : index
    %c0_131 = arith.constant 0 : index
    %438 = vector.load %arg5[%c15_129, %c0_130, %c0_131] : memref<36x4x1xf32, #tpu.memory_space<vmem>>, vector<1x4x1xf32>
    %439 = vector.shape_cast %438 : vector<1x4x1xf32> to vector<4x1xf32>
    %440 = vector.shape_cast %439 : vector<4x1xf32> to vector<1x4x1xf32>
    %441 = vector.broadcast %440 : vector<1x4x1xf32> to vector<2x4x384xf32>
    %442 = vector.broadcast %437 : vector<2x1x384xf32> to vector<2x4x384xf32>
    %443 = arith.mulf %441, %442 : vector<2x4x384xf32>
    %444 = arith.addf %436, %443 : vector<2x4x384xf32>
    %445 = vector.extract_strided_slice %311 {offsets = [0, 0, 19], sizes = [2, 4, 384], strides = [1, 1, 1]} : vector<2x4x422xf32> to vector<2x4x384xf32>
    %446 = vector.extract_strided_slice %445 {offsets = [0, 0, 0], sizes = [2, 1, 384], strides = [1, 1, 1]} : vector<2x4x384xf32> to vector<2x1x384xf32>
    %c16_132 = arith.constant 16 : index
    %c0_133 = arith.constant 0 : index
    %c0_134 = arith.constant 0 : index
    %447 = vector.load %arg5[%c16_132, %c0_133, %c0_134] : memref<36x4x1xf32, #tpu.memory_space<vmem>>, vector<1x4x1xf32>
    %448 = vector.shape_cast %447 : vector<1x4x1xf32> to vector<4x1xf32>
    %449 = vector.shape_cast %448 : vector<4x1xf32> to vector<1x4x1xf32>
    %450 = vector.broadcast %449 : vector<1x4x1xf32> to vector<2x4x384xf32>
    %451 = vector.broadcast %446 : vector<2x1x384xf32> to vector<2x4x384xf32>
    %452 = arith.mulf %450, %451 : vector<2x4x384xf32>
    %453 = arith.addf %444, %452 : vector<2x4x384xf32>
    %454 = vector.extract_strided_slice %445 {offsets = [0, 1, 0], sizes = [2, 1, 384], strides = [1, 1, 1]} : vector<2x4x384xf32> to vector<2x1x384xf32>
    %c17_135 = arith.constant 17 : index
    %c0_136 = arith.constant 0 : index
    %c0_137 = arith.constant 0 : index
    %455 = vector.load %arg5[%c17_135, %c0_136, %c0_137] : memref<36x4x1xf32, #tpu.memory_space<vmem>>, vector<1x4x1xf32>
    %456 = vector.shape_cast %455 : vector<1x4x1xf32> to vector<4x1xf32>
    %457 = vector.shape_cast %456 : vector<4x1xf32> to vector<1x4x1xf32>
    %458 = vector.broadcast %457 : vector<1x4x1xf32> to vector<2x4x384xf32>
    %459 = vector.broadcast %454 : vector<2x1x384xf32> to vector<2x4x384xf32>
    %460 = arith.mulf %458, %459 : vector<2x4x384xf32>
    %461 = arith.addf %453, %460 : vector<2x4x384xf32>
    %462 = vector.extract_strided_slice %445 {offsets = [0, 2, 0], sizes = [2, 1, 384], strides = [1, 1, 1]} : vector<2x4x384xf32> to vector<2x1x384xf32>
    %c18_138 = arith.constant 18 : index
    %c0_139 = arith.constant 0 : index
    %c0_140 = arith.constant 0 : index
    %463 = vector.load %arg5[%c18_138, %c0_139, %c0_140] : memref<36x4x1xf32, #tpu.memory_space<vmem>>, vector<1x4x1xf32>
    %464 = vector.shape_cast %463 : vector<1x4x1xf32> to vector<4x1xf32>
    %465 = vector.shape_cast %464 : vector<4x1xf32> to vector<1x4x1xf32>
    %466 = vector.broadcast %465 : vector<1x4x1xf32> to vector<2x4x384xf32>
    %467 = vector.broadcast %462 : vector<2x1x384xf32> to vector<2x4x384xf32>
    %468 = arith.mulf %466, %467 : vector<2x4x384xf32>
    %469 = arith.addf %461, %468 : vector<2x4x384xf32>
    %470 = vector.extract_strided_slice %445 {offsets = [0, 3, 0], sizes = [2, 1, 384], strides = [1, 1, 1]} : vector<2x4x384xf32> to vector<2x1x384xf32>
    %c19_141 = arith.constant 19 : index
    %c0_142 = arith.constant 0 : index
    %c0_143 = arith.constant 0 : index
    %471 = vector.load %arg5[%c19_141, %c0_142, %c0_143] : memref<36x4x1xf32, #tpu.memory_space<vmem>>, vector<1x4x1xf32>
    %472 = vector.shape_cast %471 : vector<1x4x1xf32> to vector<4x1xf32>
    %473 = vector.shape_cast %472 : vector<4x1xf32> to vector<1x4x1xf32>
    %474 = vector.broadcast %473 : vector<1x4x1xf32> to vector<2x4x384xf32>
    %475 = vector.broadcast %470 : vector<2x1x384xf32> to vector<2x4x384xf32>
    %476 = arith.mulf %474, %475 : vector<2x4x384xf32>
    %477 = arith.addf %469, %476 : vector<2x4x384xf32>
    %478 = vector.extract_strided_slice %311 {offsets = [0, 0, 20], sizes = [2, 4, 384], strides = [1, 1, 1]} : vector<2x4x422xf32> to vector<2x4x384xf32>
    %479 = vector.extract_strided_slice %478 {offsets = [0, 0, 0], sizes = [2, 1, 384], strides = [1, 1, 1]} : vector<2x4x384xf32> to vector<2x1x384xf32>
    %c20_144 = arith.constant 20 : index
    %c0_145 = arith.constant 0 : index
    %c0_146 = arith.constant 0 : index
    %480 = vector.load %arg5[%c20_144, %c0_145, %c0_146] : memref<36x4x1xf32, #tpu.memory_space<vmem>>, vector<1x4x1xf32>
    %481 = vector.shape_cast %480 : vector<1x4x1xf32> to vector<4x1xf32>
    %482 = vector.shape_cast %481 : vector<4x1xf32> to vector<1x4x1xf32>
    %483 = vector.broadcast %482 : vector<1x4x1xf32> to vector<2x4x384xf32>
    %484 = vector.broadcast %479 : vector<2x1x384xf32> to vector<2x4x384xf32>
    %485 = arith.mulf %483, %484 : vector<2x4x384xf32>
    %486 = arith.addf %477, %485 : vector<2x4x384xf32>
    %487 = vector.extract_strided_slice %478 {offsets = [0, 1, 0], sizes = [2, 1, 384], strides = [1, 1, 1]} : vector<2x4x384xf32> to vector<2x1x384xf32>
    %c21_147 = arith.constant 21 : index
    %c0_148 = arith.constant 0 : index
    %c0_149 = arith.constant 0 : index
    %488 = vector.load %arg5[%c21_147, %c0_148, %c0_149] : memref<36x4x1xf32, #tpu.memory_space<vmem>>, vector<1x4x1xf32>
    %489 = vector.shape_cast %488 : vector<1x4x1xf32> to vector<4x1xf32>
    %490 = vector.shape_cast %489 : vector<4x1xf32> to vector<1x4x1xf32>
    %491 = vector.broadcast %490 : vector<1x4x1xf32> to vector<2x4x384xf32>
    %492 = vector.broadcast %487 : vector<2x1x384xf32> to vector<2x4x384xf32>
    %493 = arith.mulf %491, %492 : vector<2x4x384xf32>
    %494 = arith.addf %486, %493 : vector<2x4x384xf32>
    %495 = vector.extract_strided_slice %478 {offsets = [0, 2, 0], sizes = [2, 1, 384], strides = [1, 1, 1]} : vector<2x4x384xf32> to vector<2x1x384xf32>
    %c22_150 = arith.constant 22 : index
    %c0_151 = arith.constant 0 : index
    %c0_152 = arith.constant 0 : index
    %496 = vector.load %arg5[%c22_150, %c0_151, %c0_152] : memref<36x4x1xf32, #tpu.memory_space<vmem>>, vector<1x4x1xf32>
    %497 = vector.shape_cast %496 : vector<1x4x1xf32> to vector<4x1xf32>
    %498 = vector.shape_cast %497 : vector<4x1xf32> to vector<1x4x1xf32>
    %499 = vector.broadcast %498 : vector<1x4x1xf32> to vector<2x4x384xf32>
    %500 = vector.broadcast %495 : vector<2x1x384xf32> to vector<2x4x384xf32>
    %501 = arith.mulf %499, %500 : vector<2x4x384xf32>
    %502 = arith.addf %494, %501 : vector<2x4x384xf32>
    %503 = vector.extract_strided_slice %478 {offsets = [0, 3, 0], sizes = [2, 1, 384], strides = [1, 1, 1]} : vector<2x4x384xf32> to vector<2x1x384xf32>
    %c23_153 = arith.constant 23 : index
    %c0_154 = arith.constant 0 : index
    %c0_155 = arith.constant 0 : index
    %504 = vector.load %arg5[%c23_153, %c0_154, %c0_155] : memref<36x4x1xf32, #tpu.memory_space<vmem>>, vector<1x4x1xf32>
    %505 = vector.shape_cast %504 : vector<1x4x1xf32> to vector<4x1xf32>
    %506 = vector.shape_cast %505 : vector<4x1xf32> to vector<1x4x1xf32>
    %507 = vector.broadcast %506 : vector<1x4x1xf32> to vector<2x4x384xf32>
    %508 = vector.broadcast %503 : vector<2x1x384xf32> to vector<2x4x384xf32>
    %509 = arith.mulf %507, %508 : vector<2x4x384xf32>
    %510 = arith.addf %502, %509 : vector<2x4x384xf32>
    %511 = vector.extract_strided_slice %311 {offsets = [0, 0, 36], sizes = [2, 4, 384], strides = [1, 1, 1]} : vector<2x4x422xf32> to vector<2x4x384xf32>
    %512 = vector.extract_strided_slice %511 {offsets = [0, 0, 0], sizes = [2, 1, 384], strides = [1, 1, 1]} : vector<2x4x384xf32> to vector<2x1x384xf32>
    %c24_156 = arith.constant 24 : index
    %c0_157 = arith.constant 0 : index
    %c0_158 = arith.constant 0 : index
    %513 = vector.load %arg5[%c24_156, %c0_157, %c0_158] : memref<36x4x1xf32, #tpu.memory_space<vmem>>, vector<1x4x1xf32>
    %514 = vector.shape_cast %513 : vector<1x4x1xf32> to vector<4x1xf32>
    %515 = vector.shape_cast %514 : vector<4x1xf32> to vector<1x4x1xf32>
    %516 = vector.broadcast %515 : vector<1x4x1xf32> to vector<2x4x384xf32>
    %517 = vector.broadcast %512 : vector<2x1x384xf32> to vector<2x4x384xf32>
    %518 = arith.mulf %516, %517 : vector<2x4x384xf32>
    %519 = arith.addf %510, %518 : vector<2x4x384xf32>
    %520 = vector.extract_strided_slice %511 {offsets = [0, 1, 0], sizes = [2, 1, 384], strides = [1, 1, 1]} : vector<2x4x384xf32> to vector<2x1x384xf32>
    %c25_159 = arith.constant 25 : index
    %c0_160 = arith.constant 0 : index
    %c0_161 = arith.constant 0 : index
    %521 = vector.load %arg5[%c25_159, %c0_160, %c0_161] : memref<36x4x1xf32, #tpu.memory_space<vmem>>, vector<1x4x1xf32>
    %522 = vector.shape_cast %521 : vector<1x4x1xf32> to vector<4x1xf32>
    %523 = vector.shape_cast %522 : vector<4x1xf32> to vector<1x4x1xf32>
    %524 = vector.broadcast %523 : vector<1x4x1xf32> to vector<2x4x384xf32>
    %525 = vector.broadcast %520 : vector<2x1x384xf32> to vector<2x4x384xf32>
    %526 = arith.mulf %524, %525 : vector<2x4x384xf32>
    %527 = arith.addf %519, %526 : vector<2x4x384xf32>
    %528 = vector.extract_strided_slice %511 {offsets = [0, 2, 0], sizes = [2, 1, 384], strides = [1, 1, 1]} : vector<2x4x384xf32> to vector<2x1x384xf32>
    %c26_162 = arith.constant 26 : index
    %c0_163 = arith.constant 0 : index
    %c0_164 = arith.constant 0 : index
    %529 = vector.load %arg5[%c26_162, %c0_163, %c0_164] : memref<36x4x1xf32, #tpu.memory_space<vmem>>, vector<1x4x1xf32>
    %530 = vector.shape_cast %529 : vector<1x4x1xf32> to vector<4x1xf32>
    %531 = vector.shape_cast %530 : vector<4x1xf32> to vector<1x4x1xf32>
    %532 = vector.broadcast %531 : vector<1x4x1xf32> to vector<2x4x384xf32>
    %533 = vector.broadcast %528 : vector<2x1x384xf32> to vector<2x4x384xf32>
    %534 = arith.mulf %532, %533 : vector<2x4x384xf32>
    %535 = arith.addf %527, %534 : vector<2x4x384xf32>
    %536 = vector.extract_strided_slice %511 {offsets = [0, 3, 0], sizes = [2, 1, 384], strides = [1, 1, 1]} : vector<2x4x384xf32> to vector<2x1x384xf32>
    %c27_165 = arith.constant 27 : index
    %c0_166 = arith.constant 0 : index
    %c0_167 = arith.constant 0 : index
    %537 = vector.load %arg5[%c27_165, %c0_166, %c0_167] : memref<36x4x1xf32, #tpu.memory_space<vmem>>, vector<1x4x1xf32>
    %538 = vector.shape_cast %537 : vector<1x4x1xf32> to vector<4x1xf32>
    %539 = vector.shape_cast %538 : vector<4x1xf32> to vector<1x4x1xf32>
    %540 = vector.broadcast %539 : vector<1x4x1xf32> to vector<2x4x384xf32>
    %541 = vector.broadcast %536 : vector<2x1x384xf32> to vector<2x4x384xf32>
    %542 = arith.mulf %540, %541 : vector<2x4x384xf32>
    %543 = arith.addf %535, %542 : vector<2x4x384xf32>
    %544 = vector.extract_strided_slice %311 {offsets = [0, 0, 37], sizes = [2, 4, 384], strides = [1, 1, 1]} : vector<2x4x422xf32> to vector<2x4x384xf32>
    %545 = vector.extract_strided_slice %544 {offsets = [0, 0, 0], sizes = [2, 1, 384], strides = [1, 1, 1]} : vector<2x4x384xf32> to vector<2x1x384xf32>
    %c28_168 = arith.constant 28 : index
    %c0_169 = arith.constant 0 : index
    %c0_170 = arith.constant 0 : index
    %546 = vector.load %arg5[%c28_168, %c0_169, %c0_170] : memref<36x4x1xf32, #tpu.memory_space<vmem>>, vector<1x4x1xf32>
    %547 = vector.shape_cast %546 : vector<1x4x1xf32> to vector<4x1xf32>
    %548 = vector.shape_cast %547 : vector<4x1xf32> to vector<1x4x1xf32>
    %549 = vector.broadcast %548 : vector<1x4x1xf32> to vector<2x4x384xf32>
    %550 = vector.broadcast %545 : vector<2x1x384xf32> to vector<2x4x384xf32>
    %551 = arith.mulf %549, %550 : vector<2x4x384xf32>
    %552 = arith.addf %543, %551 : vector<2x4x384xf32>
    %553 = vector.extract_strided_slice %544 {offsets = [0, 1, 0], sizes = [2, 1, 384], strides = [1, 1, 1]} : vector<2x4x384xf32> to vector<2x1x384xf32>
    %c29_171 = arith.constant 29 : index
    %c0_172 = arith.constant 0 : index
    %c0_173 = arith.constant 0 : index
    %554 = vector.load %arg5[%c29_171, %c0_172, %c0_173] : memref<36x4x1xf32, #tpu.memory_space<vmem>>, vector<1x4x1xf32>
    %555 = vector.shape_cast %554 : vector<1x4x1xf32> to vector<4x1xf32>
    %556 = vector.shape_cast %555 : vector<4x1xf32> to vector<1x4x1xf32>
    %557 = vector.broadcast %556 : vector<1x4x1xf32> to vector<2x4x384xf32>
    %558 = vector.broadcast %553 : vector<2x1x384xf32> to vector<2x4x384xf32>
    %559 = arith.mulf %557, %558 : vector<2x4x384xf32>
    %560 = arith.addf %552, %559 : vector<2x4x384xf32>
    %561 = vector.extract_strided_slice %544 {offsets = [0, 2, 0], sizes = [2, 1, 384], strides = [1, 1, 1]} : vector<2x4x384xf32> to vector<2x1x384xf32>
    %c30_174 = arith.constant 30 : index
    %c0_175 = arith.constant 0 : index
    %c0_176 = arith.constant 0 : index
    %562 = vector.load %arg5[%c30_174, %c0_175, %c0_176] : memref<36x4x1xf32, #tpu.memory_space<vmem>>, vector<1x4x1xf32>
    %563 = vector.shape_cast %562 : vector<1x4x1xf32> to vector<4x1xf32>
    %564 = vector.shape_cast %563 : vector<4x1xf32> to vector<1x4x1xf32>
    %565 = vector.broadcast %564 : vector<1x4x1xf32> to vector<2x4x384xf32>
    %566 = vector.broadcast %561 : vector<2x1x384xf32> to vector<2x4x384xf32>
    %567 = arith.mulf %565, %566 : vector<2x4x384xf32>
    %568 = arith.addf %560, %567 : vector<2x4x384xf32>
    %569 = vector.extract_strided_slice %544 {offsets = [0, 3, 0], sizes = [2, 1, 384], strides = [1, 1, 1]} : vector<2x4x384xf32> to vector<2x1x384xf32>
    %c31_177 = arith.constant 31 : index
    %c0_178 = arith.constant 0 : index
    %c0_179 = arith.constant 0 : index
    %570 = vector.load %arg5[%c31_177, %c0_178, %c0_179] : memref<36x4x1xf32, #tpu.memory_space<vmem>>, vector<1x4x1xf32>
    %571 = vector.shape_cast %570 : vector<1x4x1xf32> to vector<4x1xf32>
    %572 = vector.shape_cast %571 : vector<4x1xf32> to vector<1x4x1xf32>
    %573 = vector.broadcast %572 : vector<1x4x1xf32> to vector<2x4x384xf32>
    %574 = vector.broadcast %569 : vector<2x1x384xf32> to vector<2x4x384xf32>
    %575 = arith.mulf %573, %574 : vector<2x4x384xf32>
    %576 = arith.addf %568, %575 : vector<2x4x384xf32>
    %577 = vector.extract_strided_slice %311 {offsets = [0, 0, 38], sizes = [2, 4, 384], strides = [1, 1, 1]} : vector<2x4x422xf32> to vector<2x4x384xf32>
    %578 = vector.extract_strided_slice %577 {offsets = [0, 0, 0], sizes = [2, 1, 384], strides = [1, 1, 1]} : vector<2x4x384xf32> to vector<2x1x384xf32>
    %c32_180 = arith.constant 32 : index
    %c0_181 = arith.constant 0 : index
    %c0_182 = arith.constant 0 : index
    %579 = vector.load %arg5[%c32_180, %c0_181, %c0_182] : memref<36x4x1xf32, #tpu.memory_space<vmem>>, vector<1x4x1xf32>
    %580 = vector.shape_cast %579 : vector<1x4x1xf32> to vector<4x1xf32>
    %581 = vector.shape_cast %580 : vector<4x1xf32> to vector<1x4x1xf32>
    %582 = vector.broadcast %581 : vector<1x4x1xf32> to vector<2x4x384xf32>
    %583 = vector.broadcast %578 : vector<2x1x384xf32> to vector<2x4x384xf32>
    %584 = arith.mulf %582, %583 : vector<2x4x384xf32>
    %585 = arith.addf %576, %584 : vector<2x4x384xf32>
    %586 = vector.extract_strided_slice %577 {offsets = [0, 1, 0], sizes = [2, 1, 384], strides = [1, 1, 1]} : vector<2x4x384xf32> to vector<2x1x384xf32>
    %c33_183 = arith.constant 33 : index
    %c0_184 = arith.constant 0 : index
    %c0_185 = arith.constant 0 : index
    %587 = vector.load %arg5[%c33_183, %c0_184, %c0_185] : memref<36x4x1xf32, #tpu.memory_space<vmem>>, vector<1x4x1xf32>
    %588 = vector.shape_cast %587 : vector<1x4x1xf32> to vector<4x1xf32>
    %589 = vector.shape_cast %588 : vector<4x1xf32> to vector<1x4x1xf32>
    %590 = vector.broadcast %589 : vector<1x4x1xf32> to vector<2x4x384xf32>
    %591 = vector.broadcast %586 : vector<2x1x384xf32> to vector<2x4x384xf32>
    %592 = arith.mulf %590, %591 : vector<2x4x384xf32>
    %593 = arith.addf %585, %592 : vector<2x4x384xf32>
    %594 = vector.extract_strided_slice %577 {offsets = [0, 2, 0], sizes = [2, 1, 384], strides = [1, 1, 1]} : vector<2x4x384xf32> to vector<2x1x384xf32>
    %c34_186 = arith.constant 34 : index
    %c0_187 = arith.constant 0 : index
    %c0_188 = arith.constant 0 : index
    %595 = vector.load %arg5[%c34_186, %c0_187, %c0_188] : memref<36x4x1xf32, #tpu.memory_space<vmem>>, vector<1x4x1xf32>
    %596 = vector.shape_cast %595 : vector<1x4x1xf32> to vector<4x1xf32>
    %597 = vector.shape_cast %596 : vector<4x1xf32> to vector<1x4x1xf32>
    %598 = vector.broadcast %597 : vector<1x4x1xf32> to vector<2x4x384xf32>
    %599 = vector.broadcast %594 : vector<2x1x384xf32> to vector<2x4x384xf32>
    %600 = arith.mulf %598, %599 : vector<2x4x384xf32>
    %601 = arith.addf %593, %600 : vector<2x4x384xf32>
    %602 = vector.extract_strided_slice %577 {offsets = [0, 3, 0], sizes = [2, 1, 384], strides = [1, 1, 1]} : vector<2x4x384xf32> to vector<2x1x384xf32>
    %c35_189 = arith.constant 35 : index
    %c0_190 = arith.constant 0 : index
    %c0_191 = arith.constant 0 : index
    %603 = vector.load %arg5[%c35_189, %c0_190, %c0_191] : memref<36x4x1xf32, #tpu.memory_space<vmem>>, vector<1x4x1xf32>
    %604 = vector.shape_cast %603 : vector<1x4x1xf32> to vector<4x1xf32>
    %605 = vector.shape_cast %604 : vector<4x1xf32> to vector<1x4x1xf32>
    %606 = vector.broadcast %605 : vector<1x4x1xf32> to vector<2x4x384xf32>
    %607 = vector.broadcast %602 : vector<2x1x384xf32> to vector<2x4x384xf32>
    %608 = arith.mulf %606, %607 : vector<2x4x384xf32>
    %609 = arith.addf %601, %608 : vector<2x4x384xf32>
    %c0_192 = arith.constant 0 : index
    %c0_193 = arith.constant 0 : index
    %610 = vector.load %arg6[%c0_192, %c0_193] : memref<4x1xf32, #tpu.memory_space<vmem>>, vector<4x1xf32>
    %611 = vector.shape_cast %610 : vector<4x1xf32> to vector<1x4x1xf32>
    %612 = vector.broadcast %611 : vector<1x4x1xf32> to vector<2x4x384xf32>
    %613 = arith.addf %609, %612 : vector<2x4x384xf32>
    %cst_194 = arith.constant 1.000000e+00 : f32
    %614 = vector.broadcast %cst_194 : f32 to vector<2x4x384xf32>
    %615 = arith.mulf %613, %614 : vector<2x4x384xf32>
    %616 = arith.addf %615, %0 : vector<2x4x384xf32>
    %617 = vector.broadcast %1 : vector<1x1x384xf32> to vector<2x4x384xf32>
    %618 = arith.mulf %616, %617 : vector<2x4x384xf32>
    %c0_195 = arith.constant 0 : index
    %c0_196 = arith.constant 0 : index
    %c0_197 = arith.constant 0 : index
    %619 = vector.load %arg7[%c0_195, %c0_196, %c0_197] : memref<2x4x384xf32, #tpu.memory_space<vmem>>, vector<2x4x384xf32>
    tpu.vector_store %arg7[%c0_195, %c0_196, %c0_197], %618 {strides = array<i32>} : memref<2x4x384xf32, #tpu.memory_space<vmem>>, vector<2x4x384xf32>,
    return
  }
  func.func @transform_0(%arg0: i32) -> (i32, i32, i32) {
    %c0_i32 = arith.constant 0 : i32
    %c0_i32_0 = arith.constant 0 : i32
    %c0_i32_1 = arith.constant 0 : i32
    return %arg0, %c0_i32, %c0_i32_0 : i32, i32, i32
  }
  func.func @transform_1(%arg0: i32) -> (i32, i32, i32) {
    %c0_i32 = arith.constant 0 : i32
    %c0_i32_0 = arith.constant 0 : i32
    %c0_i32_1 = arith.constant 0 : i32
    %c0_i32_2 = arith.constant 0 : i32
    return %c0_i32, %c0_i32_0, %c0_i32_1 : i32, i32, i32
  }
  func.func @transform_2(%arg0: i32) -> (i32, i32, i32) {
    %c0_i32 = arith.constant 0 : i32
    %c0_i32_0 = arith.constant 0 : i32
    %c0_i32_1 = arith.constant 0 : i32
    %c0_i32_2 = arith.constant 0 : i32
    return %c0_i32, %c0_i32_0, %c0_i32_1 : i32, i32, i32
  }
  func.func @transform_3(%arg0: i32) -> (i32, i32) {
    %c0_i32 = arith.constant 0 : i32
    %c0_i32_0 = arith.constant 0 : i32
    %c0_i32_1 = arith.constant 0 : i32
    return %c0_i32, %c0_i32_0 : i32, i32
  }
  func.func @transform_4(%arg0: i32) -> (i32, i32, i32) {
    %c0_i32 = arith.constant 0 : i32
    %c0_i32_0 = arith.constant 0 : i32
    %c0_i32_1 = arith.constant 0 : i32
    %c0_i32_2 = arith.constant 0 : i32
    return %c0_i32, %c0_i32_0, %c0_i32_1 : i32, i32, i32
  }
  func.func @transform_5(%arg0: i32) -> (i32, i32) {
    %c0_i32 = arith.constant 0 : i32
    %c0_i32_0 = arith.constant 0 : i32
    %c0_i32_1 = arith.constant 0 : i32
    return %c0_i32, %c0_i32_0 : i32, i32
  }
  func.func @transform_6(%arg0: i32) -> (i32, i32, i32) {
    %c0_i32 = arith.constant 0 : i32
    %c0_i32_0 = arith.constant 0 : i32
    %c0_i32_1 = arith.constant 0 : i32
    return %arg0, %c0_i32, %c0_i32_0 : i32, i32, i32
  }
}

</mosaic_0001>

<bundles_post_ra>
// kernel: resblock_pallas.1
= control target key start
LH: loop header
LB: loop body
LE: loop exit
PB: predicated region body
PF: predicated region fallthrough
CT: control target
= control target key end

     0   :  { %v4329_v2 = vmov 0   ;;  %s4330_s25 = smov 19   ;;  %v69_v22 = vlaneseq  ;;  %vm46_vm0 = vcmask 154624   ;;  %s4331_s29 = smov 127   ;;  %vm281_vm1 = vcmask 1039360   ;;  %s8053_s0 = inlined_call_operand.vmem [shape: f32[2,4,384], index: 0, kind: input, shape index: {}]   ;;  %s8054_s2 = inlined_call_operand.vmem [shape: f32[36,4,1], index: 2, kind: input, shape index: {}]   ;;  %s8055_s3 = inlined_call_operand.vmem [shape: f32[4,1], index: 3, kind: input, shape index: {}]   ;;  %s8056_s1 = inlined_call_operand.vmem [shape: f32[1,1,384], index: 1, kind: input, shape index: {}]   ;;  %s8057_s4 = inlined_call_operand.vmem [shape: f32[36,4,1], index: 4, kind: input, shape index: {}]   ;;  %s8058_s5 = inlined_call_operand.vmem [shape: f32[4,1], index: 5, kind: input, shape index: {}]   ;;  %s8059_s6 = inlined_call_operand.vmem [shape: f32[2,4,384], index: 6, kind: output, shape index: {}]  }
   0x1   :  { %v24_v0 = vld [vmem:[%s8053_s0 + $0x8] sm:$0xf]  ;;  %v23_v1 = vld [vmem:[%s8053_s0] sm:$0xff]  ;;  %4322 = vset.pattern.permute.xlu1 %v4329_v2  ;;  %4321 = vset.pattern.permute.xlu0 %v4329_v2  ;;  %v25_v4 = vld [vmem:[%s8053_s0 + $0xc] sm:$0xff]  ;;  %s4332_s30 = smov 126   ;;  %s4333_s11 = smov 110  }
   0x2   :  { %38 = vrot.lane.b32.xlu1 %v24_v0, %s4330_s25  ;;  %34 = vrot.lane.b32.xlu0 %v23_v1, %s4330_s25  ;;  %v4382_v3 = vcombine.high %v23_v1, %v23_v1  ;;  %v4390_v5 = vcombine.high %v25_v4, %v25_v4  ;;  %v26_v6 = vld [vmem:[%s8053_s0 + $0x14] sm:$0xf]  ;;  %v4241_v7 = vld [vmem:[%s8054_s2 + $0x4] sm:$0xf]  ;;  %v4433_v25 = vshrl.u32 %v69_v22, 7  ;;  %s4334_s20 = smov 109  }
   0x3   :  { %v63_v8 = vld [vmem:[%s8054_s2] sm:$0xf]  ;;  %v4242_v9 = vld [vmem:[%s8054_s2 + $0x8] sm:$0xf]  ;;  %v4243_v10 = vld [vmem:[%s8054_s2 + $0xc] sm:$0xf] }
   0x4   :  { %8305 = vst [vmem:[#allocation2_spill] sm:$0xff] %v4382_v3  ;;  %8306 = vst [vmem:[#allocation3_spill] sm:$0xff] %v4390_v5  ;;  %v4244_v11 = vld [vmem:[%s8054_s2 + $0x10] sm:$0xf]  ;;  %v4245_v12 = vld [vmem:[%s8054_s2 + $0x14] sm:$0xf] }
   0x5   :  { %v4246_v13 = vld [vmem:[%s8054_s2 + $0x18] sm:$0xf]  ;;  %v4247_v14 = vld [vmem:[%s8054_s2 + $0x1c] sm:$0xf]  ;;  %v4248_v15 = vld [vmem:[%s8054_s2 + $0x20] sm:$0xf] }
   0x6   :  { %40 = vrot.lane.b32.xlu1 %v25_v4, %s4330_s25  ;;  %36 = vrot.lane.b32.xlu0 %v4382_v3, %s4330_s25  ;;  %v4249_v16 = vld [vmem:[%s8054_s2 + $0x24] sm:$0xf]  ;;  %v4250_v17 = vld [vmem:[%s8054_s2 + $0x28] sm:$0xf]  ;;  %v4444_v29 = vsub.s32 0, %v4433_v25  ;;  %v4513_v54 = vsub.s32 1, %v4433_v25 }
   0x7   :  { %s4335_s8 = smov 108   ;;  %s4336_s18 = smov 92   ;;  %vm534_vm2 = vcmask 1031168   ;;  %vm763_vm3 = vcmask 900096   ;;  %vm992_vm4 = vcmask 891904   ;;  %vm1221_vm5 = vcmask 883712  }
   0x8   :  { %8307 = vst [vmem:[#allocation4_spill] sm:$0xff] %v4444_v29  ;;  %8308 = vst [vmem:[#allocation5_spill] sm:$0xff] %v4513_v54  ;;  %s4337_s7 = smov 91   ;;  %s4338_s19 = smov 90   ;;  %vm1450_vm6 = vcmask 752640   ;;  %vm1679_vm7 = vcmask 744448  }
   0x9   :  { %vm1908_vm8 = vcmask 736256  }
   0xa   :  { %44 = vrot.lane.b32.xlu1 %v26_v6, %s4330_s25  ;;  %42 = vrot.lane.b32.xlu0 %v4390_v5, %s4330_s25 }
   0xe   :  { %109 = vperm.xlu1 %4322, %v4241_v7   ;;  %66 = vperm.xlu0 %4321, %v63_v8  }
  0x12   :  { %152 = vperm.xlu1 %4322, %v4242_v9   ;;  %195 = vperm.xlu0 %4321, %v4243_v10   ;;  %v4564_v10 = vsub.s32 2, %v4433_v25 }
  0x14   :  { %8309 = vst [vmem:[#allocation6_spill] sm:$0xff] %v4564_v10 }
  0x16   :  { %238 = vperm.xlu1 %4322, %v4244_v11   ;;  %304 = vperm.xlu0 %4321, %v4245_v12  }
  0x1a   :  { %369 = vperm.xlu1 %4322, %v4246_v13   ;;  %434 = vperm.xlu0 %4321, %v4247_v14  }
  0x1e   :  { %499 = vperm.xlu1 %4322, %v4248_v15   ;;  %557 = vperm.xlu0 %4321, %v4249_v16  }
  0x22   :  { %614 = vperm.xlu1 %4322, %v4250_v17  }
  0x74   :  { %v39_v18 = vpop.permute.xlu1 %38  ;;  %v35_v20 = vpop.permute.xlu0 %34 }
  0x75   :  { %v4436_v26 = vsel %vm46_vm0, 0.0, %v35_v20  ;;  %v4455_v33 = vsel %vm46_vm0, %v39_v18, 0.0 }
  0x76   :  { %v4448_v31 = vrot.slane %v4436_v26, %v4444_v29  ;;  %v4466_v39 = vrot.slane %v4455_v33, %v4444_v29  ;;  %v4519_v58 = vrot.slane %v4436_v26, %v4513_v54  ;;  %v4531_v62 = vrot.slane %v4455_v33, %v4513_v54 }
  0x77   :  { %v4570_v14 = vrot.slane %v4436_v26, %v4564_v10 }
  0x78   :  { %v41_v19 = vpop.permute.xlu1 %40  ;;  %v37_v23 = vpop.permute.xlu0 %36 }
  0x79   :  { %v4439_v27 = vsel %vm46_vm0, %v35_v20, %v37_v23  ;;  %v4458_v34 = vsel %vm46_vm0, %v37_v23, %v39_v18  ;;  %v4475_v41 = vsel %vm46_vm0, 0.0, %v41_v19  ;;  %v4582_v18 = vrot.slane %v4455_v33, %v4564_v10 }
  0x7a   :  { %v4452_v32 = vrot.slane %v4439_v27, %v4444_v29  ;;  %v4470_v40 = vrot.slane %v4458_v34, %v4444_v29  ;;  %v4484_v45 = vrot.slane %v4475_v41, %v4444_v29  ;;  %v4523_v59 = vrot.slane %v4439_v27, %v4513_v54 }
  0x7b   :  { %v4535_v63 = vrot.slane %v4458_v34, %v4513_v54  ;;  %v4543_v2 = vrot.slane %v4475_v41, %v4513_v54  ;;  %v4574_v15 = vrot.slane %v4439_v27, %v4564_v10  ;;  %v4594_v22 = vrot.slane %v4475_v41, %v4564_v10 }
  0x7c   :  { %v45_v21 = vpop.permute.xlu1 %44  ;;  %v43_v30 = vpop.permute.xlu0 %42 }
  0x7d   :  { %v4478_v42 = vsel %vm46_vm0, %v41_v19, %v43_v30  ;;  %v4493_v47 = vsel %vm46_vm0, %v45_v21, 0.0  ;;  %v4496_v48 = vsel %vm46_vm0, %v43_v30, %v45_v21  ;;  %v4586_v19 = vrot.slane %v4458_v34, %v4564_v10 }
  0x7e   :  { %v4488_v46 = vrot.slane %v4478_v42, %v4444_v29  ;;  %v4504_v52 = vrot.slane %v4493_v47, %v4444_v29  ;;  %v4508_v53 = vrot.slane %v4496_v48, %v4444_v29  ;;  %v4547_v4 = vrot.slane %v4478_v42, %v4513_v54 }
  0x7f   :  { %v4555_v8 = vrot.slane %v4493_v47, %v4513_v54  ;;  %v4559_v9 = vrot.slane %v4496_v48, %v4513_v54  ;;  %v4598_v23 = vrot.slane %v4478_v42, %v4564_v10 }
  0x89   :  { %v4431_v24 = vpop.permute.xlu1 %109  ;;  %v4462_v38 = vpop.permute.xlu0 %66 }
  0x8d   :  { %v4441_v28 = vpop.permute.xlu1 %152  ;;  %v4498_v49 = vpop.permute.xlu0 %195 }
  0x91   :  { %v239_v35 = vpop.permute.xlu1 %238  ;;  %v305_v57 = vpop.permute.xlu0 %304 }
  0x92   :  { %v249_v36 = vmul.f32 %v239_v35, %v4448_v31  ;;  %v250_v37 = vmul.f32 %v239_v35, %v4452_v32  ;;  %v251_v43 = vmul.f32 %v239_v35, %v4470_v40  ;;  %v252_v44 = vmul.f32 %v4466_v39, %v239_v35 }
  0x93   :  { %v253_v50 = vmul.f32 %v239_v35, %v4484_v45  ;;  %v254_v51 = vmul.f32 %v239_v35, %v4488_v46  ;;  %v255_v55 = vmul.f32 %v239_v35, %v4508_v53  ;;  %v256_v56 = vmul.f32 %v4504_v52, %v239_v35 }
  0x94   :  { %265 = vrot.lane.b32.xlu0 %v249_v36, %s4331_s29  ;;  %267 = vrot.lane.b32.xlu1 %v250_v37, %s4331_s29  ;;  %v316_v60 = vmul.f32 %v305_v57, %v4523_v59  ;;  %v315_v61 = vmul.f32 %v305_v57, %v4519_v58  ;;  %v318_v0 = vmul.f32 %v4531_v62, %v305_v57 }
  0x95   :  { %v317_v1 = vmul.f32 %v305_v57, %v4535_v63  ;;  %v320_v6 = vmul.f32 %v305_v57, %v4547_v4  ;;  %v319_v7 = vmul.f32 %v305_v57, %v4543_v2  ;;  %v322_v11 = vmul.f32 %v4555_v8, %v305_v57  ;;  %v370_v13 = vpop.permute.xlu1 %369 }
  0x96   :  { %v321_v12 = vmul.f32 %v305_v57, %v4559_v9  ;;  %v380_v16 = vmul.f32 %v370_v13, %v4570_v14  ;;  %v381_v17 = vmul.f32 %v370_v13, %v4574_v15  ;;  %v382_v20 = vmul.f32 %v370_v13, %v4586_v19 }
  0x97   :  { %v383_v21 = vmul.f32 %v4582_v18, %v370_v13  ;;  %v384_v30 = vmul.f32 %v370_v13, %v4594_v22  ;;  %v385_v35 = vmul.f32 %v370_v13, %v4598_v23  ;;  %v4606_v36 = vrot.slane %v4493_v47, %v4564_v10 }
  0x98   :  { %269 = vrot.lane.b32.xlu0 %v251_v43, %s4331_s29  ;;  %271 = vrot.lane.b32.xlu1 %v252_v44, %s4331_s29  ;;  %v4610_v37 = vrot.slane %v4496_v48, %v4564_v10  ;;  %v4615_v43 = vsub.s32 3, %v4433_v25 }
  0x9a   :  { %8310 = vst [vmem:[#allocation7_spill] sm:$0xff] %v4615_v43  ;;  %v386_v44 = vmul.f32 %v370_v13, %v4610_v37 }
  0x9c   :  { %273 = vrot.lane.b32.xlu0 %v253_v50, %s4331_s29  ;;  %275 = vrot.lane.b32.xlu1 %v254_v51, %s4331_s29  ;;  %v387_v50 = vmul.f32 %v4606_v36, %v370_v13  ;;  %v435_v51 = vpop.permute.xlu0 %434 }
  0xa0   :  { %277 = vrot.lane.b32.xlu0 %v255_v55, %s4331_s29  ;;  %279 = vrot.lane.b32.xlu1 %v256_v56, %s4331_s29  ;;  %v4621_v55 = vrot.slane %v4436_v26, %v4615_v43  ;;  %v4625_v56 = vrot.slane %v4439_v27, %v4615_v43  ;;  %v4637_v26 = vrot.slane %v4458_v34, %v4615_v43 }
  0xa2   :  { %v446_v25 = vmul.f32 %v435_v51, %v4625_v56  ;;  %v445_v57 = vmul.f32 %v435_v51, %v4621_v55 }
  0xa4   :  { %333 = vrot.lane.b32.xlu0 %v316_v60, %s4331_s29  ;;  %331 = vrot.lane.b32.xlu1 %v315_v61, %s4331_s29  ;;  %v4633_v60 = vrot.slane %v4455_v33, %v4615_v43  ;;  %v447_v61 = vmul.f32 %v435_v51, %v4637_v26  ;;  %v4649_v33 = vrot.slane %v4478_v42, %v4615_v43 }
  0xa6   :  { %v448_v27 = vmul.f32 %v4633_v60, %v435_v51  ;;  %v450_v34 = vmul.f32 %v435_v51, %v4649_v33 }
  0xa8   :  { %337 = vrot.lane.b32.xlu0 %v318_v0, %s4331_s29  ;;  %335 = vrot.lane.b32.xlu1 %v317_v1, %s4331_s29  ;;  %v4645_v0 = vrot.slane %v4475_v41, %v4615_v43  ;;  %v4661_v41 = vrot.slane %v4496_v48, %v4615_v43 }
  0xaa   :  { %v449_v1 = vmul.f32 %v435_v51, %v4645_v0 }
  0xac   :  { %341 = vrot.lane.b32.xlu0 %v320_v6, %s4331_s29  ;;  %339 = vrot.lane.b32.xlu1 %v319_v7, %s4331_s29  ;;  %v4657_v6 = vrot.slane %v4493_v47, %v4615_v43  ;;  %v451_v7 = vmul.f32 %v435_v51, %v4661_v41 }
  0xae   :  { %v452_v42 = vmul.f32 %v4657_v6, %v435_v51 }
  0xb0   :  { %345 = vrot.lane.b32.xlu0 %v322_v11, %s4331_s29  ;;  %343 = vrot.lane.b32.xlu1 %v321_v12, %s4331_s29  ;;  %v500_v11 = vpop.permute.xlu1 %499 }
  0xb1   :  { %v502_v47 = vmul.f32 %v500_v11, %v4448_v31  ;;  %v503_v12 = vmul.f32 %v500_v11, %v4452_v32  ;;  %v504_v48 = vmul.f32 %v500_v11, %v4470_v40  ;;  %v505_v13 = vmul.f32 %v500_v11, %v4466_v39 }
  0xb4   :  { %396 = vrot.lane.b32.xlu0 %v380_v16, %s4331_s29  ;;  %398 = vrot.lane.b32.xlu1 %v381_v17, %s4331_s29  ;;  %v506_v16 = vmul.f32 %v500_v11, %v4484_v45  ;;  %v507_v17 = vmul.f32 %v500_v11, %v4488_v46 }
  0xb8   :  { %400 = vrot.lane.b32.xlu0 %v382_v20, %s4331_s29  ;;  %402 = vrot.lane.b32.xlu1 %v383_v21, %s4331_s29  ;;  %v508_v20 = vmul.f32 %v500_v11, %v4508_v53  ;;  %v509_v21 = vmul.f32 %v500_v11, %v4504_v52 }
  0xbc   :  { %404 = vrot.lane.b32.xlu0 %v384_v30, %s4331_s29  ;;  %406 = vrot.lane.b32.xlu1 %v385_v35, %s4331_s29  ;;  %v558_v30 = vpop.permute.xlu0 %557 }
  0xbd   :  { %v561_v35 = vmul.f32 %v558_v30, %v4523_v59  ;;  %v562_v51 = vmul.f32 %v558_v30, %v4535_v63 }
  0xc0   :  { %408 = vrot.lane.b32.xlu0 %v386_v44, %s4331_s29  ;;  %410 = vrot.lane.b32.xlu1 %v387_v50, %s4331_s29  ;;  %v560_v44 = vmul.f32 %v558_v30, %v4519_v58  ;;  %v563_v50 = vmul.f32 %v558_v30, %v4531_v62 }
  0xc4   :  { %463 = vrot.lane.b32.xlu0 %v446_v25, %s4331_s29  ;;  %461 = vrot.lane.b32.xlu1 %v445_v57, %s4331_s29  ;;  %v565_v25 = vmul.f32 %v558_v30, %v4547_v4  ;;  %v564_v57 = vmul.f32 %v558_v30, %v4543_v2 }
  0xc8   :  { %467 = vrot.lane.b32.xlu0 %v448_v27, %s4331_s29  ;;  %465 = vrot.lane.b32.xlu1 %v447_v61, %s4331_s29  ;;  %v567_v27 = vmul.f32 %v558_v30, %v4555_v8  ;;  %v566_v61 = vmul.f32 %v558_v30, %v4559_v9 }
  0xcc   :  { %471 = vrot.lane.b32.xlu0 %v450_v34, %s4331_s29  ;;  %469 = vrot.lane.b32.xlu1 %v449_v1, %s4331_s29  ;;  %v615_v34 = vpop.permute.xlu1 %614 }
  0xcd   :  { %v617_v1 = vmul.f32 %v615_v34, %v4570_v14  ;;  %v620_v11 = vmul.f32 %v615_v34, %v4582_v18 }
  0xd0   :  { %475 = vrot.lane.b32.xlu0 %v452_v42, %s4331_s29  ;;  %473 = vrot.lane.b32.xlu1 %v451_v7, %s4331_s29  ;;  %v618_v42 = vmul.f32 %v615_v34, %v4574_v15  ;;  %v619_v7 = vmul.f32 %v615_v34, %v4586_v19 }
  0xd4   :  { %518 = vrot.lane.b32.xlu0 %v502_v47, %s4332_s30  ;;  %520 = vrot.lane.b32.xlu1 %v503_v12, %s4332_s30  ;;  %v621_v47 = vmul.f32 %v615_v34, %v4594_v22  ;;  %v622_v12 = vmul.f32 %v615_v34, %v4598_v23 }
  0xd8   :  { %522 = vrot.lane.b32.xlu0 %v504_v48, %s4332_s30  ;;  %524 = vrot.lane.b32.xlu1 %v505_v13, %s4332_s30  ;;  %v623_v48 = vmul.f32 %v615_v34, %v4610_v37  ;;  %v624_v13 = vmul.f32 %v615_v34, %v4606_v36 }
  0xdc   :  { %526 = vrot.lane.b32.xlu0 %v506_v16, %s4332_s30  ;;  %528 = vrot.lane.b32.xlu1 %v507_v17, %s4332_s30  ;;  %v4251_v16 = vld [vmem:[%s8054_s2 + $0x2c] sm:$0xf] }
  0xe0   :  { %530 = vrot.lane.b32.xlu0 %v508_v20, %s4332_s30  ;;  %532 = vrot.lane.b32.xlu1 %v509_v21, %s4332_s30 }
  0xe4   :  { %578 = vrot.lane.b32.xlu0 %v561_v35, %s4332_s30  ;;  %576 = vrot.lane.b32.xlu1 %v560_v44, %s4332_s30 }
  0xe8   :  { %582 = vrot.lane.b32.xlu0 %v563_v50, %s4332_s30  ;;  %580 = vrot.lane.b32.xlu1 %v562_v51, %s4332_s30 }
  0xec   :  { %586 = vrot.lane.b32.xlu0 %v565_v25, %s4332_s30  ;;  %584 = vrot.lane.b32.xlu1 %v564_v57, %s4332_s30 }
  0xf0   :  { %590 = vrot.lane.b32.xlu0 %v567_v27, %s4332_s30  ;;  %588 = vrot.lane.b32.xlu1 %v566_v61, %s4332_s30 }
  0xf4   :  { %633 = vrot.lane.b32.xlu0 %v617_v1, %s4332_s30  ;;  %635 = vrot.lane.b32.xlu1 %v618_v42, %s4332_s30 }
  0xf8   :  { %637 = vrot.lane.b32.xlu0 %v619_v7, %s4332_s30  ;;  %639 = vrot.lane.b32.xlu1 %v620_v11, %s4332_s30 }
  0xfc   :  { %641 = vrot.lane.b32.xlu0 %v621_v47, %s4332_s30  ;;  %643 = vrot.lane.b32.xlu1 %v622_v12, %s4332_s30 }
 0x100   :  { %645 = vrot.lane.b32.xlu0 %v623_v48, %s4332_s30  ;;  %647 = vrot.lane.b32.xlu1 %v624_v13, %s4332_s30 }
 0x104   :  { %671 = vperm.xlu0 %4321, %v4251_v16  }
 0x106   :  { %v4720_v17 = vpop.permute.xlu0 %265  ;;  %v4758_v48 = vpop.permute.xlu1 %267 }
 0x10a   :  { %v4722_v20 = vpop.permute.xlu0 %269  ;;  %v4764_v5 = vpop.permute.xlu1 %271 }
 0x10e   :  { %v4724_v21 = vpop.permute.xlu0 %273  ;;  %v4768_v43 = vpop.permute.xlu1 %275 }
 0x112   :  { %v4726_v30 = vpop.permute.xlu0 %277  ;;  %v4772_v29 = vpop.permute.xlu1 %279 }
 0x116   :  { %v4728_v35 = vpop.permute.xlu0 %333 }
 0x11a   :  { %v4730_v44 = vpop.permute.xlu0 %337 }
 0x11e   :  { %v4732_v50 = vpop.permute.xlu0 %341 }
 0x122   :  { %v4734_v51 = vpop.permute.xlu0 %345 }
 0x126   :  { %v4736_v25 = vpop.permute.xlu0 %396 }
 0x127   :  { %8311 = vst [vmem:[#allocation8_spill] sm:$0xff] %v4736_v25 }
 0x12a   :  { %v4738_v57 = vpop.permute.xlu0 %400 }
 0x12b   :  { %8312 = vst [vmem:[#allocation9_spill] sm:$0xff] %v4738_v57 }
 0x12e   :  { %v4740_v27 = vpop.permute.xlu0 %404 }
 0x12f   :  { %8313 = vst [vmem:[#allocation10_spill] sm:$0xff] %v4740_v27 }
 0x132   :  { %v4742_v61 = vpop.permute.xlu0 %408 }
 0x133   :  { %8314 = vst [vmem:[#allocation11_spill] sm:$0xff] %v4742_v61 }
 0x136   :  { %v4744_v34 = vpop.permute.xlu0 %463 }
 0x137   :  { %8315 = vst [vmem:[#allocation12_spill] sm:$0xff] %v4744_v34 }
 0x13a   :  { %v4746_v1 = vpop.permute.xlu0 %467 }
 0x13b   :  { %8316 = vst [vmem:[#allocation13_spill] sm:$0xff] %v4746_v1 }
 0x13e   :  { %v4748_v42 = vpop.permute.xlu0 %471 }
 0x13f   :  { %8317 = vst [vmem:[#allocation14_spill] sm:$0xff] %v4748_v42 }
 0x142   :  { %v4750_v7 = vpop.permute.xlu0 %475 }
 0x143   :  { %8318 = vst [vmem:[#allocation15_spill] sm:$0xff] %v4750_v7 }
 0x146   :  { %v4752_v11 = vpop.permute.xlu0 %518 }
 0x147   :  { %8319 = vst [vmem:[#allocation16_spill] sm:$0xff] %v4752_v11 }
 0x14a   :  { %v4754_v47 = vpop.permute.xlu0 %522 }
 0x14b   :  { %8320 = vst [vmem:[#allocation17_spill] sm:$0xff] %v4754_v47  ;;  %v4776_v47 = vpop.permute.xlu1 %331 }
 0x14e   :  { %v4756_v12 = vpop.permute.xlu0 %526 }
 0x14f   :  { %8321 = vst [vmem:[#allocation18_spill] sm:$0xff] %v4756_v12  ;;  %v4780_v11 = vpop.permute.xlu1 %335 }
 0x152   :  { %v4760_v13 = vpop.permute.xlu0 %530 }
 0x153   :  { %8322 = vst [vmem:[#allocation19_spill] sm:$0xff] %v4760_v13 }
 0x156   :  { %v4762_v16 = vpop.permute.xlu0 %578 }
 0x157   :  { %8323 = vst [vmem:[#allocation20_spill] sm:$0xff] %v4762_v16  ;;  %v4784_v16 = vpop.permute.xlu1 %339 }
 0x15a   :  { %v4766_v3 = vpop.permute.xlu0 %582 }
 0x15b   :  { %8324 = vst [vmem:[#allocation21_spill] sm:$0xff] %v4766_v3  ;;  %v4788_v3 = vpop.permute.xlu1 %343 }
 0x15e   :  { %v4770_v10 = vpop.permute.xlu0 %586 }
 0x15f   :  { %8325 = vst [vmem:[#allocation22_spill] sm:$0xff] %v4770_v10  ;;  %v4794_v34 = vpop.permute.xlu1 %398 }
 0x162   :  { %v4774_v54 = vpop.permute.xlu0 %590 }
 0x163   :  { %8326 = vst [vmem:[#allocation23_spill] sm:$0xff] %v4774_v54 }
 0x166   :  { %v4778_v12 = vpop.permute.xlu0 %633 }
 0x167   :  { %8327 = vst [vmem:[#allocation24_spill] sm:$0xff] %v4778_v12 }
 0x16a   :  { %v4782_v13 = vpop.permute.xlu0 %637 }
 0x16b   :  { %8328 = vst [vmem:[#allocation25_spill] sm:$0xff] %v4782_v13 }
 0x16e   :  { %v4786_v7 = vpop.permute.xlu0 %641 }
 0x16f   :  { %8329 = vst [vmem:[#allocation26_spill] sm:$0xff] %v4786_v7 }
 0x172   :  { %v4790_v42 = vpop.permute.xlu0 %645 }
 0x173   :  { %8330 = vst [vmem:[#allocation27_spill] sm:$0xff] %v4790_v42  ;;  %v4802_v42 = vpop.permute.xlu1 %402 }
 0x174   :  { %8331 = vst [vmem:[#allocation28_spill] sm:$0xff] %v4802_v42 }
 0x177   :  { %v4810_v27 = vpop.permute.xlu1 %406 }
 0x178   :  { %8332 = vst [vmem:[#allocation29_spill] sm:$0xff] %v4810_v27 }
 0x17f   :  { %v672_v10 = vpop.permute.xlu0 %671 }
 0x180   :  { %v675_v1 = vmul.f32 %v672_v10, %v4625_v56  ;;  %v674_v54 = vmul.f32 %v672_v10, %v4621_v55  ;;  %v677_v13 = vmul.f32 %v672_v10, %v4633_v60  ;;  %v676_v12 = vmul.f32 %v672_v10, %v4637_v26 }
 0x181   :  { %v679_v7 = vmul.f32 %v672_v10, %v4649_v33  ;;  %v678_v61 = vmul.f32 %v672_v10, %v4645_v0 }
 0x182   :  { %692 = vrot.lane.b32.xlu0 %v675_v1, %s4332_s30  ;;  %690 = vrot.lane.b32.xlu1 %v674_v54, %s4332_s30  ;;  %v681_v54 = vmul.f32 %v672_v10, %v4657_v6  ;;  %v680_v1 = vmul.f32 %v672_v10, %v4661_v41 }
 0x186   :  { %696 = vrot.lane.b32.xlu0 %v677_v13, %s4332_s30  ;;  %694 = vrot.lane.b32.xlu1 %v676_v12, %s4332_s30  ;;  %v4252_v12 = vld [vmem:[%s8054_s2 + $0x30] sm:$0xf]  ;;  %v4817_v13 = vpop.permute.xlu1 %410 }
 0x187   :  { %8333 = vst [vmem:[#allocation30_spill] sm:$0xff] %v4817_v13 }
 0x18a   :  { %700 = vrot.lane.b32.xlu0 %v679_v7, %s4332_s30  ;;  %698 = vrot.lane.b32.xlu1 %v678_v61, %s4332_s30  ;;  %v4819_v7 = vpop.permute.xlu1 %461 }
 0x18b   :  { %8334 = vst [vmem:[#allocation31_spill] sm:$0xff] %v4819_v7 }
 0x18e   :  { %704 = vrot.lane.b32.xlu0 %v681_v54, %s4332_s30  ;;  %702 = vrot.lane.b32.xlu1 %v680_v1, %s4332_s30  ;;  %v4821_v61 = vpop.permute.xlu1 %465 }
 0x18f   :  { %8335 = vst [vmem:[#allocation32_spill] sm:$0xff] %v4821_v61 }
 0x192   :  { %728 = vperm.xlu1 %4322, %v4252_v12   ;;  %v4823_v42 = vpop.permute.xlu1 %469 }
 0x193   :  { %8336 = vst [vmem:[#allocation33_spill] sm:$0xff] %v4823_v42 }
 0x196   :  { %v4825_v10 = vpop.permute.xlu1 %473 }
 0x197   :  { %8337 = vst [vmem:[#allocation34_spill] sm:$0xff] %v4825_v10 }
 0x19a   :  { %v4827_v27 = vpop.permute.xlu1 %520 }
 0x19b   :  { %8338 = vst [vmem:[#allocation35_spill] sm:$0xff] %v4827_v27 }
 0x19e   :  { %v4829_v54 = vpop.permute.xlu1 %524 }
 0x19f   :  { %8339 = vst [vmem:[#allocation36_spill] sm:$0xff] %v4829_v54 }
 0x1a2   :  { %v4831_v1 = vpop.permute.xlu1 %528 }
 0x1a3   :  { %8340 = vst [vmem:[#allocation37_spill] sm:$0xff] %v4831_v1 }
 0x1a6   :  { %v4833_v57 = vpop.permute.xlu1 %532 }
 0x1a7   :  { %8341 = vst [vmem:[#allocation38_spill] sm:$0xff] %v4833_v57 }
 0x1aa   :  { %v4835_v25 = vpop.permute.xlu1 %576 }
 0x1ab   :  { %8342 = vst [vmem:[#allocation39_spill] sm:$0xff] %v4835_v25 }
 0x1ae   :  { %v4837_v12 = vpop.permute.xlu1 %580 }
 0x1af   :  { %8343 = vst [vmem:[#allocation40_spill] sm:$0xff] %v4837_v12 }
 0x1b2   :  { %v4839_v13 = vpop.permute.xlu1 %584 }
 0x1b3   :  { %8344 = vst [vmem:[#allocation41_spill] sm:$0xff] %v4839_v13 }
 0x1b6   :  { %v4841_v7 = vpop.permute.xlu1 %588 }
 0x1b7   :  { %8345 = vst [vmem:[#allocation42_spill] sm:$0xff] %v4841_v7 }
 0x1ba   :  { %v4843_v61 = vpop.permute.xlu1 %635 }
 0x1bb   :  { %8346 = vst [vmem:[#allocation43_spill] sm:$0xff] %v4843_v61 }
 0x1be   :  { %v4845_v42 = vpop.permute.xlu1 %639 }
 0x1bf   :  { %8347 = vst [vmem:[#allocation44_spill] sm:$0xff] %v4845_v42 }
 0x1c2   :  { %v4847_v10 = vpop.permute.xlu1 %643 }
 0x1c3   :  { %8348 = vst [vmem:[#allocation45_spill] sm:$0xff] %v4847_v10 }
 0x1c6   :  { %v4849_v27 = vpop.permute.xlu1 %647 }
 0x1c7   :  { %8349 = vst [vmem:[#allocation46_spill] sm:$0xff] %v4849_v27 }
 0x1f4   :  { %v4851_v54 = vpop.permute.xlu1 %690 }
 0x1f5   :  { %8350 = vst [vmem:[#allocation47_spill] sm:$0xff] %v4851_v54 }
 0x1f8   :  { %v4853_v1 = vpop.permute.xlu1 %694 }
 0x1f9   :  { %8351 = vst [vmem:[#allocation48_spill] sm:$0xff] %v4853_v1 }
 0x1fc   :  { %v4855_v57 = vpop.permute.xlu1 %698 }
 0x1fd   :  { %8352 = vst [vmem:[#allocation49_spill] sm:$0xff] %v4855_v57 }
 0x200   :  { %v4857_v25 = vpop.permute.xlu1 %702 }
 0x201   :  { %8353 = vst [vmem:[#allocation50_spill] sm:$0xff] %v4857_v25 }
 0x20d   :  { %v729_v12 = vpop.permute.xlu1 %728 }
 0x20e   :  { %v732_v13 = vmul.f32 %v729_v12, %v4452_v32  ;;  %v731_v7 = vmul.f32 %v729_v12, %v4448_v31  ;;  %v734_v27 = vmul.f32 %v729_v12, %v4466_v39  ;;  %v733_v54 = vmul.f32 %v729_v12, %v4470_v40 }
 0x20f   :  { %v736_v25 = vmul.f32 %v729_v12, %v4488_v46  ;;  %v735_v57 = vmul.f32 %v729_v12, %v4484_v45 }
 0x210   :  { %749 = vrot.lane.b32.xlu1 %v732_v13, %s4333_s11  ;;  %747 = vrot.lane.b32.xlu0 %v731_v7, %s4333_s11  ;;  %v738_v13 = vmul.f32 %v729_v12, %v4504_v52  ;;  %v737_v7 = vmul.f32 %v729_v12, %v4508_v53 }
 0x214   :  { %753 = vrot.lane.b32.xlu1 %v734_v27, %s4333_s11  ;;  %751 = vrot.lane.b32.xlu0 %v733_v54, %s4333_s11  ;;  %v4253_v27 = vld [vmem:[%s8054_s2 + $0x34] sm:$0xf]  ;;  %v4878_v54 = vpop.permute.xlu0 %692 }
 0x215   :  { %8354 = vst [vmem:[#allocation51_spill] sm:$0xff] %v4878_v54 }
 0x218   :  { %757 = vrot.lane.b32.xlu1 %v736_v25, %s4333_s11  ;;  %755 = vrot.lane.b32.xlu0 %v735_v57, %s4333_s11  ;;  %v4880_v1 = vpop.permute.xlu0 %696 }
 0x219   :  { %8355 = vst [vmem:[#allocation52_spill] sm:$0xff] %v4880_v1 }
 0x21c   :  { %761 = vrot.lane.b32.xlu1 %v738_v13, %s4333_s11  ;;  %759 = vrot.lane.b32.xlu0 %v737_v7, %s4333_s11  ;;  %v4882_v25 = vpop.permute.xlu0 %700 }
 0x21d   :  { %8356 = vst [vmem:[#allocation53_spill] sm:$0xff] %v4882_v25 }
 0x220   :  { %786 = vperm.xlu0 %4321, %v4253_v27   ;;  %v4884_v57 = vpop.permute.xlu0 %704 }
 0x221   :  { %8357 = vst [vmem:[#allocation54_spill] sm:$0xff] %v4884_v57 }
 0x282   :  { %v4886_v10 = vpop.permute.xlu0 %747 }
 0x283   :  { %8358 = vst [vmem:[#allocation55_spill] sm:$0xff] %v4886_v10 }
 0x286   :  { %v4888_v12 = vpop.permute.xlu0 %751 }
 0x287   :  { %8359 = vst [vmem:[#allocation56_spill] sm:$0xff] %v4888_v12 }
 0x28a   :  { %v4890_v13 = vpop.permute.xlu0 %755 }
 0x28b   :  { %8360 = vst [vmem:[#allocation57_spill] sm:$0xff] %v4890_v13 }
 0x28e   :  { %v4892_v7 = vpop.permute.xlu0 %759 }
 0x28f   :  { %8361 = vst [vmem:[#allocation58_spill] sm:$0xff] %v4892_v7 }
 0x29b   :  { %v787_v42 = vpop.permute.xlu0 %786 }
 0x29c   :  { %v790_v61 = vmul.f32 %v787_v42, %v4523_v59  ;;  %v789_v27 = vmul.f32 %v787_v42, %v4519_v58  ;;  %v792_v25 = vmul.f32 %v787_v42, %v4531_v62  ;;  %v791_v57 = vmul.f32 %v787_v42, %v4535_v63 }
 0x29d   :  { %v794_v13 = vmul.f32 %v787_v42, %v4547_v4  ;;  %v793_v7 = vmul.f32 %v787_v42, %v4543_v2 }
 0x29e   :  { %807 = vrot.lane.b32.xlu0 %v790_v61, %s4333_s11  ;;  %805 = vrot.lane.b32.xlu1 %v789_v27, %s4333_s11  ;;  %v796_v61 = vmul.f32 %v787_v42, %v4555_v8  ;;  %v795_v27 = vmul.f32 %v787_v42, %v4559_v9 }
 0x2a2   :  { %811 = vrot.lane.b32.xlu0 %v792_v25, %s4333_s11  ;;  %809 = vrot.lane.b32.xlu1 %v791_v57, %s4333_s11  ;;  %v4254_v25 = vld [vmem:[%s8054_s2 + $0x38] sm:$0xf]  ;;  %v4913_v57 = vpop.permute.xlu1 %749 }
 0x2a3   :  { %8362 = vst [vmem:[#allocation59_spill] sm:$0xff] %v4913_v57 }
 0x2a6   :  { %815 = vrot.lane.b32.xlu0 %v794_v13, %s4333_s11  ;;  %813 = vrot.lane.b32.xlu1 %v793_v7, %s4333_s11  ;;  %v4915_v12 = vpop.permute.xlu1 %753 }
 0x2a7   :  { %8363 = vst [vmem:[#allocation60_spill] sm:$0xff] %v4915_v12 }
 0x2aa   :  { %819 = vrot.lane.b32.xlu0 %v796_v61, %s4333_s11  ;;  %817 = vrot.lane.b32.xlu1 %v795_v27, %s4333_s11  ;;  %v4917_v13 = vpop.permute.xlu1 %757 }
 0x2ab   :  { %8364 = vst [vmem:[#allocation61_spill] sm:$0xff] %v4917_v13 }
 0x2ae   :  { %843 = vperm.xlu1 %4322, %v4254_v25   ;;  %v4919_v7 = vpop.permute.xlu1 %761 }
 0x2af   :  { %8365 = vst [vmem:[#allocation62_spill] sm:$0xff] %v4919_v7 }
 0x310   :  { %v4921_v10 = vpop.permute.xlu1 %805 }
 0x311   :  { %8366 = vst [vmem:[#allocation63_spill] sm:$0xff] %v4921_v10 }
 0x314   :  { %v4923_v42 = vpop.permute.xlu1 %809 }
 0x315   :  { %8367 = vst [vmem:[#allocation64_spill] sm:$0xff] %v4923_v42 }
 0x318   :  { %v4925_v61 = vpop.permute.xlu1 %813 }
 0x319   :  { %8368 = vst [vmem:[#allocation65_spill] sm:$0xff] %v4925_v61 }
 0x31c   :  { %v4927_v27 = vpop.permute.xlu1 %817 }
 0x31d   :  { %8369 = vst [vmem:[#allocation66_spill] sm:$0xff] %v4927_v27 }
 0x329   :  { %v844_v1 = vpop.permute.xlu1 %843 }
 0x32a   :  { %v847_v54 = vmul.f32 %v844_v1, %v4574_v15  ;;  %v846_v25 = vmul.f32 %v844_v1, %v4570_v14  ;;  %v849_v13 = vmul.f32 %v844_v1, %v4582_v18  ;;  %v848_v7 = vmul.f32 %v844_v1, %v4586_v19 }
 0x32b   :  { %v851_v61 = vmul.f32 %v844_v1, %v4598_v23  ;;  %v850_v27 = vmul.f32 %v844_v1, %v4594_v22 }
 0x32c   :  { %864 = vrot.lane.b32.xlu1 %v847_v54, %s4333_s11  ;;  %862 = vrot.lane.b32.xlu0 %v846_v25, %s4333_s11  ;;  %v853_v54 = vmul.f32 %v844_v1, %v4606_v36  ;;  %v852_v25 = vmul.f32 %v844_v1, %v4610_v37 }
 0x330   :  { %868 = vrot.lane.b32.xlu1 %v849_v13, %s4333_s11  ;;  %866 = vrot.lane.b32.xlu0 %v848_v7, %s4333_s11  ;;  %v4255_v13 = vld [vmem:[%s8054_s2 + $0x3c] sm:$0xf]  ;;  %v4948_v7 = vpop.permute.xlu0 %807 }
 0x331   :  { %8370 = vst [vmem:[#allocation67_spill] sm:$0xff] %v4948_v7 }
 0x334   :  { %872 = vrot.lane.b32.xlu1 %v851_v61, %s4333_s11  ;;  %870 = vrot.lane.b32.xlu0 %v850_v27, %s4333_s11  ;;  %v4950_v42 = vpop.permute.xlu0 %811 }
 0x335   :  { %8371 = vst [vmem:[#allocation68_spill] sm:$0xff] %v4950_v42 }
 0x338   :  { %876 = vrot.lane.b32.xlu1 %v853_v54, %s4333_s11  ;;  %874 = vrot.lane.b32.xlu0 %v852_v25, %s4333_s11  ;;  %v4952_v61 = vpop.permute.xlu0 %815 }
 0x339   :  { %8372 = vst [vmem:[#allocation69_spill] sm:$0xff] %v4952_v61 }
 0x33c   :  { %900 = vperm.xlu0 %4321, %v4255_v13   ;;  %v4954_v27 = vpop.permute.xlu0 %819 }
 0x33d   :  { %8373 = vst [vmem:[#allocation70_spill] sm:$0xff] %v4954_v27 }
 0x39e   :  { %v4956_v10 = vpop.permute.xlu0 %862 }
 0x39f   :  { %8374 = vst [vmem:[#allocation71_spill] sm:$0xff] %v4956_v10 }
 0x3a2   :  { %v4958_v1 = vpop.permute.xlu0 %866 }
 0x3a3   :  { %8375 = vst [vmem:[#allocation72_spill] sm:$0xff] %v4958_v1 }
 0x3a6   :  { %v4960_v54 = vpop.permute.xlu0 %870 }
 0x3a7   :  { %8376 = vst [vmem:[#allocation73_spill] sm:$0xff] %v4960_v54 }
 0x3aa   :  { %v4962_v25 = vpop.permute.xlu0 %874 }
 0x3ab   :  { %8377 = vst [vmem:[#allocation74_spill] sm:$0xff] %v4962_v25 }
 0x3b7   :  { %v901_v12 = vpop.permute.xlu0 %900 }
 0x3b8   :  { %v904_v57 = vmul.f32 %v901_v12, %v4625_v56  ;;  %v903_v13 = vmul.f32 %v901_v12, %v4621_v55  ;;  %v906_v61 = vmul.f32 %v901_v12, %v4633_v60  ;;  %v905_v27 = vmul.f32 %v901_v12, %v4637_v26 }
 0x3b9   :  { %v908_v54 = vmul.f32 %v901_v12, %v4649_v33  ;;  %v907_v25 = vmul.f32 %v901_v12, %v4645_v0 }
 0x3ba   :  { %921 = vrot.lane.b32.xlu0 %v904_v57, %s4333_s11  ;;  %919 = vrot.lane.b32.xlu1 %v903_v13, %s4333_s11  ;;  %v910_v57 = vmul.f32 %v901_v12, %v4657_v6  ;;  %v909_v13 = vmul.f32 %v901_v12, %v4661_v41 }
 0x3be   :  { %925 = vrot.lane.b32.xlu0 %v906_v61, %s4333_s11  ;;  %923 = vrot.lane.b32.xlu1 %v905_v27, %s4333_s11  ;;  %v4256_v61 = vld [vmem:[%s8054_s2 + $0x40] sm:$0xf]  ;;  %v4983_v27 = vpop.permute.xlu1 %864 }
 0x3bf   :  { %8378 = vst [vmem:[#allocation75_spill] sm:$0xff] %v4983_v27 }
 0x3c2   :  { %929 = vrot.lane.b32.xlu0 %v908_v54, %s4333_s11  ;;  %927 = vrot.lane.b32.xlu1 %v907_v25, %s4333_s11  ;;  %v4985_v1 = vpop.permute.xlu1 %868 }
 0x3c3   :  { %8379 = vst [vmem:[#allocation76_spill] sm:$0xff] %v4985_v1 }
 0x3c6   :  { %933 = vrot.lane.b32.xlu0 %v910_v57, %s4333_s11  ;;  %931 = vrot.lane.b32.xlu1 %v909_v13, %s4333_s11  ;;  %v4987_v54 = vpop.permute.xlu1 %872 }
 0x3c7   :  { %8380 = vst [vmem:[#allocation77_spill] sm:$0xff] %v4987_v54 }
 0x3ca   :  { %957 = vperm.xlu1 %4322, %v4256_v61   ;;  %v4989_v25 = vpop.permute.xlu1 %876 }
 0x3cb   :  { %8381 = vst [vmem:[#allocation78_spill] sm:$0xff] %v4989_v25 }
 0x42c   :  { %v4991_v10 = vpop.permute.xlu1 %919 }
 0x42d   :  { %8382 = vst [vmem:[#allocation79_spill] sm:$0xff] %v4991_v10 }
 0x430   :  { %v4993_v12 = vpop.permute.xlu1 %923 }
 0x431   :  { %8383 = vst [vmem:[#allocation80_spill] sm:$0xff] %v4993_v12 }
 0x434   :  { %v4995_v57 = vpop.permute.xlu1 %927 }
 0x435   :  { %8384 = vst [vmem:[#allocation81_spill] sm:$0xff] %v4995_v57 }
 0x438   :  { %v4997_v13 = vpop.permute.xlu1 %931 }
 0x439   :  { %8385 = vst [vmem:[#allocation82_spill] sm:$0xff] %v4997_v13 }
 0x445   :  { %v958_v42 = vpop.permute.xlu1 %957 }
 0x446   :  { %v961_v7 = vmul.f32 %v958_v42, %v4452_v32  ;;  %v960_v61 = vmul.f32 %v958_v42, %v4448_v31  ;;  %v963_v25 = vmul.f32 %v958_v42, %v4466_v39  ;;  %v962_v10 = vmul.f32 %v958_v42, %v4470_v40 }
 0x447   :  { %v965_v13 = vmul.f32 %v958_v42, %v4488_v46  ;;  %v964_v57 = vmul.f32 %v958_v42, %v4484_v45 }
 0x448   :  { %978 = vrot.lane.b32.xlu1 %v961_v7, %s4334_s20  ;;  %976 = vrot.lane.b32.xlu0 %v960_v61, %s4334_s20  ;;  %v967_v7 = vmul.f32 %v958_v42, %v4504_v52  ;;  %v966_v61 = vmul.f32 %v958_v42, %v4508_v53 }
 0x44c   :  { %982 = vrot.lane.b32.xlu1 %v963_v25, %s4334_s20  ;;  %980 = vrot.lane.b32.xlu0 %v962_v10, %s4334_s20  ;;  %v4257_v10 = vld [vmem:[%s8054_s2 + $0x44] sm:$0xf]  ;;  %v5018_v25 = vpop.permute.xlu0 %921 }
 0x44d   :  { %8386 = vst [vmem:[#allocation83_spill] sm:$0xff] %v5018_v25 }
 0x450   :  { %986 = vrot.lane.b32.xlu1 %v965_v13, %s4334_s20  ;;  %984 = vrot.lane.b32.xlu0 %v964_v57, %s4334_s20  ;;  %v5020_v12 = vpop.permute.xlu0 %925 }
 0x451   :  { %8387 = vst [vmem:[#allocation84_spill] sm:$0xff] %v5020_v12 }
 0x454   :  { %990 = vrot.lane.b32.xlu1 %v967_v7, %s4334_s20  ;;  %988 = vrot.lane.b32.xlu0 %v966_v61, %s4334_s20  ;;  %v5022_v13 = vpop.permute.xlu0 %929 }
 0x455   :  { %8388 = vst [vmem:[#allocation85_spill] sm:$0xff] %v5022_v13 }
 0x458   :  { %1015 = vperm.xlu0 %4321, %v4257_v10   ;;  %v5024_v57 = vpop.permute.xlu0 %933 }
 0x459   :  { %8389 = vst [vmem:[#allocation86_spill] sm:$0xff] %v5024_v57 }
 0x4ba   :  { %v5026_v54 = vpop.permute.xlu0 %976 }
 0x4bb   :  { %8390 = vst [vmem:[#allocation87_spill] sm:$0xff] %v5026_v54 }
 0x4be   :  { %v5028_v42 = vpop.permute.xlu0 %980 }
 0x4bf   :  { %8391 = vst [vmem:[#allocation88_spill] sm:$0xff] %v5028_v42 }
 0x4c2   :  { %v5030_v7 = vpop.permute.xlu0 %984 }
 0x4c3   :  { %8392 = vst [vmem:[#allocation89_spill] sm:$0xff] %v5030_v7 }
 0x4c6   :  { %v5032_v61 = vpop.permute.xlu0 %988 }
 0x4c7   :  { %8393 = vst [vmem:[#allocation90_spill] sm:$0xff] %v5032_v61 }
 0x4d3   :  { %v1016_v1 = vpop.permute.xlu0 %1015 }
 0x4d4   :  { %v1019_v27 = vmul.f32 %v1016_v1, %v4523_v59  ;;  %v1018_v10 = vmul.f32 %v1016_v1, %v4519_v58  ;;  %v1021_v13 = vmul.f32 %v1016_v1, %v4531_v62  ;;  %v1020_v57 = vmul.f32 %v1016_v1, %v4535_v63 }
 0x4d5   :  { %v1023_v7 = vmul.f32 %v1016_v1, %v4547_v4  ;;  %v1022_v61 = vmul.f32 %v1016_v1, %v4543_v2 }
 0x4d6   :  { %1036 = vrot.lane.b32.xlu0 %v1019_v27, %s4334_s20  ;;  %1034 = vrot.lane.b32.xlu1 %v1018_v10, %s4334_s20  ;;  %v1025_v27 = vmul.f32 %v1016_v1, %v4555_v8  ;;  %v1024_v10 = vmul.f32 %v1016_v1, %v4559_v9 }
 0x4da   :  { %1040 = vrot.lane.b32.xlu0 %v1021_v13, %s4334_s20  ;;  %1038 = vrot.lane.b32.xlu1 %v1020_v57, %s4334_s20  ;;  %v4258_v13 = vld [vmem:[%s8054_s2 + $0x48] sm:$0xf]  ;;  %v5053_v57 = vpop.permute.xlu1 %978 }
 0x4db   :  { %8394 = vst [vmem:[#allocation91_spill] sm:$0xff] %v5053_v57 }
 0x4de   :  { %1044 = vrot.lane.b32.xlu0 %v1023_v7, %s4334_s20  ;;  %1042 = vrot.lane.b32.xlu1 %v1022_v61, %s4334_s20  ;;  %v5055_v42 = vpop.permute.xlu1 %982 }
 0x4df   :  { %8395 = vst [vmem:[#allocation92_spill] sm:$0xff] %v5055_v42 }
 0x4e2   :  { %1048 = vrot.lane.b32.xlu0 %v1025_v27, %s4334_s20  ;;  %1046 = vrot.lane.b32.xlu1 %v1024_v10, %s4334_s20  ;;  %v5057_v7 = vpop.permute.xlu1 %986 }
 0x4e3   :  { %8396 = vst [vmem:[#allocation93_spill] sm:$0xff] %v5057_v7 }
 0x4e6   :  { %1072 = vperm.xlu1 %4322, %v4258_v13   ;;  %v5059_v61 = vpop.permute.xlu1 %990 }
 0x4e7   :  { %8397 = vst [vmem:[#allocation94_spill] sm:$0xff] %v5059_v61 }
 0x548   :  { %v5061_v54 = vpop.permute.xlu1 %1034 }
 0x549   :  { %8398 = vst [vmem:[#allocation95_spill] sm:$0xff] %v5061_v54 }
 0x54c   :  { %v5063_v1 = vpop.permute.xlu1 %1038 }
 0x54d   :  { %8399 = vst [vmem:[#allocation96_spill] sm:$0xff] %v5063_v1 }
 0x550   :  { %v5065_v27 = vpop.permute.xlu1 %1042 }
 0x551   :  { %8400 = vst [vmem:[#allocation97_spill] sm:$0xff] %v5065_v27 }
 0x554   :  { %v5067_v10 = vpop.permute.xlu1 %1046 }
 0x555   :  { %8401 = vst [vmem:[#allocation98_spill] sm:$0xff] %v5067_v10 }
 0x561   :  { %v1073_v12 = vpop.permute.xlu1 %1072 }
 0x562   :  { %v1076_v25 = vmul.f32 %v1073_v12, %v4574_v15  ;;  %v1075_v13 = vmul.f32 %v1073_v12, %v4570_v14  ;;  %v1078_v7 = vmul.f32 %v1073_v12, %v4582_v18  ;;  %v1077_v61 = vmul.f32 %v1073_v12, %v4586_v19 }
 0x563   :  { %v1080_v27 = vmul.f32 %v1073_v12, %v4598_v23  ;;  %v1079_v10 = vmul.f32 %v1073_v12, %v4594_v22 }
 0x564   :  { %1093 = vrot.lane.b32.xlu1 %v1076_v25, %s4334_s20  ;;  %1091 = vrot.lane.b32.xlu0 %v1075_v13, %s4334_s20  ;;  %v1082_v25 = vmul.f32 %v1073_v12, %v4606_v36  ;;  %v1081_v13 = vmul.f32 %v1073_v12, %v4610_v37 }
 0x568   :  { %1097 = vrot.lane.b32.xlu1 %v1078_v7, %s4334_s20  ;;  %1095 = vrot.lane.b32.xlu0 %v1077_v61, %s4334_s20  ;;  %v4259_v7 = vld [vmem:[%s8054_s2 + $0x4c] sm:$0xf]  ;;  %v5088_v61 = vpop.permute.xlu0 %1036 }
 0x569   :  { %8402 = vst [vmem:[#allocation99_spill] sm:$0xff] %v5088_v61 }
 0x56c   :  { %1101 = vrot.lane.b32.xlu1 %v1080_v27, %s4334_s20  ;;  %1099 = vrot.lane.b32.xlu0 %v1079_v10, %s4334_s20  ;;  %v5090_v1 = vpop.permute.xlu0 %1040 }
 0x56d   :  { %8403 = vst [vmem:[#allocation100_spill] sm:$0xff] %v5090_v1 }
 0x570   :  { %1105 = vrot.lane.b32.xlu1 %v1082_v25, %s4334_s20  ;;  %1103 = vrot.lane.b32.xlu0 %v1081_v13, %s4334_s20  ;;  %v5092_v27 = vpop.permute.xlu0 %1044 }
 0x571   :  { %8404 = vst [vmem:[#allocation101_spill] sm:$0xff] %v5092_v27 }
 0x574   :  { %1129 = vperm.xlu0 %4321, %v4259_v7   ;;  %v5094_v10 = vpop.permute.xlu0 %1048 }
 0x575   :  { %8405 = vst [vmem:[#allocation102_spill] sm:$0xff] %v5094_v10 }
 0x5d6   :  { %v5096_v54 = vpop.permute.xlu0 %1091 }
 0x5d7   :  { %8406 = vst [vmem:[#allocation103_spill] sm:$0xff] %v5096_v54 }
 0x5da   :  { %v5098_v12 = vpop.permute.xlu0 %1095 }
 0x5db   :  { %8407 = vst [vmem:[#allocation104_spill] sm:$0xff] %v5098_v12 }
 0x5de   :  { %v5100_v25 = vpop.permute.xlu0 %1099 }
 0x5df   :  { %8408 = vst [vmem:[#allocation105_spill] sm:$0xff] %v5100_v25 }
 0x5e2   :  { %v5102_v13 = vpop.permute.xlu0 %1103 }
 0x5e3   :  { %8409 = vst [vmem:[#allocation106_spill] sm:$0xff] %v5102_v13 }
 0x5ef   :  { %v1130_v42 = vpop.permute.xlu0 %1129 }
 0x5f0   :  { %v1133_v57 = vmul.f32 %v1130_v42, %v4625_v56  ;;  %v1132_v7 = vmul.f32 %v1130_v42, %v4621_v55  ;;  %v1135_v27 = vmul.f32 %v1130_v42, %v4633_v60  ;;  %v1134_v10 = vmul.f32 %v1130_v42, %v4637_v26 }
 0x5f1   :  { %v1137_v25 = vmul.f32 %v1130_v42, %v4649_v33  ;;  %v1136_v13 = vmul.f32 %v1130_v42, %v4645_v0 }
 0x5f2   :  { %1150 = vrot.lane.b32.xlu0 %v1133_v57, %s4334_s20  ;;  %1148 = vrot.lane.b32.xlu1 %v1132_v7, %s4334_s20  ;;  %v1139_v57 = vmul.f32 %v1130_v42, %v4657_v6  ;;  %v1138_v7 = vmul.f32 %v1130_v42, %v4661_v41 }
 0x5f6   :  { %1154 = vrot.lane.b32.xlu0 %v1135_v27, %s4334_s20  ;;  %1152 = vrot.lane.b32.xlu1 %v1134_v10, %s4334_s20  ;;  %v4260_v27 = vld [vmem:[%s8054_s2 + $0x50] sm:$0xf]  ;;  %v5123_v10 = vpop.permute.xlu1 %1093 }
 0x5f7   :  { %8410 = vst [vmem:[#allocation107_spill] sm:$0xff] %v5123_v10 }
 0x5fa   :  { %1158 = vrot.lane.b32.xlu0 %v1137_v25, %s4334_s20  ;;  %1156 = vrot.lane.b32.xlu1 %v1136_v13, %s4334_s20  ;;  %v5125_v12 = vpop.permute.xlu1 %1097 }
 0x5fb   :  { %8411 = vst [vmem:[#allocation108_spill] sm:$0xff] %v5125_v12 }
 0x5fe   :  { %1162 = vrot.lane.b32.xlu0 %v1139_v57, %s4334_s20  ;;  %1160 = vrot.lane.b32.xlu1 %v1138_v7, %s4334_s20  ;;  %v5127_v25 = vpop.permute.xlu1 %1101 }
 0x5ff   :  { %8412 = vst [vmem:[#allocation109_spill] sm:$0xff] %v5127_v25 }
 0x602   :  { %1186 = vperm.xlu1 %4322, %v4260_v27   ;;  %v5129_v13 = vpop.permute.xlu1 %1105 }
 0x603   :  { %8413 = vst [vmem:[#allocation110_spill] sm:$0xff] %v5129_v13 }
 0x664   :  { %v5131_v54 = vpop.permute.xlu1 %1148 }
 0x665   :  { %8414 = vst [vmem:[#allocation111_spill] sm:$0xff] %v5131_v54 }
 0x668   :  { %v5133_v42 = vpop.permute.xlu1 %1152 }
 0x669   :  { %8415 = vst [vmem:[#allocation112_spill] sm:$0xff] %v5133_v42 }
 0x66c   :  { %v5135_v57 = vpop.permute.xlu1 %1156 }
 0x66d   :  { %8416 = vst [vmem:[#allocation113_spill] sm:$0xff] %v5135_v57 }
 0x670   :  { %v5137_v7 = vpop.permute.xlu1 %1160 }
 0x671   :  { %8417 = vst [vmem:[#allocation114_spill] sm:$0xff] %v5137_v7 }
 0x67d   :  { %v1187_v1 = vpop.permute.xlu1 %1186 }
 0x67e   :  { %v1190_v61 = vmul.f32 %v1187_v1, %v4452_v32  ;;  %v1189_v27 = vmul.f32 %v1187_v1, %v4448_v31  ;;  %v1192_v13 = vmul.f32 %v1187_v1, %v4466_v39  ;;  %v1191_v54 = vmul.f32 %v1187_v1, %v4470_v40 }
 0x67f   :  { %v1194_v7 = vmul.f32 %v1187_v1, %v4488_v46  ;;  %v1193_v57 = vmul.f32 %v1187_v1, %v4484_v45 }
 0x680   :  { %1207 = vrot.lane.b32.xlu1 %v1190_v61, %s4335_s8  ;;  %1205 = vrot.lane.b32.xlu0 %v1189_v27, %s4335_s8  ;;  %v1196_v61 = vmul.f32 %v1187_v1, %v4504_v52  ;;  %v1195_v27 = vmul.f32 %v1187_v1, %v4508_v53 }
 0x684   :  { %1211 = vrot.lane.b32.xlu1 %v1192_v13, %s4335_s8  ;;  %1209 = vrot.lane.b32.xlu0 %v1191_v54, %s4335_s8  ;;  %v4261_v54 = vld [vmem:[%s8054_s2 + $0x54] sm:$0xf]  ;;  %v5158_v13 = vpop.permute.xlu0 %1150 }
 0x685   :  { %8418 = vst [vmem:[#allocation115_spill] sm:$0xff] %v5158_v13 }
 0x688   :  { %1215 = vrot.lane.b32.xlu1 %v1194_v7, %s4335_s8  ;;  %1213 = vrot.lane.b32.xlu0 %v1193_v57, %s4335_s8  ;;  %v5160_v42 = vpop.permute.xlu0 %1154 }
 0x689   :  { %8419 = vst [vmem:[#allocation116_spill] sm:$0xff] %v5160_v42 }
 0x68c   :  { %1219 = vrot.lane.b32.xlu1 %v1196_v61, %s4335_s8  ;;  %1217 = vrot.lane.b32.xlu0 %v1195_v27, %s4335_s8  ;;  %v5162_v7 = vpop.permute.xlu0 %1158 }
 0x68d   :  { %8420 = vst [vmem:[#allocation117_spill] sm:$0xff] %v5162_v7 }
 0x690   :  { %1244 = vperm.xlu0 %4321, %v4261_v54   ;;  %v5164_v57 = vpop.permute.xlu0 %1162 }
 0x691   :  { %8421 = vst [vmem:[#allocation118_spill] sm:$0xff] %v5164_v57 }
 0x6f2   :  { %v5166_v25 = vpop.permute.xlu0 %1205 }
 0x6f3   :  { %8422 = vst [vmem:[#allocation119_spill] sm:$0xff] %v5166_v25 }
 0x6f6   :  { %v5168_v1 = vpop.permute.xlu0 %1209 }
 0x6f7   :  { %8423 = vst [vmem:[#allocation120_spill] sm:$0xff] %v5168_v1 }
 0x6fa   :  { %v5170_v61 = vpop.permute.xlu0 %1213 }
 0x6fb   :  { %8424 = vst [vmem:[#allocation121_spill] sm:$0xff] %v5170_v61 }
 0x6fe   :  { %v5172_v27 = vpop.permute.xlu0 %1217 }
 0x6ff   :  { %8425 = vst [vmem:[#allocation122_spill] sm:$0xff] %v5172_v27 }
 0x70b   :  { %v1245_v12 = vpop.permute.xlu0 %1244 }
 0x70c   :  { %v1248_v10 = vmul.f32 %v1245_v12, %v4523_v59  ;;  %v1247_v54 = vmul.f32 %v1245_v12, %v4519_v58  ;;  %v1250_v7 = vmul.f32 %v1245_v12, %v4531_v62  ;;  %v1249_v57 = vmul.f32 %v1245_v12, %v4535_v63 }
 0x70d   :  { %v1252_v61 = vmul.f32 %v1245_v12, %v4547_v4  ;;  %v1251_v27 = vmul.f32 %v1245_v12, %v4543_v2 }
 0x70e   :  { %1265 = vrot.lane.b32.xlu0 %v1248_v10, %s4335_s8  ;;  %1263 = vrot.lane.b32.xlu1 %v1247_v54, %s4335_s8  ;;  %v1254_v10 = vmul.f32 %v1245_v12, %v4555_v8  ;;  %v1253_v54 = vmul.f32 %v1245_v12, %v4559_v9 }
 0x712   :  { %1269 = vrot.lane.b32.xlu0 %v1250_v7, %s4335_s8  ;;  %1267 = vrot.lane.b32.xlu1 %v1249_v57, %s4335_s8  ;;  %v4262_v7 = vld [vmem:[%s8054_s2 + $0x58] sm:$0xf]  ;;  %v5193_v57 = vpop.permute.xlu1 %1207 }
 0x713   :  { %8426 = vst [vmem:[#allocation123_spill] sm:$0xff] %v5193_v57 }
 0x716   :  { %1273 = vrot.lane.b32.xlu0 %v1252_v61, %s4335_s8  ;;  %1271 = vrot.lane.b32.xlu1 %v1251_v27, %s4335_s8  ;;  %v5195_v1 = vpop.permute.xlu1 %1211 }
 0x717   :  { %8427 = vst [vmem:[#allocation124_spill] sm:$0xff] %v5195_v1 }
 0x71a   :  { %1277 = vrot.lane.b32.xlu0 %v1254_v10, %s4335_s8  ;;  %1275 = vrot.lane.b32.xlu1 %v1253_v54, %s4335_s8  ;;  %v5197_v61 = vpop.permute.xlu1 %1215 }
 0x71b   :  { %8428 = vst [vmem:[#allocation125_spill] sm:$0xff] %v5197_v61 }
 0x71e   :  { %1301 = vperm.xlu1 %4322, %v4262_v7   ;;  %v5199_v27 = vpop.permute.xlu1 %1219 }
 0x71f   :  { %8429 = vst [vmem:[#allocation126_spill] sm:$0xff] %v5199_v27 }
 0x780   :  { %v5201_v25 = vpop.permute.xlu1 %1263 }
 0x781   :  { %8430 = vst [vmem:[#allocation127_spill] sm:$0xff] %v5201_v25 }
 0x784   :  { %v5203_v12 = vpop.permute.xlu1 %1267 }
 0x785   :  { %8431 = vst [vmem:[#allocation128_spill] sm:$0xff] %v5203_v12 }
 0x788   :  { %v5205_v10 = vpop.permute.xlu1 %1271 }
 0x789   :  { %8432 = vst [vmem:[#allocation129_spill] sm:$0xff] %v5205_v10 }
 0x78c   :  { %v5207_v54 = vpop.permute.xlu1 %1275 }
 0x78d   :  { %8433 = vst [vmem:[#allocation130_spill] sm:$0xff] %v5207_v54 }
 0x799   :  { %v1302_v42 = vpop.permute.xlu1 %1301 }
 0x79a   :  { %v1305_v13 = vmul.f32 %v1302_v42, %v4574_v15  ;;  %v1304_v7 = vmul.f32 %v1302_v42, %v4570_v14  ;;  %v1307_v61 = vmul.f32 %v1302_v42, %v4582_v18  ;;  %v1306_v27 = vmul.f32 %v1302_v42, %v4586_v19 }
 0x79b   :  { %v1309_v10 = vmul.f32 %v1302_v42, %v4598_v23  ;;  %v1308_v54 = vmul.f32 %v1302_v42, %v4594_v22 }
 0x79c   :  { %1322 = vrot.lane.b32.xlu1 %v1305_v13, %s4335_s8  ;;  %1320 = vrot.lane.b32.xlu0 %v1304_v7, %s4335_s8  ;;  %v1311_v13 = vmul.f32 %v1302_v42, %v4606_v36  ;;  %v1310_v7 = vmul.f32 %v1302_v42, %v4610_v37 }
 0x7a0   :  { %1326 = vrot.lane.b32.xlu1 %v1307_v61, %s4335_s8  ;;  %1324 = vrot.lane.b32.xlu0 %v1306_v27, %s4335_s8  ;;  %v4263_v61 = vld [vmem:[%s8054_s2 + $0x5c] sm:$0xf]  ;;  %v5228_v27 = vpop.permute.xlu0 %1265 }
 0x7a1   :  { %8434 = vst [vmem:[#allocation131_spill] sm:$0xff] %v5228_v27 }
 0x7a4   :  { %1330 = vrot.lane.b32.xlu1 %v1309_v10, %s4335_s8  ;;  %1328 = vrot.lane.b32.xlu0 %v1308_v54, %s4335_s8  ;;  %v5230_v12 = vpop.permute.xlu0 %1269 }
 0x7a5   :  { %8435 = vst [vmem:[#allocation132_spill] sm:$0xff] %v5230_v12 }
 0x7a8   :  { %1334 = vrot.lane.b32.xlu1 %v1311_v13, %s4335_s8  ;;  %1332 = vrot.lane.b32.xlu0 %v1310_v7, %s4335_s8  ;;  %v5232_v10 = vpop.permute.xlu0 %1273 }
 0x7a9   :  { %8436 = vst [vmem:[#allocation133_spill] sm:$0xff] %v5232_v10 }
 0x7ac   :  { %1358 = vperm.xlu0 %4321, %v4263_v61   ;;  %v5234_v54 = vpop.permute.xlu0 %1277 }
 0x7ad   :  { %8437 = vst [vmem:[#allocation134_spill] sm:$0xff] %v5234_v54 }
 0x80e   :  { %v5236_v25 = vpop.permute.xlu0 %1320 }
 0x80f   :  { %8438 = vst [vmem:[#allocation135_spill] sm:$0xff] %v5236_v25 }
 0x812   :  { %v5238_v42 = vpop.permute.xlu0 %1324 }
 0x813   :  { %8439 = vst [vmem:[#allocation136_spill] sm:$0xff] %v5238_v42 }
 0x816   :  { %v5240_v13 = vpop.permute.xlu0 %1328 }
 0x817   :  { %8440 = vst [vmem:[#allocation137_spill] sm:$0xff] %v5240_v13 }
 0x81a   :  { %v5242_v7 = vpop.permute.xlu0 %1332 }
 0x81b   :  { %8441 = vst [vmem:[#allocation138_spill] sm:$0xff] %v5242_v7 }
 0x827   :  { %v1359_v1 = vpop.permute.xlu0 %1358 }
 0x828   :  { %v1362_v57 = vmul.f32 %v1359_v1, %v4625_v56  ;;  %v1361_v61 = vmul.f32 %v1359_v1, %v4621_v55  ;;  %v1364_v10 = vmul.f32 %v1359_v1, %v4633_v60  ;;  %v1363_v54 = vmul.f32 %v1359_v1, %v4637_v26 }
 0x829   :  { %v1366_v13 = vmul.f32 %v1359_v1, %v4649_v33  ;;  %v1365_v7 = vmul.f32 %v1359_v1, %v4645_v0 }
 0x82a   :  { %1379 = vrot.lane.b32.xlu0 %v1362_v57, %s4335_s8  ;;  %1377 = vrot.lane.b32.xlu1 %v1361_v61, %s4335_s8  ;;  %v1368_v57 = vmul.f32 %v1359_v1, %v4657_v6  ;;  %v1367_v61 = vmul.f32 %v1359_v1, %v4661_v41 }
 0x82e   :  { %1383 = vrot.lane.b32.xlu0 %v1364_v10, %s4335_s8  ;;  %1381 = vrot.lane.b32.xlu1 %v1363_v54, %s4335_s8  ;;  %v4264_v10 = vld [vmem:[%s8054_s2 + $0x60] sm:$0xf]  ;;  %v5263_v54 = vpop.permute.xlu1 %1322 }
 0x82f   :  { %8442 = vst [vmem:[#allocation139_spill] sm:$0xff] %v5263_v54 }
 0x832   :  { %1387 = vrot.lane.b32.xlu0 %v1366_v13, %s4335_s8  ;;  %1385 = vrot.lane.b32.xlu1 %v1365_v7, %s4335_s8  ;;  %v5265_v42 = vpop.permute.xlu1 %1326 }
 0x833   :  { %8443 = vst [vmem:[#allocation140_spill] sm:$0xff] %v5265_v42 }
 0x836   :  { %1391 = vrot.lane.b32.xlu0 %v1368_v57, %s4335_s8  ;;  %1389 = vrot.lane.b32.xlu1 %v1367_v61, %s4335_s8  ;;  %v5267_v13 = vpop.permute.xlu1 %1330 }
 0x837   :  { %8444 = vst [vmem:[#allocation141_spill] sm:$0xff] %v5267_v13 }
 0x83a   :  { %1415 = vperm.xlu1 %4322, %v4264_v10   ;;  %v5269_v7 = vpop.permute.xlu1 %1334 }
 0x83b   :  { %8445 = vst [vmem:[#allocation142_spill] sm:$0xff] %v5269_v7 }
 0x89c   :  { %v5271_v25 = vpop.permute.xlu1 %1377 }
 0x89d   :  { %8446 = vst [vmem:[#allocation143_spill] sm:$0xff] %v5271_v25 }
 0x8a0   :  { %v5273_v1 = vpop.permute.xlu1 %1381 }
 0x8a1   :  { %8447 = vst [vmem:[#allocation144_spill] sm:$0xff] %v5273_v1 }
 0x8a4   :  { %v5275_v57 = vpop.permute.xlu1 %1385 }
 0x8a5   :  { %8448 = vst [vmem:[#allocation145_spill] sm:$0xff] %v5275_v57 }
 0x8a8   :  { %v5277_v61 = vpop.permute.xlu1 %1389 }
 0x8a9   :  { %8449 = vst [vmem:[#allocation146_spill] sm:$0xff] %v5277_v61 }
 0x8b5   :  { %v1416_v12 = vpop.permute.xlu1 %1415 }
 0x8b6   :  { %v1419_v27 = vmul.f32 %v1416_v12, %v4452_v32  ;;  %v1418_v10 = vmul.f32 %v1416_v12, %v4448_v31  ;;  %v1421_v7 = vmul.f32 %v1416_v12, %v4466_v39  ;;  %v1420_v25 = vmul.f32 %v1416_v12, %v4470_v40 }
 0x8b7   :  { %v1423_v61 = vmul.f32 %v1416_v12, %v4488_v46  ;;  %v1422_v57 = vmul.f32 %v1416_v12, %v4484_v45 }
 0x8b8   :  { %1436 = vrot.lane.b32.xlu1 %v1419_v27, %s4336_s18  ;;  %1434 = vrot.lane.b32.xlu0 %v1418_v10, %s4336_s18  ;;  %v1425_v27 = vmul.f32 %v1416_v12, %v4504_v52  ;;  %v1424_v10 = vmul.f32 %v1416_v12, %v4508_v53 }
 0x8bc   :  { %1440 = vrot.lane.b32.xlu1 %v1421_v7, %s4336_s18  ;;  %1438 = vrot.lane.b32.xlu0 %v1420_v25, %s4336_s18  ;;  %v4265_v25 = vld [vmem:[%s8054_s2 + $0x64] sm:$0xf]  ;;  %v5298_v7 = vpop.permute.xlu0 %1379 }
 0x8bd   :  { %8450 = vst [vmem:[#allocation147_spill] sm:$0xff] %v5298_v7 }
 0x8c0   :  { %1444 = vrot.lane.b32.xlu1 %v1423_v61, %s4336_s18  ;;  %1442 = vrot.lane.b32.xlu0 %v1422_v57, %s4336_s18  ;;  %v5300_v1 = vpop.permute.xlu0 %1383 }
 0x8c1   :  { %8451 = vst [vmem:[#allocation148_spill] sm:$0xff] %v5300_v1 }
 0x8c4   :  { %1448 = vrot.lane.b32.xlu1 %v1425_v27, %s4336_s18  ;;  %1446 = vrot.lane.b32.xlu0 %v1424_v10, %s4336_s18  ;;  %v5302_v61 = vpop.permute.xlu0 %1387 }
 0x8c5   :  { %8452 = vst [vmem:[#allocation149_spill] sm:$0xff] %v5302_v61 }
 0x8c8   :  { %1473 = vperm.xlu0 %4321, %v4265_v25   ;;  %v5304_v57 = vpop.permute.xlu0 %1391 }
 0x8c9   :  { %8453 = vst [vmem:[#allocation150_spill] sm:$0xff] %v5304_v57 }
 0x92a   :  { %v5306_v13 = vpop.permute.xlu0 %1434 }
 0x92b   :  { %8454 = vst [vmem:[#allocation151_spill] sm:$0xff] %v5306_v13 }
 0x92e   :  { %v5308_v12 = vpop.permute.xlu0 %1438 }
 0x92f   :  { %8455 = vst [vmem:[#allocation152_spill] sm:$0xff] %v5308_v12 }
 0x932   :  { %v5310_v27 = vpop.permute.xlu0 %1442 }
 0x933   :  { %8456 = vst [vmem:[#allocation153_spill] sm:$0xff] %v5310_v27 }
 0x936   :  { %v5312_v10 = vpop.permute.xlu0 %1446 }
 0x937   :  { %8457 = vst [vmem:[#allocation154_spill] sm:$0xff] %v5312_v10 }
 0x943   :  { %v1474_v42 = vpop.permute.xlu0 %1473 }
 0x944   :  { %v1477_v54 = vmul.f32 %v1474_v42, %v4523_v59  ;;  %v1476_v25 = vmul.f32 %v1474_v42, %v4519_v58  ;;  %v1479_v61 = vmul.f32 %v1474_v42, %v4531_v62  ;;  %v1478_v57 = vmul.f32 %v1474_v42, %v4535_v63 }
 0x945   :  { %v1481_v27 = vmul.f32 %v1474_v42, %v4547_v4  ;;  %v1480_v10 = vmul.f32 %v1474_v42, %v4543_v2 }
 0x946   :  { %1494 = vrot.lane.b32.xlu0 %v1477_v54, %s4336_s18  ;;  %1492 = vrot.lane.b32.xlu1 %v1476_v25, %s4336_s18  ;;  %v1483_v54 = vmul.f32 %v1474_v42, %v4555_v8  ;;  %v1482_v25 = vmul.f32 %v1474_v42, %v4559_v9 }
 0x94a   :  { %1498 = vrot.lane.b32.xlu0 %v1479_v61, %s4336_s18  ;;  %1496 = vrot.lane.b32.xlu1 %v1478_v57, %s4336_s18  ;;  %v4266_v61 = vld [vmem:[%s8054_s2 + $0x68] sm:$0xf]  ;;  %v5333_v57 = vpop.permute.xlu1 %1436 }
 0x94b   :  { %8458 = vst [vmem:[#allocation155_spill] sm:$0xff] %v5333_v57 }
 0x94e   :  { %1502 = vrot.lane.b32.xlu0 %v1481_v27, %s4336_s18  ;;  %1500 = vrot.lane.b32.xlu1 %v1480_v10, %s4336_s18  ;;  %v5335_v12 = vpop.permute.xlu1 %1440 }
 0x94f   :  { %8459 = vst [vmem:[#allocation156_spill] sm:$0xff] %v5335_v12 }
 0x952   :  { %1506 = vrot.lane.b32.xlu0 %v1483_v54, %s4336_s18  ;;  %1504 = vrot.lane.b32.xlu1 %v1482_v25, %s4336_s18  ;;  %v5337_v27 = vpop.permute.xlu1 %1444 }
 0x953   :  { %8460 = vst [vmem:[#allocation157_spill] sm:$0xff] %v5337_v27 }
 0x956   :  { %1530 = vperm.xlu1 %4322, %v4266_v61   ;;  %v5339_v10 = vpop.permute.xlu1 %1448 }
 0x957   :  { %8461 = vst [vmem:[#allocation158_spill] sm:$0xff] %v5339_v10 }
 0x9b8   :  { %v5341_v13 = vpop.permute.xlu1 %1492 }
 0x9b9   :  { %8462 = vst [vmem:[#allocation159_spill] sm:$0xff] %v5341_v13 }
 0x9bc   :  { %v5343_v42 = vpop.permute.xlu1 %1496 }
 0x9bd   :  { %8463 = vst [vmem:[#allocation160_spill] sm:$0xff] %v5343_v42 }
 0x9c0   :  { %v5345_v54 = vpop.permute.xlu1 %1500 }
 0x9c1   :  { %8464 = vst [vmem:[#allocation161_spill] sm:$0xff] %v5345_v54 }
 0x9c4   :  { %v5347_v25 = vpop.permute.xlu1 %1504 }
 0x9c5   :  { %8465 = vst [vmem:[#allocation162_spill] sm:$0xff] %v5347_v25 }
 0x9d1   :  { %v1531_v1 = vpop.permute.xlu1 %1530 }
 0x9d2   :  { %v1534_v7 = vmul.f32 %v1531_v1, %v4574_v15  ;;  %v1533_v61 = vmul.f32 %v1531_v1, %v4570_v14  ;;  %v1536_v27 = vmul.f32 %v1531_v1, %v4582_v18  ;;  %v1535_v10 = vmul.f32 %v1531_v1, %v4586_v19 }
 0x9d3   :  { %v1538_v54 = vmul.f32 %v1531_v1, %v4598_v23  ;;  %v1537_v25 = vmul.f32 %v1531_v1, %v4594_v22 }
 0x9d4   :  { %1551 = vrot.lane.b32.xlu1 %v1534_v7, %s4336_s18  ;;  %1549 = vrot.lane.b32.xlu0 %v1533_v61, %s4336_s18  ;;  %v1540_v7 = vmul.f32 %v1531_v1, %v4606_v36  ;;  %v1539_v61 = vmul.f32 %v1531_v1, %v4610_v37 }
 0x9d8   :  { %1555 = vrot.lane.b32.xlu1 %v1536_v27, %s4336_s18  ;;  %1553 = vrot.lane.b32.xlu0 %v1535_v10, %s4336_s18  ;;  %v4267_v27 = vld [vmem:[%s8054_s2 + $0x6c] sm:$0xf]  ;;  %v5368_v10 = vpop.permute.xlu0 %1494 }
 0x9d9   :  { %8466 = vst [vmem:[#allocation163_spill] sm:$0xff] %v5368_v10 }
 0x9dc   :  { %1559 = vrot.lane.b32.xlu1 %v1538_v54, %s4336_s18  ;;  %1557 = vrot.lane.b32.xlu0 %v1537_v25, %s4336_s18  ;;  %v5370_v42 = vpop.permute.xlu0 %1498 }
 0x9dd   :  { %8467 = vst [vmem:[#allocation164_spill] sm:$0xff] %v5370_v42 }
 0x9e0   :  { %1563 = vrot.lane.b32.xlu1 %v1540_v7, %s4336_s18  ;;  %1561 = vrot.lane.b32.xlu0 %v1539_v61, %s4336_s18  ;;  %v5372_v54 = vpop.permute.xlu0 %1502 }
 0x9e1   :  { %8468 = vst [vmem:[#allocation165_spill] sm:$0xff] %v5372_v54 }
 0x9e4   :  { %1587 = vperm.xlu0 %4321, %v4267_v27   ;;  %v5374_v25 = vpop.permute.xlu0 %1506 }
 0x9e5   :  { %8469 = vst [vmem:[#allocation166_spill] sm:$0xff] %v5374_v25 }
 0xa46   :  { %v5376_v13 = vpop.permute.xlu0 %1549 }
 0xa47   :  { %8470 = vst [vmem:[#allocation167_spill] sm:$0xff] %v5376_v13 }
 0xa4a   :  { %v5378_v1 = vpop.permute.xlu0 %1553 }
 0xa4b   :  { %8471 = vst [vmem:[#allocation168_spill] sm:$0xff] %v5378_v1 }
 0xa4e   :  { %v5380_v7 = vpop.permute.xlu0 %1557 }
 0xa4f   :  { %8472 = vst [vmem:[#allocation169_spill] sm:$0xff] %v5380_v7 }
 0xa52   :  { %v5382_v61 = vpop.permute.xlu0 %1561 }
 0xa53   :  { %8473 = vst [vmem:[#allocation170_spill] sm:$0xff] %v5382_v61 }
 0xa5f   :  { %v1588_v12 = vpop.permute.xlu0 %1587 }
 0xa60   :  { %v1591_v57 = vmul.f32 %v1588_v12, %v4625_v56  ;;  %v1590_v27 = vmul.f32 %v1588_v12, %v4621_v55  ;;  %v1593_v54 = vmul.f32 %v1588_v12, %v4633_v60  ;;  %v1592_v25 = vmul.f32 %v1588_v12, %v4637_v26 }
 0xa61   :  { %v1595_v7 = vmul.f32 %v1588_v12, %v4649_v33  ;;  %v1594_v61 = vmul.f32 %v1588_v12, %v4645_v0 }
 0xa62   :  { %1608 = vrot.lane.b32.xlu0 %v1591_v57, %s4336_s18  ;;  %1606 = vrot.lane.b32.xlu1 %v1590_v27, %s4336_s18  ;;  %v1597_v57 = vmul.f32 %v1588_v12, %v4657_v6  ;;  %v1596_v27 = vmul.f32 %v1588_v12, %v4661_v41 }
 0xa66   :  { %1612 = vrot.lane.b32.xlu0 %v1593_v54, %s4336_s18  ;;  %1610 = vrot.lane.b32.xlu1 %v1592_v25, %s4336_s18  ;;  %v4268_v54 = vld [vmem:[%s8054_s2 + $0x70] sm:$0xf]  ;;  %v5403_v25 = vpop.permute.xlu1 %1551 }
 0xa67   :  { %8474 = vst [vmem:[#allocation171_spill] sm:$0xff] %v5403_v25 }
 0xa6a   :  { %1616 = vrot.lane.b32.xlu0 %v1595_v7, %s4336_s18  ;;  %1614 = vrot.lane.b32.xlu1 %v1594_v61, %s4336_s18  ;;  %v5405_v1 = vpop.permute.xlu1 %1555 }
 0xa6b   :  { %8475 = vst [vmem:[#allocation172_spill] sm:$0xff] %v5405_v1 }
 0xa6e   :  { %1620 = vrot.lane.b32.xlu0 %v1597_v57, %s4336_s18  ;;  %1618 = vrot.lane.b32.xlu1 %v1596_v27, %s4336_s18  ;;  %v5407_v7 = vpop.permute.xlu1 %1559 }
 0xa6f   :  { %8476 = vst [vmem:[#allocation173_spill] sm:$0xff] %v5407_v7 }
 0xa72   :  { %1644 = vperm.xlu1 %4322, %v4268_v54   ;;  %v5409_v61 = vpop.permute.xlu1 %1563 }
 0xa73   :  { %8477 = vst [vmem:[#allocation174_spill] sm:$0xff] %v5409_v61 }
 0xad4   :  { %v5411_v13 = vpop.permute.xlu1 %1606 }
 0xad5   :  { %8478 = vst [vmem:[#allocation175_spill] sm:$0xff] %v5411_v13 }
 0xad8   :  { %v5413_v12 = vpop.permute.xlu1 %1610 }
 0xad9   :  { %8479 = vst [vmem:[#allocation176_spill] sm:$0xff] %v5413_v12 }
 0xadc   :  { %v5415_v57 = vpop.permute.xlu1 %1614 }
 0xadd   :  { %8480 = vst [vmem:[#allocation177_spill] sm:$0xff] %v5415_v57 }
 0xae0   :  { %v5417_v27 = vpop.permute.xlu1 %1618 }
 0xae1   :  { %8481 = vst [vmem:[#allocation178_spill] sm:$0xff] %v5417_v27 }
 0xaed   :  { %v1645_v42 = vpop.permute.xlu1 %1644 }
 0xaee   :  { %v1648_v10 = vmul.f32 %v1645_v42, %v4452_v32  ;;  %v1647_v54 = vmul.f32 %v1645_v42, %v4448_v31  ;;  %v1650_v61 = vmul.f32 %v1645_v42, %v4466_v39  ;;  %v1649_v13 = vmul.f32 %v1645_v42, %v4470_v40 }
 0xaef   :  { %v1652_v27 = vmul.f32 %v1645_v42, %v4488_v46  ;;  %v1651_v57 = vmul.f32 %v1645_v42, %v4484_v45 }
 0xaf0   :  { %1665 = vrot.lane.b32.xlu1 %v1648_v10, %s4337_s7  ;;  %1663 = vrot.lane.b32.xlu0 %v1647_v54, %s4337_s7  ;;  %v1654_v10 = vmul.f32 %v1645_v42, %v4504_v52  ;;  %v1653_v54 = vmul.f32 %v1645_v42, %v4508_v53 }
 0xaf4   :  { %1669 = vrot.lane.b32.xlu1 %v1650_v61, %s4337_s7  ;;  %1667 = vrot.lane.b32.xlu0 %v1649_v13, %s4337_s7  ;;  %v4269_v13 = vld [vmem:[%s8054_s2 + $0x74] sm:$0xf]  ;;  %v5438_v61 = vpop.permute.xlu0 %1608 }
 0xaf5   :  { %8482 = vst [vmem:[#allocation179_spill] sm:$0xff] %v5438_v61 }
 0xaf8   :  { %1673 = vrot.lane.b32.xlu1 %v1652_v27, %s4337_s7  ;;  %1671 = vrot.lane.b32.xlu0 %v1651_v57, %s4337_s7  ;;  %v5440_v12 = vpop.permute.xlu0 %1612 }
 0xaf9   :  { %8483 = vst [vmem:[#allocation180_spill] sm:$0xff] %v5440_v12 }
 0xafc   :  { %1677 = vrot.lane.b32.xlu1 %v1654_v10, %s4337_s7  ;;  %1675 = vrot.lane.b32.xlu0 %v1653_v54, %s4337_s7  ;;  %v5442_v27 = vpop.permute.xlu0 %1616 }
 0xafd   :  { %8484 = vst [vmem:[#allocation181_spill] sm:$0xff] %v5442_v27 }
 0xb00   :  { %1702 = vperm.xlu0 %4321, %v4269_v13   ;;  %v5444_v57 = vpop.permute.xlu0 %1620 }
 0xb01   :  { %8485 = vst [vmem:[#allocation182_spill] sm:$0xff] %v5444_v57 }
 0xb62   :  { %v5446_v7 = vpop.permute.xlu0 %1663 }
 0xb63   :  { %8486 = vst [vmem:[#allocation183_spill] sm:$0xff] %v5446_v7 }
 0xb66   :  { %v5448_v42 = vpop.permute.xlu0 %1667 }
 0xb67   :  { %8487 = vst [vmem:[#allocation184_spill] sm:$0xff] %v5448_v42 }
 0xb6a   :  { %v5450_v10 = vpop.permute.xlu0 %1671 }
 0xb6b   :  { %8488 = vst [vmem:[#allocation185_spill] sm:$0xff] %v5450_v10 }
 0xb6e   :  { %v5452_v54 = vpop.permute.xlu0 %1675 }
 0xb6f   :  { %8489 = vst [vmem:[#allocation186_spill] sm:$0xff] %v5452_v54 }
 0xb7b   :  { %v1703_v1 = vpop.permute.xlu0 %1702 }
 0xb7c   :  { %v1706_v25 = vmul.f32 %v1703_v1, %v4523_v59  ;;  %v1705_v13 = vmul.f32 %v1703_v1, %v4519_v58  ;;  %v1708_v27 = vmul.f32 %v1703_v1, %v4531_v62  ;;  %v1707_v57 = vmul.f32 %v1703_v1, %v4535_v63 }
 0xb7d   :  { %v1710_v10 = vmul.f32 %v1703_v1, %v4547_v4  ;;  %v1709_v54 = vmul.f32 %v1703_v1, %v4543_v2 }
 0xb7e   :  { %1723 = vrot.lane.b32.xlu0 %v1706_v25, %s4337_s7  ;;  %1721 = vrot.lane.b32.xlu1 %v1705_v13, %s4337_s7  ;;  %v1712_v25 = vmul.f32 %v1703_v1, %v4555_v8  ;;  %v1711_v13 = vmul.f32 %v1703_v1, %v4559_v9 }
 0xb82   :  { %1727 = vrot.lane.b32.xlu0 %v1708_v27, %s4337_s7  ;;  %1725 = vrot.lane.b32.xlu1 %v1707_v57, %s4337_s7  ;;  %v4270_v27 = vld [vmem:[%s8054_s2 + $0x78] sm:$0xf]  ;;  %v5473_v57 = vpop.permute.xlu1 %1665 }
 0xb83   :  { %8490 = vst [vmem:[#allocation187_spill] sm:$0xff] %v5473_v57 }
 0xb86   :  { %1731 = vrot.lane.b32.xlu0 %v1710_v10, %s4337_s7  ;;  %1729 = vrot.lane.b32.xlu1 %v1709_v54, %s4337_s7  ;;  %v5475_v42 = vpop.permute.xlu1 %1669 }
 0xb87   :  { %8491 = vst [vmem:[#allocation188_spill] sm:$0xff] %v5475_v42 }
 0xb8a   :  { %1735 = vrot.lane.b32.xlu0 %v1712_v25, %s4337_s7  ;;  %1733 = vrot.lane.b32.xlu1 %v1711_v13, %s4337_s7  ;;  %v5477_v10 = vpop.permute.xlu1 %1673 }
 0xb8b   :  { %8492 = vst [vmem:[#allocation189_spill] sm:$0xff] %v5477_v10 }
 0xb8e   :  { %1759 = vperm.xlu1 %4322, %v4270_v27   ;;  %v5479_v54 = vpop.permute.xlu1 %1677 }
 0xb8f   :  { %8493 = vst [vmem:[#allocation190_spill] sm:$0xff] %v5479_v54 }
 0xbf0   :  { %v5481_v7 = vpop.permute.xlu1 %1721 }
 0xbf1   :  { %8494 = vst [vmem:[#allocation191_spill] sm:$0xff] %v5481_v7 }
 0xbf4   :  { %v5483_v1 = vpop.permute.xlu1 %1725 }
 0xbf5   :  { %8495 = vst [vmem:[#allocation192_spill] sm:$0xff] %v5483_v1 }
 0xbf8   :  { %v5485_v25 = vpop.permute.xlu1 %1729 }
 0xbf9   :  { %8496 = vst [vmem:[#allocation193_spill] sm:$0xff] %v5485_v25 }
 0xbfc   :  { %v5487_v13 = vpop.permute.xlu1 %1733 }
 0xbfd   :  { %8497 = vst [vmem:[#allocation194_spill] sm:$0xff] %v5487_v13 }
 0xc09   :  { %v1760_v12 = vpop.permute.xlu1 %1759 }
 0xc0a   :  { %v1763_v61 = vmul.f32 %v1760_v12, %v4574_v15  ;;  %v1762_v27 = vmul.f32 %v1760_v12, %v4570_v14  ;;  %v1765_v10 = vmul.f32 %v1760_v12, %v4582_v18  ;;  %v1764_v54 = vmul.f32 %v1760_v12, %v4586_v19 }
 0xc0b   :  { %v1767_v25 = vmul.f32 %v1760_v12, %v4598_v23  ;;  %v1766_v13 = vmul.f32 %v1760_v12, %v4594_v22 }
 0xc0c   :  { %1780 = vrot.lane.b32.xlu1 %v1763_v61, %s4337_s7  ;;  %1778 = vrot.lane.b32.xlu0 %v1762_v27, %s4337_s7  ;;  %v1769_v61 = vmul.f32 %v1760_v12, %v4606_v36  ;;  %v1768_v27 = vmul.f32 %v1760_v12, %v4610_v37 }
 0xc10   :  { %1784 = vrot.lane.b32.xlu1 %v1765_v10, %s4337_s7  ;;  %1782 = vrot.lane.b32.xlu0 %v1764_v54, %s4337_s7  ;;  %v4271_v10 = vld [vmem:[%s8054_s2 + $0x7c] sm:$0xf]  ;;  %v5508_v54 = vpop.permute.xlu0 %1723 }
 0xc11   :  { %8498 = vst [vmem:[#allocation195_spill] sm:$0xff] %v5508_v54 }
 0xc14   :  { %1788 = vrot.lane.b32.xlu1 %v1767_v25, %s4337_s7  ;;  %1786 = vrot.lane.b32.xlu0 %v1766_v13, %s4337_s7  ;;  %v5510_v1 = vpop.permute.xlu0 %1727 }
 0xc15   :  { %8499 = vst [vmem:[#allocation196_spill] sm:$0xff] %v5510_v1 }
 0xc18   :  { %1792 = vrot.lane.b32.xlu1 %v1769_v61, %s4337_s7  ;;  %1790 = vrot.lane.b32.xlu0 %v1768_v27, %s4337_s7  ;;  %v5512_v25 = vpop.permute.xlu0 %1731 }
 0xc19   :  { %8500 = vst [vmem:[#allocation197_spill] sm:$0xff] %v5512_v25 }
 0xc1c   :  { %1816 = vperm.xlu0 %4321, %v4271_v10   ;;  %v5514_v13 = vpop.permute.xlu0 %1735 }
 0xc1d   :  { %8501 = vst [vmem:[#allocation198_spill] sm:$0xff] %v5514_v13 }
 0xc7e   :  { %v5516_v7 = vpop.permute.xlu0 %1778 }
 0xc7f   :  { %8502 = vst [vmem:[#allocation199_spill] sm:$0xff] %v5516_v7 }
 0xc82   :  { %v5518_v12 = vpop.permute.xlu0 %1782 }
 0xc83   :  { %8503 = vst [vmem:[#allocation200_spill] sm:$0xff] %v5518_v12 }
 0xc86   :  { %v5520_v61 = vpop.permute.xlu0 %1786 }
 0xc87   :  { %8504 = vst [vmem:[#allocation201_spill] sm:$0xff] %v5520_v61 }
 0xc8a   :  { %v5522_v27 = vpop.permute.xlu0 %1790 }
 0xc8b   :  { %8505 = vst [vmem:[#allocation202_spill] sm:$0xff] %v5522_v27 }
 0xc97   :  { %v1817_v42 = vpop.permute.xlu0 %1816 }
 0xc98   :  { %v1820_v57 = vmul.f32 %v1817_v42, %v4625_v56  ;;  %v1819_v10 = vmul.f32 %v1817_v42, %v4621_v55  ;;  %v1822_v25 = vmul.f32 %v1817_v42, %v4633_v60  ;;  %v1821_v13 = vmul.f32 %v1817_v42, %v4637_v26 }
 0xc99   :  { %v1824_v61 = vmul.f32 %v1817_v42, %v4649_v33  ;;  %v1823_v27 = vmul.f32 %v1817_v42, %v4645_v0 }
 0xc9a   :  { %1837 = vrot.lane.b32.xlu0 %v1820_v57, %s4337_s7  ;;  %1835 = vrot.lane.b32.xlu1 %v1819_v10, %s4337_s7  ;;  %v1826_v57 = vmul.f32 %v1817_v42, %v4657_v6  ;;  %v1825_v10 = vmul.f32 %v1817_v42, %v4661_v41 }
 0xc9e   :  { %1841 = vrot.lane.b32.xlu0 %v1822_v25, %s4337_s7  ;;  %1839 = vrot.lane.b32.xlu1 %v1821_v13, %s4337_s7  ;;  %v4272_v25 = vld [vmem:[%s8054_s2 + $0x80] sm:$0xf]  ;;  %v5543_v13 = vpop.permute.xlu1 %1780 }
 0xca2   :  { %1845 = vrot.lane.b32.xlu0 %v1824_v61, %s4337_s7  ;;  %1843 = vrot.lane.b32.xlu1 %v1823_v27, %s4337_s7  ;;  %v5545_v12 = vpop.permute.xlu1 %1784 }
 0xca6   :  { %1849 = vrot.lane.b32.xlu0 %v1826_v57, %s4337_s7  ;;  %1847 = vrot.lane.b32.xlu1 %v1825_v10, %s4337_s7  ;;  %v5547_v61 = vpop.permute.xlu1 %1788 }
 0xca7   :  { %8506 = vst [vmem:[#allocation203_spill] sm:$0xff] %v5547_v61 }
 0xcaa   :  { %1873 = vperm.xlu1 %4322, %v4272_v25   ;;  %v5549_v27 = vpop.permute.xlu1 %1792 }
 0xcab   :  { %8507 = vst [vmem:[#allocation204_spill] sm:$0xff] %v5549_v27 }
 0xd0c   :  { %v5551_v7 = vpop.permute.xlu1 %1835 }
 0xd0d   :  { %8508 = vst [vmem:[#allocation205_spill] sm:$0xff] %v5551_v7 }
 0xd10   :  { %v5553_v42 = vpop.permute.xlu1 %1839 }
 0xd11   :  { %8509 = vst [vmem:[#allocation206_spill] sm:$0xff] %v5553_v42 }
 0xd14   :  { %v5555_v57 = vpop.permute.xlu1 %1843 }
 0xd15   :  { %8510 = vst [vmem:[#allocation207_spill] sm:$0xff] %v5555_v57 }
 0xd18   :  { %v5557_v10 = vpop.permute.xlu1 %1847 }
 0xd19   :  { %8511 = vst [vmem:[#allocation208_spill] sm:$0xff] %v5557_v10 }
 0xd25   :  { %v1874_v1 = vpop.permute.xlu1 %1873 }
 0xd26   :  { %v1877_v54 = vmul.f32 %v1874_v1, %v4452_v32  ;;  %v1876_v25 = vmul.f32 %v1874_v1, %v4448_v31  ;;  %v1879_v27 = vmul.f32 %v1874_v1, %v4466_v39  ;;  %v1878_v7 = vmul.f32 %v1874_v1, %v4470_v40  ;;  %v4273_v39 = vld [vmem:[%s8054_s2 + $0x84] sm:$0xf] }
 0xd27   :  { %v1881_v10 = vmul.f32 %v1874_v1, %v4488_v46  ;;  %v1880_v57 = vmul.f32 %v1874_v1, %v4484_v45 }
 0xd28   :  { %1894 = vrot.lane.b32.xlu1 %v1877_v54, %s4338_s19  ;;  %1892 = vrot.lane.b32.xlu0 %v1876_v25, %s4338_s19  ;;  %v1883_v54 = vmul.f32 %v1874_v1, %v4504_v52  ;;  %v1882_v25 = vmul.f32 %v1874_v1, %v4508_v53 }
 0xd2c   :  { %1898 = vrot.lane.b32.xlu1 %v1879_v27, %s4338_s19  ;;  %1896 = vrot.lane.b32.xlu0 %v1878_v7, %s4338_s19  ;;  %v5578_v7 = vpop.permute.xlu0 %1837 }
 0xd30   :  { %1902 = vrot.lane.b32.xlu1 %v1881_v10, %s4338_s19  ;;  %1900 = vrot.lane.b32.xlu0 %v1880_v57, %s4338_s19  ;;  %v5580_v27 = vpop.permute.xlu0 %1841 }
 0xd34   :  { %1906 = vrot.lane.b32.xlu1 %v1883_v54, %s4338_s19  ;;  %1904 = vrot.lane.b32.xlu0 %v1882_v25, %s4338_s19  ;;  %v5582_v10 = vpop.permute.xlu0 %1845 }
 0xd35   :  { %8512 = vst [vmem:[#allocation209_spill] sm:$0xff] %v5582_v10 }
 0xd38   :  { %1931 = vperm.xlu0 %4321, %v4273_v39   ;;  %v5584_v57 = vpop.permute.xlu0 %1849 }
 0xd39   :  { %8513 = vst [vmem:[#allocation210_spill] sm:$0xff] %v5584_v57 }
 0xd9a   :  { %v5586_v52 = vpop.permute.xlu0 %1892 }
 0xd9b   :  { %8514 = vst [vmem:[#allocation211_spill] sm:$0xff] %v5586_v52 }
 0xd9e   :  { %v5588_v1 = vpop.permute.xlu0 %1896 }
 0xd9f   :  { %8515 = vst [vmem:[#allocation212_spill] sm:$0xff] %v5588_v1 }
 0xda2   :  { %v5590_v54 = vpop.permute.xlu0 %1900 }
 0xda3   :  { %8516 = vst [vmem:[#allocation213_spill] sm:$0xff] %v5590_v54 }
 0xda6   :  { %v5592_v25 = vpop.permute.xlu0 %1904 }
 0xda7   :  { %8517 = vst [vmem:[#allocation214_spill] sm:$0xff] %v5592_v25 }
 0xdb3   :  { %v1932_v42 = vpop.permute.xlu0 %1931 }
 0xdb4   :  { %v1935_v61 = vmul.f32 %v1932_v42, %v4523_v59  ;;  %v1934_v39 = vmul.f32 %v1932_v42, %v4519_v58  ;;  %v1937_v10 = vmul.f32 %v1932_v42, %v4531_v62  ;;  %v1936_v57 = vmul.f32 %v1932_v42, %v4535_v63  ;;  %v4274_v62 = vld [vmem:[%s8054_s2 + $0x88] sm:$0xf] }
 0xdb5   :  { %v1939_v54 = vmul.f32 %v1932_v42, %v4547_v4  ;;  %v1938_v25 = vmul.f32 %v1932_v42, %v4543_v2 }
 0xdb6   :  { %1952 = vrot.lane.b32.xlu0 %v1935_v61, %s4338_s19  ;;  %1950 = vrot.lane.b32.xlu1 %v1934_v39, %s4338_s19  ;;  %v1941_v61 = vmul.f32 %v1932_v42, %v4555_v8  ;;  %v1940_v39 = vmul.f32 %v1932_v42, %v4559_v9 }
 0xdba   :  { %1956 = vrot.lane.b32.xlu0 %v1937_v10, %s4338_s19  ;;  %1954 = vrot.lane.b32.xlu1 %v1936_v57, %s4338_s19  ;;  %v5613_v10 = vpop.permute.xlu1 %1894 }
 0xdbe   :  { %1960 = vrot.lane.b32.xlu0 %v1939_v54, %s4338_s19  ;;  %1958 = vrot.lane.b32.xlu1 %v1938_v25, %s4338_s19  ;;  %v5615_v57 = vpop.permute.xlu1 %1898 }
 0xdc2   :  { %1964 = vrot.lane.b32.xlu0 %v1941_v61, %s4338_s19  ;;  %1962 = vrot.lane.b32.xlu1 %v1940_v39, %s4338_s19  ;;  %v5617_v54 = vpop.permute.xlu1 %1902 }
 0xdc3   :  { %8518 = vst [vmem:[#allocation215_spill] sm:$0xff] %v5617_v54 }
 0xdc6   :  { %1988 = vperm.xlu1 %4322, %v4274_v62   ;;  %v5619_v25 = vpop.permute.xlu1 %1906 }
 0xdc7   :  { %8519 = vst [vmem:[#allocation216_spill] sm:$0xff] %v5619_v25 }
 0xe28   :  { %v5621_v8 = vpop.permute.xlu1 %1950 }
 0xe29   :  { %8520 = vst [vmem:[#allocation217_spill] sm:$0xff] %v5621_v8 }
 0xe2c   :  { %v5623_v42 = vpop.permute.xlu1 %1954 }
 0xe2d   :  { %8521 = vst [vmem:[#allocation218_spill] sm:$0xff] %v5623_v42 }
 0xe30   :  { %v5625_v61 = vpop.permute.xlu1 %1958 }
 0xe31   :  { %8522 = vst [vmem:[#allocation219_spill] sm:$0xff] %v5625_v61 }
 0xe34   :  { %v5627_v39 = vpop.permute.xlu1 %1962 }
 0xe35   :  { %8523 = vst [vmem:[#allocation220_spill] sm:$0xff] %v5627_v39 }
 0xe41   :  { %v1989_v1 = vpop.permute.xlu1 %1988 }
 0xe42   :  { %v1992_v52 = vmul.f32 %v1989_v1, %v4574_v15  ;;  %v1991_v62 = vmul.f32 %v1989_v1, %v4570_v14  ;;  %v1994_v54 = vmul.f32 %v1989_v1, %v4582_v18  ;;  %v1993_v25 = vmul.f32 %v1989_v1, %v4586_v19  ;;  %v4275_v18 = vld [vmem:[%s8054_s2 + $0x8c] sm:$0xf] }
 0xe43   :  { %v1996_v61 = vmul.f32 %v1989_v1, %v4598_v23  ;;  %v1995_v39 = vmul.f32 %v1989_v1, %v4594_v22 }
 0xe44   :  { %2009 = vrot.lane.b32.xlu1 %v1992_v52, %s4338_s19  ;;  %2007 = vrot.lane.b32.xlu0 %v1991_v62, %s4338_s19  ;;  %v1998_v52 = vmul.f32 %v1989_v1, %v4606_v36  ;;  %v1997_v62 = vmul.f32 %v1989_v1, %v4610_v37 }
 0xe48   :  { %2013 = vrot.lane.b32.xlu1 %v1994_v54, %s4338_s19  ;;  %2011 = vrot.lane.b32.xlu0 %v1993_v25, %s4338_s19  ;;  %v5648_v54 = vpop.permute.xlu0 %1952 }
 0xe4c   :  { %2017 = vrot.lane.b32.xlu1 %v1996_v61, %s4338_s19  ;;  %2015 = vrot.lane.b32.xlu0 %v1995_v39, %s4338_s19  ;;  %v5650_v25 = vpop.permute.xlu0 %1956 }
 0xe4d   :  { %8524 = vst [vmem:[#allocation221_spill] sm:$0xff] %v5650_v25 }
 0xe50   :  { %2021 = vrot.lane.b32.xlu1 %v1998_v52, %s4338_s19  ;;  %2019 = vrot.lane.b32.xlu0 %v1997_v62, %s4338_s19  ;;  %v5652_v61 = vpop.permute.xlu0 %1960 }
 0xe51   :  { %8525 = vst [vmem:[#allocation222_spill] sm:$0xff] %v5652_v61 }
 0xe54   :  { %2045 = vperm.xlu0 %4321, %v4275_v18   ;;  %v5654_v39 = vpop.permute.xlu0 %1964 }
 0xe55   :  { %8526 = vst [vmem:[#allocation223_spill] sm:$0xff] %v5654_v39 }
 0xeb6   :  { %v5656_v36 = vpop.permute.xlu0 %2007 }
 0xeb7   :  { %8527 = vst [vmem:[#allocation224_spill] sm:$0xff] %v5656_v36 }
 0xeba   :  { %v5658_v1 = vpop.permute.xlu0 %2011 }
 0xebb   :  { %8528 = vst [vmem:[#allocation225_spill] sm:$0xff] %v5658_v1 }
 0xebe   :  { %v5660_v52 = vpop.permute.xlu0 %2015 }
 0xebf   :  { %8529 = vst [vmem:[#allocation226_spill] sm:$0xff] %v5660_v52 }
 0xec2   :  { %v5662_v62 = vpop.permute.xlu0 %2019 }
 0xec3   :  { %8530 = vst [vmem:[#allocation227_spill] sm:$0xff] %v5662_v62 }
 0xecf   :  { %v2046_v42 = vpop.permute.xlu0 %2045 }
 0xed0   :  { %v2049_v8 = vmul.f32 %v2046_v42, %v4625_v56  ;;  %v2048_v18 = vmul.f32 %v2046_v42, %v4621_v55  ;;  %v2051_v61 = vmul.f32 %v2046_v42, %v4633_v60  ;;  %v2050_v39 = vmul.f32 %v2046_v42, %v4637_v26  ;;  %v2098_v60 = vld [vmem:[%s8055_s3] sm:$0xf] }
 0xed1   :  { %v2053_v52 = vmul.f32 %v2046_v42, %v4649_v33  ;;  %v2052_v62 = vmul.f32 %v2046_v42, %v4645_v0 }
 0xed2   :  { %2066 = vrot.lane.b32.xlu0 %v2049_v8, %s4338_s19  ;;  %2064 = vrot.lane.b32.xlu1 %v2048_v18, %s4338_s19  ;;  %v2055_v8 = vmul.f32 %v2046_v42, %v4657_v6  ;;  %v2054_v18 = vmul.f32 %v2046_v42, %v4661_v41  ;;  %v94_v6 = vmul.f32 %v4452_v32, %v4462_v38 }
 0xed3   :  { %v97_v42 = vmul.f32 %v4488_v46, %v4462_v38  ;;  %v139_v32 = vmul.f32 %v4543_v2, %v4431_v24  ;;  %v180_v46 = vmul.f32 %v4574_v15, %v4441_v28  ;;  %v182_v2 = vmul.f32 %v4594_v22, %v4441_v28 }
 0xed4   :  { %v223_v22 = vmul.f32 %v4625_v56, %v4498_v49  ;;  %v227_v56 = vmul.f32 %v4661_v41, %v4498_v49 }
 0xed6   :  { %2070 = vrot.lane.b32.xlu0 %v2051_v61, %s4338_s19  ;;  %2068 = vrot.lane.b32.xlu1 %v2050_v39, %s4338_s19  ;;  %v137_v61 = vmul.f32 %v4523_v59, %v4431_v24  ;;  %v140_v39 = vmul.f32 %v4547_v4, %v4431_v24  ;;  %v138_v59 = vmul.f32 %v4535_v63, %v4431_v24 }
 0xed7   :  { %v96_v4 = vmul.f32 %v4484_v45, %v4462_v38  ;;  %v183_v63 = vmul.f32 %v4598_v23, %v4441_v28  ;;  %v181_v45 = vmul.f32 %v4586_v19, %v4441_v28  ;;  %v222_v19 = vmul.f32 %v4621_v55, %v4498_v49 }
 0xed8   :  { %v143_v15 = vadd.f32 %v137_v61, %v94_v6  ;;  %v283_v55 = vsel %vm281_vm1, %v4758_v48, %v4722_v20 }
 0xed9   :  { %v145_v1 = vadd.f32 %v139_v32, %v96_v4 }
 0xeda   :  { %2074 = vrot.lane.b32.xlu0 %v2053_v52, %s4338_s19  ;;  %2072 = vrot.lane.b32.xlu1 %v2052_v62, %s4338_s19  ;;  %v93_v52 = vmul.f32 %v4448_v31, %v4462_v38  ;;  %v136_v62 = vmul.f32 %v4519_v58, %v4431_v24  ;;  %v179_v31 = vmul.f32 %v4570_v14, %v4441_v28 }
 0xedb   :  { %v98_v58 = vmul.f32 %v4508_v53, %v4462_v38  ;;  %v184_v14 = vmul.f32 %v4610_v37, %v4441_v28  ;;  %v188_v23 = vadd.f32 %v182_v2, %v145_v1  ;;  %v282_v28 = vsel %vm281_vm1, %v4720_v17, %v4758_v48 }
 0xedc   :  { %v224_v37 = vmul.f32 %v4637_v26, %v4498_v49  ;;  %v226_v1 = vmul.f32 %v4649_v33, %v4498_v49  ;;  %v284_v26 = vsel %vm281_vm1, %v4722_v20, %v4764_v5  ;;  %v285_v33 = vsel %vm281_vm1, %v4724_v21, %v4768_v43 }
 0xedd   :  { %v286_v48 = vsel %vm281_vm1, %v4768_v43, %v4726_v30  ;;  %v347_v5 = vsel %vm281_vm1, %v4776_v47, %v4728_v35  ;;  %v348_v20 = vsel %vm281_vm1, %v4728_v35, %v4780_v11  ;;  %v349_v21 = vsel %vm281_vm1, %v4780_v11, %v4730_v44  ;;  %v8531_v47 = vld [vmem:[#allocation8_spill] sm:$0xff]  ;;  %v8532_v11 = vld [vmem:[#allocation9_spill] sm:$0xff] }
 0xede   :  { %2078 = vrot.lane.b32.xlu0 %v2055_v8, %s4338_s19  ;;  %2076 = vrot.lane.b32.xlu1 %v2054_v18, %s4338_s19  ;;  %v95_v8 = vmul.f32 %v4470_v40, %v4462_v38  ;;  %v141_v40 = vmul.f32 %v4559_v9, %v4431_v24  ;;  %v142_v18 = vadd.f32 %v136_v62, %v93_v52 }
 0xedf   :  { %v146_v38 = vadd.f32 %v140_v39, %v97_v42  ;;  %v186_v24 = vadd.f32 %v180_v46, %v143_v15  ;;  %v225_v39 = vmul.f32 %v4645_v0, %v4498_v49  ;;  %v287_v49 = vsel %vm281_vm1, %v4726_v30, %v4772_v29  ;;  %v8536_v15 = vld [vmem:[#allocation11_spill] sm:$0xff] }
 0xee0   :  { %v185_v53 = vadd.f32 %v179_v31, %v142_v18  ;;  %v147_v9 = vadd.f32 %v141_v40, %v98_v58  ;;  %v350_v43 = vsel %vm281_vm1, %v4784_v16, %v4732_v50  ;;  %v351_v29 = vsel %vm281_vm1, %v4732_v50, %v4788_v3  ;;  %v8533_v58 = vld [vmem:[#allocation28_spill] sm:$0xff] }
 0xee1   :  { %v189_v25 = vadd.f32 %v183_v63, %v146_v38  ;;  %v229_v42 = vadd.f32 %v223_v22, %v186_v24  ;;  %v231_v17 = vadd.f32 %v225_v39, %v188_v23  ;;  %v352_v30 = vsel %vm281_vm1, %v4788_v3, %v4734_v51  ;;  %v8534_v63 = vld [vmem:[#allocation29_spill] sm:$0xff]  ;;  %v8538_v38 = vld [vmem:[#allocation12_spill] sm:$0xff] }
 0xee2   :  { %2101 = vperm.xlu1 %4322, %v2098_v60   ;;  %v144_v60 = vadd.f32 %v138_v59, %v95_v8  ;;  %v190_v61 = vadd.f32 %v184_v14, %v147_v9  ;;  %v228_v6 = vadd.f32 %v222_v19, %v185_v53  ;;  %v412_v35 = vsel %vm281_vm1, %v8531_v47, %v4794_v34  ;;  %v8539_v53 = vld [vmem:[#allocation31_spill] sm:$0xff]  ;;  %v8540_v23 = vld [vmem:[#allocation32_spill] sm:$0xff]  ;;  %v8541_v22 = vld [vmem:[#allocation13_spill] sm:$0xff] }
 0xee3   :  { %v232_v62 = vadd.f32 %v226_v1, %v189_v25  ;;  %v295_v59 = vadd.f32 %v283_v55, %v229_v42  ;;  %v297_v25 = vadd.f32 %v285_v33, %v231_v17  ;;  %v413_v16 = vsel %vm281_vm1, %v4794_v34, %v8532_v11  ;;  %v8537_v34 = vld [vmem:[#allocation30_spill] sm:$0xff]  ;;  %v8545_v55 = vld [vmem:[#allocation15_spill] sm:$0xff] }
 0xee4   :  { %v187_v36 = vadd.f32 %v181_v45, %v144_v60  ;;  %v294_v0 = vadd.f32 %v282_v28, %v228_v6  ;;  %v233_v8 = vadd.f32 %v227_v56, %v190_v61  ;;  %v414_v50 = vsel %vm281_vm1, %v8532_v11, %v8533_v58  ;;  %v8535_v45 = vld [vmem:[#allocation10_spill] sm:$0xff]  ;;  %v8556_v58 = vld [vmem:[#allocation40_spill] sm:$0xff] }
 0xee5   :  { %v360_v32 = vadd.f32 %v348_v20, %v295_v59  ;;  %v362_v31 = vadd.f32 %v350_v43, %v297_v25  ;;  %v415_v2 = vsel %vm281_vm1, %v8535_v45, %v8534_v63  ;;  %v416_v14 = vsel %vm281_vm1, %v8534_v63, %v8536_v15  ;;  %v8542_v28 = vld [vmem:[#allocation14_spill] sm:$0xff]  ;;  %v8559_v63 = vld [vmem:[#allocation41_spill] sm:$0xff] }
 0xee6   :  { %v230_v52 = vadd.f32 %v224_v37, %v187_v36  ;;  %v298_v36 = vadd.f32 %v286_v48, %v232_v62  ;;  %v299_v4 = vadd.f32 %v287_v49, %v233_v8  ;;  %v359_v44 = vadd.f32 %v347_v5, %v294_v0  ;;  %v8543_v37 = vld [vmem:[#allocation33_spill] sm:$0xff]  ;;  %v8544_v6 = vld [vmem:[#allocation34_spill] sm:$0xff] }
 0xee7   :  { %v425_v18 = vadd.f32 %v413_v16, %v360_v32  ;;  %v417_v60 = vsel %vm281_vm1, %v8536_v15, %v8537_v34  ;;  %v477_v24 = vsel %vm281_vm1, %v8539_v53, %v8538_v38  ;;  %v478_v19 = vsel %vm281_vm1, %v8538_v38, %v8540_v23  ;;  %v8548_v8 = vld [vmem:[#allocation17_spill] sm:$0xff]  ;;  %v8554_v16 = vld [vmem:[#allocation20_spill] sm:$0xff]  ;;  %v8555_v32 = vld [vmem:[#allocation39_spill] sm:$0xff] }
 0xee8   :  { %v296_v41 = vadd.f32 %v284_v26, %v230_v52  ;;  %v363_v40 = vadd.f32 %v351_v29, %v298_v36  ;;  %v364_v3 = vadd.f32 %v352_v30, %v299_v4  ;;  %v424_v51 = vadd.f32 %v412_v35, %v359_v44  ;;  %v8546_v52 = vld [vmem:[#allocation35_spill] sm:$0xff]  ;;  %v8547_v26 = vld [vmem:[#allocation16_spill] sm:$0xff]  ;;  %v8550_v29 = vld [vmem:[#allocation37_spill] sm:$0xff] }
 0xee9   :  { %v479_v61 = vsel %vm281_vm1, %v8540_v23, %v8541_v22  ;;  %v480_v39 = vsel %vm281_vm1, %v8543_v37, %v8542_v28  ;;  %v427_v1 = vadd.f32 %v415_v2, %v362_v31  ;;  %v481_v42 = vsel %vm281_vm1, %v8542_v28, %v8544_v6  ;;  %v8551_v30 = vld [vmem:[#allocation18_spill] sm:$0xff]  ;;  %v8552_v36 = vld [vmem:[#allocation19_spill] sm:$0xff]  ;;  %v8563_v38 = vld [vmem:[#allocation24_spill] sm:$0xff] }
 0xeea   :  { %v361_v46 = vadd.f32 %v349_v21, %v296_v41  ;;  %v482_v56 = vsel %vm281_vm1, %v8544_v6, %v8545_v55  ;;  %v535_v17 = vsel %vm534_vm2, %v8547_v26, %v8546_v52  ;;  %v428_v62 = vadd.f32 %v416_v14, %v363_v40  ;;  %v8549_v41 = vld [vmem:[#allocation36_spill] sm:$0xff]  ;;  %v8553_v44 = vld [vmem:[#allocation38_spill] sm:$0xff]  ;;  %v8557_v40 = vld [vmem:[#allocation21_spill] sm:$0xff] }
 0xeeb   :  { %v429_v0 = vadd.f32 %v417_v60, %v364_v3  ;;  %v489_v33 = vadd.f32 %v477_v24, %v424_v51  ;;  %v536_v59 = vsel %vm534_vm2, %v8546_v52, %v8548_v8  ;;  %v490_v48 = vadd.f32 %v478_v19, %v425_v18  ;;  %v8558_v51 = vld [vmem:[#allocation22_spill] sm:$0xff]  ;;  %v8561_v14 = vld [vmem:[#allocation23_spill] sm:$0xff]  ;;  %v8564_v28 = vld [vmem:[#allocation25_spill] sm:$0xff] }
 0xeec   :  { %v426_v9 = vadd.f32 %v414_v50, %v361_v46  ;;  %v492_v5 = vadd.f32 %v480_v39, %v427_v1  ;;  %v537_v20 = vsel %vm534_vm2, %v8548_v8, %v8549_v41  ;;  %v493_v21 = vadd.f32 %v481_v42, %v428_v62  ;;  %v8560_v18 = vld [vmem:[#allocation42_spill] sm:$0xff]  ;;  %v8562_v60 = vld [vmem:[#allocation43_spill] sm:$0xff]  ;;  %v8565_v42 = vld [vmem:[#allocation44_spill] sm:$0xff] }
 0xeed   :  { %v494_v43 = vadd.f32 %v482_v56, %v429_v0  ;;  %v547_v25 = vadd.f32 %v535_v17, %v489_v33  ;;  %v538_v47 = vsel %vm534_vm2, %v8551_v30, %v8550_v29  ;;  %v548_v35 = vadd.f32 %v536_v59, %v490_v48  ;;  %v8566_v56 = vld [vmem:[#allocation45_spill] sm:$0xff]  ;;  %v8567_v52 = vld [vmem:[#allocation26_spill] sm:$0xff]  ;;  %v8568_v17 = vld [vmem:[#allocation27_spill] sm:$0xff] }
 0xeee   :  { %v491_v49 = vadd.f32 %v479_v61, %v426_v9  ;;  %v539_v4 = vsel %vm534_vm2, %v8550_v29, %v8552_v36  ;;  %v540_v11 = vsel %vm534_vm2, %v8552_v36, %v8553_v44  ;;  %v592_v46 = vsel %vm534_vm2, %v8555_v32, %v8554_v16  ;;  %v8569_v0 = vld [vmem:[#allocation46_spill] sm:$0xff]  ;;  %v8570_v59 = vld [vmem:[#allocation51_spill] sm:$0xff]  ;;  %v8575_v29 = vld [vmem:[#allocation49_spill] sm:$0xff] }
 0xeef   :  { %v593_v50 = vsel %vm534_vm2, %v8554_v16, %v8556_v58  ;;  %v594_v3 = vsel %vm534_vm2, %v8556_v58, %v8557_v40  ;;  %v595_v45 = vsel %vm534_vm2, %v8559_v63, %v8558_v51  ;;  %v550_v2 = vadd.f32 %v538_v47, %v492_v5  ;;  %v8571_v48 = vld [vmem:[#allocation47_spill] sm:$0xff]  ;;  %v8572_v5 = vld [vmem:[#allocation48_spill] sm:$0xff]  ;;  %v8576_v47 = vld [vmem:[#allocation50_spill] sm:$0xff] }
 0xef0   :  { %v549_v31 = vadd.f32 %v537_v20, %v491_v49  ;;  %v596_v15 = vsel %vm534_vm2, %v8558_v51, %v8560_v18  ;;  %v597_v34 = vsel %vm534_vm2, %v8560_v18, %v8561_v14  ;;  %v649_v53 = vsel %vm534_vm2, %v8563_v38, %v8562_v60  ;;  %v8573_v20 = vld [vmem:[#allocation52_spill] sm:$0xff]  ;;  %v8577_v36 = vld [vmem:[#allocation54_spill] sm:$0xff]  ;;  %v8578_v32 = vld [vmem:[#allocation59_spill] sm:$0xff] }
 0xef1   :  { %v551_v24 = vadd.f32 %v539_v4, %v493_v21  ;;  %v552_v9 = vadd.f32 %v540_v11, %v494_v43  ;;  %v604_v23 = vadd.f32 %v592_v46, %v547_v25  ;;  %v605_v19 = vadd.f32 %v593_v50, %v548_v35  ;;  %v8574_v25 = vld [vmem:[#allocation53_spill] sm:$0xff]  ;;  %v8579_v46 = vld [vmem:[#allocation55_spill] sm:$0xff]  ;;  %v8581_v18 = vld [vmem:[#allocation60_spill] sm:$0xff] }
 0xef2   :  { %v606_v22 = vadd.f32 %v594_v3, %v549_v31  ;;  %v607_v61 = vadd.f32 %v595_v45, %v550_v2  ;;  %v650_v37 = vsel %vm534_vm2, %v8562_v60, %v8564_v28  ;;  %v651_v55 = vsel %vm534_vm2, %v8564_v28, %v8565_v42  ;;  %v8580_v3 = vld [vmem:[#allocation56_spill] sm:$0xff]  ;;  %v8583_v60 = vld [vmem:[#allocation57_spill] sm:$0xff] }
 0xef3   :  { %v608_v39 = vadd.f32 %v596_v15, %v551_v24  ;;  %v609_v1 = vadd.f32 %v597_v34, %v552_v9  ;;  %v661_v6 = vadd.f32 %v649_v53, %v604_v23  ;;  %v652_v26 = vsel %vm534_vm2, %v8567_v52, %v8566_v56  ;;  %v8582_v34 = vld [vmem:[#allocation61_spill] sm:$0xff]  ;;  %v8584_v53 = vld [vmem:[#allocation58_spill] sm:$0xff] }
 0xef4   :  { %v653_v62 = vsel %vm534_vm2, %v8566_v56, %v8568_v17  ;;  %v654_v33 = vsel %vm534_vm2, %v8568_v17, %v8569_v0  ;;  %v662_v8 = vadd.f32 %v650_v37, %v605_v19  ;;  %v706_v49 = vsel %vm534_vm2, %v8571_v48, %v8570_v59  ;;  %v8585_v9 = vld [vmem:[#allocation62_spill] sm:$0xff]  ;;  %v8588_v37 = vld [vmem:[#allocation64_spill] sm:$0xff]  ;;  %v8591_v56 = vld [vmem:[#allocation65_spill] sm:$0xff] }
 0xef5   :  { %v707_v41 = vsel %vm534_vm2, %v8570_v59, %v8572_v5  ;;  %v708_v21 = vsel %vm534_vm2, %v8572_v5, %v8573_v20  ;;  %v663_v43 = vadd.f32 %v651_v55, %v606_v22  ;;  %v709_v30 = vsel %vm534_vm2, %v8575_v29, %v8574_v25  ;;  %v8586_v22 = vld [vmem:[#allocation67_spill] sm:$0xff]  ;;  %v8590_v55 = vld [vmem:[#allocation69_spill] sm:$0xff] }
 0xef6   :  { %v710_v35 = vsel %vm534_vm2, %v8574_v25, %v8576_v47  ;;  %v711_v4 = vsel %vm534_vm2, %v8576_v47, %v8577_v36  ;;  %v664_v44 = vadd.f32 %v652_v26, %v607_v61  ;;  %v665_v11 = vadd.f32 %v653_v62, %v608_v39  ;;  %v8587_v61 = vld [vmem:[#allocation63_spill] sm:$0xff]  ;;  %v8592_v26 = vld [vmem:[#allocation66_spill] sm:$0xff] }
 0xef7   :  { %v666_v16 = vadd.f32 %v654_v33, %v609_v1  ;;  %v764_v31 = vsel %vm763_vm3, %v8579_v46, %v8578_v32  ;;  %v718_v58 = vadd.f32 %v706_v49, %v661_v6  ;;  %v719_v50 = vadd.f32 %v707_v41, %v662_v8  ;;  %v8589_v1 = vld [vmem:[#allocation68_spill] sm:$0xff]  ;;  %v8593_v62 = vld [vmem:[#allocation70_spill] sm:$0xff]  ;;  %v8594_v48 = vld [vmem:[#allocation75_spill] sm:$0xff] }
 0xef8   :  { %v720_v40 = vadd.f32 %v708_v21, %v663_v43  ;;  %v765_v51 = vsel %vm763_vm3, %v8578_v32, %v8580_v3  ;;  %v721_v63 = vadd.f32 %v709_v30, %v664_v44  ;;  %v722_v45 = vadd.f32 %v710_v35, %v665_v11  ;;  %v8595_v49 = vld [vmem:[#allocation71_spill] sm:$0xff]  ;;  %v8596_v43 = vld [vmem:[#allocation72_spill] sm:$0xff]  ;;  %v8598_v44 = vld [vmem:[#allocation77_spill] sm:$0xff] }
 0xef9   :  { %v723_v2 = vadd.f32 %v711_v4, %v666_v16  ;;  %v766_v15 = vsel %vm763_vm3, %v8580_v3, %v8581_v18  ;;  %v776_v14 = vadd.f32 %v764_v31, %v718_v58  ;;  %v767_v38 = vsel %vm763_vm3, %v8583_v60, %v8582_v34  ;;  %v8597_v35 = vld [vmem:[#allocation76_spill] sm:$0xff]  ;;  %v8599_v11 = vld [vmem:[#allocation73_spill] sm:$0xff]  ;;  %v8600_v32 = vld [vmem:[#allocation74_spill] sm:$0xff] }
 0xefa   :  { %v768_v24 = vsel %vm763_vm3, %v8582_v34, %v8584_v53  ;;  %v769_v23 = vsel %vm763_vm3, %v8584_v53, %v8585_v9  ;;  %v777_v19 = vadd.f32 %v765_v51, %v719_v50  ;;  %v821_v28 = vsel %vm763_vm3, %v8587_v61, %v8586_v22  ;;  %v8601_v58 = vld [vmem:[#allocation78_spill] sm:$0xff]  ;;  %v8603_v3 = vld [vmem:[#allocation79_spill] sm:$0xff]  ;;  %v8605_v18 = vld [vmem:[#allocation84_spill] sm:$0xff] }
 0xefb   :  { %v822_v39 = vsel %vm763_vm3, %v8586_v22, %v8588_v37  ;;  %v823_v6 = vsel %vm763_vm3, %v8588_v37, %v8589_v1  ;;  %v778_v42 = vadd.f32 %v766_v15, %v720_v40  ;;  %v824_v52 = vsel %vm763_vm3, %v8591_v56, %v8590_v55  ;;  %v8602_v40 = vld [vmem:[#allocation83_spill] sm:$0xff]  ;;  %v8607_v34 = vld [vmem:[#allocation81_spill] sm:$0xff] }
 0xefc   :  { %v825_v17 = vsel %vm763_vm3, %v8590_v55, %v8592_v26  ;;  %v826_v0 = vsel %vm763_vm3, %v8592_v26, %v8593_v62  ;;  %v779_v33 = vadd.f32 %v767_v38, %v721_v63  ;;  %v780_v8 = vadd.f32 %v768_v24, %v722_v45  ;;  %v8604_v63 = vld [vmem:[#allocation80_spill] sm:$0xff]  ;;  %v8608_v38 = vld [vmem:[#allocation82_spill] sm:$0xff]  ;;  %v8610_v22 = vld [vmem:[#allocation91_spill] sm:$0xff] }
 0xefd   :  { %v781_v59 = vadd.f32 %v769_v23, %v723_v2  ;;  %v878_v5 = vsel %vm763_vm3, %v8595_v49, %v8594_v48  ;;  %v833_v41 = vadd.f32 %v821_v28, %v776_v14  ;;  %v834_v20 = vadd.f32 %v822_v39, %v777_v19  ;;  %v8606_v14 = vld [vmem:[#allocation85_spill] sm:$0xff]  ;;  %v8609_v23 = vld [vmem:[#allocation86_spill] sm:$0xff]  ;;  %v8611_v61 = vld [vmem:[#allocation87_spill] sm:$0xff] }
 0xefe   :  { %v835_v21 = vadd.f32 %v823_v6, %v778_v42  ;;  %v879_v25 = vsel %vm763_vm3, %v8594_v48, %v8596_v43  ;;  %v836_v29 = vadd.f32 %v824_v52, %v779_v33  ;;  %v837_v30 = vadd.f32 %v825_v17, %v780_v8  ;;  %v8612_v6 = vld [vmem:[#allocation88_spill] sm:$0xff]  ;;  %v8614_v33 = vld [vmem:[#allocation93_spill] sm:$0xff]  ;;  %v8616_v48 = vld [vmem:[#allocation90_spill] sm:$0xff] }
 0xeff   :  { %v838_v47 = vadd.f32 %v826_v0, %v781_v59  ;;  %v880_v36 = vsel %vm763_vm3, %v8596_v43, %v8597_v35  ;;  %v890_v4 = vadd.f32 %v878_v5, %v833_v41  ;;  %v881_v16 = vsel %vm763_vm3, %v8599_v11, %v8598_v44  ;;  %v8613_v26 = vld [vmem:[#allocation92_spill] sm:$0xff]  ;;  %v8615_v8 = vld [vmem:[#allocation89_spill] sm:$0xff]  ;;  %v8617_v41 = vld [vmem:[#allocation94_spill] sm:$0xff] }
 0xf00   :  { %v882_v46 = vsel %vm763_vm3, %v8598_v44, %v8600_v32  ;;  %v891_v31 = vadd.f32 %v879_v25, %v834_v20  ;;  %v883_v50 = vsel %vm763_vm3, %v8600_v32, %v8601_v58  ;;  %v935_v51 = vsel %vm763_vm3, %v8603_v3, %v8602_v40  ;;  %v8619_v43 = vld [vmem:[#allocation95_spill] sm:$0xff]  ;;  %v8621_v35 = vld [vmem:[#allocation100_spill] sm:$0xff]  ;;  %v8623_v44 = vld [vmem:[#allocation97_spill] sm:$0xff] }
 0xf01   :  { %v936_v45 = vsel %vm763_vm3, %v8602_v40, %v8604_v63  ;;  %v892_v2 = vadd.f32 %v880_v36, %v835_v21  ;;  %v937_v15 = vsel %vm763_vm3, %v8604_v63, %v8605_v18  ;;  %v938_v60 = vsel %vm763_vm3, %v8607_v34, %v8606_v14  ;;  %v8618_v21 = vld [vmem:[#allocation99_spill] sm:$0xff]  ;;  %v8625_v58 = vld [vmem:[#allocation102_spill] sm:$0xff]  ;;  %v8628_v18 = vld [vmem:[#allocation104_spill] sm:$0xff] }
 0xf02   :  { %v939_v53 = vsel %vm763_vm3, %v8606_v14, %v8608_v38  ;;  %v893_v24 = vadd.f32 %v881_v16, %v836_v29  ;;  %v894_v9 = vadd.f32 %v882_v46, %v837_v30  ;;  %v940_v19 = vsel %vm763_vm3, %v8608_v38, %v8609_v23  ;;  %v8620_v29 = vld [vmem:[#allocation96_spill] sm:$0xff]  ;;  %v8624_v16 = vld [vmem:[#allocation98_spill] sm:$0xff]  ;;  %v8626_v40 = vld [vmem:[#allocation107_spill] sm:$0xff] }
 0xf03   :  { %v993_v28 = vsel %vm992_vm4, %v8611_v61, %v8610_v22  ;;  %v895_v37 = vadd.f32 %v883_v50, %v838_v47  ;;  %v947_v39 = vadd.f32 %v935_v51, %v890_v4  ;;  %v948_v1 = vadd.f32 %v936_v45, %v891_v31  ;;  %v8622_v4 = vld [vmem:[#allocation101_spill] sm:$0xff]  ;;  %v8627_v3 = vld [vmem:[#allocation103_spill] sm:$0xff]  ;;  %v8629_v38 = vld [vmem:[#allocation108_spill] sm:$0xff] }
 0xf04   :  { %v994_v42 = vsel %vm992_vm4, %v8610_v22, %v8612_v6  ;;  %v949_v55 = vadd.f32 %v937_v15, %v892_v2  ;;  %v950_v56 = vadd.f32 %v938_v60, %v893_v24  ;;  %v951_v52 = vadd.f32 %v939_v53, %v894_v9  ;;  %v8630_v23 = vld [vmem:[#allocation109_spill] sm:$0xff] }
 0xf05   :  { %v995_v17 = vsel %vm992_vm4, %v8612_v6, %v8613_v26  ;;  %v952_v62 = vadd.f32 %v940_v19, %v895_v37  ;;  %v1005_v0 = vadd.f32 %v993_v28, %v947_v39  ;;  %v996_v59 = vsel %vm992_vm4, %v8615_v8, %v8614_v33  ;;  %v8631_v19 = vld [vmem:[#allocation105_spill] sm:$0xff]  ;;  %v8632_v28 = vld [vmem:[#allocation106_spill] sm:$0xff]  ;;  %v8634_v6 = vld [vmem:[#allocation115_spill] sm:$0xff] }
 0xf06   :  { %v997_v49 = vsel %vm992_vm4, %v8614_v33, %v8616_v48  ;;  %v1006_v5 = vadd.f32 %v994_v42, %v948_v1  ;;  %v998_v20 = vsel %vm992_vm4, %v8616_v48, %v8617_v41  ;;  %v1050_v25 = vsel %vm992_vm4, %v8619_v43, %v8618_v21  ;;  %v8633_v39 = vld [vmem:[#allocation110_spill] sm:$0xff]  ;;  %v8635_v42 = vld [vmem:[#allocation111_spill] sm:$0xff]  ;;  %v8639_v33 = vld [vmem:[#allocation113_spill] sm:$0xff] }
 0xf07   :  { %v1051_v30 = vsel %vm992_vm4, %v8618_v21, %v8620_v29  ;;  %v1007_v47 = vadd.f32 %v995_v17, %v949_v55  ;;  %v1052_v36 = vsel %vm992_vm4, %v8620_v29, %v8621_v35  ;;  %v1053_v11 = vsel %vm992_vm4, %v8623_v44, %v8622_v4  ;;  %v8637_v17 = vld [vmem:[#allocation116_spill] sm:$0xff]  ;;  %v8640_v48 = vld [vmem:[#allocation114_spill] sm:$0xff]  ;;  %v8643_v21 = vld [vmem:[#allocation119_spill] sm:$0xff] }
 0xf08   :  { %v1054_v32 = vsel %vm992_vm4, %v8622_v4, %v8624_v16  ;;  %v1008_v46 = vadd.f32 %v996_v59, %v950_v56  ;;  %v1009_v31 = vadd.f32 %v997_v49, %v951_v52  ;;  %v1055_v50 = vsel %vm992_vm4, %v8624_v16, %v8625_v58  ;;  %v8636_v52 = vld [vmem:[#allocation112_spill] sm:$0xff]  ;;  %v8646_v58 = vld [vmem:[#allocation125_spill] sm:$0xff] }
 0xf09   :  { %v1107_v51 = vsel %vm992_vm4, %v8627_v3, %v8626_v40  ;;  %v1010_v63 = vadd.f32 %v998_v20, %v952_v62  ;;  %v1062_v45 = vadd.f32 %v1050_v25, %v1005_v0  ;;  %v1063_v2 = vadd.f32 %v1051_v30, %v1006_v5  ;;  %v8638_v0 = vld [vmem:[#allocation117_spill] sm:$0xff]  ;;  %v8641_v5 = vld [vmem:[#allocation118_spill] sm:$0xff]  ;;  %v8642_v20 = vld [vmem:[#allocation123_spill] sm:$0xff] }
 0xf0a   :  { %v1108_v15 = vsel %vm992_vm4, %v8626_v40, %v8628_v18  ;;  %v1064_v14 = vadd.f32 %v1052_v36, %v1007_v47  ;;  %v1065_v34 = vadd.f32 %v1053_v11, %v1008_v46  ;;  %v1066_v60 = vadd.f32 %v1054_v32, %v1009_v31  ;;  %v8644_v47 = vld [vmem:[#allocation120_spill] sm:$0xff] }
 0xf0b   :  { %v1109_v53 = vsel %vm992_vm4, %v8628_v18, %v8629_v38  ;;  %v1067_v24 = vadd.f32 %v1055_v50, %v1010_v63  ;;  %v1119_v9 = vadd.f32 %v1107_v51, %v1062_v45  ;;  %v1110_v22 = vsel %vm992_vm4, %v8631_v19, %v8630_v23  ;;  %v8645_v11 = vld [vmem:[#allocation124_spill] sm:$0xff]  ;;  %v8647_v50 = vld [vmem:[#allocation121_spill] sm:$0xff]  ;;  %v8648_v51 = vld [vmem:[#allocation122_spill] sm:$0xff] }
 0xf0c   :  { %v1120_v61 = vadd.f32 %v1108_v15, %v1063_v2  ;;  %v1111_v37 = vsel %vm992_vm4, %v8630_v23, %v8632_v28  ;;  %v1112_v1 = vsel %vm992_vm4, %v8632_v28, %v8633_v39  ;;  %v1164_v55 = vsel %vm992_vm4, %v8635_v42, %v8634_v6  ;;  %v8649_v45 = vld [vmem:[#allocation126_spill] sm:$0xff]  ;;  %v8650_v18 = vld [vmem:[#allocation131_spill] sm:$0xff]  ;;  %v8655_v23 = vld [vmem:[#allocation129_spill] sm:$0xff] }
 0xf0d   :  { %v1121_v56 = vadd.f32 %v1109_v53, %v1064_v14  ;;  %v1165_v26 = vsel %vm992_vm4, %v8634_v6, %v8636_v52  ;;  %v1166_v62 = vsel %vm992_vm4, %v8636_v52, %v8637_v17  ;;  %v1167_v8 = vsel %vm992_vm4, %v8639_v33, %v8638_v0  ;;  %v8651_v15 = vld [vmem:[#allocation127_spill] sm:$0xff]  ;;  %v8653_v53 = vld [vmem:[#allocation132_spill] sm:$0xff] }
 0xf0e   :  { %v1122_v59 = vadd.f32 %v1110_v22, %v1065_v34  ;;  %v1168_v49 = vsel %vm992_vm4, %v8638_v0, %v8640_v48  ;;  %v1169_v41 = vsel %vm992_vm4, %v8640_v48, %v8641_v5  ;;  %v1222_v43 = vsel %vm1221_vm5, %v8643_v21, %v8642_v20  ;;  %v8659_v6 = vld [vmem:[#allocation135_spill] sm:$0xff]  ;;  %v8660_v33 = vld [vmem:[#allocation136_spill] sm:$0xff]  ;;  %v8663_v21 = vld [vmem:[#allocation137_spill] sm:$0xff] }
 0xf0f   :  { %v1123_v25 = vadd.f32 %v1111_v37, %v1066_v60  ;;  %v1124_v29 = vadd.f32 %v1112_v1, %v1067_v24  ;;  %v1176_v30 = vadd.f32 %v1164_v55, %v1119_v9  ;;  %v1223_v35 = vsel %vm1221_vm5, %v8642_v20, %v8644_v47  ;;  %v8652_v60 = vld [vmem:[#allocation128_spill] sm:$0xff]  ;;  %v8654_v9 = vld [vmem:[#allocation133_spill] sm:$0xff]  ;;  %v8657_v37 = vld [vmem:[#allocation134_spill] sm:$0xff] }
 0xf10   :  { %v1177_v36 = vadd.f32 %v1165_v26, %v1120_v61  ;;  %v1178_v4 = vadd.f32 %v1166_v62, %v1121_v56  ;;  %v1179_v44 = vadd.f32 %v1167_v8, %v1122_v59  ;;  %v1224_v16 = vsel %vm1221_vm5, %v8644_v47, %v8645_v11  ;;  %v8656_v61 = vld [vmem:[#allocation130_spill] sm:$0xff]  ;;  %v8658_v1 = vld [vmem:[#allocation139_spill] sm:$0xff]  ;;  %v6058_v26 = vpop.permute.xlu1 %2009  ;;  %v8661_v5 = vld [vmem:[#allocation140_spill] sm:$0xff] }
 0xf11   :  { %v1180_v32 = vadd.f32 %v1168_v49, %v1123_v25  ;;  %v1181_v46 = vadd.f32 %v1169_v41, %v1124_v29  ;;  %v1234_v31 = vadd.f32 %v1222_v43, %v1176_v30  ;;  %v1225_v40 = vsel %vm1221_vm5, %v8647_v50, %v8646_v58  ;;  %v8662_v20 = vld [vmem:[#allocation141_spill] sm:$0xff]  ;;  %v8664_v25 = vld [vmem:[#allocation138_spill] sm:$0xff]  ;;  %v8668_v11 = vld [vmem:[#allocation144_spill] sm:$0xff] }
 0xf12   :  { %v1235_v3 = vadd.f32 %v1223_v35, %v1177_v36  ;;  %v1226_v63 = vsel %vm1221_vm5, %v8646_v58, %v8648_v51  ;;  %v1227_v2 = vsel %vm1221_vm5, %v8648_v51, %v8649_v45  ;;  %v1279_v14 = vsel %vm1221_vm5, %v8651_v15, %v8650_v18  ;;  %v8665_v30 = vld [vmem:[#allocation142_spill] sm:$0xff]  ;;  %v8666_v36 = vld [vmem:[#allocation147_spill] sm:$0xff]  ;;  %v8670_v58 = vld [vmem:[#allocation149_spill] sm:$0xff] }
 0xf13   :  { %v1236_v34 = vadd.f32 %v1224_v16, %v1178_v4  ;;  %v1280_v38 = vsel %vm1221_vm5, %v8650_v18, %v8652_v60  ;;  %v1281_v24 = vsel %vm1221_vm5, %v8652_v60, %v8653_v53  ;;  %v1282_v19 = vsel %vm1221_vm5, %v8655_v23, %v8654_v9  ;;  %v8667_v4 = vld [vmem:[#allocation143_spill] sm:$0xff]  ;;  %v8671_v50 = vld [vmem:[#allocation145_spill] sm:$0xff]  ;;  %v8676_v23 = vld [vmem:[#allocation152_spill] sm:$0xff] }
 0xf14   :  { %v1237_v22 = vadd.f32 %v1225_v40, %v1179_v44  ;;  %v1283_v28 = vsel %vm1221_vm5, %v8654_v9, %v8656_v61  ;;  %v1284_v39 = vsel %vm1221_vm5, %v8656_v61, %v8657_v37  ;;  %v1336_v42 = vsel %vm1221_vm5, %v8659_v6, %v8658_v1  ;;  %v8677_v37 = vld [vmem:[#allocation156_spill] sm:$0xff]  ;;  %v8678_v6 = vld [vmem:[#allocation157_spill] sm:$0xff] }
 0xf15   :  { %v1238_v55 = vadd.f32 %v1226_v63, %v1180_v32  ;;  %v1239_v56 = vadd.f32 %v1227_v2, %v1181_v46  ;;  %v1291_v52 = vadd.f32 %v1279_v14, %v1234_v31  ;;  %v1292_v17 = vadd.f32 %v1280_v38, %v1235_v3  ;;  %v8669_v32 = vld [vmem:[#allocation148_spill] sm:$0xff]  ;;  %v8672_v3 = vld [vmem:[#allocation146_spill] sm:$0xff]  ;;  %v8674_v14 = vld [vmem:[#allocation155_spill] sm:$0xff]  ;;  %v6096_v38 = vpop.permute.xlu1 %2013 }
 0xf16   :  { %v1293_v62 = vadd.f32 %v1281_v24, %v1236_v34  ;;  %v1294_v0 = vadd.f32 %v1282_v19, %v1237_v22  ;;  %v1337_v8 = vsel %vm1221_vm5, %v8658_v1, %v8660_v33  ;;  %v1338_v41 = vsel %vm1221_vm5, %v8660_v33, %v8661_v5  ;;  %v8673_v63 = vld [vmem:[#allocation150_spill] sm:$0xff]  ;;  %v8675_v34 = vld [vmem:[#allocation151_spill] sm:$0xff]  ;;  %v8685_v5 = vld [vmem:[#allocation164_spill] sm:$0xff] }
 0xf17   :  { %v1295_v59 = vadd.f32 %v1283_v28, %v1238_v55  ;;  %v1296_v48 = vadd.f32 %v1284_v39, %v1239_v56  ;;  %v1348_v49 = vadd.f32 %v1336_v42, %v1291_v52  ;;  %v1339_v43 = vsel %vm1221_vm5, %v8663_v21, %v8662_v20  ;;  %v8679_v42 = vld [vmem:[#allocation153_spill] sm:$0xff]  ;;  %v8680_v56 = vld [vmem:[#allocation154_spill] sm:$0xff]  ;;  %v8682_v33 = vld [vmem:[#allocation163_spill] sm:$0xff] }
 0xf18   :  { %v1340_v29 = vsel %vm1221_vm5, %v8662_v20, %v8664_v25  ;;  %v1341_v47 = vsel %vm1221_vm5, %v8664_v25, %v8665_v30  ;;  %v1349_v35 = vadd.f32 %v1337_v8, %v1292_v17  ;;  %v1393_v44 = vsel %vm1221_vm5, %v8667_v4, %v8666_v36  ;;  %v8681_v17 = vld [vmem:[#allocation158_spill] sm:$0xff]  ;;  %v8683_v8 = vld [vmem:[#allocation159_spill] sm:$0xff]  ;;  %v8686_v21 = vld [vmem:[#allocation165_spill] sm:$0xff] }
 0xf19   :  { %v1394_v16 = vsel %vm1221_vm5, %v8666_v36, %v8668_v11  ;;  %v1395_v46 = vsel %vm1221_vm5, %v8668_v11, %v8669_v32  ;;  %v1350_v31 = vadd.f32 %v1338_v41, %v1293_v62  ;;  %v1396_v40 = vsel %vm1221_vm5, %v8671_v50, %v8670_v58  ;;  %v6131_v11 = vpop.permute.xlu1 %2017 }
 0xf1a   :  { %v1397_v51 = vsel %vm1221_vm5, %v8670_v58, %v8672_v3  ;;  %v1398_v45 = vsel %vm1221_vm5, %v8672_v3, %v8673_v63  ;;  %v1351_v2 = vadd.f32 %v1339_v43, %v1294_v0  ;;  %v1352_v18 = vadd.f32 %v1340_v29, %v1295_v59  ;;  %v8687_v43 = vld [vmem:[#allocation161_spill] sm:$0xff]  ;;  %v8688_v29 = vld [vmem:[#allocation162_spill] sm:$0xff]  ;;  %v8691_v58 = vld [vmem:[#allocation167_spill] sm:$0xff] }
 0xf1b   :  { %v1353_v15 = vadd.f32 %v1341_v47, %v1296_v48  ;;  %v1451_v60 = vsel %vm1450_vm6, %v8675_v34, %v8674_v14  ;;  %v1405_v53 = vadd.f32 %v1393_v44, %v1348_v49  ;;  %v1406_v24 = vadd.f32 %v1394_v16, %v1349_v35  ;;  %v8684_v48 = vld [vmem:[#allocation160_spill] sm:$0xff]  ;;  %v8689_v47 = vld [vmem:[#allocation166_spill] sm:$0xff] }
 0xf1c   :  { %v1407_v9 = vadd.f32 %v1395_v46, %v1350_v31  ;;  %v1452_v19 = vsel %vm1450_vm6, %v8674_v14, %v8676_v23  ;;  %v1408_v22 = vadd.f32 %v1396_v40, %v1351_v2  ;;  %v1409_v61 = vadd.f32 %v1397_v51, %v1352_v18  ;;  %v8690_v31 = vld [vmem:[#allocation171_spill] sm:$0xff]  ;;  %v8692_v63 = vld [vmem:[#allocation168_spill] sm:$0xff]  ;;  %v8695_v14 = vld [vmem:[#allocation169_spill] sm:$0xff] }
 0xf1d   :  { %v1410_v28 = vadd.f32 %v1398_v45, %v1353_v15  ;;  %v1453_v39 = vsel %vm1450_vm6, %v8676_v23, %v8677_v37  ;;  %v1463_v1 = vadd.f32 %v1451_v60, %v1405_v53  ;;  %v1454_v55 = vsel %vm1450_vm6, %v8679_v42, %v8678_v6  ;;  %v8693_v2 = vld [vmem:[#allocation172_spill] sm:$0xff]  ;;  %v8694_v15 = vld [vmem:[#allocation173_spill] sm:$0xff]  ;;  %v8696_v60 = vld [vmem:[#allocation170_spill] sm:$0xff] }
 0xf1e   :  { %v1455_v52 = vsel %vm1450_vm6, %v8678_v6, %v8680_v56  ;;  %v1456_v62 = vsel %vm1450_vm6, %v8680_v56, %v8681_v17  ;;  %v1464_v0 = vadd.f32 %v1452_v19, %v1406_v24  ;;  %v1508_v59 = vsel %vm1450_vm6, %v8683_v8, %v8682_v33  ;;  %v8697_v24 = vld [vmem:[#allocation174_spill] sm:$0xff]  ;;  %v8698_v19 = vld [vmem:[#allocation179_spill] sm:$0xff]  ;;  %v8702_v42 = vld [vmem:[#allocation181_spill] sm:$0xff] }
 0xf1f   :  { %v1509_v49 = vsel %vm1450_vm6, %v8682_v33, %v8684_v48  ;;  %v1510_v41 = vsel %vm1450_vm6, %v8684_v48, %v8685_v5  ;;  %v1465_v20 = vadd.f32 %v1453_v39, %v1407_v9  ;;  %v1511_v25 = vsel %vm1450_vm6, %v8687_v43, %v8686_v21  ;;  %v8705_v5 = vld [vmem:[#allocation182_spill] sm:$0xff] }
 0xf20   :  { %v1512_v30 = vsel %vm1450_vm6, %v8686_v21, %v8688_v29  ;;  %v1513_v35 = vsel %vm1450_vm6, %v8688_v29, %v8689_v47  ;;  %v1466_v36 = vadd.f32 %v1454_v55, %v1408_v22  ;;  %v1467_v4 = vadd.f32 %v1455_v52, %v1409_v61  ;;  %v8699_v22 = vld [vmem:[#allocation175_spill] sm:$0xff]  ;;  %v8703_v55 = vld [vmem:[#allocation177_spill] sm:$0xff]  ;;  %v8704_v52 = vld [vmem:[#allocation178_spill] sm:$0xff] }
 0xf21   :  { %v1468_v44 = vadd.f32 %v1456_v62, %v1410_v28  ;;  %v1520_v16 = vadd.f32 %v1508_v59, %v1463_v1  ;;  %v1521_v32 = vadd.f32 %v1509_v49, %v1464_v0  ;;  %v1522_v46 = vadd.f32 %v1510_v41, %v1465_v20  ;;  %v8700_v28 = vld [vmem:[#allocation176_spill] sm:$0xff]  ;;  %v6166_v59 = vpop.permute.xlu1 %2021  ;;  %v8706_v20 = vld [vmem:[#allocation187_spill] sm:$0xff] }
 0xf22   :  { %v1565_v50 = vsel %vm1450_vm6, %v8691_v58, %v8690_v31  ;;  %v1523_v40 = vadd.f32 %v1511_v25, %v1466_v36  ;;  %v1524_v3 = vadd.f32 %v1512_v30, %v1467_v4  ;;  %v1566_v45 = vsel %vm1450_vm6, %v8690_v31, %v8692_v63  ;;  %v8701_v1 = vld [vmem:[#allocation180_spill] sm:$0xff]  ;;  %v8707_v21 = vld [vmem:[#allocation183_spill] sm:$0xff]  ;;  %v8713_v58 = vld [vmem:[#allocation190_spill] sm:$0xff] }
 0xf23   :  { %v1525_v51 = vadd.f32 %v1513_v35, %v1468_v44  ;;  %v1567_v18 = vsel %vm1450_vm6, %v8692_v63, %v8693_v2  ;;  %v1568_v34 = vsel %vm1450_vm6, %v8695_v14, %v8694_v15  ;;  %v1569_v53 = vsel %vm1450_vm6, %v8694_v15, %v8696_v60  ;;  %v8708_v47 = vld [vmem:[#allocation184_spill] sm:$0xff]  ;;  %v8710_v44 = vld [vmem:[#allocation189_spill] sm:$0xff]  ;;  %v8715_v63 = vld [vmem:[#allocation191_spill] sm:$0xff] }
 0xf24   :  { %v1570_v9 = vsel %vm1450_vm6, %v8696_v60, %v8697_v24  ;;  %v1577_v23 = vadd.f32 %v1565_v50, %v1520_v16  ;;  %v1622_v61 = vsel %vm1450_vm6, %v8699_v22, %v8698_v19  ;;  %v1623_v37 = vsel %vm1450_vm6, %v8698_v19, %v8700_v28  ;;  %v8709_v36 = vld [vmem:[#allocation188_spill] sm:$0xff]  ;;  %v8711_v16 = vld [vmem:[#allocation185_spill] sm:$0xff]  ;;  %v8720_v19 = vld [vmem:[#allocation194_spill] sm:$0xff] }
 0xf25   :  { %v1578_v39 = vadd.f32 %v1566_v45, %v1521_v32  ;;  %v1624_v6 = vsel %vm1450_vm6, %v8700_v28, %v8701_v1  ;;  %v1625_v56 = vsel %vm1450_vm6, %v8703_v55, %v8702_v42  ;;  %v1626_v17 = vsel %vm1450_vm6, %v8702_v42, %v8704_v52  ;;  %v8716_v2 = vld [vmem:[#allocation192_spill] sm:$0xff]  ;;  %v8718_v24 = vld [vmem:[#allocation197_spill] sm:$0xff]  ;;  %v8721_v42 = vld [vmem:[#allocation198_spill] sm:$0xff] }
 0xf26   :  { %v1579_v62 = vadd.f32 %v1567_v18, %v1522_v46  ;;  %v1580_v0 = vadd.f32 %v1568_v34, %v1523_v40  ;;  %v1581_v33 = vadd.f32 %v1569_v53, %v1524_v3  ;;  %v1582_v8 = vadd.f32 %v1570_v9, %v1525_v51  ;;  %v8712_v46 = vld [vmem:[#allocation186_spill] sm:$0xff]  ;;  %v8714_v51 = vld [vmem:[#allocation195_spill] sm:$0xff]  ;;  %v8717_v60 = vld [vmem:[#allocation196_spill] sm:$0xff] }
 0xf27   :  { %v1634_v48 = vadd.f32 %v1622_v61, %v1577_v23  ;;  %v1635_v49 = vadd.f32 %v1623_v37, %v1578_v39  ;;  %v1627_v41 = vsel %vm1450_vm6, %v8704_v52, %v8705_v5  ;;  %v1680_v43 = vsel %vm1679_vm7, %v8707_v21, %v8706_v20  ;;  %v8719_v9 = vld [vmem:[#allocation193_spill] sm:$0xff] }
 0xf28   :  { %v1636_v25 = vadd.f32 %v1624_v6, %v1579_v62  ;;  %v1637_v29 = vadd.f32 %v1625_v56, %v1580_v0  ;;  %v1638_v30 = vadd.f32 %v1626_v17, %v1581_v33  ;;  %v1681_v35 = vsel %vm1679_vm7, %v8706_v20, %v8708_v47  ;;  %v8722_v56 = vld [vmem:[#allocation199_spill] sm:$0xff]  ;;  %v8723_v33 = vld [vmem:[#allocation200_spill] sm:$0xff]  ;;  %v8725_v5 = vld [vmem:[#allocation201_spill] sm:$0xff] }
 0xf29   :  { %v1682_v4 = vsel %vm1679_vm7, %v8708_v47, %v8709_v36  ;;  %v1683_v32 = vsel %vm1679_vm7, %v8711_v16, %v8710_v44  ;;  %v1684_v31 = vsel %vm1679_vm7, %v8710_v44, %v8712_v46  ;;  %v1685_v50 = vsel %vm1679_vm7, %v8712_v46, %v8713_v58  ;;  %v8726_v20 = vld [vmem:[#allocation202_spill] sm:$0xff]  ;;  %v8731_v46 = vld [vmem:[#allocation207_spill] sm:$0xff] }
 0xf2a   :  { %v1639_v40 = vadd.f32 %v1627_v41, %v1582_v8  ;;  %v1692_v3 = vadd.f32 %v1680_v43, %v1634_v48  ;;  %v1737_v45 = vsel %vm1679_vm7, %v8715_v63, %v8714_v51  ;;  %v1738_v18 = vsel %vm1679_vm7, %v8714_v51, %v8716_v2  ;;  %v8727_v43 = vld [vmem:[#allocation204_spill] sm:$0xff] }
 0xf2b   :  { %v1693_v34 = vadd.f32 %v1681_v35, %v1635_v49  ;;  %v1739_v53 = vsel %vm1679_vm7, %v8716_v2, %v8717_v60  ;;  %v1740_v23 = vsel %vm1679_vm7, %v8719_v9, %v8718_v24  ;;  %v1741_v22 = vsel %vm1679_vm7, %v8718_v24, %v8720_v19  ;;  %v8724_v49 = vld [vmem:[#allocation203_spill] sm:$0xff]  ;;  %v8729_v35 = vld [vmem:[#allocation206_spill] sm:$0xff]  ;;  %v8735_v24 = vld [vmem:[#allocation212_spill] sm:$0xff] }
 0xf2c   :  { %v1694_v61 = vadd.f32 %v1682_v4, %v1636_v25  ;;  %v1695_v28 = vadd.f32 %v1683_v32, %v1637_v29  ;;  %v1696_v37 = vadd.f32 %v1684_v31, %v1638_v30  ;;  %v1697_v39 = vadd.f32 %v1685_v50, %v1639_v40  ;;  %v8730_v32 = vld [vmem:[#allocation209_spill] sm:$0xff]  ;;  %v8733_v2 = vld [vmem:[#allocation210_spill] sm:$0xff]  ;;  %v8734_v60 = vld [vmem:[#allocation211_spill] sm:$0xff] }
 0xf2d   :  { %v1749_v1 = vadd.f32 %v1737_v45, %v1692_v3  ;;  %v1750_v6 = vadd.f32 %v1738_v18, %v1693_v34  ;;  %v1742_v55 = vsel %vm1679_vm7, %v8720_v19, %v8721_v42  ;;  %v1794_v52 = vsel %vm1679_vm7, %v8722_v56, %v5543_v13  ;;  %v8732_v45 = vld [vmem:[#allocation208_spill] sm:$0xff]  ;;  %v8736_v19 = vld [vmem:[#allocation215_spill] sm:$0xff]  ;;  %v8741_v56 = vld [vmem:[#allocation218_spill] sm:$0xff] }
 0xf2e   :  { %v1751_v17 = vadd.f32 %v1739_v53, %v1694_v61  ;;  %v1752_v62 = vadd.f32 %v1740_v23, %v1695_v28  ;;  %v1753_v0 = vadd.f32 %v1741_v22, %v1696_v37  ;;  %v1795_v8 = vsel %vm1679_vm7, %v5543_v13, %v8723_v33  ;;  %v8728_v13 = vld [vmem:[#allocation205_spill] sm:$0xff]  ;;  %v8738_v28 = vld [vmem:[#allocation214_spill] sm:$0xff] }
 0xf2f   :  { %v1796_v48 = vsel %vm1679_vm7, %v8723_v33, %v5545_v12  ;;  %v1797_v41 = vsel %vm1679_vm7, %v8725_v5, %v8724_v49  ;;  %v1798_v21 = vsel %vm1679_vm7, %v8724_v49, %v8726_v20  ;;  %v1799_v25 = vsel %vm1679_vm7, %v8726_v20, %v8727_v43  ;;  %v8737_v22 = vld [vmem:[#allocation213_spill] sm:$0xff]  ;;  %v8744_v49 = vld [vmem:[#allocation219_spill] sm:$0xff] }
 0xf30   :  { %v1754_v29 = vadd.f32 %v1742_v55, %v1697_v39  ;;  %v1806_v30 = vadd.f32 %v1794_v52, %v1749_v1  ;;  %v1851_v47 = vsel %vm1679_vm7, %v8728_v13, %v5578_v7  ;;  %v1852_v12 = vsel %vm1679_vm7, %v5578_v7, %v8729_v35  ;;  %v8739_v39 = vld [vmem:[#allocation216_spill] sm:$0xff]  ;;  %v8742_v33 = vld [vmem:[#allocation221_spill] sm:$0xff] }
 0xf31   :  { %v1807_v44 = vadd.f32 %v1795_v8, %v1750_v6  ;;  %v1853_v16 = vsel %vm1679_vm7, %v8729_v35, %v5580_v27  ;;  %v1854_v31 = vsel %vm1679_vm7, %v8731_v46, %v8730_v32  ;;  %v1808_v58 = vadd.f32 %v1796_v48, %v1751_v17  ;;  %v8743_v48 = vld [vmem:[#allocation222_spill] sm:$0xff]  ;;  %v8746_v13 = vld [vmem:[#allocation225_spill] sm:$0xff]  ;;  %v8748_v46 = vld [vmem:[#allocation220_spill] sm:$0xff] }
 0xf32   :  { %v1809_v50 = vadd.f32 %v1797_v41, %v1752_v62  ;;  %v1810_v40 = vadd.f32 %v1798_v21, %v1753_v0  ;;  %v1811_v3 = vadd.f32 %v1799_v25, %v1754_v29  ;;  %v1863_v51 = vadd.f32 %v1851_v47, %v1806_v30 }
 0xf33   :  { %v1864_v63 = vadd.f32 %v1852_v12, %v1807_v44  ;;  %v1855_v7 = vsel %vm1679_vm7, %v8730_v32, %v8732_v45  ;;  %v1856_v18 = vsel %vm1679_vm7, %v8732_v45, %v8733_v2  ;;  %v1865_v27 = vadd.f32 %v1853_v16, %v1808_v58  ;;  %v8747_v16 = vld [vmem:[#allocation226_spill] sm:$0xff]  ;;  %v8749_v58 = vld [vmem:[#allocation223_spill] sm:$0xff] }
 0xf34   :  { %v1866_v34 = vadd.f32 %v1854_v31, %v1809_v50  ;;  %v1909_v53 = vsel %vm1908_vm8, %v8734_v60, %v5613_v10  ;;  %v1910_v9 = vsel %vm1908_vm8, %v5613_v10, %v8735_v24  ;;  %v1911_v23 = vsel %vm1908_vm8, %v8735_v24, %v5615_v57  ;;  %v8740_v10 = vld [vmem:[#allocation217_spill] sm:$0xff] }
 0xf35   :  { %v1912_v61 = vsel %vm1908_vm8, %v8737_v22, %v8736_v19  ;;  %v1913_v37 = vsel %vm1908_vm8, %v8736_v19, %v8738_v28  ;;  %v1914_v1 = vsel %vm1908_vm8, %v8738_v28, %v8739_v39  ;;  %v1867_v6 = vadd.f32 %v1855_v7, %v1810_v40  ;;  %v8751_v28 = vld [vmem:[#allocation5_spill] sm:$0xff] }
 0xf36   :  { %v1868_v42 = vadd.f32 %v1856_v18, %v1811_v3  ;;  %v1966_v55 = vsel %vm1908_vm8, %v8740_v10, %v5648_v54  ;;  %v1967_v57 = vsel %vm1908_vm8, %v5648_v54, %v8741_v56  ;;  %v1921_v62 = vadd.f32 %v1909_v53, %v1863_v51  ;;  %v8745_v54 = vld [vmem:[#allocation224_spill] sm:$0xff] }
 0xf37   :  { %v1922_v0 = vadd.f32 %v1910_v9, %v1864_v63  ;;  %v1968_v8 = vsel %vm1908_vm8, %v8741_v56, %v8742_v33  ;;  %v1969_v5 = vsel %vm1908_vm8, %v8744_v49, %v8743_v48  ;;  %v1923_v41 = vadd.f32 %v1911_v23, %v1865_v27  ;;  %v8750_v27 = vld [vmem:[#allocation227_spill] sm:$0xff] }
 0xf38   :  { %v1924_v20 = vadd.f32 %v1912_v61, %v1866_v34  ;;  %v1925_v21 = vadd.f32 %v1913_v37, %v1867_v6  ;;  %v1926_v43 = vadd.f32 %v1914_v1, %v1868_v42  ;;  %v1978_v25 = vadd.f32 %v1966_v55, %v1921_v62 }
 0xf39   :  { %v1979_v29 = vadd.f32 %v1967_v57, %v1922_v0  ;;  %v2023_v30 = vsel %vm1908_vm8, %v8745_v54, %v6058_v26  ;;  %v2024_v47 = vsel %vm1908_vm8, %v6058_v26, %v8746_v13  ;;  %v1980_v35 = vadd.f32 %v1968_v8, %v1923_v41  ;;  %v4276_v54 = vld [vmem:[%s8057_s4 + $0x4] sm:$0xf] }
 0xf3a   :  { %v1981_v12 = vadd.f32 %v1969_v5, %v1924_v20  ;;  %v2025_v44 = vsel %vm1908_vm8, %v8746_v13, %v6096_v38  ;;  %v2026_v32 = vsel %vm1908_vm8, %v8747_v16, %v6131_v11  ;;  %v1970_v31 = vsel %vm1908_vm8, %v8743_v48, %v8748_v46  ;;  %v4278_v13 = vld [vmem:[%s8057_s4 + $0xc] sm:$0xf] }
 0xf3b   :  { %v1971_v50 = vsel %vm1908_vm8, %v8748_v46, %v8749_v58  ;;  %v2035_v38 = vadd.f32 %v2023_v30, %v1978_v25  ;;  %v2036_v3 = vadd.f32 %v2024_v47, %v1979_v29  ;;  %v2037_v2 = vadd.f32 %v2025_v44, %v1980_v35  ;;  %v2172_v30 = vld [vmem:[%s8057_s4] sm:$0xf]  ;;  %v4277_v47 = vld [vmem:[%s8057_s4 + $0x8] sm:$0xf]  ;;  %v4279_v35 = vld [vmem:[%s8057_s4 + $0x10] sm:$0xf] }
 0xf3c   :  { %v2038_v18 = vadd.f32 %v2026_v32, %v1981_v12  ;;  %v2027_v34 = vsel %vm1908_vm8, %v6131_v11, %v8750_v27  ;;  %v1982_v60 = vadd.f32 %v1970_v31, %v1925_v21 }
 0xf3e   :  { %v2039_v22 = vadd.f32 %v2027_v34, %v1982_v60 }
 0xf44   :  { %v6195_v15 = vpop.permute.xlu0 %2066  ;;  %v6197_v14 = vpop.permute.xlu1 %2064 }
 0xf45   :  { %v2080_v26 = vsel %vm1908_vm8, %v6197_v14, %v6195_v15  ;;  %v2028_v14 = vsel %vm1908_vm8, %v8750_v27, %v6166_v59  ;;  %v8753_v59 = vld [vmem:[#allocation4_spill] sm:$0xff] }
 0xf48   :  { %v2071_v36 = vpop.permute.xlu0 %2070  ;;  %v2069_v4 = vpop.permute.xlu1 %2068 }
 0xf49   :  { %v2081_v40 = vsel %vm1908_vm8, %v6195_v15, %v2069_v4  ;;  %v2082_v51 = vsel %vm1908_vm8, %v2069_v4, %v2071_v36  ;;  %v27_v15 = vld [vmem:[%s8056_s1] sm:$0x7]  ;;  %v1983_v36 = vadd.f32 %v1971_v50, %v1926_v43  ;;  %v2092_v4 = vadd.f32 %v2080_v26, %v2035_v38 }
 0xf4a   :  { %v2093_v53 = vadd.f32 %v2081_v40, %v2036_v3  ;;  %v2094_v24 = vadd.f32 %v2082_v51, %v2037_v2  ;;  %v6314_v37 = vrot.slane %v27_v15, %v8751_v28  ;;  %v6317_v39 = vrot.slane %v27_v15, %v8753_v59 }
 0xf4b   :  { %v2040_v11 = vadd.f32 %v2028_v14, %v1983_v36 }
 0xf4c   :  { %v2075_v52 = vpop.permute.xlu0 %2074  ;;  %v2073_v17 = vpop.permute.xlu1 %2072  ;;  %8752 = vst [vmem:[#allocation8_spill] sm:$0xff] %v6314_v37  ;;  %8754 = vst [vmem:[#allocation9_spill] sm:$0xff] %v6317_v39 }
 0xf4d   :  { %v2083_v63 = vsel %vm1908_vm8, %v2073_v17, %v2075_v52 }
 0xf4e   :  { %v2095_v9 = vadd.f32 %v2083_v63, %v2038_v18 }
 0xf50   :  { %v2079_v45 = vpop.permute.xlu0 %2078  ;;  %v2077_v7 = vpop.permute.xlu1 %2076 }
 0xf51   :  { %v2084_v23 = vsel %vm1908_vm8, %v2075_v52, %v2077_v7  ;;  %v2085_v19 = vsel %vm1908_vm8, %v2077_v7, %v2079_v45  ;;  %v8755_v52 = vld [vmem:[#allocation6_spill] sm:$0xff] }
 0xf52   :  { %v2096_v55 = vadd.f32 %v2084_v23, %v2039_v22  ;;  %v2097_v56 = vadd.f32 %v2085_v19, %v2040_v11  ;;  %v6320_v62 = vrot.slane %v27_v15, %v8755_v52 }
 0xf54   :  { %8756 = vst [vmem:[#allocation28_spill] sm:$0xff] %v6320_v62 }
 0xf5d   :  { %v2102_v61 = vpop.permute.xlu1 %2101 }
 0xf5e   :  { %v2105_v1 = vadd.f32 %v2102_v61, %v2093_v53  ;;  %v2104_v6 = vadd.f32 %v2102_v61, %v2092_v4  ;;  %v2107_v42 = vadd.f32 %v2102_v61, %v2095_v9  ;;  %v2106_v10 = vadd.f32 %v2102_v61, %v2094_v24 }
 0xf5f   :  { %v2109_v0 = vadd.f32 %v2102_v61, %v2097_v56  ;;  %v2108_v33 = vadd.f32 %v2102_v61, %v2096_v55 }
 0xf60   :  { %v2111_v57 = vmax.f32 %v2105_v1, 0.0  ;;  %v2110_v17 = vmax.f32 %v2104_v6, 0.0  ;;  %v2113_v49 = vmax.f32 %v2107_v42, 0.0  ;;  %v2112_v5 = vmax.f32 %v2106_v10, 0.0  ;;  %v4280_v1 = vld [vmem:[%s8057_s4 + $0x14] sm:$0xf] }
 0xf61   :  { %v2115_v21 = vmax.f32 %v2109_v0, 0.0  ;;  %v2114_v43 = vmax.f32 %v2108_v33, 0.0 }
 0xf62   :  { %v2133_v8 = vmul.f32 %v6314_v37, %v2111_v57  ;;  %v2132_v48 = vmul.f32 %v6317_v39, %v2110_v17  ;;  %v2135_v41 = vmul.f32 %v6317_v39, %v2113_v49  ;;  %v2134_v20 = vmul.f32 %v6320_v62, %v2112_v5 }
 0xf63   :  { %v2137_v25 = vmul.f32 %v6320_v62, %v2115_v21  ;;  %v2136_v29 = vmul.f32 %v6314_v37, %v2114_v43 }
 0xf64   :  { %2146 = vrot.lane.b32.xlu1 %v2133_v8, %s4330_s25  ;;  %2144 = vrot.lane.b32.xlu0 %v2132_v48, %s4330_s25 }
 0xf68   :  { %2150 = vrot.lane.b32.xlu1 %v2135_v41, %s4330_s25  ;;  %2148 = vrot.lane.b32.xlu0 %v2134_v20, %s4330_s25 }
 0xf6c   :  { %2154 = vrot.lane.b32.xlu1 %v2137_v25, %s4330_s25  ;;  %2152 = vrot.lane.b32.xlu0 %v2136_v29, %s4330_s25 }
 0xf70   :  { %2218 = vperm.xlu1 %4322, %v4276_v54   ;;  %2175 = vperm.xlu0 %4321, %v2172_v30  }
 0xf74   :  { %2304 = vperm.xlu1 %4322, %v4278_v13   ;;  %2261 = vperm.xlu0 %4321, %v4277_v47   ;;  %v4281_v47 = vld [vmem:[%s8057_s4 + $0x18] sm:$0xf] }
 0xf78   :  { %2347 = vperm.xlu0 %4321, %v4279_v35  }
 0xfd6   :  { %v2145_v12 = vpop.permute.xlu0 %2144  ;;  %v2147_v46 = vpop.permute.xlu1 %2146 }
 0xfd7   :  { %v6352_v31 = vsel %vm46_vm0, %v2145_v12, %v2147_v46  ;;  %v6355_v58 = vsel %vm46_vm0, 0.0, %v2145_v12 }
 0xfd8   :  { %v6361_v26 = vrot.slane %v6355_v58, %v8753_v59  ;;  %v6365_v40 = vrot.slane %v6352_v31, %v8753_v59  ;;  %v6442_v57 = vrot.slane %v6355_v58, %v8751_v28  ;;  %v6446_v17 = vrot.slane %v6352_v31, %v8751_v28 }
 0xfda   :  { %v2149_v44 = vpop.permute.xlu0 %2148  ;;  %8757 = vst [vmem:[#allocation29_spill] sm:$0xff] %v6361_v26  ;;  %8758 = vst [vmem:[#allocation10_spill] sm:$0xff] %v6365_v40  ;;  %v2151_v38 = vpop.permute.xlu1 %2150 }
 0xfdb   :  { %v6368_v3 = vsel %vm46_vm0, %v2147_v46, %v2149_v44  ;;  %v6371_v51 = vsel %vm46_vm0, %v2149_v44, 0.0  ;;  %v6386_v27 = vsel %vm46_vm0, 0.0, %v2151_v38  ;;  %8765 = vst [vmem:[#allocation14_spill] sm:$0xff] %v6442_v57  ;;  %8766 = vst [vmem:[#allocation33_spill] sm:$0xff] %v6446_v17 }
 0xfdc   :  { %v6377_v2 = vrot.slane %v6368_v3, %v8753_v59  ;;  %v6381_v18 = vrot.slane %v6371_v51, %v8753_v59  ;;  %v6395_v36 = vrot.slane %v6386_v27, %v8753_v59  ;;  %v6452_v48 = vrot.slane %v6368_v3, %v8751_v28 }
 0xfdd   :  { %v6456_v49 = vrot.slane %v6371_v51, %v8751_v28  ;;  %v6464_v20 = vrot.slane %v6386_v27, %v8751_v28 }
 0xfde   :  { %v2153_v16 = vpop.permute.xlu0 %2152  ;;  %8759 = vst [vmem:[#allocation11_spill] sm:$0xff] %v6377_v2  ;;  %8760 = vst [vmem:[#allocation30_spill] sm:$0xff] %v6381_v18  ;;  %v2155_v14 = vpop.permute.xlu1 %2154 }
 0xfdf   :  { %v6389_v34 = vsel %vm46_vm0, %v2151_v38, %v2153_v16  ;;  %8761 = vst [vmem:[#allocation12_spill] sm:$0xff] %v6395_v36  ;;  %v6404_v53 = vsel %vm46_vm0, %v2155_v14, 0.0  ;;  %v6407_v24 = vsel %vm46_vm0, %v2153_v16, %v2155_v14  ;;  %8767 = vst [vmem:[#allocation34_spill] sm:$0xff] %v6452_v48 }
 0xfe0   :  { %v6399_v4 = vrot.slane %v6389_v34, %v8753_v59  ;;  %v6413_v19 = vrot.slane %v6404_v53, %v8753_v59  ;;  %v6417_v22 = vrot.slane %v6407_v24, %v8753_v59  ;;  %8768 = vst [vmem:[#allocation15_spill] sm:$0xff] %v6456_v49  ;;  %8769 = vst [vmem:[#allocation35_spill] sm:$0xff] %v6464_v20 }
 0xfe1   :  { %v6468_v21 = vrot.slane %v6389_v34, %v8751_v28  ;;  %v6476_v29 = vrot.slane %v6404_v53, %v8751_v28  ;;  %v6480_v54 = vrot.slane %v6407_v24, %v8751_v28 }
 0xfe2   :  { %8762 = vst [vmem:[#allocation31_spill] sm:$0xff] %v6399_v4  ;;  %8763 = vst [vmem:[#allocation32_spill] sm:$0xff] %v6413_v19 }
 0xfe3   :  { %8764 = vst [vmem:[#allocation13_spill] sm:$0xff] %v6417_v22  ;;  %8770 = vst [vmem:[#allocation16_spill] sm:$0xff] %v6468_v21 }
 0xfe4   :  { %8771 = vst [vmem:[#allocation17_spill] sm:$0xff] %v6476_v29  ;;  %8772 = vst [vmem:[#allocation36_spill] sm:$0xff] %v6480_v54 }
 0xfeb   :  { %v6349_v32 = vpop.permute.xlu0 %2175  ;;  %v6428_v6 = vpop.permute.xlu1 %2218 }
 0xfef   :  { %v6357_v50 = vpop.permute.xlu0 %2261  ;;  %v6430_v59 = vpop.permute.xlu1 %2304 }
 0xff3   :  { %v2348_v63 = vpop.permute.xlu0 %2347 }
 0xff4   :  { %v2359_v45 = vmul.f32 %v2348_v63, %v6365_v40  ;;  %v2358_v7 = vmul.f32 %v2348_v63, %v6361_v26  ;;  %v2361_v15 = vmul.f32 %v6381_v18, %v2348_v63  ;;  %v2360_v60 = vmul.f32 %v2348_v63, %v6377_v2 }
 0xff5   :  { %v2363_v9 = vmul.f32 %v2348_v63, %v6399_v4  ;;  %v2362_v23 = vmul.f32 %v2348_v63, %v6395_v36  ;;  %v2365_v11 = vmul.f32 %v6413_v19, %v2348_v63  ;;  %v2364_v61 = vmul.f32 %v2348_v63, %v6417_v22 }
 0xff6   :  { %2376 = vrot.lane.b32.xlu0 %v2359_v45, %s4331_s29  ;;  %2374 = vrot.lane.b32.xlu1 %v2358_v7, %s4331_s29  ;;  %v6509_v45 = vrot.slane %v6355_v58, %v8755_v52  ;;  %v6513_v7 = vrot.slane %v6352_v31, %v8755_v52 }
 0xff8   :  { %8773 = vst [vmem:[#allocation37_spill] sm:$0xff] %v6509_v45  ;;  %8774 = vst [vmem:[#allocation18_spill] sm:$0xff] %v6513_v7 }
 0xffa   :  { %2380 = vrot.lane.b32.xlu0 %v2361_v15, %s4331_s29  ;;  %2378 = vrot.lane.b32.xlu1 %v2360_v60, %s4331_s29 }
 0xffe   :  { %2384 = vrot.lane.b32.xlu0 %v2363_v9, %s4331_s29  ;;  %2382 = vrot.lane.b32.xlu1 %v2362_v23, %s4331_s29  ;;  %v6519_v9 = vrot.slane %v6368_v3, %v8755_v52  ;;  %v6523_v23 = vrot.slane %v6371_v51, %v8755_v52 }
0x1000   :  { %8775 = vst [vmem:[#allocation19_spill] sm:$0xff] %v6519_v9  ;;  %8776 = vst [vmem:[#allocation38_spill] sm:$0xff] %v6523_v23 }
0x1002   :  { %2388 = vrot.lane.b32.xlu0 %v2365_v11, %s4331_s29  ;;  %2386 = vrot.lane.b32.xlu1 %v2364_v61, %s4331_s29 }
0x1006   :  { %2412 = vperm.xlu1 %4322, %v4280_v1   ;;  %v6531_v1 = vrot.slane %v6386_v27, %v8755_v52 }
0x1068   :  { %v6432_v42 = vpop.permute.xlu1 %2374  ;;  %v6491_v35 = vpop.permute.xlu0 %2376 }
0x106c   :  { %v6434_v10 = vpop.permute.xlu1 %2378  ;;  %v6493_v28 = vpop.permute.xlu0 %2380 }
0x1070   :  { %v6436_v55 = vpop.permute.xlu1 %2382  ;;  %v6495_v12 = vpop.permute.xlu0 %2384 }
0x1074   :  { %v6438_v56 = vpop.permute.xlu1 %2386  ;;  %v6497_v44 = vpop.permute.xlu0 %2388 }
0x1081   :  { %v2413_v0 = vpop.permute.xlu1 %2412 }
0x1082   :  { %v2424_v33 = vmul.f32 %v2413_v0, %v6446_v17  ;;  %v2423_v8 = vmul.f32 %v2413_v0, %v6442_v57  ;;  %v2426_v5 = vmul.f32 %v6456_v49, %v2413_v0  ;;  %v2425_v41 = vmul.f32 %v2413_v0, %v6452_v48 }
0x1083   :  { %v2428_v43 = vmul.f32 %v2413_v0, %v6468_v21  ;;  %v2427_v25 = vmul.f32 %v2413_v0, %v6464_v20  ;;  %v2430_v30 = vmul.f32 %v6476_v29, %v2413_v0  ;;  %v2429_v13 = vmul.f32 %v2413_v0, %v6480_v54 }
0x1084   :  { %2441 = vrot.lane.b32.xlu1 %v2424_v33, %s4331_s29  ;;  %2439 = vrot.lane.b32.xlu0 %v2423_v8, %s4331_s29  ;;  %v6535_v0 = vrot.slane %v6389_v34, %v8755_v52 }
0x1088   :  { %2445 = vrot.lane.b32.xlu1 %v2426_v5, %s4331_s29  ;;  %2443 = vrot.lane.b32.xlu0 %v2425_v41, %s4331_s29  ;;  %v6543_v5 = vrot.slane %v6404_v53, %v8755_v52  ;;  %v6547_v41 = vrot.slane %v6407_v24, %v8755_v52 }
0x108a   :  { %8777 = vst [vmem:[#allocation20_spill] sm:$0xff] %v6543_v5 }
0x108c   :  { %2449 = vrot.lane.b32.xlu1 %v2428_v43, %s4331_s29  ;;  %2447 = vrot.lane.b32.xlu0 %v2427_v25, %s4331_s29 }
0x1090   :  { %2453 = vrot.lane.b32.xlu1 %v2430_v30, %s4331_s29  ;;  %2451 = vrot.lane.b32.xlu0 %v2429_v13, %s4331_s29  ;;  %v4282_v30 = vld [vmem:[%s8057_s4 + $0x1c] sm:$0xf] }
0x1094   :  { %2477 = vperm.xlu0 %4321, %v4281_v47  }
0x10f6   :  { %v6499_v16 = vpop.permute.xlu0 %2439  ;;  %v6558_v13 = vpop.permute.xlu1 %2441 }
0x10fa   :  { %v6501_v46 = vpop.permute.xlu0 %2443  ;;  %v6560_v52 = vpop.permute.xlu1 %2445 }
0x10fe   :  { %v6503_v38 = vpop.permute.xlu0 %2447  ;;  %v6562_v47 = vpop.permute.xlu1 %2449 }
0x1102   :  { %v6505_v63 = vpop.permute.xlu0 %2451 }
0x110f   :  { %v2478_v14 = vpop.permute.xlu0 %2477 }
0x1110   :  { %v2489_v15 = vmul.f32 %v2478_v14, %v6513_v7  ;;  %v2488_v60 = vmul.f32 %v2478_v14, %v6509_v45  ;;  %v2491_v11 = vmul.f32 %v6523_v23, %v2478_v14  ;;  %v2490_v61 = vmul.f32 %v2478_v14, %v6519_v9 }
0x1111   :  { %v2493_v33 = vmul.f32 %v2478_v14, %v6535_v0  ;;  %v2492_v8 = vmul.f32 %v2478_v14, %v6531_v1  ;;  %v2495_v43 = vmul.f32 %v6543_v5, %v2478_v14  ;;  %v2494_v25 = vmul.f32 %v2478_v14, %v6547_v41 }
0x1112   :  { %2506 = vrot.lane.b32.xlu0 %v2489_v15, %s4331_s29  ;;  %2504 = vrot.lane.b32.xlu1 %v2488_v60, %s4331_s29  ;;  %v6564_v15 = vpop.permute.xlu1 %2453 }
0x1116   :  { %2510 = vrot.lane.b32.xlu0 %v2491_v11, %s4331_s29  ;;  %2508 = vrot.lane.b32.xlu1 %v2490_v61, %s4331_s29 }
0x111a   :  { %2514 = vrot.lane.b32.xlu0 %v2493_v33, %s4331_s29  ;;  %2512 = vrot.lane.b32.xlu1 %v2492_v8, %s4331_s29  ;;  %v8782_v33 = vld [vmem:[#allocation7_spill] sm:$0xff] }
0x111b   :  { %v6576_v8 = vrot.slane %v6355_v58, %v8782_v33  ;;  %v6586_v39 = vrot.slane %v6368_v3, %v8782_v33  ;;  %v6590_v62 = vrot.slane %v6371_v51, %v8782_v33  ;;  %v6602_v3 = vrot.slane %v6389_v34, %v8782_v33 }
0x111d   :  { %8783 = vst [vmem:[#allocation41_spill] sm:$0xff] %v6590_v62 }
0x111e   :  { %2518 = vrot.lane.b32.xlu0 %v2495_v43, %s4331_s29  ;;  %2516 = vrot.lane.b32.xlu1 %v2494_v25, %s4331_s29  ;;  %v6580_v43 = vrot.slane %v6352_v31, %v8782_v33 }
0x1122   :  { %2542 = vperm.xlu1 %4322, %v4282_v30  }
0x1184   :  { %v6566_v60 = vpop.permute.xlu1 %2504 }
0x1185   :  { %8778 = vst [vmem:[#allocation39_spill] sm:$0xff] %v6566_v60 }
0x1188   :  { %v6568_v14 = vpop.permute.xlu1 %2508 }
0x1189   :  { %8779 = vst [vmem:[#allocation40_spill] sm:$0xff] %v6568_v14 }
0x118c   :  { %v6570_v11 = vpop.permute.xlu1 %2512 }
0x118d   :  { %8780 = vst [vmem:[#allocation21_spill] sm:$0xff] %v6570_v11 }
0x1190   :  { %v6572_v61 = vpop.permute.xlu1 %2516 }
0x1191   :  { %8781 = vst [vmem:[#allocation22_spill] sm:$0xff] %v6572_v61  ;;  %v6598_v61 = vrot.slane %v6386_v27, %v8782_v33  ;;  %v6614_v27 = vrot.slane %v6407_v24, %v8782_v33 }
0x119d   :  { %v2543_v25 = vpop.permute.xlu1 %2542 }
0x119e   :  { %v2554_v30 = vmul.f32 %v2543_v25, %v6580_v43  ;;  %v2553_v37 = vmul.f32 %v2543_v25, %v6576_v8  ;;  %v2556_v31 = vmul.f32 %v6590_v62, %v2543_v25  ;;  %v2555_v58 = vmul.f32 %v2543_v25, %v6586_v39 }
0x119f   :  { %v2558_v51 = vmul.f32 %v2543_v25, %v6602_v3 }
0x11a0   :  { %2571 = vrot.lane.b32.xlu1 %v2554_v30, %s4331_s29  ;;  %2569 = vrot.lane.b32.xlu0 %v2553_v37, %s4331_s29  ;;  %v2557_v37 = vmul.f32 %v2543_v25, %v6598_v61  ;;  %v6610_v30 = vrot.slane %v6404_v53, %v8782_v33  ;;  %v4283_v53 = vld [vmem:[%s8057_s4 + $0x20] sm:$0xf] }
0x11a2   :  { %8784 = vst [vmem:[#allocation42_spill] sm:$0xff] %v6610_v30  ;;  %v2560_v34 = vmul.f32 %v6610_v30, %v2543_v25 }
0x11a4   :  { %2575 = vrot.lane.b32.xlu1 %v2556_v31, %s4331_s29  ;;  %2573 = vrot.lane.b32.xlu0 %v2555_v58, %s4331_s29  ;;  %v2559_v31 = vmul.f32 %v2543_v25, %v6614_v27  ;;  %v6625_v58 = vpop.permute.xlu0 %2506 }
0x11a8   :  { %2579 = vrot.lane.b32.xlu1 %v2558_v51, %s4331_s29  ;;  %2577 = vrot.lane.b32.xlu0 %v2557_v37, %s4331_s29  ;;  %v6627_v24 = vpop.permute.xlu0 %2510 }
0x11a9   :  { %8785 = vst [vmem:[#allocation23_spill] sm:$0xff] %v6627_v24 }
0x11ac   :  { %2583 = vrot.lane.b32.xlu1 %v2560_v34, %s4331_s29  ;;  %2581 = vrot.lane.b32.xlu0 %v2559_v31, %s4331_s29  ;;  %v6629_v33 = vpop.permute.xlu0 %2514 }
0x11ad   :  { %8786 = vst [vmem:[#allocation43_spill] sm:$0xff] %v6629_v33 }
0x11b0   :  { %2607 = vperm.xlu0 %4321, %v4283_v53   ;;  %v6631_v51 = vpop.permute.xlu0 %2518 }
0x11b1   :  { %8787 = vst [vmem:[#allocation24_spill] sm:$0xff] %v6631_v51 }
0x1212   :  { %v6633_v37 = vpop.permute.xlu0 %2569 }
0x1213   :  { %8788 = vst [vmem:[#allocation25_spill] sm:$0xff] %v6633_v37 }
0x1216   :  { %v6635_v25 = vpop.permute.xlu0 %2573 }
0x1217   :  { %8789 = vst [vmem:[#allocation44_spill] sm:$0xff] %v6635_v25 }
0x121a   :  { %v6637_v34 = vpop.permute.xlu0 %2577 }
0x121b   :  { %8790 = vst [vmem:[#allocation45_spill] sm:$0xff] %v6637_v34 }
0x121e   :  { %v6639_v31 = vpop.permute.xlu0 %2581 }
0x121f   :  { %8791 = vst [vmem:[#allocation26_spill] sm:$0xff] %v6639_v31 }
0x122b   :  { %v2608_v11 = vpop.permute.xlu0 %2607 }
0x122c   :  { %v2611_v14 = vmul.f32 %v2608_v11, %v6365_v40  ;;  %v2610_v53 = vmul.f32 %v2608_v11, %v6361_v26  ;;  %v2613_v33 = vmul.f32 %v2608_v11, %v6381_v18  ;;  %v2612_v51 = vmul.f32 %v2608_v11, %v6377_v2 }
0x122d   :  { %v2615_v34 = vmul.f32 %v2608_v11, %v6399_v4  ;;  %v2614_v31 = vmul.f32 %v2608_v11, %v6395_v36 }
0x122e   :  { %2628 = vrot.lane.b32.xlu0 %v2611_v14, %s4332_s30  ;;  %2626 = vrot.lane.b32.xlu1 %v2610_v53, %s4332_s30  ;;  %v2617_v14 = vmul.f32 %v2608_v11, %v6413_v19  ;;  %v2616_v53 = vmul.f32 %v2608_v11, %v6417_v22 }
0x1232   :  { %2632 = vrot.lane.b32.xlu0 %v2613_v33, %s4332_s30  ;;  %2630 = vrot.lane.b32.xlu1 %v2612_v51, %s4332_s30  ;;  %v4284_v33 = vld [vmem:[%s8057_s4 + $0x24] sm:$0xf]  ;;  %v6660_v51 = vpop.permute.xlu1 %2571 }
0x1233   :  { %8792 = vst [vmem:[#allocation27_spill] sm:$0xff] %v6660_v51 }
0x1236   :  { %2636 = vrot.lane.b32.xlu0 %v2615_v34, %s4332_s30  ;;  %2634 = vrot.lane.b32.xlu1 %v2614_v31, %s4332_s30  ;;  %v6662_v25 = vpop.permute.xlu1 %2575 }
0x1237   :  { %8793 = vst [vmem:[#allocation46_spill] sm:$0xff] %v6662_v25 }
0x123a   :  { %2640 = vrot.lane.b32.xlu0 %v2617_v14, %s4332_s30  ;;  %2638 = vrot.lane.b32.xlu1 %v2616_v53, %s4332_s30  ;;  %v6664_v34 = vpop.permute.xlu1 %2579 }
0x123b   :  { %8794 = vst [vmem:[#allocation51_spill] sm:$0xff] %v6664_v34 }
0x123e   :  { %2664 = vperm.xlu1 %4322, %v4284_v33   ;;  %v6666_v31 = vpop.permute.xlu1 %2583 }
0x123f   :  { %8795 = vst [vmem:[#allocation47_spill] sm:$0xff] %v6666_v31 }
0x12a0   :  { %v6668_v37 = vpop.permute.xlu1 %2626 }
0x12a1   :  { %8796 = vst [vmem:[#allocation48_spill] sm:$0xff] %v6668_v37 }
0x12a4   :  { %v6670_v11 = vpop.permute.xlu1 %2630 }
0x12a5   :  { %8797 = vst [vmem:[#allocation52_spill] sm:$0xff] %v6670_v11 }
0x12a8   :  { %v6672_v14 = vpop.permute.xlu1 %2634 }
0x12a9   :  { %8798 = vst [vmem:[#allocation53_spill] sm:$0xff] %v6672_v14 }
0x12ac   :  { %v6674_v53 = vpop.permute.xlu1 %2638 }
0x12ad   :  { %8799 = vst [vmem:[#allocation49_spill] sm:$0xff] %v6674_v53 }
0x12b9   :  { %v2665_v24 = vpop.permute.xlu1 %2664 }
0x12ba   :  { %v2668_v60 = vmul.f32 %v2665_v24, %v6446_v17  ;;  %v2667_v33 = vmul.f32 %v2665_v24, %v6442_v57  ;;  %v2670_v34 = vmul.f32 %v2665_v24, %v6456_v49  ;;  %v2669_v31 = vmul.f32 %v2665_v24, %v6452_v48 }
0x12bb   :  { %v2672_v14 = vmul.f32 %v2665_v24, %v6468_v21  ;;  %v2671_v53 = vmul.f32 %v2665_v24, %v6464_v20 }
0x12bc   :  { %2685 = vrot.lane.b32.xlu1 %v2668_v60, %s4332_s30  ;;  %2683 = vrot.lane.b32.xlu0 %v2667_v33, %s4332_s30  ;;  %v2674_v60 = vmul.f32 %v2665_v24, %v6476_v29  ;;  %v2673_v33 = vmul.f32 %v2665_v24, %v6480_v54 }
0x12c0   :  { %2689 = vrot.lane.b32.xlu1 %v2670_v34, %s4332_s30  ;;  %2687 = vrot.lane.b32.xlu0 %v2669_v31, %s4332_s30  ;;  %v4285_v34 = vld [vmem:[%s8057_s4 + $0x28] sm:$0xf]  ;;  %v6695_v31 = vpop.permute.xlu0 %2628 }
0x12c1   :  { %8800 = vst [vmem:[#allocation50_spill] sm:$0xff] %v6695_v31 }
0x12c4   :  { %2693 = vrot.lane.b32.xlu1 %v2672_v14, %s4332_s30  ;;  %2691 = vrot.lane.b32.xlu0 %v2671_v53, %s4332_s30  ;;  %v6697_v11 = vpop.permute.xlu0 %2632 }
0x12c5   :  { %8801 = vst [vmem:[#allocation54_spill] sm:$0xff] %v6697_v11 }
0x12c8   :  { %2697 = vrot.lane.b32.xlu1 %v2674_v60, %s4332_s30  ;;  %2695 = vrot.lane.b32.xlu0 %v2673_v33, %s4332_s30  ;;  %v6699_v14 = vpop.permute.xlu0 %2636 }
0x12c9   :  { %8802 = vst [vmem:[#allocation59_spill] sm:$0xff] %v6699_v14 }
0x12cc   :  { %2721 = vperm.xlu0 %4321, %v4285_v34   ;;  %v6701_v53 = vpop.permute.xlu0 %2640 }
0x12cd   :  { %8803 = vst [vmem:[#allocation55_spill] sm:$0xff] %v6701_v53 }
0x132e   :  { %v6703_v37 = vpop.permute.xlu0 %2683 }
0x132f   :  { %8804 = vst [vmem:[#allocation56_spill] sm:$0xff] %v6703_v37 }
0x1332   :  { %v6705_v24 = vpop.permute.xlu0 %2687 }
0x1333   :  { %8805 = vst [vmem:[#allocation60_spill] sm:$0xff] %v6705_v24 }
0x1336   :  { %v6707_v60 = vpop.permute.xlu0 %2691 }
0x1337   :  { %8806 = vst [vmem:[#allocation61_spill] sm:$0xff] %v6707_v60 }
0x133a   :  { %v6709_v33 = vpop.permute.xlu0 %2695 }
0x133b   :  { %8807 = vst [vmem:[#allocation57_spill] sm:$0xff] %v6709_v33 }
0x1347   :  { %v2722_v25 = vpop.permute.xlu0 %2721 }
0x1348   :  { %v2725_v51 = vmul.f32 %v2722_v25, %v6513_v7  ;;  %v2724_v34 = vmul.f32 %v2722_v25, %v6509_v45  ;;  %v2727_v14 = vmul.f32 %v2722_v25, %v6523_v23  ;;  %v2726_v53 = vmul.f32 %v2722_v25, %v6519_v9 }
0x1349   :  { %v2729_v60 = vmul.f32 %v2722_v25, %v6535_v0  ;;  %v2728_v33 = vmul.f32 %v2722_v25, %v6531_v1 }
0x134a   :  { %2742 = vrot.lane.b32.xlu0 %v2725_v51, %s4332_s30  ;;  %2740 = vrot.lane.b32.xlu1 %v2724_v34, %s4332_s30  ;;  %v2731_v51 = vmul.f32 %v2722_v25, %v6543_v5  ;;  %v2730_v34 = vmul.f32 %v2722_v25, %v6547_v41 }
0x134e   :  { %2746 = vrot.lane.b32.xlu0 %v2727_v14, %s4332_s30  ;;  %2744 = vrot.lane.b32.xlu1 %v2726_v53, %s4332_s30  ;;  %v4286_v14 = vld [vmem:[%s8057_s4 + $0x2c] sm:$0xf]  ;;  %v6730_v53 = vpop.permute.xlu1 %2685 }
0x134f   :  { %8808 = vst [vmem:[#allocation58_spill] sm:$0xff] %v6730_v53 }
0x1352   :  { %2750 = vrot.lane.b32.xlu0 %v2729_v60, %s4332_s30  ;;  %2748 = vrot.lane.b32.xlu1 %v2728_v33, %s4332_s30  ;;  %v6732_v24 = vpop.permute.xlu1 %2689 }
0x1353   :  { %8809 = vst [vmem:[#allocation62_spill] sm:$0xff] %v6732_v24 }
0x1356   :  { %2754 = vrot.lane.b32.xlu0 %v2731_v51, %s4332_s30  ;;  %2752 = vrot.lane.b32.xlu1 %v2730_v34, %s4332_s30  ;;  %v6734_v60 = vpop.permute.xlu1 %2693 }
0x1357   :  { %8810 = vst [vmem:[#allocation67_spill] sm:$0xff] %v6734_v60 }
0x135a   :  { %2778 = vperm.xlu1 %4322, %v4286_v14   ;;  %v6736_v33 = vpop.permute.xlu1 %2697 }
0x135b   :  { %8811 = vst [vmem:[#allocation63_spill] sm:$0xff] %v6736_v33 }
0x13bc   :  { %v6738_v37 = vpop.permute.xlu1 %2740 }
0x13bd   :  { %8812 = vst [vmem:[#allocation64_spill] sm:$0xff] %v6738_v37 }
0x13c0   :  { %v6740_v25 = vpop.permute.xlu1 %2744 }
0x13c1   :  { %8813 = vst [vmem:[#allocation68_spill] sm:$0xff] %v6740_v25 }
0x13c4   :  { %v6742_v51 = vpop.permute.xlu1 %2748 }
0x13c5   :  { %8814 = vst [vmem:[#allocation69_spill] sm:$0xff] %v6742_v51 }
0x13c8   :  { %v6744_v34 = vpop.permute.xlu1 %2752 }
0x13c9   :  { %8815 = vst [vmem:[#allocation65_spill] sm:$0xff] %v6744_v34 }
0x13d5   :  { %v2779_v11 = vpop.permute.xlu1 %2778 }
0x13d6   :  { %v2782_v31 = vmul.f32 %v2779_v11, %v6580_v43  ;;  %v2781_v14 = vmul.f32 %v2779_v11, %v6576_v8  ;;  %v2784_v60 = vmul.f32 %v2779_v11, %v6590_v62  ;;  %v2783_v33 = vmul.f32 %v2779_v11, %v6586_v39 }
0x13d7   :  { %v2786_v51 = vmul.f32 %v2779_v11, %v6602_v3  ;;  %v2785_v34 = vmul.f32 %v2779_v11, %v6598_v61 }
0x13d8   :  { %2799 = vrot.lane.b32.xlu1 %v2782_v31, %s4332_s30  ;;  %2797 = vrot.lane.b32.xlu0 %v2781_v14, %s4332_s30  ;;  %v2788_v31 = vmul.f32 %v2779_v11, %v6610_v30  ;;  %v2787_v14 = vmul.f32 %v2779_v11, %v6614_v27 }
0x13dc   :  { %2803 = vrot.lane.b32.xlu1 %v2784_v60, %s4332_s30  ;;  %2801 = vrot.lane.b32.xlu0 %v2783_v33, %s4332_s30  ;;  %v4287_v60 = vld [vmem:[%s8057_s4 + $0x30] sm:$0xf]  ;;  %v6765_v33 = vpop.permute.xlu0 %2742 }
0x13dd   :  { %8816 = vst [vmem:[#allocation66_spill] sm:$0xff] %v6765_v33 }
0x13e0   :  { %2807 = vrot.lane.b32.xlu1 %v2786_v51, %s4332_s30  ;;  %2805 = vrot.lane.b32.xlu0 %v2785_v34, %s4332_s30  ;;  %v6767_v25 = vpop.permute.xlu0 %2746 }
0x13e1   :  { %8817 = vst [vmem:[#allocation70_spill] sm:$0xff] %v6767_v25 }
0x13e4   :  { %2811 = vrot.lane.b32.xlu1 %v2788_v31, %s4332_s30  ;;  %2809 = vrot.lane.b32.xlu0 %v2787_v14, %s4332_s30  ;;  %v6769_v51 = vpop.permute.xlu0 %2750 }
0x13e5   :  { %8818 = vst [vmem:[#allocation75_spill] sm:$0xff] %v6769_v51 }
0x13e8   :  { %2835 = vperm.xlu0 %4321, %v4287_v60   ;;  %v6771_v34 = vpop.permute.xlu0 %2754 }
0x13e9   :  { %8819 = vst [vmem:[#allocation71_spill] sm:$0xff] %v6771_v34 }
0x144a   :  { %v6773_v37 = vpop.permute.xlu0 %2797 }
0x144b   :  { %8820 = vst [vmem:[#allocation72_spill] sm:$0xff] %v6773_v37 }
0x144e   :  { %v6775_v11 = vpop.permute.xlu0 %2801 }
0x144f   :  { %8821 = vst [vmem:[#allocation76_spill] sm:$0xff] %v6775_v11 }
0x1452   :  { %v6777_v31 = vpop.permute.xlu0 %2805 }
0x1453   :  { %8822 = vst [vmem:[#allocation77_spill] sm:$0xff] %v6777_v31 }
0x1456   :  { %v6779_v14 = vpop.permute.xlu0 %2809 }
0x1457   :  { %8823 = vst [vmem:[#allocation73_spill] sm:$0xff] %v6779_v14 }
0x1463   :  { %v2836_v24 = vpop.permute.xlu0 %2835 }
0x1464   :  { %v2839_v53 = vmul.f32 %v2836_v24, %v6365_v40  ;;  %v2838_v60 = vmul.f32 %v2836_v24, %v6361_v26  ;;  %v2841_v51 = vmul.f32 %v2836_v24, %v6381_v18  ;;  %v2840_v34 = vmul.f32 %v2836_v24, %v6377_v2 }
0x1465   :  { %v2843_v31 = vmul.f32 %v2836_v24, %v6399_v4  ;;  %v2842_v14 = vmul.f32 %v2836_v24, %v6395_v36 }
0x1466   :  { %2856 = vrot.lane.b32.xlu0 %v2839_v53, %s4333_s11  ;;  %2854 = vrot.lane.b32.xlu1 %v2838_v60, %s4333_s11  ;;  %v2845_v53 = vmul.f32 %v2836_v24, %v6413_v19  ;;  %v2844_v60 = vmul.f32 %v2836_v24, %v6417_v22 }
0x146a   :  { %2860 = vrot.lane.b32.xlu0 %v2841_v51, %s4333_s11  ;;  %2858 = vrot.lane.b32.xlu1 %v2840_v34, %s4333_s11  ;;  %v4288_v51 = vld [vmem:[%s8057_s4 + $0x34] sm:$0xf]  ;;  %v6800_v34 = vpop.permute.xlu1 %2799 }
0x146b   :  { %8824 = vst [vmem:[#allocation74_spill] sm:$0xff] %v6800_v34 }
0x146e   :  { %2864 = vrot.lane.b32.xlu0 %v2843_v31, %s4333_s11  ;;  %2862 = vrot.lane.b32.xlu1 %v2842_v14, %s4333_s11  ;;  %v6802_v11 = vpop.permute.xlu1 %2803 }
0x146f   :  { %8825 = vst [vmem:[#allocation78_spill] sm:$0xff] %v6802_v11 }
0x1472   :  { %2868 = vrot.lane.b32.xlu0 %v2845_v53, %s4333_s11  ;;  %2866 = vrot.lane.b32.xlu1 %v2844_v60, %s4333_s11  ;;  %v6804_v31 = vpop.permute.xlu1 %2807 }
0x1473   :  { %8826 = vst [vmem:[#allocation83_spill] sm:$0xff] %v6804_v31 }
0x1476   :  { %2892 = vperm.xlu1 %4322, %v4288_v51   ;;  %v6806_v14 = vpop.permute.xlu1 %2811 }
0x1477   :  { %8827 = vst [vmem:[#allocation79_spill] sm:$0xff] %v6806_v14 }
0x14d8   :  { %v6808_v37 = vpop.permute.xlu1 %2854 }
0x14d9   :  { %8828 = vst [vmem:[#allocation80_spill] sm:$0xff] %v6808_v37 }
0x14dc   :  { %v6810_v24 = vpop.permute.xlu1 %2858 }
0x14dd   :  { %8829 = vst [vmem:[#allocation84_spill] sm:$0xff] %v6810_v24 }
0x14e0   :  { %v6812_v53 = vpop.permute.xlu1 %2862 }
0x14e1   :  { %8830 = vst [vmem:[#allocation85_spill] sm:$0xff] %v6812_v53 }
0x14e4   :  { %v6814_v60 = vpop.permute.xlu1 %2866 }
0x14e5   :  { %8831 = vst [vmem:[#allocation81_spill] sm:$0xff] %v6814_v60 }
0x14f1   :  { %v2893_v25 = vpop.permute.xlu1 %2892 }
0x14f2   :  { %v2896_v33 = vmul.f32 %v2893_v25, %v6446_v17  ;;  %v2895_v51 = vmul.f32 %v2893_v25, %v6442_v57  ;;  %v2898_v31 = vmul.f32 %v2893_v25, %v6456_v49  ;;  %v2897_v14 = vmul.f32 %v2893_v25, %v6452_v48 }
0x14f3   :  { %v2900_v53 = vmul.f32 %v2893_v25, %v6468_v21  ;;  %v2899_v60 = vmul.f32 %v2893_v25, %v6464_v20 }
0x14f4   :  { %2913 = vrot.lane.b32.xlu1 %v2896_v33, %s4333_s11  ;;  %2911 = vrot.lane.b32.xlu0 %v2895_v51, %s4333_s11  ;;  %v2902_v33 = vmul.f32 %v2893_v25, %v6476_v29  ;;  %v2901_v51 = vmul.f32 %v2893_v25, %v6480_v54 }
0x14f8   :  { %2917 = vrot.lane.b32.xlu1 %v2898_v31, %s4333_s11  ;;  %2915 = vrot.lane.b32.xlu0 %v2897_v14, %s4333_s11  ;;  %v4289_v31 = vld [vmem:[%s8057_s4 + $0x38] sm:$0xf]  ;;  %v6835_v14 = vpop.permute.xlu0 %2856 }
0x14f9   :  { %8832 = vst [vmem:[#allocation82_spill] sm:$0xff] %v6835_v14 }
0x14fc   :  { %2921 = vrot.lane.b32.xlu1 %v2900_v53, %s4333_s11  ;;  %2919 = vrot.lane.b32.xlu0 %v2899_v60, %s4333_s11  ;;  %v6837_v24 = vpop.permute.xlu0 %2860 }
0x14fd   :  { %8833 = vst [vmem:[#allocation86_spill] sm:$0xff] %v6837_v24 }
0x1500   :  { %2925 = vrot.lane.b32.xlu1 %v2902_v33, %s4333_s11  ;;  %2923 = vrot.lane.b32.xlu0 %v2901_v51, %s4333_s11  ;;  %v6839_v53 = vpop.permute.xlu0 %2864 }
0x1501   :  { %8834 = vst [vmem:[#allocation91_spill] sm:$0xff] %v6839_v53 }
0x1504   :  { %2949 = vperm.xlu0 %4321, %v4289_v31   ;;  %v6841_v60 = vpop.permute.xlu0 %2868 }
0x1505   :  { %8835 = vst [vmem:[#allocation87_spill] sm:$0xff] %v6841_v60 }
0x1566   :  { %v6843_v37 = vpop.permute.xlu0 %2911 }
0x1567   :  { %8836 = vst [vmem:[#allocation88_spill] sm:$0xff] %v6843_v37 }
0x156a   :  { %v6845_v25 = vpop.permute.xlu0 %2915 }
0x156b   :  { %8837 = vst [vmem:[#allocation92_spill] sm:$0xff] %v6845_v25 }
0x156e   :  { %v6847_v33 = vpop.permute.xlu0 %2919 }
0x156f   :  { %8838 = vst [vmem:[#allocation93_spill] sm:$0xff] %v6847_v33 }
0x1572   :  { %v6849_v51 = vpop.permute.xlu0 %2923 }
0x1573   :  { %8839 = vst [vmem:[#allocation89_spill] sm:$0xff] %v6849_v51 }
0x157f   :  { %v2950_v11 = vpop.permute.xlu0 %2949 }
0x1580   :  { %v2953_v34 = vmul.f32 %v2950_v11, %v6513_v7  ;;  %v2952_v31 = vmul.f32 %v2950_v11, %v6509_v45  ;;  %v2955_v53 = vmul.f32 %v2950_v11, %v6523_v23  ;;  %v2954_v60 = vmul.f32 %v2950_v11, %v6519_v9 }
0x1581   :  { %v2957_v33 = vmul.f32 %v2950_v11, %v6535_v0  ;;  %v2956_v51 = vmul.f32 %v2950_v11, %v6531_v1 }
0x1582   :  { %2970 = vrot.lane.b32.xlu0 %v2953_v34, %s4333_s11  ;;  %2968 = vrot.lane.b32.xlu1 %v2952_v31, %s4333_s11  ;;  %v2959_v34 = vmul.f32 %v2950_v11, %v6543_v5  ;;  %v2958_v31 = vmul.f32 %v2950_v11, %v6547_v41 }
0x1586   :  { %2974 = vrot.lane.b32.xlu0 %v2955_v53, %s4333_s11  ;;  %2972 = vrot.lane.b32.xlu1 %v2954_v60, %s4333_s11  ;;  %v4290_v53 = vld [vmem:[%s8057_s4 + $0x3c] sm:$0xf]  ;;  %v6870_v60 = vpop.permute.xlu1 %2913 }
0x1587   :  { %8840 = vst [vmem:[#allocation90_spill] sm:$0xff] %v6870_v60 }
0x158a   :  { %2978 = vrot.lane.b32.xlu0 %v2957_v33, %s4333_s11  ;;  %2976 = vrot.lane.b32.xlu1 %v2956_v51, %s4333_s11  ;;  %v6872_v25 = vpop.permute.xlu1 %2917 }
0x158b   :  { %8841 = vst [vmem:[#allocation94_spill] sm:$0xff] %v6872_v25 }
0x158e   :  { %2982 = vrot.lane.b32.xlu0 %v2959_v34, %s4333_s11  ;;  %2980 = vrot.lane.b32.xlu1 %v2958_v31, %s4333_s11  ;;  %v6874_v33 = vpop.permute.xlu1 %2921 }
0x158f   :  { %8842 = vst [vmem:[#allocation99_spill] sm:$0xff] %v6874_v33 }
0x1592   :  { %3006 = vperm.xlu1 %4322, %v4290_v53   ;;  %v6876_v51 = vpop.permute.xlu1 %2925 }
0x1593   :  { %8843 = vst [vmem:[#allocation95_spill] sm:$0xff] %v6876_v51 }
0x15f4   :  { %v6878_v37 = vpop.permute.xlu1 %2968 }
0x15f5   :  { %8844 = vst [vmem:[#allocation96_spill] sm:$0xff] %v6878_v37 }
0x15f8   :  { %v6880_v11 = vpop.permute.xlu1 %2972 }
0x15f9   :  { %8845 = vst [vmem:[#allocation100_spill] sm:$0xff] %v6880_v11 }
0x15fc   :  { %v6882_v34 = vpop.permute.xlu1 %2976 }
0x15fd   :  { %8846 = vst [vmem:[#allocation101_spill] sm:$0xff] %v6882_v34 }
0x1600   :  { %v6884_v31 = vpop.permute.xlu1 %2980 }
0x1601   :  { %8847 = vst [vmem:[#allocation97_spill] sm:$0xff] %v6884_v31 }
0x160d   :  { %v3007_v24 = vpop.permute.xlu1 %3006 }
0x160e   :  { %v3010_v14 = vmul.f32 %v3007_v24, %v6580_v43  ;;  %v3009_v53 = vmul.f32 %v3007_v24, %v6576_v8  ;;  %v3012_v33 = vmul.f32 %v3007_v24, %v6590_v62  ;;  %v3011_v51 = vmul.f32 %v3007_v24, %v6586_v39 }
0x160f   :  { %v3014_v34 = vmul.f32 %v3007_v24, %v6602_v3  ;;  %v3013_v31 = vmul.f32 %v3007_v24, %v6598_v61 }
0x1610   :  { %3027 = vrot.lane.b32.xlu1 %v3010_v14, %s4333_s11  ;;  %3025 = vrot.lane.b32.xlu0 %v3009_v53, %s4333_s11  ;;  %v3016_v14 = vmul.f32 %v3007_v24, %v6610_v30  ;;  %v3015_v53 = vmul.f32 %v3007_v24, %v6614_v27 }
0x1614   :  { %3031 = vrot.lane.b32.xlu1 %v3012_v33, %s4333_s11  ;;  %3029 = vrot.lane.b32.xlu0 %v3011_v51, %s4333_s11  ;;  %v4291_v33 = vld [vmem:[%s8057_s4 + $0x40] sm:$0xf]  ;;  %v6905_v51 = vpop.permute.xlu0 %2970 }
0x1615   :  { %8848 = vst [vmem:[#allocation98_spill] sm:$0xff] %v6905_v51 }
0x1618   :  { %3035 = vrot.lane.b32.xlu1 %v3014_v34, %s4333_s11  ;;  %3033 = vrot.lane.b32.xlu0 %v3013_v31, %s4333_s11  ;;  %v6907_v11 = vpop.permute.xlu0 %2974 }
0x1619   :  { %8849 = vst [vmem:[#allocation102_spill] sm:$0xff] %v6907_v11 }
0x161c   :  { %3039 = vrot.lane.b32.xlu1 %v3016_v14, %s4333_s11  ;;  %3037 = vrot.lane.b32.xlu0 %v3015_v53, %s4333_s11  ;;  %v6909_v34 = vpop.permute.xlu0 %2978 }
0x161d   :  { %8850 = vst [vmem:[#allocation107_spill] sm:$0xff] %v6909_v34 }
0x1620   :  { %3063 = vperm.xlu0 %4321, %v4291_v33   ;;  %v6911_v31 = vpop.permute.xlu0 %2982 }
0x1621   :  { %8851 = vst [vmem:[#allocation103_spill] sm:$0xff] %v6911_v31 }
0x1682   :  { %v6913_v37 = vpop.permute.xlu0 %3025 }
0x1683   :  { %8852 = vst [vmem:[#allocation104_spill] sm:$0xff] %v6913_v37 }
0x1686   :  { %v6915_v24 = vpop.permute.xlu0 %3029 }
0x1687   :  { %8853 = vst [vmem:[#allocation108_spill] sm:$0xff] %v6915_v24 }
0x168a   :  { %v6917_v14 = vpop.permute.xlu0 %3033 }
0x168b   :  { %8854 = vst [vmem:[#allocation109_spill] sm:$0xff] %v6917_v14 }
0x168e   :  { %v6919_v53 = vpop.permute.xlu0 %3037 }
0x168f   :  { %8855 = vst [vmem:[#allocation105_spill] sm:$0xff] %v6919_v53 }
0x169b   :  { %v3064_v25 = vpop.permute.xlu0 %3063 }
0x169c   :  { %v3067_v60 = vmul.f32 %v3064_v25, %v6365_v40  ;;  %v3066_v33 = vmul.f32 %v3064_v25, %v6361_v26  ;;  %v3069_v34 = vmul.f32 %v3064_v25, %v6381_v18  ;;  %v3068_v31 = vmul.f32 %v3064_v25, %v6377_v2 }
0x169d   :  { %v3071_v14 = vmul.f32 %v3064_v25, %v6399_v4  ;;  %v3070_v53 = vmul.f32 %v3064_v25, %v6395_v36 }
0x169e   :  { %3084 = vrot.lane.b32.xlu0 %v3067_v60, %s4334_s20  ;;  %3082 = vrot.lane.b32.xlu1 %v3066_v33, %s4334_s20  ;;  %v3073_v60 = vmul.f32 %v3064_v25, %v6413_v19  ;;  %v3072_v33 = vmul.f32 %v3064_v25, %v6417_v22 }
0x16a2   :  { %3088 = vrot.lane.b32.xlu0 %v3069_v34, %s4334_s20  ;;  %3086 = vrot.lane.b32.xlu1 %v3068_v31, %s4334_s20  ;;  %v4292_v34 = vld [vmem:[%s8057_s4 + $0x44] sm:$0xf]  ;;  %v6940_v31 = vpop.permute.xlu1 %3027 }
0x16a3   :  { %8856 = vst [vmem:[#allocation106_spill] sm:$0xff] %v6940_v31 }
0x16a6   :  { %3092 = vrot.lane.b32.xlu0 %v3071_v14, %s4334_s20  ;;  %3090 = vrot.lane.b32.xlu1 %v3070_v53, %s4334_s20  ;;  %v6942_v24 = vpop.permute.xlu1 %3031 }
0x16a7   :  { %8857 = vst [vmem:[#allocation110_spill] sm:$0xff] %v6942_v24 }
0x16aa   :  { %3096 = vrot.lane.b32.xlu0 %v3073_v60, %s4334_s20  ;;  %3094 = vrot.lane.b32.xlu1 %v3072_v33, %s4334_s20  ;;  %v6944_v14 = vpop.permute.xlu1 %3035 }
0x16ab   :  { %8858 = vst [vmem:[#allocation115_spill] sm:$0xff] %v6944_v14 }
0x16ae   :  { %3120 = vperm.xlu1 %4322, %v4292_v34   ;;  %v6946_v53 = vpop.permute.xlu1 %3039 }
0x16af   :  { %8859 = vst [vmem:[#allocation111_spill] sm:$0xff] %v6946_v53 }
0x1710   :  { %v6948_v37 = vpop.permute.xlu1 %3082 }
0x1711   :  { %8860 = vst [vmem:[#allocation112_spill] sm:$0xff] %v6948_v37 }
0x1714   :  { %v6950_v25 = vpop.permute.xlu1 %3086 }
0x1715   :  { %8861 = vst [vmem:[#allocation116_spill] sm:$0xff] %v6950_v25 }
0x1718   :  { %v6952_v60 = vpop.permute.xlu1 %3090 }
0x1719   :  { %8862 = vst [vmem:[#allocation117_spill] sm:$0xff] %v6952_v60 }
0x171c   :  { %v6954_v33 = vpop.permute.xlu1 %3094 }
0x171d   :  { %8863 = vst [vmem:[#allocation113_spill] sm:$0xff] %v6954_v33 }
0x1729   :  { %v3121_v11 = vpop.permute.xlu1 %3120 }
0x172a   :  { %v3124_v51 = vmul.f32 %v3121_v11, %v6446_v17  ;;  %v3123_v34 = vmul.f32 %v3121_v11, %v6442_v57  ;;  %v3126_v14 = vmul.f32 %v3121_v11, %v6456_v49  ;;  %v3125_v53 = vmul.f32 %v3121_v11, %v6452_v48 }
0x172b   :  { %v3128_v60 = vmul.f32 %v3121_v11, %v6468_v21  ;;  %v3127_v33 = vmul.f32 %v3121_v11, %v6464_v20 }
0x172c   :  { %3141 = vrot.lane.b32.xlu1 %v3124_v51, %s4334_s20  ;;  %3139 = vrot.lane.b32.xlu0 %v3123_v34, %s4334_s20  ;;  %v3130_v51 = vmul.f32 %v3121_v11, %v6476_v29  ;;  %v3129_v34 = vmul.f32 %v3121_v11, %v6480_v54 }
0x1730   :  { %3145 = vrot.lane.b32.xlu1 %v3126_v14, %s4334_s20  ;;  %3143 = vrot.lane.b32.xlu0 %v3125_v53, %s4334_s20  ;;  %v4293_v14 = vld [vmem:[%s8057_s4 + $0x48] sm:$0xf]  ;;  %v6975_v53 = vpop.permute.xlu0 %3084 }
0x1731   :  { %8864 = vst [vmem:[#allocation114_spill] sm:$0xff] %v6975_v53 }
0x1734   :  { %3149 = vrot.lane.b32.xlu1 %v3128_v60, %s4334_s20  ;;  %3147 = vrot.lane.b32.xlu0 %v3127_v33, %s4334_s20  ;;  %v6977_v25 = vpop.permute.xlu0 %3088 }
0x1735   :  { %8865 = vst [vmem:[#allocation118_spill] sm:$0xff] %v6977_v25 }
0x1738   :  { %3153 = vrot.lane.b32.xlu1 %v3130_v51, %s4334_s20  ;;  %3151 = vrot.lane.b32.xlu0 %v3129_v34, %s4334_s20  ;;  %v6979_v60 = vpop.permute.xlu0 %3092 }
0x1739   :  { %8866 = vst [vmem:[#allocation123_spill] sm:$0xff] %v6979_v60 }
0x173c   :  { %3177 = vperm.xlu0 %4321, %v4293_v14   ;;  %v6981_v33 = vpop.permute.xlu0 %3096 }
0x173d   :  { %8867 = vst [vmem:[#allocation119_spill] sm:$0xff] %v6981_v33 }
0x179e   :  { %v6983_v37 = vpop.permute.xlu0 %3139 }
0x179f   :  { %8868 = vst [vmem:[#allocation120_spill] sm:$0xff] %v6983_v37 }
0x17a2   :  { %v6985_v11 = vpop.permute.xlu0 %3143 }
0x17a3   :  { %8869 = vst [vmem:[#allocation124_spill] sm:$0xff] %v6985_v11 }
0x17a6   :  { %v6987_v51 = vpop.permute.xlu0 %3147 }
0x17a7   :  { %8870 = vst [vmem:[#allocation125_spill] sm:$0xff] %v6987_v51 }
0x17aa   :  { %v6989_v34 = vpop.permute.xlu0 %3151 }
0x17ab   :  { %8871 = vst [vmem:[#allocation121_spill] sm:$0xff] %v6989_v34 }
0x17b7   :  { %v3178_v24 = vpop.permute.xlu0 %3177 }
0x17b8   :  { %v3181_v31 = vmul.f32 %v3178_v24, %v6513_v7  ;;  %v3180_v14 = vmul.f32 %v3178_v24, %v6509_v45  ;;  %v3183_v60 = vmul.f32 %v3178_v24, %v6523_v23  ;;  %v3182_v33 = vmul.f32 %v3178_v24, %v6519_v9 }
0x17b9   :  { %v3185_v51 = vmul.f32 %v3178_v24, %v6535_v0  ;;  %v3184_v34 = vmul.f32 %v3178_v24, %v6531_v1 }
0x17ba   :  { %3198 = vrot.lane.b32.xlu0 %v3181_v31, %s4334_s20  ;;  %3196 = vrot.lane.b32.xlu1 %v3180_v14, %s4334_s20  ;;  %v3187_v31 = vmul.f32 %v3178_v24, %v6543_v5  ;;  %v3186_v14 = vmul.f32 %v3178_v24, %v6547_v41 }
0x17be   :  { %3202 = vrot.lane.b32.xlu0 %v3183_v60, %s4334_s20  ;;  %3200 = vrot.lane.b32.xlu1 %v3182_v33, %s4334_s20  ;;  %v4294_v60 = vld [vmem:[%s8057_s4 + $0x4c] sm:$0xf]  ;;  %v7010_v33 = vpop.permute.xlu1 %3141 }
0x17bf   :  { %8872 = vst [vmem:[#allocation122_spill] sm:$0xff] %v7010_v33 }
0x17c2   :  { %3206 = vrot.lane.b32.xlu0 %v3185_v51, %s4334_s20  ;;  %3204 = vrot.lane.b32.xlu1 %v3184_v34, %s4334_s20  ;;  %v7012_v11 = vpop.permute.xlu1 %3145 }
0x17c3   :  { %8873 = vst [vmem:[#allocation126_spill] sm:$0xff] %v7012_v11 }
0x17c6   :  { %3210 = vrot.lane.b32.xlu0 %v3187_v31, %s4334_s20  ;;  %3208 = vrot.lane.b32.xlu1 %v3186_v14, %s4334_s20  ;;  %v7014_v51 = vpop.permute.xlu1 %3149 }
0x17c7   :  { %8874 = vst [vmem:[#allocation131_spill] sm:$0xff] %v7014_v51 }
0x17ca   :  { %3234 = vperm.xlu1 %4322, %v4294_v60   ;;  %v7016_v34 = vpop.permute.xlu1 %3153 }
0x17cb   :  { %8875 = vst [vmem:[#allocation127_spill] sm:$0xff] %v7016_v34 }
0x182c   :  { %v7018_v37 = vpop.permute.xlu1 %3196 }
0x182d   :  { %8876 = vst [vmem:[#allocation128_spill] sm:$0xff] %v7018_v37 }
0x1830   :  { %v7020_v24 = vpop.permute.xlu1 %3200 }
0x1831   :  { %8877 = vst [vmem:[#allocation132_spill] sm:$0xff] %v7020_v24 }
0x1834   :  { %v7022_v31 = vpop.permute.xlu1 %3204 }
0x1835   :  { %8878 = vst [vmem:[#allocation133_spill] sm:$0xff] %v7022_v31 }
0x1838   :  { %v7024_v14 = vpop.permute.xlu1 %3208 }
0x1839   :  { %8879 = vst [vmem:[#allocation129_spill] sm:$0xff] %v7024_v14 }
0x1845   :  { %v3235_v25 = vpop.permute.xlu1 %3234 }
0x1846   :  { %v3238_v53 = vmul.f32 %v3235_v25, %v6580_v43  ;;  %v3237_v60 = vmul.f32 %v3235_v25, %v6576_v8  ;;  %v3240_v51 = vmul.f32 %v3235_v25, %v6590_v62  ;;  %v3239_v34 = vmul.f32 %v3235_v25, %v6586_v39 }
0x1847   :  { %v3242_v31 = vmul.f32 %v3235_v25, %v6602_v3  ;;  %v3241_v14 = vmul.f32 %v3235_v25, %v6598_v61 }
0x1848   :  { %3255 = vrot.lane.b32.xlu1 %v3238_v53, %s4334_s20  ;;  %3253 = vrot.lane.b32.xlu0 %v3237_v60, %s4334_s20  ;;  %v3244_v53 = vmul.f32 %v3235_v25, %v6610_v30  ;;  %v3243_v60 = vmul.f32 %v3235_v25, %v6614_v27 }
0x184c   :  { %3259 = vrot.lane.b32.xlu1 %v3240_v51, %s4334_s20  ;;  %3257 = vrot.lane.b32.xlu0 %v3239_v34, %s4334_s20  ;;  %v4295_v51 = vld [vmem:[%s8057_s4 + $0x50] sm:$0xf]  ;;  %v7045_v34 = vpop.permute.xlu0 %3198 }
0x184d   :  { %8880 = vst [vmem:[#allocation130_spill] sm:$0xff] %v7045_v34 }
0x1850   :  { %3263 = vrot.lane.b32.xlu1 %v3242_v31, %s4334_s20  ;;  %3261 = vrot.lane.b32.xlu0 %v3241_v14, %s4334_s20  ;;  %v7047_v24 = vpop.permute.xlu0 %3202 }
0x1851   :  { %8881 = vst [vmem:[#allocation134_spill] sm:$0xff] %v7047_v24 }
0x1854   :  { %3267 = vrot.lane.b32.xlu1 %v3244_v53, %s4334_s20  ;;  %3265 = vrot.lane.b32.xlu0 %v3243_v60, %s4334_s20  ;;  %v7049_v31 = vpop.permute.xlu0 %3206 }
0x1855   :  { %8882 = vst [vmem:[#allocation139_spill] sm:$0xff] %v7049_v31 }
0x1858   :  { %3291 = vperm.xlu0 %4321, %v4295_v51   ;;  %v7051_v14 = vpop.permute.xlu0 %3210 }
0x1859   :  { %8883 = vst [vmem:[#allocation135_spill] sm:$0xff] %v7051_v14 }
0x18ba   :  { %v7053_v37 = vpop.permute.xlu0 %3253 }
0x18bb   :  { %8884 = vst [vmem:[#allocation136_spill] sm:$0xff] %v7053_v37 }
0x18be   :  { %v7055_v25 = vpop.permute.xlu0 %3257 }
0x18bf   :  { %8885 = vst [vmem:[#allocation140_spill] sm:$0xff] %v7055_v25 }
0x18c2   :  { %v7057_v53 = vpop.permute.xlu0 %3261 }
0x18c3   :  { %8886 = vst [vmem:[#allocation141_spill] sm:$0xff] %v7057_v53 }
0x18c6   :  { %v7059_v60 = vpop.permute.xlu0 %3265 }
0x18c7   :  { %8887 = vst [vmem:[#allocation137_spill] sm:$0xff] %v7059_v60 }
0x18d3   :  { %v3292_v11 = vpop.permute.xlu0 %3291 }
0x18d4   :  { %v3295_v33 = vmul.f32 %v3292_v11, %v6365_v40  ;;  %v3294_v51 = vmul.f32 %v3292_v11, %v6361_v26  ;;  %v3297_v31 = vmul.f32 %v3292_v11, %v6381_v18  ;;  %v3296_v14 = vmul.f32 %v3292_v11, %v6377_v2 }
0x18d5   :  { %v3299_v53 = vmul.f32 %v3292_v11, %v6399_v4  ;;  %v3298_v60 = vmul.f32 %v3292_v11, %v6395_v36 }
0x18d6   :  { %3312 = vrot.lane.b32.xlu0 %v3295_v33, %s4335_s8  ;;  %3310 = vrot.lane.b32.xlu1 %v3294_v51, %s4335_s8  ;;  %v3301_v33 = vmul.f32 %v3292_v11, %v6413_v19  ;;  %v3300_v51 = vmul.f32 %v3292_v11, %v6417_v22 }
0x18da   :  { %3316 = vrot.lane.b32.xlu0 %v3297_v31, %s4335_s8  ;;  %3314 = vrot.lane.b32.xlu1 %v3296_v14, %s4335_s8  ;;  %v4296_v31 = vld [vmem:[%s8057_s4 + $0x54] sm:$0xf]  ;;  %v7080_v14 = vpop.permute.xlu1 %3255 }
0x18db   :  { %8888 = vst [vmem:[#allocation138_spill] sm:$0xff] %v7080_v14 }
0x18de   :  { %3320 = vrot.lane.b32.xlu0 %v3299_v53, %s4335_s8  ;;  %3318 = vrot.lane.b32.xlu1 %v3298_v60, %s4335_s8  ;;  %v7082_v25 = vpop.permute.xlu1 %3259 }
0x18df   :  { %8889 = vst [vmem:[#allocation142_spill] sm:$0xff] %v7082_v25 }
0x18e2   :  { %3324 = vrot.lane.b32.xlu0 %v3301_v33, %s4335_s8  ;;  %3322 = vrot.lane.b32.xlu1 %v3300_v51, %s4335_s8  ;;  %v7084_v53 = vpop.permute.xlu1 %3263 }
0x18e3   :  { %8890 = vst [vmem:[#allocation147_spill] sm:$0xff] %v7084_v53 }
0x18e6   :  { %3348 = vperm.xlu1 %4322, %v4296_v31   ;;  %v7086_v60 = vpop.permute.xlu1 %3267 }
0x18e7   :  { %8891 = vst [vmem:[#allocation143_spill] sm:$0xff] %v7086_v60 }
0x1948   :  { %v7088_v37 = vpop.permute.xlu1 %3310 }
0x1949   :  { %8892 = vst [vmem:[#allocation144_spill] sm:$0xff] %v7088_v37 }
0x194c   :  { %v7090_v11 = vpop.permute.xlu1 %3314 }
0x194d   :  { %8893 = vst [vmem:[#allocation148_spill] sm:$0xff] %v7090_v11 }
0x1950   :  { %v7092_v33 = vpop.permute.xlu1 %3318 }
0x1951   :  { %8894 = vst [vmem:[#allocation149_spill] sm:$0xff] %v7092_v33 }
0x1954   :  { %v7094_v51 = vpop.permute.xlu1 %3322 }
0x1955   :  { %8895 = vst [vmem:[#allocation145_spill] sm:$0xff] %v7094_v51 }
0x1961   :  { %v3349_v24 = vpop.permute.xlu1 %3348 }
0x1962   :  { %v3352_v34 = vmul.f32 %v3349_v24, %v6446_v17  ;;  %v3351_v31 = vmul.f32 %v3349_v24, %v6442_v57  ;;  %v3354_v53 = vmul.f32 %v3349_v24, %v6456_v49  ;;  %v3353_v60 = vmul.f32 %v3349_v24, %v6452_v48 }
0x1963   :  { %v3356_v33 = vmul.f32 %v3349_v24, %v6468_v21  ;;  %v3355_v51 = vmul.f32 %v3349_v24, %v6464_v20 }
0x1964   :  { %3369 = vrot.lane.b32.xlu1 %v3352_v34, %s4335_s8  ;;  %3367 = vrot.lane.b32.xlu0 %v3351_v31, %s4335_s8  ;;  %v3358_v34 = vmul.f32 %v3349_v24, %v6476_v29  ;;  %v3357_v31 = vmul.f32 %v3349_v24, %v6480_v54 }
0x1968   :  { %3373 = vrot.lane.b32.xlu1 %v3354_v53, %s4335_s8  ;;  %3371 = vrot.lane.b32.xlu0 %v3353_v60, %s4335_s8  ;;  %v4297_v53 = vld [vmem:[%s8057_s4 + $0x58] sm:$0xf]  ;;  %v7115_v60 = vpop.permute.xlu0 %3312 }
0x1969   :  { %8896 = vst [vmem:[#allocation146_spill] sm:$0xff] %v7115_v60 }
0x196c   :  { %3377 = vrot.lane.b32.xlu1 %v3356_v33, %s4335_s8  ;;  %3375 = vrot.lane.b32.xlu0 %v3355_v51, %s4335_s8  ;;  %v7117_v11 = vpop.permute.xlu0 %3316 }
0x196d   :  { %8897 = vst [vmem:[#allocation150_spill] sm:$0xff] %v7117_v11 }
0x1970   :  { %3381 = vrot.lane.b32.xlu1 %v3358_v34, %s4335_s8  ;;  %3379 = vrot.lane.b32.xlu0 %v3357_v31, %s4335_s8  ;;  %v7119_v33 = vpop.permute.xlu0 %3320 }
0x1971   :  { %8898 = vst [vmem:[#allocation155_spill] sm:$0xff] %v7119_v33 }
0x1974   :  { %3405 = vperm.xlu0 %4321, %v4297_v53   ;;  %v7121_v51 = vpop.permute.xlu0 %3324 }
0x1975   :  { %8899 = vst [vmem:[#allocation151_spill] sm:$0xff] %v7121_v51 }
0x19d6   :  { %v7123_v37 = vpop.permute.xlu0 %3367 }
0x19d7   :  { %8900 = vst [vmem:[#allocation152_spill] sm:$0xff] %v7123_v37 }
0x19da   :  { %v7125_v24 = vpop.permute.xlu0 %3371 }
0x19db   :  { %8901 = vst [vmem:[#allocation156_spill] sm:$0xff] %v7125_v24 }
0x19de   :  { %v7127_v34 = vpop.permute.xlu0 %3375 }
0x19df   :  { %8902 = vst [vmem:[#allocation157_spill] sm:$0xff] %v7127_v34 }
0x19e2   :  { %v7129_v31 = vpop.permute.xlu0 %3379 }
0x19e3   :  { %8903 = vst [vmem:[#allocation153_spill] sm:$0xff] %v7129_v31 }
0x19ef   :  { %v3406_v25 = vpop.permute.xlu0 %3405 }
0x19f0   :  { %v3409_v14 = vmul.f32 %v3406_v25, %v6513_v7  ;;  %v3408_v53 = vmul.f32 %v3406_v25, %v6509_v45  ;;  %v3411_v33 = vmul.f32 %v3406_v25, %v6523_v23  ;;  %v3410_v51 = vmul.f32 %v3406_v25, %v6519_v9 }
0x19f1   :  { %v3413_v34 = vmul.f32 %v3406_v25, %v6535_v0  ;;  %v3412_v31 = vmul.f32 %v3406_v25, %v6531_v1 }
0x19f2   :  { %3426 = vrot.lane.b32.xlu0 %v3409_v14, %s4335_s8  ;;  %3424 = vrot.lane.b32.xlu1 %v3408_v53, %s4335_s8  ;;  %v3415_v14 = vmul.f32 %v3406_v25, %v6543_v5  ;;  %v3414_v53 = vmul.f32 %v3406_v25, %v6547_v41 }
0x19f6   :  { %3430 = vrot.lane.b32.xlu0 %v3411_v33, %s4335_s8  ;;  %3428 = vrot.lane.b32.xlu1 %v3410_v51, %s4335_s8  ;;  %v4298_v33 = vld [vmem:[%s8057_s4 + $0x5c] sm:$0xf]  ;;  %v7150_v51 = vpop.permute.xlu1 %3369 }
0x19fa   :  { %3434 = vrot.lane.b32.xlu0 %v3413_v34, %s4335_s8  ;;  %3432 = vrot.lane.b32.xlu1 %v3412_v31, %s4335_s8  ;;  %v7152_v24 = vpop.permute.xlu1 %3373 }
0x19fb   :  { %8904 = vst [vmem:[#allocation154_spill] sm:$0xff] %v7152_v24 }
0x19fe   :  { %3438 = vrot.lane.b32.xlu0 %v3415_v14, %s4335_s8  ;;  %3436 = vrot.lane.b32.xlu1 %v3414_v53, %s4335_s8  ;;  %v7154_v34 = vpop.permute.xlu1 %3377 }
0x19ff   :  { %8905 = vst [vmem:[#allocation158_spill] sm:$0xff] %v7154_v34 }
0x1a02   :  { %3462 = vperm.xlu1 %4322, %v4298_v33   ;;  %v7156_v31 = vpop.permute.xlu1 %3381 }
0x1a03   :  { %8906 = vst [vmem:[#allocation163_spill] sm:$0xff] %v7156_v31 }
0x1a64   :  { %v7158_v11 = vpop.permute.xlu1 %3424 }
0x1a68   :  { %v7160_v25 = vpop.permute.xlu1 %3428 }
0x1a69   :  { %8907 = vst [vmem:[#allocation159_spill] sm:$0xff] %v7160_v25 }
0x1a6c   :  { %v7162_v14 = vpop.permute.xlu1 %3432 }
0x1a6d   :  { %8908 = vst [vmem:[#allocation160_spill] sm:$0xff] %v7162_v14 }
0x1a70   :  { %v7164_v53 = vpop.permute.xlu1 %3436 }
0x1a71   :  { %8909 = vst [vmem:[#allocation164_spill] sm:$0xff] %v7164_v53 }
0x1a7d   :  { %v3463_v37 = vpop.permute.xlu1 %3462 }
0x1a7e   :  { %v3466_v60 = vmul.f32 %v3463_v37, %v6580_v43  ;;  %v3465_v33 = vmul.f32 %v3463_v37, %v6576_v8  ;;  %v3468_v34 = vmul.f32 %v3463_v37, %v6590_v62  ;;  %v3467_v31 = vmul.f32 %v3463_v37, %v6586_v39 }
0x1a7f   :  { %v3470_v14 = vmul.f32 %v3463_v37, %v6602_v3  ;;  %v3469_v53 = vmul.f32 %v3463_v37, %v6598_v61 }
0x1a80   :  { %3483 = vrot.lane.b32.xlu1 %v3466_v60, %s4335_s8  ;;  %3481 = vrot.lane.b32.xlu0 %v3465_v33, %s4335_s8  ;;  %v3472_v60 = vmul.f32 %v3463_v37, %v6610_v30  ;;  %v3471_v33 = vmul.f32 %v3463_v37, %v6614_v27 }
0x1a84   :  { %3487 = vrot.lane.b32.xlu1 %v3468_v34, %s4335_s8  ;;  %3485 = vrot.lane.b32.xlu0 %v3467_v31, %s4335_s8  ;;  %v4299_v34 = vld [vmem:[%s8057_s4 + $0x60] sm:$0xf]  ;;  %v7185_v31 = vpop.permute.xlu0 %3426 }
0x1a88   :  { %3491 = vrot.lane.b32.xlu1 %v3470_v14, %s4335_s8  ;;  %3489 = vrot.lane.b32.xlu0 %v3469_v53, %s4335_s8  ;;  %v7187_v62 = vpop.permute.xlu0 %3430 }
0x1a89   :  { %8910 = vst [vmem:[#allocation165_spill] sm:$0xff] %v7187_v62 }
0x1a8c   :  { %3495 = vrot.lane.b32.xlu1 %v3472_v60, %s4335_s8  ;;  %3493 = vrot.lane.b32.xlu0 %v3471_v33, %s4335_s8  ;;  %v7189_v14 = vpop.permute.xlu0 %3434 }
0x1a8d   :  { %8911 = vst [vmem:[#allocation161_spill] sm:$0xff] %v7189_v14 }
0x1a90   :  { %3519 = vperm.xlu0 %4321, %v4299_v34   ;;  %v7191_v53 = vpop.permute.xlu0 %3438 }
0x1a91   :  { %8912 = vst [vmem:[#allocation162_spill] sm:$0xff] %v7191_v53 }
0x1af2   :  { %v7193_v30 = vpop.permute.xlu0 %3481 }
0x1af6   :  { %v7195_v37 = vpop.permute.xlu0 %3485 }
0x1af7   :  { %8913 = vst [vmem:[#allocation166_spill] sm:$0xff] %v7195_v37 }
0x1afa   :  { %v7197_v60 = vpop.permute.xlu0 %3489 }
0x1afb   :  { %8914 = vst [vmem:[#allocation171_spill] sm:$0xff] %v7197_v60 }
0x1afe   :  { %v7199_v33 = vpop.permute.xlu0 %3493 }
0x1aff   :  { %8915 = vst [vmem:[#allocation167_spill] sm:$0xff] %v7199_v33 }
0x1b0b   :  { %v3520_v25 = vpop.permute.xlu0 %3519 }
0x1b0c   :  { %v3523_v24 = vmul.f32 %v3520_v25, %v6365_v40  ;;  %v3522_v34 = vmul.f32 %v3520_v25, %v6361_v26  ;;  %v3525_v14 = vmul.f32 %v3520_v25, %v6381_v18  ;;  %v3524_v53 = vmul.f32 %v3520_v25, %v6377_v2 }
0x1b0d   :  { %v3527_v60 = vmul.f32 %v3520_v25, %v6399_v4  ;;  %v3526_v33 = vmul.f32 %v3520_v25, %v6395_v36 }
0x1b0e   :  { %3540 = vrot.lane.b32.xlu0 %v3523_v24, %s4336_s18  ;;  %3538 = vrot.lane.b32.xlu1 %v3522_v34, %s4336_s18  ;;  %v3529_v24 = vmul.f32 %v3520_v25, %v6413_v19  ;;  %v3528_v34 = vmul.f32 %v3520_v25, %v6417_v22 }
0x1b12   :  { %3544 = vrot.lane.b32.xlu0 %v3525_v14, %s4336_s18  ;;  %3542 = vrot.lane.b32.xlu1 %v3524_v53, %s4336_s18  ;;  %v4300_v14 = vld [vmem:[%s8057_s4 + $0x64] sm:$0xf]  ;;  %v7220_v53 = vpop.permute.xlu1 %3483 }
0x1b16   :  { %3548 = vrot.lane.b32.xlu0 %v3527_v60, %s4336_s18  ;;  %3546 = vrot.lane.b32.xlu1 %v3526_v33, %s4336_s18  ;;  %v7222_v18 = vpop.permute.xlu1 %3487 }
0x1b17   :  { %8916 = vst [vmem:[#allocation168_spill] sm:$0xff] %v7222_v18 }
0x1b1a   :  { %3552 = vrot.lane.b32.xlu0 %v3529_v24, %s4336_s18  ;;  %3550 = vrot.lane.b32.xlu1 %v3528_v34, %s4336_s18  ;;  %v7224_v60 = vpop.permute.xlu1 %3491 }
0x1b1b   :  { %8917 = vst [vmem:[#allocation172_spill] sm:$0xff] %v7224_v60 }
0x1b1e   :  { %3576 = vperm.xlu1 %4322, %v4300_v14   ;;  %v7226_v33 = vpop.permute.xlu1 %3495 }
0x1b1f   :  { %8918 = vst [vmem:[#allocation173_spill] sm:$0xff] %v7226_v33 }
0x1b80   :  { %v7228_v19 = vpop.permute.xlu1 %3538 }
0x1b81   :  { %8919 = vst [vmem:[#allocation169_spill] sm:$0xff] %v7228_v19 }
0x1b84   :  { %v7230_v25 = vpop.permute.xlu1 %3542 }
0x1b85   :  { %8920 = vst [vmem:[#allocation170_spill] sm:$0xff] %v7230_v25 }
0x1b88   :  { %v7232_v24 = vpop.permute.xlu1 %3546 }
0x1b89   :  { %8921 = vst [vmem:[#allocation174_spill] sm:$0xff] %v7232_v24 }
0x1b8c   :  { %v7234_v34 = vpop.permute.xlu1 %3550 }
0x1b8d   :  { %8922 = vst [vmem:[#allocation179_spill] sm:$0xff] %v7234_v34 }
0x1b99   :  { %v3577_v37 = vpop.permute.xlu1 %3576 }
0x1b9a   :  { %v3580_v62 = vmul.f32 %v3577_v37, %v6446_v17  ;;  %v3579_v14 = vmul.f32 %v3577_v37, %v6442_v57  ;;  %v3582_v60 = vmul.f32 %v3577_v37, %v6456_v49  ;;  %v3581_v33 = vmul.f32 %v3577_v37, %v6452_v48 }
0x1b9b   :  { %v3584_v24 = vmul.f32 %v3577_v37, %v6468_v21  ;;  %v3583_v34 = vmul.f32 %v3577_v37, %v6464_v20 }
0x1b9c   :  { %3597 = vrot.lane.b32.xlu1 %v3580_v62, %s4336_s18  ;;  %3595 = vrot.lane.b32.xlu0 %v3579_v14, %s4336_s18  ;;  %v3586_v62 = vmul.f32 %v3577_v37, %v6476_v29  ;;  %v3585_v14 = vmul.f32 %v3577_v37, %v6480_v54 }
0x1ba0   :  { %3601 = vrot.lane.b32.xlu1 %v3582_v60, %s4336_s18  ;;  %3599 = vrot.lane.b32.xlu0 %v3581_v33, %s4336_s18  ;;  %v4301_v60 = vld [vmem:[%s8057_s4 + $0x68] sm:$0xf]  ;;  %v7255_v33 = vpop.permute.xlu0 %3540 }
0x1ba1   :  { %8923 = vst [vmem:[#allocation175_spill] sm:$0xff] %v7255_v33 }
0x1ba4   :  { %3605 = vrot.lane.b32.xlu1 %v3584_v24, %s4336_s18  ;;  %3603 = vrot.lane.b32.xlu0 %v3583_v34, %s4336_s18  ;;  %v7257_v49 = vpop.permute.xlu0 %3544 }
0x1ba5   :  { %8924 = vst [vmem:[#allocation176_spill] sm:$0xff] %v7257_v49 }
0x1ba8   :  { %3609 = vrot.lane.b32.xlu1 %v3586_v62, %s4336_s18  ;;  %3607 = vrot.lane.b32.xlu0 %v3585_v14, %s4336_s18  ;;  %v7259_v24 = vpop.permute.xlu0 %3548 }
0x1ba9   :  { %8925 = vst [vmem:[#allocation180_spill] sm:$0xff] %v7259_v24 }
0x1bac   :  { %3633 = vperm.xlu0 %4321, %v4301_v60   ;;  %v7261_v34 = vpop.permute.xlu0 %3552 }
0x1bad   :  { %8926 = vst [vmem:[#allocation181_spill] sm:$0xff] %v7261_v34 }
0x1c0e   :  { %v7263_v29 = vpop.permute.xlu1 %3597  ;;  %v7265_v37 = vpop.permute.xlu0 %3595 }
0x1c0f   :  { %8927 = vst [vmem:[#allocation177_spill] sm:$0xff] %v7263_v29  ;;  %8928 = vst [vmem:[#allocation178_spill] sm:$0xff] %v7265_v37 }
0x1c12   :  { %v3602_v62 = vpop.permute.xlu1 %3601  ;;  %v3600_v25 = vpop.permute.xlu0 %3599 }
0x1c13   :  { %v7269_v14 = vsel %vm1450_vm6, %v7263_v29, %v3600_v25  ;;  %v7272_v60 = vsel %vm1450_vm6, %v3600_v25, %v3602_v62 }
0x1c16   :  { %v3606_v18 = vpop.permute.xlu1 %3605  ;;  %v3604_v19 = vpop.permute.xlu0 %3603 }
0x1c17   :  { %v7275_v49 = vsel %vm1450_vm6, %v3604_v19, %v3606_v18 }
0x1c18   :  { %8929 = vst [vmem:[#allocation182_spill] sm:$0xff] %v7275_v49 }
0x1c1a   :  { %v7277_v24 = vpop.permute.xlu0 %3607 }
0x1c1b   :  { %8930 = vst [vmem:[#allocation187_spill] sm:$0xff] %v7277_v24  ;;  %v7281_v34 = vsel %vm1450_vm6, %v3606_v18, %v7277_v24 }
0x1c1c   :  { %8931 = vst [vmem:[#allocation183_spill] sm:$0xff] %v7281_v34 }
0x1c27   :  { %v3634_v37 = vpop.permute.xlu0 %3633 }
0x1c28   :  { %v3637_v33 = vmul.f32 %v3634_v37, %v6513_v7  ;;  %v3636_v29 = vmul.f32 %v3634_v37, %v6509_v45  ;;  %v3639_v25 = vmul.f32 %v3634_v37, %v6523_v23  ;;  %v3638_v19 = vmul.f32 %v3634_v37, %v6519_v9 }
0x1c29   :  { %v3641_v18 = vmul.f32 %v3634_v37, %v6535_v0  ;;  %v3640_v62 = vmul.f32 %v3634_v37, %v6531_v1  ;;  %v2249_v23 = vmul.f32 %v6468_v21, %v6428_v6  ;;  %v2291_v21 = vmul.f32 %v6531_v1, %v6357_v50 }
0x1c2a   :  { %3654 = vrot.lane.b32.xlu0 %v3637_v33, %s4336_s18  ;;  %3652 = vrot.lane.b32.xlu1 %v3636_v29, %s4336_s18  ;;  %v3643_v33 = vmul.f32 %v3634_v37, %v6543_v5  ;;  %v3642_v29 = vmul.f32 %v3634_v37, %v6547_v41  ;;  %v2245_v37 = vmul.f32 %v6442_v57, %v6428_v6 }
0x1c2b   :  { %v2248_v5 = vmul.f32 %v6464_v20, %v6428_v6  ;;  %v2288_v57 = vmul.f32 %v6509_v45, %v6357_v50  ;;  %v2290_v20 = vmul.f32 %v6519_v9, %v6357_v50  ;;  %v2292_v45 = vmul.f32 %v6535_v0, %v6357_v50 }
0x1c2c   :  { %v2331_v9 = vmul.f32 %v6576_v8, %v6430_v59 }
0x1c2e   :  { %3658 = vrot.lane.b32.xlu0 %v3639_v25, %s4336_s18  ;;  %3656 = vrot.lane.b32.xlu1 %v3638_v19, %s4336_s18  ;;  %v4302_v25 = vld [vmem:[%s8057_s4 + $0x6c] sm:$0xf]  ;;  %v2246_v19 = vmul.f32 %v6446_v17, %v6428_v6  ;;  %v2206_v17 = vmul.f32 %v6399_v4, %v6349_v32 }
0x1c30   :  { %v2255_v24 = vadd.f32 %v2249_v23, %v2206_v17  ;;  %v2392_v17 = vsel %vm281_vm1, %v6434_v10, %v6493_v28  ;;  %v2457_v28 = vsel %vm281_vm1, %v6501_v46, %v6560_v52  ;;  %v2460_v23 = vsel %vm281_vm1, %v6505_v63, %v6564_v15  ;;  %v8933_v52 = vld [vmem:[#allocation40_spill] sm:$0xff]  ;;  %v8937_v15 = vld [vmem:[#allocation22_spill] sm:$0xff] }
0x1c32   :  { %3662 = vrot.lane.b32.xlu0 %v3641_v18, %s4336_s18  ;;  %3660 = vrot.lane.b32.xlu1 %v3640_v62, %s4336_s18  ;;  %v2203_v18 = vmul.f32 %v6365_v40, %v6349_v32  ;;  %v2202_v62 = vmul.f32 %v6361_v26, %v6349_v32 }
0x1c34   :  { %v2251_v26 = vadd.f32 %v2245_v37, %v2202_v62  ;;  %v2252_v4 = vadd.f32 %v2246_v19, %v2203_v18  ;;  %v2332_v19 = vmul.f32 %v6580_v43, %v6430_v59  ;;  %v2298_v18 = vadd.f32 %v2292_v45, %v2255_v24 }
0x1c35   :  { %v2333_v62 = vmul.f32 %v6586_v39, %v6430_v59 }
0x1c36   :  { %3666 = vrot.lane.b32.xlu0 %v3643_v33, %s4336_s18  ;;  %3664 = vrot.lane.b32.xlu1 %v3642_v29, %s4336_s18  ;;  %v2247_v33 = vmul.f32 %v6452_v48, %v6428_v6  ;;  %v2204_v29 = vmul.f32 %v6377_v2, %v6349_v32  ;;  %v2289_v48 = vmul.f32 %v6513_v7, %v6357_v50 }
0x1c37   :  { %v2250_v2 = vmul.f32 %v6480_v54, %v6428_v6  ;;  %v2293_v7 = vmul.f32 %v6547_v41, %v6357_v50  ;;  %v2294_v6 = vadd.f32 %v2288_v57, %v2251_v26  ;;  %v2335_v26 = vmul.f32 %v6602_v3, %v6430_v59 }
0x1c38   :  { %v2253_v40 = vadd.f32 %v2247_v33, %v2204_v29  ;;  %v2295_v54 = vadd.f32 %v2289_v48, %v2252_v4  ;;  %v2391_v4 = vsel %vm281_vm1, %v6491_v35, %v6434_v10  ;;  %v8934_v33 = vld [vmem:[#allocation23_spill] sm:$0xff] }
0x1c3a   :  { %3690 = vperm.xlu1 %4322, %v4302_v25   ;;  %v2205_v25 = vmul.f32 %v6395_v36, %v6349_v32  ;;  %v2207_v36 = vmul.f32 %v6417_v22, %v6349_v32  ;;  %v2296_v32 = vadd.f32 %v2290_v20, %v2253_v40  ;;  %v2337_v40 = vadd.f32 %v2331_v9, %v2294_v6  ;;  %v8936_v6 = vld [vmem:[#allocation21_spill] sm:$0xff] }
0x1c3b   :  { %v2393_v20 = vsel %vm281_vm1, %v6436_v55, %v6495_v12  ;;  %v2456_v55 = vsel %vm281_vm1, %v6558_v13, %v6501_v46 }
0x1c3c   :  { %v2254_v34 = vadd.f32 %v2248_v5, %v2205_v25  ;;  %v2256_v49 = vadd.f32 %v2250_v2, %v2207_v36  ;;  %v2334_v5 = vmul.f32 %v6598_v61, %v6430_v59  ;;  %v2390_v2 = vsel %vm281_vm1, %v6432_v42, %v6491_v35  ;;  %v8935_v25 = vld [vmem:[#allocation43_spill] sm:$0xff] }
0x1c3d   :  { %v2338_v36 = vadd.f32 %v2332_v19, %v2295_v54  ;;  %v2339_v57 = vadd.f32 %v2333_v62, %v2296_v32  ;;  %v2394_v42 = vsel %vm281_vm1, %v6495_v12, %v6438_v56  ;;  %v2395_v54 = vsel %vm281_vm1, %v6438_v56, %v6497_v44  ;;  %v8938_v19 = vld [vmem:[#allocation24_spill] sm:$0xff] }
0x1c3e   :  { %v2297_v22 = vadd.f32 %v2291_v21, %v2254_v34  ;;  %v2299_v50 = vadd.f32 %v2293_v7, %v2256_v49  ;;  %v2336_v49 = vmul.f32 %v6614_v27, %v6430_v59  ;;  %v2341_v21 = vadd.f32 %v2335_v26, %v2298_v18  ;;  %v8940_v26 = vld [vmem:[#allocation25_spill] sm:$0xff] }
0x1c3f   :  { %v2402_v35 = vadd.f32 %v2390_v2, %v2337_v40  ;;  %v2403_v45 = vadd.f32 %v2391_v4, %v2338_v36  ;;  %v2404_v59 = vadd.f32 %v2392_v17, %v2339_v57  ;;  %v2458_v56 = vsel %vm281_vm1, %v6503_v38, %v6562_v47  ;;  %v8941_v36 = vld [vmem:[#allocation44_spill] sm:$0xff]  ;;  %v8942_v57 = vld [vmem:[#allocation46_spill] sm:$0xff] }
0x1c40   :  { %v2340_v48 = vadd.f32 %v2334_v5, %v2297_v22  ;;  %v2342_v10 = vadd.f32 %v2336_v49, %v2299_v50  ;;  %v2455_v22 = vsel %vm281_vm1, %v6499_v16, %v6558_v13  ;;  %v2406_v44 = vadd.f32 %v2394_v42, %v2341_v21  ;;  %v8932_v13 = vld [vmem:[#allocation39_spill] sm:$0xff]  ;;  %v8944_v49 = vld [vmem:[#allocation45_spill] sm:$0xff] }
0x1c41   :  { %v2459_v16 = vsel %vm281_vm1, %v6562_v47, %v6505_v63  ;;  %v2467_v9 = vadd.f32 %v2455_v22, %v2402_v35  ;;  %v2520_v46 = vsel %vm281_vm1, %v8932_v13, %v6625_v58  ;;  %v2521_v38 = vsel %vm281_vm1, %v6625_v58, %v8933_v52  ;;  %v8939_v50 = vld [vmem:[#allocation27_spill] sm:$0xff]  ;;  %v8945_v35 = vld [vmem:[#allocation26_spill] sm:$0xff] }
0x1c42   :  { %v2405_v12 = vadd.f32 %v2393_v20, %v2340_v48  ;;  %v2407_v7 = vadd.f32 %v2395_v54, %v2342_v10  ;;  %v2468_v24 = vadd.f32 %v2456_v55, %v2403_v45  ;;  %v2469_v34 = vadd.f32 %v2457_v28, %v2404_v59  ;;  %v8943_v48 = vld [vmem:[#allocation51_spill] sm:$0xff]  ;;  %v8947_v55 = vld [vmem:[#allocation50_spill] sm:$0xff]  ;;  %v8948_v28 = vld [vmem:[#allocation48_spill] sm:$0xff] }
0x1c43   :  { %v2522_v47 = vsel %vm281_vm1, %v8933_v52, %v8934_v33  ;;  %v2471_v29 = vadd.f32 %v2459_v16, %v2406_v44  ;;  %v2523_v63 = vsel %vm281_vm1, %v8936_v6, %v8935_v25  ;;  %v2524_v32 = vsel %vm281_vm1, %v8935_v25, %v8937_v15  ;;  %v8946_v22 = vld [vmem:[#allocation47_spill] sm:$0xff] }
0x1c44   :  { %v2470_v37 = vadd.f32 %v2458_v56, %v2405_v12  ;;  %v2525_v58 = vsel %vm281_vm1, %v8937_v15, %v8938_v19  ;;  %v2472_v18 = vadd.f32 %v2460_v23, %v2407_v7  ;;  %v2532_v62 = vadd.f32 %v2520_v46, %v2467_v9  ;;  %v8949_v12 = vld [vmem:[#allocation52_spill] sm:$0xff]  ;;  %v8950_v23 = vld [vmem:[#allocation54_spill] sm:$0xff]  ;;  %v8951_v52 = vld [vmem:[#allocation59_spill] sm:$0xff] }
0x1c45   :  { %v2533_v5 = vadd.f32 %v2521_v38, %v2468_v24  ;;  %v2585_v40 = vsel %vm281_vm1, %v8940_v26, %v8939_v50  ;;  %v2534_v2 = vadd.f32 %v2522_v47, %v2469_v34  ;;  %v2586_v4 = vsel %vm281_vm1, %v8939_v50, %v8941_v36  ;;  %v8952_v38 = vld [vmem:[#allocation53_spill] sm:$0xff]  ;;  %v8954_v33 = vld [vmem:[#allocation55_spill] sm:$0xff]  ;;  %v8956_v15 = vld [vmem:[#allocation56_spill] sm:$0xff] }
0x1c46   :  { %v2587_v17 = vsel %vm281_vm1, %v8941_v36, %v8942_v57  ;;  %v2588_v20 = vsel %vm281_vm1, %v8944_v49, %v8943_v48  ;;  %v2535_v21 = vadd.f32 %v2523_v63, %v2470_v37  ;;  %v2536_v42 = vadd.f32 %v2524_v32, %v2471_v29  ;;  %v8953_v34 = vld [vmem:[#allocation49_spill] sm:$0xff]  ;;  %v8955_v63 = vld [vmem:[#allocation58_spill] sm:$0xff]  ;;  %v8959_v50 = vld [vmem:[#allocation67_spill] sm:$0xff] }
0x1c47   :  { %v2537_v54 = vadd.f32 %v2525_v58, %v2472_v18  ;;  %v2589_v45 = vsel %vm281_vm1, %v8943_v48, %v8945_v35  ;;  %v2597_v10 = vadd.f32 %v2585_v40, %v2532_v62  ;;  %v2590_v59 = vsel %vm281_vm1, %v8945_v35, %v8946_v22  ;;  %v8957_v58 = vld [vmem:[#allocation60_spill] sm:$0xff]  ;;  %v8958_v62 = vld [vmem:[#allocation62_spill] sm:$0xff]  ;;  %v8960_v26 = vld [vmem:[#allocation61_spill] sm:$0xff] }
0x1c48   :  { %v2642_v56 = vsel %vm534_vm2, %v8948_v28, %v8947_v55  ;;  %v2643_v44 = vsel %vm534_vm2, %v8947_v55, %v8949_v12  ;;  %v2598_v7 = vadd.f32 %v2586_v4, %v2533_v5  ;;  %v2599_v16 = vadd.f32 %v2587_v17, %v2534_v2  ;;  %v8961_v57 = vld [vmem:[#allocation57_spill] sm:$0xff]  ;;  %v8962_v49 = vld [vmem:[#allocation63_spill] sm:$0xff]  ;;  %v8965_v35 = vld [vmem:[#allocation68_spill] sm:$0xff] }
0x1c49   :  { %v2600_v9 = vadd.f32 %v2588_v20, %v2535_v21  ;;  %v2644_v13 = vsel %vm534_vm2, %v8949_v12, %v8950_v23  ;;  %v2601_v46 = vadd.f32 %v2589_v45, %v2536_v42  ;;  %v2645_v24 = vsel %vm534_vm2, %v8952_v38, %v8951_v52  ;;  %v8963_v21 = vld [vmem:[#allocation66_spill] sm:$0xff]  ;;  %v8964_v42 = vld [vmem:[#allocation64_spill] sm:$0xff]  ;;  %v8967_v12 = vld [vmem:[#allocation75_spill] sm:$0xff] }
0x1c4a   :  { %v2646_v37 = vsel %vm534_vm2, %v8951_v52, %v8953_v34  ;;  %v2647_v47 = vsel %vm534_vm2, %v8953_v34, %v8954_v33  ;;  %v2602_v29 = vadd.f32 %v2590_v59, %v2537_v54  ;;  %v2654_v25 = vadd.f32 %v2642_v56, %v2597_v10  ;;  %v8966_v55 = vld [vmem:[#allocation70_spill] sm:$0xff]  ;;  %v8970_v23 = vld [vmem:[#allocation71_spill] sm:$0xff]  ;;  %v8972_v34 = vld [vmem:[#allocation72_spill] sm:$0xff] }
0x1c4b   :  { %v2655_v6 = vadd.f32 %v2643_v44, %v2598_v7  ;;  %v2699_v32 = vsel %vm534_vm2, %v8956_v15, %v8955_v63  ;;  %v2656_v19 = vadd.f32 %v2644_v13, %v2599_v16  ;;  %v2700_v18 = vsel %vm534_vm2, %v8955_v63, %v8957_v58  ;;  %v8968_v44 = vld [vmem:[#allocation69_spill] sm:$0xff]  ;;  %v8975_v63 = vld [vmem:[#allocation83_spill] sm:$0xff] }
0x1c4c   :  { %v2701_v5 = vsel %vm534_vm2, %v8957_v58, %v8958_v62  ;;  %v2702_v40 = vsel %vm534_vm2, %v8960_v26, %v8959_v50  ;;  %v2657_v2 = vadd.f32 %v2645_v24, %v2600_v9  ;;  %v2658_v36 = vadd.f32 %v2646_v37, %v2601_v46  ;;  %v8969_v16 = vld [vmem:[#allocation65_spill] sm:$0xff]  ;;  %v8971_v24 = vld [vmem:[#allocation74_spill] sm:$0xff]  ;;  %v8978_v26 = vld [vmem:[#allocation79_spill] sm:$0xff] }
0x1c4d   :  { %v2659_v4 = vadd.f32 %v2647_v47, %v2602_v29  ;;  %v2703_v17 = vsel %vm534_vm2, %v8959_v50, %v8961_v57  ;;  %v2711_v48 = vadd.f32 %v2699_v32, %v2654_v25  ;;  %v2704_v20 = vsel %vm534_vm2, %v8961_v57, %v8962_v49  ;;  %v8973_v47 = vld [vmem:[#allocation76_spill] sm:$0xff]  ;;  %v8974_v25 = vld [vmem:[#allocation78_spill] sm:$0xff]  ;;  %v8976_v15 = vld [vmem:[#allocation77_spill] sm:$0xff] }
0x1c4e   :  { %v2756_v54 = vsel %vm534_vm2, %v8964_v42, %v8963_v21  ;;  %v2757_v45 = vsel %vm534_vm2, %v8963_v21, %v8965_v35  ;;  %v2712_v10 = vadd.f32 %v2700_v18, %v2655_v6  ;;  %v2713_v22 = vadd.f32 %v2701_v5, %v2656_v19  ;;  %v8977_v62 = vld [vmem:[#allocation73_spill] sm:$0xff]  ;;  %v8981_v57 = vld [vmem:[#allocation84_spill] sm:$0xff]  ;;  %v8982_v21 = vld [vmem:[#allocation86_spill] sm:$0xff] }
0x1c4f   :  { %v2714_v59 = vadd.f32 %v2702_v40, %v2657_v2  ;;  %v2758_v28 = vsel %vm534_vm2, %v8965_v35, %v8966_v55  ;;  %v2715_v56 = vadd.f32 %v2703_v17, %v2658_v36  ;;  %v2759_v7 = vsel %vm534_vm2, %v8968_v44, %v8967_v12  ;;  %v8979_v2 = vld [vmem:[#allocation82_spill] sm:$0xff]  ;;  %v8980_v36 = vld [vmem:[#allocation80_spill] sm:$0xff]  ;;  %v8983_v35 = vld [vmem:[#allocation91_spill] sm:$0xff] }
0x1c50   :  { %v2760_v9 = vsel %vm534_vm2, %v8967_v12, %v8969_v16  ;;  %v2761_v13 = vsel %vm534_vm2, %v8969_v16, %v8970_v23  ;;  %v2716_v46 = vadd.f32 %v2704_v20, %v2659_v4  ;;  %v2768_v52 = vadd.f32 %v2756_v54, %v2711_v48  ;;  %v8986_v55 = vld [vmem:[#allocation87_spill] sm:$0xff]  ;;  %v8988_v16 = vld [vmem:[#allocation88_spill] sm:$0xff] }
0x1c51   :  { %v2769_v38 = vadd.f32 %v2757_v45, %v2712_v10  ;;  %v2813_v37 = vsel %vm534_vm2, %v8972_v34, %v8971_v24  ;;  %v2770_v33 = vadd.f32 %v2758_v28, %v2713_v22  ;;  %v2814_v29 = vsel %vm534_vm2, %v8971_v24, %v8973_v47  ;;  %v8984_v45 = vld [vmem:[#allocation85_spill] sm:$0xff]  ;;  %v8991_v24 = vld [vmem:[#allocation99_spill] sm:$0xff] }
0x1c52   :  { %v2815_v6 = vsel %vm534_vm2, %v8973_v47, %v8974_v25  ;;  %v2816_v32 = vsel %vm534_vm2, %v8976_v15, %v8975_v63  ;;  %v2771_v19 = vadd.f32 %v2759_v7, %v2714_v59  ;;  %v2772_v58 = vadd.f32 %v2760_v9, %v2715_v56  ;;  %v8985_v22 = vld [vmem:[#allocation81_spill] sm:$0xff]  ;;  %v8987_v7 = vld [vmem:[#allocation90_spill] sm:$0xff]  ;;  %v8994_v15 = vld [vmem:[#allocation95_spill] sm:$0xff] }
0x1c53   :  { %v2773_v18 = vadd.f32 %v2761_v13, %v2716_v46  ;;  %v2817_v5 = vsel %vm534_vm2, %v8975_v63, %v8977_v62  ;;  %v2825_v50 = vadd.f32 %v2813_v37, %v2768_v52  ;;  %v2818_v40 = vsel %vm534_vm2, %v8977_v62, %v8978_v26  ;;  %v8989_v13 = vld [vmem:[#allocation92_spill] sm:$0xff]  ;;  %v8990_v52 = vld [vmem:[#allocation94_spill] sm:$0xff]  ;;  %v8992_v34 = vld [vmem:[#allocation93_spill] sm:$0xff] }
0x1c54   :  { %v2870_v4 = vsel %vm763_vm3, %v8980_v36, %v8979_v2  ;;  %v2871_v17 = vsel %vm763_vm3, %v8979_v2, %v8981_v57  ;;  %v2826_v48 = vadd.f32 %v2814_v29, %v2769_v38  ;;  %v2827_v49 = vadd.f32 %v2815_v6, %v2770_v33  ;;  %v8993_v25 = vld [vmem:[#allocation89_spill] sm:$0xff]  ;;  %v8997_v62 = vld [vmem:[#allocation100_spill] sm:$0xff]  ;;  %v8998_v2 = vld [vmem:[#allocation102_spill] sm:$0xff] }
0x1c55   :  { %v2828_v20 = vadd.f32 %v2816_v32, %v2771_v19  ;;  %v2872_v42 = vsel %vm763_vm3, %v8981_v57, %v8982_v21  ;;  %v2829_v54 = vadd.f32 %v2817_v5, %v2772_v58  ;;  %v2873_v10 = vsel %vm763_vm3, %v8984_v45, %v8983_v35  ;;  %v8995_v19 = vld [vmem:[#allocation98_spill] sm:$0xff]  ;;  %v8996_v58 = vld [vmem:[#allocation96_spill] sm:$0xff]  ;;  %v8999_v57 = vld [vmem:[#allocation107_spill] sm:$0xff] }
0x1c56   :  { %v2874_v59 = vsel %vm763_vm3, %v8983_v35, %v8985_v22  ;;  %v2875_v28 = vsel %vm763_vm3, %v8985_v22, %v8986_v55  ;;  %v2830_v56 = vadd.f32 %v2818_v40, %v2773_v18  ;;  %v2882_v12 = vadd.f32 %v2870_v4, %v2825_v50  ;;  %v9002_v21 = vld [vmem:[#allocation103_spill] sm:$0xff]  ;;  %v9004_v22 = vld [vmem:[#allocation104_spill] sm:$0xff] }
0x1c57   :  { %v2883_v44 = vadd.f32 %v2871_v17, %v2826_v48  ;;  %v2927_v9 = vsel %vm763_vm3, %v8988_v16, %v8987_v7  ;;  %v2884_v23 = vadd.f32 %v2872_v42, %v2827_v49  ;;  %v2928_v46 = vsel %vm763_vm3, %v8987_v7, %v8989_v13  ;;  %v9000_v17 = vld [vmem:[#allocation101_spill] sm:$0xff]  ;;  %v9007_v7 = vld [vmem:[#allocation115_spill] sm:$0xff] }
0x1c58   :  { %v2929_v38 = vsel %vm763_vm3, %v8989_v13, %v8990_v52  ;;  %v2930_v37 = vsel %vm763_vm3, %v8992_v34, %v8991_v24  ;;  %v2885_v33 = vadd.f32 %v2873_v10, %v2828_v20  ;;  %v2886_v47 = vadd.f32 %v2874_v59, %v2829_v54  ;;  %v9001_v49 = vld [vmem:[#allocation97_spill] sm:$0xff]  ;;  %v9003_v10 = vld [vmem:[#allocation106_spill] sm:$0xff]  ;;  %v9010_v34 = vld [vmem:[#allocation111_spill] sm:$0xff] }
0x1c59   :  { %v2887_v29 = vadd.f32 %v2875_v28, %v2830_v56  ;;  %v2931_v6 = vsel %vm763_vm3, %v8991_v24, %v8993_v25  ;;  %v2939_v63 = vadd.f32 %v2927_v9, %v2882_v12  ;;  %v2932_v32 = vsel %vm763_vm3, %v8993_v25, %v8994_v15  ;;  %v9005_v28 = vld [vmem:[#allocation108_spill] sm:$0xff]  ;;  %v9006_v12 = vld [vmem:[#allocation110_spill] sm:$0xff]  ;;  %v9008_v16 = vld [vmem:[#allocation109_spill] sm:$0xff] }
0x1c5a   :  { %v2984_v18 = vsel %vm763_vm3, %v8996_v58, %v8995_v19  ;;  %v2985_v5 = vsel %vm763_vm3, %v8995_v19, %v8997_v62  ;;  %v2940_v50 = vadd.f32 %v2928_v46, %v2883_v44  ;;  %v2941_v26 = vadd.f32 %v2929_v38, %v2884_v23  ;;  %v9009_v52 = vld [vmem:[#allocation105_spill] sm:$0xff]  ;;  %v9013_v25 = vld [vmem:[#allocation116_spill] sm:$0xff]  ;;  %v9014_v19 = vld [vmem:[#allocation118_spill] sm:$0xff] }
0x1c5b   :  { %v2942_v40 = vadd.f32 %v2930_v37, %v2885_v33  ;;  %v2986_v36 = vsel %vm763_vm3, %v8997_v62, %v8998_v2  ;;  %v2943_v4 = vadd.f32 %v2931_v6, %v2886_v47  ;;  %v2987_v48 = vsel %vm763_vm3, %v9000_v17, %v8999_v57  ;;  %v9011_v33 = vld [vmem:[#allocation114_spill] sm:$0xff]  ;;  %v9012_v47 = vld [vmem:[#allocation112_spill] sm:$0xff]  ;;  %v9015_v62 = vld [vmem:[#allocation123_spill] sm:$0xff] }
0x1c5c   :  { %v2988_v20 = vsel %vm763_vm3, %v8999_v57, %v9001_v49  ;;  %v2989_v42 = vsel %vm763_vm3, %v9001_v49, %v9002_v21  ;;  %v2944_v54 = vadd.f32 %v2932_v32, %v2887_v29  ;;  %v2996_v35 = vadd.f32 %v2984_v18, %v2939_v63  ;;  %v9018_v2 = vld [vmem:[#allocation119_spill] sm:$0xff]  ;;  %v9020_v49 = vld [vmem:[#allocation120_spill] sm:$0xff] }
0x1c5d   :  { %v2997_v45 = vadd.f32 %v2985_v5, %v2940_v50  ;;  %v3041_v59 = vsel %vm763_vm3, %v9004_v22, %v9003_v10  ;;  %v2998_v55 = vadd.f32 %v2986_v36, %v2941_v26  ;;  %v3042_v56 = vsel %vm763_vm3, %v9003_v10, %v9005_v28  ;;  %v9016_v5 = vld [vmem:[#allocation117_spill] sm:$0xff]  ;;  %v9023_v10 = vld [vmem:[#allocation131_spill] sm:$0xff] }
0x1c5e   :  { %v3043_v44 = vsel %vm763_vm3, %v9005_v28, %v9006_v12  ;;  %v3044_v9 = vsel %vm763_vm3, %v9008_v16, %v9007_v7  ;;  %v2999_v23 = vadd.f32 %v2987_v48, %v2942_v40  ;;  %v3000_v13 = vadd.f32 %v2988_v20, %v2943_v4  ;;  %v9017_v26 = vld [vmem:[#allocation113_spill] sm:$0xff]  ;;  %v9019_v48 = vld [vmem:[#allocation122_spill] sm:$0xff]  ;;  %v9026_v16 = vld [vmem:[#allocation127_spill] sm:$0xff] }
0x1c5f   :  { %v3001_v46 = vadd.f32 %v2989_v42, %v2944_v54  ;;  %v3045_v38 = vsel %vm763_vm3, %v9007_v7, %v9009_v52  ;;  %v3053_v24 = vadd.f32 %v3041_v59, %v2996_v35  ;;  %v3046_v37 = vsel %vm763_vm3, %v9009_v52, %v9010_v34  ;;  %v9021_v42 = vld [vmem:[#allocation124_spill] sm:$0xff]  ;;  %v9022_v35 = vld [vmem:[#allocation126_spill] sm:$0xff]  ;;  %v9024_v22 = vld [vmem:[#allocation125_spill] sm:$0xff] }
0x1c60   :  { %v3098_v29 = vsel %vm992_vm4, %v9012_v47, %v9011_v33  ;;  %v3099_v6 = vsel %vm992_vm4, %v9011_v33, %v9013_v25  ;;  %v3054_v63 = vadd.f32 %v3042_v56, %v2997_v45  ;;  %v3055_v15 = vadd.f32 %v3043_v44, %v2998_v55  ;;  %v9025_v12 = vld [vmem:[#allocation121_spill] sm:$0xff]  ;;  %v9029_v52 = vld [vmem:[#allocation132_spill] sm:$0xff]  ;;  %v9030_v33 = vld [vmem:[#allocation134_spill] sm:$0xff] }
0x1c61   :  { %v3056_v32 = vadd.f32 %v3044_v9, %v2999_v23  ;;  %v3100_v58 = vsel %vm992_vm4, %v9013_v25, %v9014_v19  ;;  %v3057_v18 = vadd.f32 %v3045_v38, %v3000_v13  ;;  %v3101_v50 = vsel %vm992_vm4, %v9016_v5, %v9015_v62  ;;  %v9027_v23 = vld [vmem:[#allocation130_spill] sm:$0xff]  ;;  %v9028_v13 = vld [vmem:[#allocation128_spill] sm:$0xff]  ;;  %v9031_v25 = vld [vmem:[#allocation139_spill] sm:$0xff] }
0x1c62   :  { %v3102_v40 = vsel %vm992_vm4, %v9015_v62, %v9017_v26  ;;  %v3103_v36 = vsel %vm992_vm4, %v9017_v26, %v9018_v2  ;;  %v3058_v4 = vadd.f32 %v3046_v37, %v3001_v46  ;;  %v3110_v57 = vadd.f32 %v3098_v29, %v3053_v24  ;;  %v9034_v19 = vld [vmem:[#allocation138_spill] sm:$0xff]  ;;  %v9036_v26 = vld [vmem:[#allocation135_spill] sm:$0xff] }
0x1c63   :  { %v3111_v17 = vadd.f32 %v3099_v6, %v3054_v63  ;;  %v3155_v20 = vsel %vm992_vm4, %v9020_v49, %v9019_v48  ;;  %v3112_v21 = vadd.f32 %v3100_v58, %v3055_v15  ;;  %v3156_v54 = vsel %vm992_vm4, %v9019_v48, %v9021_v42  ;;  %v9032_v6 = vld [vmem:[#allocation133_spill] sm:$0xff]  ;;  %v9035_v58 = vld [vmem:[#allocation136_spill] sm:$0xff]  ;;  %v9039_v48 = vld [vmem:[#allocation146_spill] sm:$0xff] }
0x1c64   :  { %v3157_v45 = vsel %vm992_vm4, %v9021_v42, %v9022_v35  ;;  %v3158_v59 = vsel %vm992_vm4, %v9024_v22, %v9023_v10  ;;  %v3113_v55 = vadd.f32 %v3101_v50, %v3056_v32  ;;  %v3114_v28 = vadd.f32 %v3102_v40, %v3057_v18  ;;  %v9033_v15 = vld [vmem:[#allocation129_spill] sm:$0xff]  ;;  %v9040_v49 = vld [vmem:[#allocation144_spill] sm:$0xff]  ;;  %v9041_v35 = vld [vmem:[#allocation147_spill] sm:$0xff] }
0x1c65   :  { %v3115_v56 = vadd.f32 %v3103_v36, %v3058_v4  ;;  %v3159_v44 = vsel %vm992_vm4, %v9023_v10, %v9025_v12  ;;  %v3167_v7 = vadd.f32 %v3155_v20, %v3110_v57  ;;  %v3160_v9 = vsel %vm992_vm4, %v9025_v12, %v9026_v16  ;;  %v9037_v36 = vld [vmem:[#allocation140_spill] sm:$0xff]  ;;  %v9038_v57 = vld [vmem:[#allocation142_spill] sm:$0xff] }
0x1c66   :  { %v3212_v46 = vsel %vm992_vm4, %v9028_v13, %v9027_v23  ;;  %v3213_v38 = vsel %vm992_vm4, %v9027_v23, %v9029_v52  ;;  %v3168_v24 = vadd.f32 %v3156_v54, %v3111_v17  ;;  %v3169_v34 = vadd.f32 %v3157_v45, %v3112_v21  ;;  %v9042_v45 = vld [vmem:[#allocation141_spill] sm:$0xff]  ;;  %v9045_v12 = vld [vmem:[#allocation152_spill] sm:$0xff] }
0x1c67   :  { %v3170_v37 = vadd.f32 %v3158_v59, %v3113_v55  ;;  %v3214_v47 = vsel %vm992_vm4, %v9029_v52, %v9030_v33  ;;  %v3171_v29 = vadd.f32 %v3159_v44, %v3114_v28  ;;  %v3215_v63 = vsel %vm992_vm4, %v9032_v6, %v9031_v25  ;;  %v9043_v59 = vld [vmem:[#allocation137_spill] sm:$0xff]  ;;  %v9044_v28 = vld [vmem:[#allocation143_spill] sm:$0xff]  ;;  %v9046_v23 = vld [vmem:[#allocation148_spill] sm:$0xff] }
0x1c68   :  { %v3216_v32 = vsel %vm992_vm4, %v9031_v25, %v9033_v15  ;;  %v3269_v18 = vsel %vm992_vm4, %v9035_v58, %v9034_v19  ;;  %v3172_v62 = vadd.f32 %v3160_v9, %v3115_v56  ;;  %v3224_v5 = vadd.f32 %v3212_v46, %v3167_v7  ;;  %v9047_v52 = vld [vmem:[#allocation150_spill] sm:$0xff]  ;;  %v9050_v25 = vld [vmem:[#allocation145_spill] sm:$0xff] }
0x1c69   :  { %v3225_v50 = vadd.f32 %v3213_v38, %v3168_v24  ;;  %v3217_v40 = vsel %vm992_vm4, %v9033_v15, %v9036_v26  ;;  %v3226_v2 = vadd.f32 %v3214_v47, %v3169_v34  ;;  %v3270_v4 = vsel %vm992_vm4, %v9034_v19, %v9037_v36  ;;  %v9048_v24 = vld [vmem:[#allocation155_spill] sm:$0xff]  ;;  %v9049_v34 = vld [vmem:[#allocation149_spill] sm:$0xff]  ;;  %v9052_v58 = vld [vmem:[#allocation154_spill] sm:$0xff] }
0x1c6a   :  { %v3271_v17 = vsel %vm992_vm4, %v9037_v36, %v9038_v57  ;;  %v3326_v20 = vsel %vm1221_vm5, %v9040_v49, %v9039_v48  ;;  %v3227_v21 = vadd.f32 %v3215_v63, %v3170_v37  ;;  %v3228_v42 = vadd.f32 %v3216_v32, %v3171_v29  ;;  %v9051_v32 = vld [vmem:[#allocation156_spill] sm:$0xff]  ;;  %v9054_v36 = vld [vmem:[#allocation159_spill] sm:$0xff] }
0x1c6b   :  { %v3281_v54 = vadd.f32 %v3269_v18, %v3224_v5  ;;  %v3272_v10 = vsel %vm992_vm4, %v9042_v45, %v9041_v35  ;;  %v3229_v22 = vadd.f32 %v3217_v40, %v3172_v62  ;;  %v3273_v55 = vsel %vm992_vm4, %v9041_v35, %v9043_v59  ;;  %v3610_v45 = vpop.permute.xlu1 %3609 }
0x1c6c   :  { %v3274_v56 = vsel %vm992_vm4, %v9043_v59, %v9044_v28  ;;  %v3383_v44 = vsel %vm1221_vm5, %v9045_v12, %v7150_v51  ;;  %v3282_v7 = vadd.f32 %v3270_v4, %v3225_v50  ;;  %v3283_v16 = vadd.f32 %v3271_v17, %v3226_v2  ;;  %v9053_v50 = vld [vmem:[#allocation151_spill] sm:$0xff]  ;;  %v9055_v4 = vld [vmem:[#allocation165_spill] sm:$0xff]  ;;  %v9061_v59 = vld [vmem:[#allocation168_spill] sm:$0xff] }
0x1c6d   :  { %v3338_v9 = vadd.f32 %v3326_v20, %v3281_v54  ;;  %v3327_v13 = vsel %vm1221_vm5, %v9039_v48, %v9046_v23  ;;  %v3284_v46 = vadd.f32 %v3272_v10, %v3227_v21  ;;  %v3328_v38 = vsel %vm1221_vm5, %v9046_v23, %v9047_v52  ;;  %v9056_v17 = vld [vmem:[#allocation175_spill] sm:$0xff]  ;;  %v9057_v48 = vld [vmem:[#allocation169_spill] sm:$0xff]  ;;  %v9058_v21 = vld [vmem:[#allocation158_spill] sm:$0xff] }
0x1c6e   :  { %v3329_v37 = vsel %vm1221_vm5, %v9049_v34, %v9048_v24  ;;  %v3440_v33 = vsel %vm1221_vm5, %v7158_v11, %v7185_v31  ;;  %v3285_v47 = vadd.f32 %v3273_v55, %v3228_v42  ;;  %v3286_v29 = vadd.f32 %v3274_v56, %v3229_v22  ;;  %v9059_v42 = vld [vmem:[#allocation157_spill] sm:$0xff]  ;;  %v9060_v22 = vld [vmem:[#allocation166_spill] sm:$0xff]  ;;  %v9066_v52 = vld [vmem:[#allocation160_spill] sm:$0xff] }
0x1c6f   :  { %v3330_v6 = vsel %vm1221_vm5, %v9048_v24, %v9050_v25  ;;  %v3395_v63 = vadd.f32 %v3383_v44, %v3338_v9  ;;  %v3339_v15 = vadd.f32 %v3327_v13, %v3282_v7  ;;  %v3384_v19 = vsel %vm1221_vm5, %v7150_v51, %v9051_v32  ;;  %v9062_v28 = vld [vmem:[#allocation177_spill] sm:$0xff]  ;;  %v9063_v56 = vld [vmem:[#allocation178_spill] sm:$0xff]  ;;  %v9068_v34 = vld [vmem:[#allocation176_spill] sm:$0xff] }
0x1c70   :  { %v3385_v18 = vsel %vm1221_vm5, %v9051_v32, %v9052_v58  ;;  %v3497_v11 = vsel %vm1221_vm5, %v7193_v30, %v7220_v53  ;;  %v3340_v62 = vadd.f32 %v3328_v38, %v3283_v16  ;;  %v3341_v5 = vadd.f32 %v3329_v37, %v3284_v46  ;;  %v9064_v44 = vld [vmem:[#allocation153_spill] sm:$0xff]  ;;  %v9067_v38 = vld [vmem:[#allocation170_spill] sm:$0xff] }
0x1c71   :  { %v3331_v26 = vsel %vm1221_vm5, %v9050_v25, %v9053_v50  ;;  %v3452_v40 = vadd.f32 %v3440_v33, %v3395_v63  ;;  %v3342_v2 = vadd.f32 %v3330_v6, %v3285_v47  ;;  %v3441_v51 = vsel %vm1221_vm5, %v7185_v31, %v9054_v36  ;;  %v9065_v46 = vld [vmem:[#allocation161_spill] sm:$0xff]  ;;  %v9069_v33 = vld [vmem:[#allocation163_spill] sm:$0xff] }
0x1c72   :  { %v3442_v57 = vsel %vm1221_vm5, %v9054_v36, %v9055_v4  ;;  %v3554_v30 = vsel %vm1450_vm6, %v9057_v48, %v9056_v17  ;;  %v3396_v49 = vadd.f32 %v3384_v19, %v3339_v15  ;;  %v3397_v20 = vadd.f32 %v3385_v18, %v3340_v62  ;;  %v9070_v19 = vld [vmem:[#allocation164_spill] sm:$0xff]  ;;  %v9073_v4 = vld [vmem:[#allocation162_spill] sm:$0xff] }
0x1c73   :  { %v3386_v54 = vsel %vm1221_vm5, %v9059_v42, %v9058_v21  ;;  %v3509_v35 = vadd.f32 %v3497_v11, %v3452_v40  ;;  %v3343_v10 = vadd.f32 %v3331_v26, %v3286_v29  ;;  %v3498_v31 = vsel %vm1221_vm5, %v7220_v53, %v9060_v22  ;;  %v9071_v18 = vld [vmem:[#allocation172_spill] sm:$0xff]  ;;  %v9072_v11 = vld [vmem:[#allocation171_spill] sm:$0xff] }
0x1c74   :  { %v3499_v55 = vsel %vm1221_vm5, %v9060_v22, %v9061_v59  ;;  %v3611_v12 = vsel %vm1450_vm6, %v9063_v56, %v9062_v28  ;;  %v3387_v7 = vsel %vm1221_vm5, %v9058_v21, %v9064_v44  ;;  %v3453_v16 = vadd.f32 %v3441_v51, %v3396_v49  ;;  %v9077_v22 = vld [vmem:[#allocation173_spill] sm:$0xff] }
0x1c75   :  { %v3454_v9 = vadd.f32 %v3442_v57, %v3397_v20  ;;  %v3566_v23 = vadd.f32 %v3554_v30, %v3509_v35  ;;  %v3398_v13 = vadd.f32 %v3386_v54, %v3341_v5  ;;  %v3443_v53 = vsel %vm1221_vm5, %v9066_v52, %v9065_v46  ;;  %v9076_v35 = vld [vmem:[#allocation167_spill] sm:$0xff] }
0x1c76   :  { %v3555_v24 = vsel %vm1450_vm6, %v9056_v17, %v9067_v38  ;;  %v3556_v37 = vsel %vm1450_vm6, %v9067_v38, %v9068_v34  ;;  %v3388_v47 = vsel %vm1221_vm5, %v9064_v44, %v9069_v33  ;;  %v3510_v29 = vadd.f32 %v3498_v31, %v3453_v16  ;;  %v9075_v17 = vld [vmem:[#allocation174_spill] sm:$0xff]  ;;  %v9078_v44 = vld [vmem:[#allocation179_spill] sm:$0xff] }
0x1c77   :  { %v3511_v25 = vadd.f32 %v3499_v55, %v3454_v9  ;;  %v3623_v6 = vadd.f32 %v3611_v12, %v3566_v23  ;;  %v3399_v32 = vadd.f32 %v3387_v7, %v3342_v2  ;;  %v3444_v58 = vsel %vm1221_vm5, %v9065_v46, %v9070_v19  ;;  %v9074_v2 = vld [vmem:[#allocation180_spill] sm:$0xff]  ;;  %v9079_v7 = vld [vmem:[#allocation181_spill] sm:$0xff]  ;;  %v9081_v38 = vld [vmem:[#allocation187_spill] sm:$0xff] }
0x1c78   :  { %v3500_v62 = vsel %vm1221_vm5, %v9072_v11, %v9071_v18  ;;  %v3455_v50 = vadd.f32 %v3443_v53, %v3398_v13  ;;  %v3567_v26 = vadd.f32 %v3555_v24, %v3510_v29  ;;  %v3400_v51 = vadd.f32 %v3388_v47, %v3343_v10  ;;  %v9080_v13 = vld [vmem:[#allocation182_spill] sm:$0xff]  ;;  %v9082_v29 = vld [vmem:[#allocation183_spill] sm:$0xff] }
0x1c79   :  { %v3568_v40 = vadd.f32 %v3556_v37, %v3511_v25  ;;  %v3445_v57 = vsel %vm1221_vm5, %v9070_v19, %v9073_v4  ;;  %v3557_v48 = vsel %vm1450_vm6, %v9075_v17, %v9074_v2  ;;  %v3456_v30 = vadd.f32 %v3444_v58, %v3399_v32  ;;  %v9084_v4 = vld [vmem:[#allocation42_spill] sm:$0xff]  ;;  %v4303_v17 = vld [vmem:[%s8057_s4 + $0x70] sm:$0xf] }
0x1c7a   :  { %v3512_v49 = vadd.f32 %v3500_v62, %v3455_v50  ;;  %v3624_v20 = vadd.f32 %v7269_v14, %v3567_v26  ;;  %v3501_v10 = vsel %vm1221_vm5, %v9071_v18, %v9076_v35  ;;  %v3502_v31 = vsel %vm1221_vm5, %v9076_v35, %v9077_v22 }
0x1c7b   :  { %v3625_v21 = vadd.f32 %v7272_v60, %v3568_v40  ;;  %v3457_v28 = vadd.f32 %v3445_v57, %v3400_v51  ;;  %v3558_v60 = vsel %vm1450_vm6, %v9074_v2, %v9078_v44  ;;  %v3559_v16 = vsel %vm1450_vm6, %v9078_v44, %v9079_v7 }
0x1c7c   :  { %v3569_v56 = vadd.f32 %v3557_v48, %v3512_v49  ;;  %v3513_v9 = vadd.f32 %v3501_v10, %v3456_v30  ;;  %v3616_v24 = vsel %vm1450_vm6, %v9081_v38, %v3610_v45 }
0x1c7d   :  { %v3514_v23 = vadd.f32 %v3502_v31, %v3457_v28 }
0x1c7e   :  { %v3626_v46 = vadd.f32 %v9080_v13, %v3569_v56  ;;  %v3570_v37 = vadd.f32 %v3558_v60, %v3513_v9 }
0x1c7f   :  { %v3571_v33 = vadd.f32 %v3559_v16, %v3514_v23  ;;  %v9085_v23 = vld [vmem:[#allocation10_spill] sm:$0xff] }
0x1c80   :  { %v3627_v25 = vadd.f32 %v9082_v29, %v3570_v37  ;;  %v9090_v37 = vld [vmem:[#allocation12_spill] sm:$0xff]  ;;  %v9091_v29 = vld [vmem:[#allocation13_spill] sm:$0xff] }
0x1c9c   :  { %v3655_v63 = vpop.permute.xlu0 %3654  ;;  %v3653_v15 = vpop.permute.xlu1 %3652 }
0x1c9d   :  { %v3668_v5 = vsel %vm1450_vm6, %v3653_v15, %v3655_v63 }
0x1c9e   :  { %v3680_v36 = vadd.f32 %v3668_v5, %v3623_v6  ;;  %v3628_v6 = vadd.f32 %v3616_v24, %v3571_v33  ;;  %v9083_v5 = vld [vmem:[#allocation41_spill] sm:$0xff]  ;;  %v9089_v24 = vld [vmem:[#allocation31_spill] sm:$0xff] }
0x1ca0   :  { %v3659_v42 = vpop.permute.xlu0 %3658  ;;  %v3657_v54 = vpop.permute.xlu1 %3656 }
0x1ca1   :  { %v3669_v59 = vsel %vm1450_vm6, %v3655_v63, %v3657_v54  ;;  %v3670_v55 = vsel %vm1450_vm6, %v3657_v54, %v3659_v42 }
0x1ca2   :  { %v3681_v12 = vadd.f32 %v3669_v59, %v3624_v20  ;;  %v3682_v14 = vadd.f32 %v3670_v55, %v3625_v21 }
0x1ca4   :  { %v3663_v52 = vpop.permute.xlu0 %3662  ;;  %v3661_v53 = vpop.permute.xlu1 %3660 }
0x1ca5   :  { %v3671_v34 = vsel %vm1450_vm6, %v3661_v53, %v3663_v52  ;;  %v9088_v53 = vld [vmem:[#allocation11_spill] sm:$0xff] }
0x1ca6   :  { %v3683_v47 = vadd.f32 %v3671_v34, %v3626_v46  ;;  %v9086_v46 = vld [vmem:[#allocation29_spill] sm:$0xff] }
0x1ca8   :  { %v3667_v63 = vpop.permute.xlu0 %3666  ;;  %v3665_v15 = vpop.permute.xlu1 %3664 }
0x1ca9   :  { %v3672_v32 = vsel %vm1450_vm6, %v3663_v52, %v3665_v15  ;;  %v3673_v19 = vsel %vm1450_vm6, %v3665_v15, %v3667_v63  ;;  %v4305_v63 = vld [vmem:[%s8057_s4 + $0x78] sm:$0xf]  ;;  %v4308_v15 = vld [vmem:[%s8057_s4 + $0x84] sm:$0xf] }
0x1caa   :  { %v3684_v58 = vadd.f32 %v3672_v32, %v3627_v25  ;;  %v3685_v18 = vadd.f32 %v3673_v19, %v3628_v6  ;;  %v4306_v6 = vld [vmem:[%s8057_s4 + $0x7c] sm:$0xf]  ;;  %v4307_v32 = vld [vmem:[%s8057_s4 + $0x80] sm:$0xf]  ;;  %v4310_v19 = vld [vmem:[%s8057_s4 + $0x8c] sm:$0xf] }
0x1cb5   :  { %v3691_v11 = vpop.permute.xlu1 %3690 }
0x1cb6   :  { %v3694_v62 = vmul.f32 %v3691_v11, %v6580_v43  ;;  %v3693_v45 = vmul.f32 %v3691_v11, %v6576_v8  ;;  %v3696_v50 = vmul.f32 %v3691_v11, %v9083_v5  ;;  %v3695_v26 = vmul.f32 %v3691_v11, %v6586_v39 }
0x1cb7   :  { %v3698_v40 = vmul.f32 %v3691_v11, %v6602_v3  ;;  %v3697_v51 = vmul.f32 %v3691_v11, %v6598_v61  ;;  %v3700_v57 = vmul.f32 %v3691_v11, %v9084_v4  ;;  %v3699_v2 = vmul.f32 %v3691_v11, %v6614_v27 }
0x1cb8   :  { %3711 = vrot.lane.b32.xlu1 %v3694_v62, %s4336_s18  ;;  %3709 = vrot.lane.b32.xlu0 %v3693_v45, %s4336_s18 }
0x1cbc   :  { %3715 = vrot.lane.b32.xlu1 %v3696_v50, %s4336_s18  ;;  %3713 = vrot.lane.b32.xlu0 %v3695_v26, %s4336_s18 }
0x1cc0   :  { %3719 = vrot.lane.b32.xlu1 %v3698_v40, %s4336_s18  ;;  %3717 = vrot.lane.b32.xlu0 %v3697_v51, %s4336_s18 }
0x1cc4   :  { %3723 = vrot.lane.b32.xlu1 %v3700_v57, %s4336_s18  ;;  %3721 = vrot.lane.b32.xlu0 %v3699_v2, %s4336_s18 }
0x1cc8   :  { %3747 = vperm.xlu0 %4321, %v4303_v17  }
0x1d2a   :  { %v3712_v48 = vpop.permute.xlu1 %3711  ;;  %v3710_v30 = vpop.permute.xlu0 %3709 }
0x1d2b   :  { %v3725_v49 = vsel %vm1450_vm6, %v3710_v30, %v3712_v48 }
0x1d2c   :  { %v3737_v20 = vadd.f32 %v3725_v49, %v3680_v36 }
0x1d2e   :  { %v3716_v21 = vpop.permute.xlu1 %3715  ;;  %v3714_v42 = vpop.permute.xlu0 %3713 }
0x1d2f   :  { %v3726_v54 = vsel %vm1450_vm6, %v3712_v48, %v3714_v42  ;;  %v3727_v35 = vsel %vm1450_vm6, %v3714_v42, %v3716_v21 }
0x1d30   :  { %v3738_v10 = vadd.f32 %v3726_v54, %v3681_v12  ;;  %v3739_v22 = vadd.f32 %v3727_v35, %v3682_v14  ;;  %v9087_v14 = vld [vmem:[#allocation30_spill] sm:$0xff] }
0x1d32   :  { %v3720_v31 = vpop.permute.xlu1 %3719  ;;  %v3718_v59 = vpop.permute.xlu0 %3717 }
0x1d33   :  { %v3728_v55 = vsel %vm1450_vm6, %v3718_v59, %v3720_v31  ;;  %v9093_v59 = vld [vmem:[#allocation14_spill] sm:$0xff] }
0x1d34   :  { %v3740_v28 = vadd.f32 %v3728_v55, %v3683_v47  ;;  %v4304_v47 = vld [vmem:[%s8057_s4 + $0x74] sm:$0xf] }
0x1d36   :  { %v3724_v56 = vpop.permute.xlu1 %3723  ;;  %v3722_v44 = vpop.permute.xlu0 %3721 }
0x1d37   :  { %v3729_v60 = vsel %vm1450_vm6, %v3720_v31, %v3722_v44  ;;  %v3730_v7 = vsel %vm1450_vm6, %v3722_v44, %v3724_v56  ;;  %v9094_v56 = vld [vmem:[#allocation33_spill] sm:$0xff] }
0x1d38   :  { %v3741_v36 = vadd.f32 %v3729_v60, %v3684_v58  ;;  %v7768_v16 = vadd.f32 %v3730_v7, %v3685_v18  ;;  %v4309_v58 = vld [vmem:[%s8057_s4 + $0x88] sm:$0xf]  ;;  %v9092_v18 = vld [vmem:[#allocation32_spill] sm:$0xff] }
0x1d39   :  { %v9096_v7 = vld [vmem:[#allocation15_spill] sm:$0xff] }
0x1d43   :  { %v3748_v9 = vpop.permute.xlu0 %3747 }
0x1d44   :  { %v3751_v13 = vmul.f32 %v3748_v9, %v9085_v23  ;;  %v3750_v12 = vmul.f32 %v3748_v9, %v9086_v46  ;;  %v3753_v52 = vmul.f32 %v3748_v9, %v9087_v14  ;;  %v3752_v38 = vmul.f32 %v3748_v9, %v9088_v53 }
0x1d45   :  { %v3755_v34 = vmul.f32 %v3748_v9, %v9089_v24  ;;  %v3754_v33 = vmul.f32 %v3748_v9, %v9090_v37  ;;  %v3756_v25 = vmul.f32 %v3748_v9, %v9091_v29  ;;  %v3757_v11 = vmul.f32 %v3748_v9, %v9092_v18  ;;  %v9097_v9 = vld [vmem:[#allocation35_spill] sm:$0xff] }
0x1d46   :  { %3768 = vrot.lane.b32.xlu0 %v3751_v13, %s4337_s7  ;;  %3766 = vrot.lane.b32.xlu1 %v3750_v12, %s4337_s7  ;;  %v9098_v12 = vld [vmem:[#allocation16_spill] sm:$0xff] }
0x1d4a   :  { %3772 = vrot.lane.b32.xlu0 %v3753_v52, %s4337_s7  ;;  %3770 = vrot.lane.b32.xlu1 %v3752_v38, %s4337_s7 }
0x1d4e   :  { %3776 = vrot.lane.b32.xlu0 %v3755_v34, %s4337_s7  ;;  %3774 = vrot.lane.b32.xlu1 %v3754_v33, %s4337_s7  ;;  %v9099_v34 = vld [vmem:[#allocation36_spill] sm:$0xff] }
0x1d52   :  { %3804 = vperm.xlu0 %4321, %v4304_v47   ;;  %3778 = vrot.lane.b32.xlu1 %v3756_v25, %s4337_s7  ;;  %v9100_v47 = vld [vmem:[#allocation17_spill] sm:$0xff] }
0x1d56   :  { %3918 = vperm.xlu0 %4321, %v4306_v6   ;;  %3861 = vperm.xlu1 %4322, %v4305_v63  }
0x1d5a   :  { %4032 = vperm.xlu0 %4321, %v4308_v15   ;;  %3975 = vperm.xlu1 %4322, %v4307_v32   ;;  %v9101_v15 = vld [vmem:[#allocation18_spill] sm:$0xff] }
0x1d5e   :  { %4146 = vperm.xlu0 %4321, %v4310_v19   ;;  %4089 = vperm.xlu1 %4322, %v4309_v58   ;;  %v9102_v19 = vld [vmem:[#allocation37_spill] sm:$0xff] }
0x1d62   :  { %3780 = vrot.lane.b32.xlu1 %v3757_v11, %s4337_s7 }
0x1db8   :  { %v3769_v62 = vpop.permute.xlu0 %3768  ;;  %v3767_v45 = vpop.permute.xlu1 %3766 }
0x1db9   :  { %v3782_v50 = vsel %vm1679_vm7, %v3767_v45, %v3769_v62 }
0x1dba   :  { %v7808_v26 = vadd.f32 %v3782_v50, %v3737_v20  ;;  %v9104_v50 = vld [vmem:[#allocation19_spill] sm:$0xff] }
0x1dbc   :  { %v3773_v40 = vpop.permute.xlu0 %3772  ;;  %v3771_v51 = vpop.permute.xlu1 %3770 }
0x1dbd   :  { %v3783_v57 = vsel %vm1679_vm7, %v3769_v62, %v3771_v51  ;;  %v3784_v2 = vsel %vm1679_vm7, %v3771_v51, %v3773_v40  ;;  %v9103_v62 = vld [vmem:[#allocation38_spill] sm:$0xff] }
0x1dbe   :  { %v7812_v17 = vadd.f32 %v3783_v57, %v3738_v10  ;;  %v7814_v48 = vadd.f32 %v3784_v2, %v3739_v22  ;;  %v9095_v22 = vld [vmem:[#allocation34_spill] sm:$0xff] }
0x1dc0   :  { %v3777_v30 = vpop.permute.xlu0 %3776  ;;  %v3775_v49 = vpop.permute.xlu1 %3774 }
0x1dc1   :  { %v3785_v21 = vsel %vm1679_vm7, %v3775_v49, %v3777_v30 }
0x1dc2   :  { %v7817_v42 = vadd.f32 %v3785_v21, %v3740_v28 }
0x1dc4   :  { %v3779_v54 = vpop.permute.xlu1 %3778 }
0x1dc5   :  { %v3786_v20 = vsel %vm1679_vm7, %v3777_v30, %v3779_v54 }
0x1dc6   :  { %v7820_v35 = vadd.f32 %v3786_v20, %v3741_v36 }
0x1dcd   :  { %v3805_v31 = vpop.permute.xlu0 %3804 }
0x1dce   :  { %v3807_v55 = vmul.f32 %v3805_v31, %v9093_v59  ;;  %v3808_v44 = vmul.f32 %v3805_v31, %v9094_v56  ;;  %v3809_v60 = vmul.f32 %v3805_v31, %v9095_v22  ;;  %v3810_v28 = vmul.f32 %v3805_v31, %v9096_v7 }
0x1dcf   :  { %v3811_v13 = vmul.f32 %v3805_v31, %v9097_v9  ;;  %v3812_v52 = vmul.f32 %v3805_v31, %v9098_v12  ;;  %v3813_v33 = vmul.f32 %v3805_v31, %v9099_v34  ;;  %v3814_v25 = vmul.f32 %v3805_v31, %v9100_v47 }
0x1dd0   :  { %3823 = vrot.lane.b32.xlu0 %v3807_v55, %s4337_s7  ;;  %3825 = vrot.lane.b32.xlu1 %v3808_v44, %s4337_s7 }
0x1dd1   :  { %v3862_v10 = vpop.permute.xlu1 %3861  ;;  %v3919_v49 = vpop.permute.xlu0 %3918 }
0x1dd2   :  { %v3865_v32 = vmul.f32 %v3862_v10, %v9101_v15  ;;  %v3864_v58 = vmul.f32 %v3862_v10, %v9102_v19  ;;  %v3867_v45 = vmul.f32 %v3862_v10, %v9103_v62  ;;  %v3866_v40 = vmul.f32 %v3862_v10, %v9104_v50 }
0x1dd3   :  { %v3869_v51 = vmul.f32 %v3862_v10, %v6535_v0  ;;  %v3868_v57 = vmul.f32 %v3862_v10, %v6531_v1  ;;  %v3870_v30 = vmul.f32 %v3862_v10, %v6547_v41  ;;  %v3922_v21 = vmul.f32 %v3919_v49, %v6580_v43 }
0x1dd4   :  { %3827 = vrot.lane.b32.xlu0 %v3809_v60, %s4337_s7  ;;  %3829 = vrot.lane.b32.xlu1 %v3810_v28, %s4337_s7  ;;  %v3924_v20 = vmul.f32 %v3919_v49, %v9083_v5  ;;  %v3923_v31 = vmul.f32 %v3919_v49, %v6586_v39  ;;  %v3926_v55 = vmul.f32 %v3919_v49, %v6602_v3 }
0x1dd5   :  { %v3976_v36 = vpop.permute.xlu1 %3975  ;;  %v3925_v44 = vmul.f32 %v3919_v49, %v6598_v61  ;;  %v3927_v60 = vmul.f32 %v3919_v49, %v6614_v27 }
0x1dd6   :  { %v3979_v28 = vmul.f32 %v3976_v36, %v9085_v23  ;;  %v3985_v23 = vmul.f32 %v3976_v36, %v9092_v18 }
0x1dd8   :  { %3831 = vrot.lane.b32.xlu0 %v3811_v13, %s4337_s7  ;;  %3833 = vrot.lane.b32.xlu1 %v3812_v52, %s4337_s7  ;;  %v3978_v13 = vmul.f32 %v3976_v36, %v9086_v46  ;;  %v3982_v52 = vmul.f32 %v3976_v36, %v9090_v37  ;;  %v3981_v46 = vmul.f32 %v3976_v36, %v9087_v14 }
0x1dd9   :  { %v7834_v38 = vpop.permute.xlu1 %4089 }
0x1ddc   :  { %3835 = vrot.lane.b32.xlu0 %v3813_v33, %s4337_s7  ;;  %3837 = vrot.lane.b32.xlu1 %v3814_v25, %s4337_s7  ;;  %v3980_v33 = vmul.f32 %v3976_v36, %v9088_v53  ;;  %v3984_v25 = vmul.f32 %v3976_v36, %v9091_v29 }
0x1ddd   :  { %v3781_v6 = vpop.permute.xlu1 %3780 }
0x1dde   :  { %v3787_v63 = vsel %vm1679_vm7, %v3779_v54, %v3781_v6  ;;  %v3921_v54 = vmul.f32 %v3919_v49, %v6576_v8  ;;  %v3983_v6 = vmul.f32 %v3976_v36, %v9089_v24  ;;  %v4092_v36 = vmul.f32 %v7834_v38, %v9102_v19 }
0x1ddf   :  { %v7844_v11 = vadd.f32 %v3787_v63, %v7768_v16  ;;  %v9105_v16 = vld [vmem:[#allocation20_spill] sm:$0xff]  ;;  %v4033_v63 = vpop.permute.xlu0 %4032 }
0x1de0   :  { %3882 = vrot.lane.b32.xlu1 %v3865_v32, %s4337_s7  ;;  %3880 = vrot.lane.b32.xlu0 %v3864_v58, %s4337_s7  ;;  %v3871_v2 = vmul.f32 %v3862_v10, %v9105_v16  ;;  %v3928_v10 = vmul.f32 %v3919_v49, %v9084_v4  ;;  %v4036_v53 = vmul.f32 %v4033_v63, %v9094_v56 }
0x1de1   :  { %v4035_v37 = vmul.f32 %v4033_v63, %v9093_v59  ;;  %v4039_v24 = vmul.f32 %v4033_v63, %v9097_v9  ;;  %v4037_v29 = vmul.f32 %v4033_v63, %v9095_v22  ;;  %v4041_v14 = vmul.f32 %v4033_v63, %v9099_v34 }
0x1de2   :  { %v4040_v18 = vmul.f32 %v4033_v63, %v9098_v12  ;;  %v4042_v59 = vmul.f32 %v4033_v63, %v9100_v47  ;;  %v4038_v56 = vmul.f32 %v4033_v63, %v9096_v7  ;;  %v4093_v22 = vmul.f32 %v7834_v38, %v9101_v15 }
0x1de3   :  { %v4096_v9 = vmul.f32 %v7834_v38, %v6531_v1  ;;  %v4094_v7 = vmul.f32 %v7834_v38, %v9104_v50  ;;  %v4098_v12 = vmul.f32 %v7834_v38, %v6547_v41  ;;  %v4097_v34 = vmul.f32 %v7834_v38, %v6535_v0  ;;  %v4199_v1 = vld [vmem:[%s8058_s5] sm:$0xf]  ;;  %v4147_v15 = vpop.permute.xlu0 %4146 }
0x1de4   :  { %3886 = vrot.lane.b32.xlu1 %v3867_v45, %s4337_s7  ;;  %3884 = vrot.lane.b32.xlu0 %v3866_v40, %s4337_s7  ;;  %v4095_v47 = vmul.f32 %v7834_v38, %v9103_v62  ;;  %v4149_v41 = vmul.f32 %v4147_v15, %v6576_v8  ;;  %v4099_v0 = vmul.f32 %v7834_v38, %v9105_v16 }
0x1de5   :  { %v4151_v32 = vmul.f32 %v4147_v15, %v6586_v39  ;;  %v4150_v19 = vmul.f32 %v4147_v15, %v6580_v43  ;;  %v4154_v58 = vmul.f32 %v4147_v15, %v6602_v3  ;;  %v4153_v62 = vmul.f32 %v4147_v15, %v6598_v61 }
0x1de6   :  { %v4152_v8 = vmul.f32 %v4147_v15, %v9083_v5  ;;  %v4155_v38 = vmul.f32 %v4147_v15, %v6614_v27  ;;  %v4156_v39 = vmul.f32 %v4147_v15, %v9084_v4 }
0x1de8   :  { %3890 = vrot.lane.b32.xlu1 %v3869_v51, %s4337_s7  ;;  %3888 = vrot.lane.b32.xlu0 %v3868_v57, %s4337_s7 }
0x1dec   :  { %3894 = vrot.lane.b32.xlu1 %v3871_v2, %s4337_s7  ;;  %3892 = vrot.lane.b32.xlu0 %v3870_v30, %s4337_s7 }
0x1df0   :  { %3939 = vrot.lane.b32.xlu1 %v3922_v21, %s4337_s7  ;;  %3937 = vrot.lane.b32.xlu0 %v3921_v54, %s4337_s7 }
0x1df4   :  { %3943 = vrot.lane.b32.xlu1 %v3924_v20, %s4337_s7  ;;  %3941 = vrot.lane.b32.xlu0 %v3923_v31, %s4337_s7 }
0x1df8   :  { %3947 = vrot.lane.b32.xlu1 %v3926_v55, %s4337_s7  ;;  %3945 = vrot.lane.b32.xlu0 %v3925_v44, %s4337_s7 }
0x1dfc   :  { %3951 = vrot.lane.b32.xlu1 %v3928_v10, %s4337_s7  ;;  %3949 = vrot.lane.b32.xlu0 %v3927_v60, %s4337_s7 }
0x1e00   :  { %3996 = vrot.lane.b32.xlu1 %v3979_v28, %s4338_s19  ;;  %3994 = vrot.lane.b32.xlu0 %v3978_v13, %s4338_s19 }
0x1e04   :  { %4002 = vrot.lane.b32.xlu1 %v3982_v52, %s4338_s19  ;;  %3998 = vrot.lane.b32.xlu0 %v3980_v33, %s4338_s19 }
0x1e08   :  { %4006 = vrot.lane.b32.xlu1 %v3984_v25, %s4338_s19  ;;  %4004 = vrot.lane.b32.xlu0 %v3983_v6, %s4338_s19 }
0x1e0c   :  { %4008 = vrot.lane.b32.xlu1 %v3985_v23, %s4338_s19  ;;  %4000 = vrot.lane.b32.xlu0 %v3981_v46, %s4338_s19 }
0x1e10   :  { %4053 = vrot.lane.b32.xlu1 %v4036_v53, %s4338_s19  ;;  %4051 = vrot.lane.b32.xlu0 %v4035_v37, %s4338_s19 }
0x1e14   :  { %4059 = vrot.lane.b32.xlu1 %v4039_v24, %s4338_s19  ;;  %4055 = vrot.lane.b32.xlu0 %v4037_v29, %s4338_s19 }
0x1e18   :  { %4063 = vrot.lane.b32.xlu1 %v4041_v14, %s4338_s19  ;;  %4061 = vrot.lane.b32.xlu0 %v4040_v18, %s4338_s19 }
0x1e1c   :  { %4065 = vrot.lane.b32.xlu1 %v4042_v59, %s4338_s19  ;;  %4057 = vrot.lane.b32.xlu0 %v4038_v56, %s4338_s19 }
0x1e20   :  { %4110 = vrot.lane.b32.xlu1 %v4093_v22, %s4338_s19  ;;  %4108 = vrot.lane.b32.xlu0 %v4092_v36, %s4338_s19 }
0x1e24   :  { %4116 = vrot.lane.b32.xlu1 %v4096_v9, %s4338_s19  ;;  %4112 = vrot.lane.b32.xlu0 %v4094_v7, %s4338_s19 }
0x1e28   :  { %4120 = vrot.lane.b32.xlu1 %v4098_v12, %s4338_s19  ;;  %4118 = vrot.lane.b32.xlu0 %v4097_v34, %s4338_s19 }
0x1e2c   :  { %4114 = vrot.lane.b32.xlu1 %v4095_v47, %s4338_s19  ;;  %4202 = vperm.xlu0 %4321, %v4199_v1  }
0x1e30   :  { %4165 = vrot.lane.b32.xlu1 %v4149_v41, %s4338_s19  ;;  %4122 = vrot.lane.b32.xlu0 %v4099_v0, %s4338_s19 }
0x1e34   :  { %4169 = vrot.lane.b32.xlu1 %v4151_v32, %s4338_s19  ;;  %4167 = vrot.lane.b32.xlu0 %v4150_v19, %s4338_s19 }
0x1e38   :  { %4175 = vrot.lane.b32.xlu1 %v4154_v58, %s4338_s19  ;;  %4173 = vrot.lane.b32.xlu0 %v4153_v62, %s4338_s19 }
0x1e3c   :  { %4171 = vrot.lane.b32.xlu1 %v4152_v8, %s4338_s19  ;;  %4177 = vrot.lane.b32.xlu0 %v4155_v38, %s4338_s19 }
0x1e40   :  { %4179 = vrot.lane.b32.xlu0 %v4156_v39, %s4338_s19 }
0x1e42   :  { %v3824_v43 = vpop.permute.xlu0 %3823  ;;  %v3826_v3 = vpop.permute.xlu1 %3825 }
0x1e43   :  { %v3839_v61 = vsel %vm1679_vm7, %v3824_v43, %v3826_v3 }
0x1e44   :  { %v3851_v45 = vadd.f32 %v3839_v61, %v7808_v26 }
0x1e46   :  { %v3828_v50 = vpop.permute.xlu0 %3827  ;;  %v3830_v40 = vpop.permute.xlu1 %3829 }
0x1e47   :  { %v3840_v5 = vsel %vm1679_vm7, %v3826_v3, %v3828_v50  ;;  %v3841_v27 = vsel %vm1679_vm7, %v3828_v50, %v3830_v40 }
0x1e48   :  { %v3852_v51 = vadd.f32 %v3840_v5, %v7812_v17  ;;  %v3853_v57 = vadd.f32 %v3841_v27, %v7814_v48 }
0x1e4a   :  { %v3832_v16 = vpop.permute.xlu0 %3831  ;;  %v3834_v4 = vpop.permute.xlu1 %3833 }
0x1e4b   :  { %v3842_v2 = vsel %vm1679_vm7, %v3832_v16, %v3834_v4 }
0x1e4c   :  { %v3854_v30 = vadd.f32 %v3842_v2, %v7817_v42 }
0x1e4e   :  { %v3836_v49 = vpop.permute.xlu0 %3835  ;;  %v3838_v21 = vpop.permute.xlu1 %3837 }
0x1e4f   :  { %v3843_v26 = vsel %vm1679_vm7, %v3834_v4, %v3836_v49  ;;  %v3844_v54 = vsel %vm1679_vm7, %v3836_v49, %v3838_v21 }
0x1e50   :  { %v3855_v20 = vadd.f32 %v3843_v26, %v7820_v35  ;;  %v3856_v31 = vadd.f32 %v3844_v54, %v7844_v11 }
0x1e52   :  { %v3881_v55 = vpop.permute.xlu0 %3880  ;;  %v3883_v17 = vpop.permute.xlu1 %3882 }
0x1e53   :  { %v3896_v48 = vsel %vm1679_vm7, %v3881_v55, %v3883_v17 }
0x1e54   :  { %v3908_v44 = vadd.f32 %v3896_v48, %v3851_v45 }
0x1e56   :  { %v3885_v10 = vpop.permute.xlu0 %3884  ;;  %v3887_v60 = vpop.permute.xlu1 %3886 }
0x1e57   :  { %v3897_v28 = vsel %vm1679_vm7, %v3883_v17, %v3885_v10  ;;  %v3898_v42 = vsel %vm1679_vm7, %v3885_v10, %v3887_v60 }
0x1e58   :  { %v3909_v13 = vadd.f32 %v3897_v28, %v3852_v51  ;;  %v3910_v52 = vadd.f32 %v3898_v42, %v3853_v57 }
0x1e5a   :  { %v3889_v33 = vpop.permute.xlu0 %3888  ;;  %v3891_v25 = vpop.permute.xlu1 %3890 }
0x1e5b   :  { %v3899_v6 = vsel %vm1679_vm7, %v3889_v33, %v3891_v25 }
0x1e5c   :  { %v3911_v35 = vadd.f32 %v3899_v6, %v3854_v30 }
0x1e5e   :  { %v3893_v23 = vpop.permute.xlu0 %3892  ;;  %v3895_v11 = vpop.permute.xlu1 %3894 }
0x1e5f   :  { %v3900_v46 = vsel %vm1679_vm7, %v3891_v25, %v3893_v23  ;;  %v3901_v63 = vsel %vm1679_vm7, %v3893_v23, %v3895_v11 }
0x1e60   :  { %v3912_v53 = vadd.f32 %v3900_v46, %v3855_v20  ;;  %v3913_v37 = vadd.f32 %v3901_v63, %v3856_v31 }
0x1e62   :  { %v3938_v24 = vpop.permute.xlu0 %3937  ;;  %v3940_v29 = vpop.permute.xlu1 %3939 }
0x1e63   :  { %v3953_v14 = vsel %vm1679_vm7, %v3938_v24, %v3940_v29 }
0x1e64   :  { %v3965_v18 = vadd.f32 %v3953_v14, %v3908_v44 }
0x1e66   :  { %v3942_v59 = vpop.permute.xlu0 %3941  ;;  %v3944_v56 = vpop.permute.xlu1 %3943 }
0x1e67   :  { %v3954_v22 = vsel %vm1679_vm7, %v3940_v29, %v3942_v59  ;;  %v3955_v36 = vsel %vm1679_vm7, %v3942_v59, %v3944_v56 }
0x1e68   :  { %v3966_v9 = vadd.f32 %v3954_v22, %v3909_v13  ;;  %v3967_v7 = vadd.f32 %v3955_v36, %v3910_v52 }
0x1e6a   :  { %v3946_v12 = vpop.permute.xlu0 %3945  ;;  %v3948_v34 = vpop.permute.xlu1 %3947 }
0x1e6b   :  { %v3956_v1 = vsel %vm1679_vm7, %v3946_v12, %v3948_v34 }
0x1e6c   :  { %v3968_v47 = vadd.f32 %v3956_v1, %v3911_v35 }
0x1e6e   :  { %v3950_v15 = vpop.permute.xlu0 %3949  ;;  %v3952_v41 = vpop.permute.xlu1 %3951 }
0x1e6f   :  { %v3957_v0 = vsel %vm1679_vm7, %v3948_v34, %v3950_v15  ;;  %v3958_v32 = vsel %vm1679_vm7, %v3950_v15, %v3952_v41 }
0x1e70   :  { %v3969_v19 = vadd.f32 %v3957_v0, %v3912_v53  ;;  %v7975_v58 = vadd.f32 %v3958_v32, %v3913_v37 }
0x1e72   :  { %v3995_v62 = vpop.permute.xlu0 %3994  ;;  %v3997_v8 = vpop.permute.xlu1 %3996 }
0x1e73   :  { %v4010_v44 = vsel %vm1908_vm8, %v3995_v62, %v3997_v8 }
0x1e74   :  { %v4022_v33 = vadd.f32 %v4010_v44, %v3965_v18 }
0x1e76   :  { %v3999_v38 = vpop.permute.xlu0 %3998  ;;  %v4003_v39 = vpop.permute.xlu1 %4002 }
0x1e77   :  { %v4011_v10 = vsel %vm1908_vm8, %v3997_v8, %v3999_v38 }
0x1e78   :  { %v4023_v25 = vadd.f32 %v4011_v10, %v3966_v9 }
0x1e7a   :  { %v4005_v43 = vpop.permute.xlu0 %4004  ;;  %v4007_v3 = vpop.permute.xlu1 %4006 }
0x1e7b   :  { %v4013_v23 = vsel %vm1908_vm8, %v4003_v39, %v4005_v43  ;;  %v4014_v24 = vsel %vm1908_vm8, %v4005_v43, %v4007_v3 }
0x1e7c   :  { %v4025_v18 = vadd.f32 %v4013_v23, %v3968_v47  ;;  %v4026_v32 = vadd.f32 %v4014_v24, %v3969_v19  ;;  %v4325_v19 = vld [vmem:[%s8053_s0 + $0x8] sm:$0xf]  ;;  %v4328_v24 = vld [vmem:[%s8053_s0 + $0x14] sm:$0xf] }
0x1e7d   :  { %v9110_v23 = vld [vmem:[#allocation3_spill] sm:$0xff] }
0x1e7e   :  { %v4001_v61 = vpop.permute.xlu0 %4000  ;;  %v4009_v45 = vpop.permute.xlu1 %4008 }
0x1e7f   :  { %v4012_v17 = vsel %vm1908_vm8, %v3999_v38, %v4001_v61  ;;  %v4015_v8 = vsel %vm1908_vm8, %v4007_v3, %v4009_v45  ;;  %v4326_v3 = vld [vmem:[%s8053_s0] sm:$0xff] }
0x1e80   :  { %v4024_v28 = vadd.f32 %v4012_v17, %v3967_v7  ;;  %v9109_v17 = vld [vmem:[#allocation8_spill] sm:$0xff] }
0x1e82   :  { %v4052_v50 = vpop.permute.xlu0 %4051  ;;  %v4054_v40 = vpop.permute.xlu1 %4053 }
0x1e83   :  { %v4067_v42 = vsel %vm1908_vm8, %v4052_v50, %v4054_v40 }
0x1e84   :  { %v4079_v53 = vadd.f32 %v4067_v42, %v4022_v33  ;;  %v4327_v33 = vld [vmem:[%s8053_s0 + $0xc] sm:$0xff] }
0x1e86   :  { %v4056_v5 = vpop.permute.xlu0 %4055  ;;  %v4060_v27 = vpop.permute.xlu1 %4059 }
0x1e87   :  { %v4068_v13 = vsel %vm1908_vm8, %v4054_v40, %v4056_v5 }
0x1e88   :  { %v4080_v37 = vadd.f32 %v4068_v13, %v4023_v25 }
0x1e8a   :  { %v7977_v51 = vpop.permute.xlu1 %4063  ;;  %v4062_v57 = vpop.permute.xlu0 %4061 }
0x1e8b   :  { %v4070_v29 = vsel %vm1908_vm8, %v4060_v27, %v4062_v57  ;;  %v4071_v62 = vsel %vm1908_vm8, %v4062_v57, %v7977_v51  ;;  %v9106_v57 = vld [vmem:[#allocation2_spill] sm:$0xff] }
0x1e8c   :  { %v4082_v15 = vadd.f32 %v4070_v29, %v4025_v18  ;;  %v4083_v27 = vadd.f32 %v4071_v62, %v4026_v32 }
0x1e8e   :  { %v7979_v16 = vpop.permute.xlu1 %4065  ;;  %v4058_v4 = vpop.permute.xlu0 %4057 }
0x1e8f   :  { %v4069_v60 = vsel %vm1908_vm8, %v4056_v5, %v4058_v4 }
0x1e90   :  { %v4081_v11 = vadd.f32 %v4069_v60, %v4024_v28 }
0x1e92   :  { %v4111_v2 = vpop.permute.xlu1 %4110  ;;  %v4109_v49 = vpop.permute.xlu0 %4108 }
0x1e93   :  { %v4124_v46 = vsel %vm1908_vm8, %v4109_v49, %v4111_v2  ;;  %v4072_v49 = vsel %vm1908_vm8, %v7977_v51, %v7979_v16 }
0x1e94   :  { %v4136_v56 = vadd.f32 %v4124_v46, %v4079_v53 }
0x1e96   :  { %v4117_v30 = vpop.permute.xlu1 %4116  ;;  %v4113_v26 = vpop.permute.xlu0 %4112 }
0x1e97   :  { %v4125_v63 = vsel %vm1908_vm8, %v4111_v2, %v4113_v26 }
0x1e98   :  { %v4137_v22 = vadd.f32 %v4125_v63, %v4080_v37 }
0x1e9a   :  { %v7981_v21 = vpop.permute.xlu1 %4120  ;;  %v4119_v31 = vpop.permute.xlu0 %4118 }
0x1e9b   :  { %v4127_v7 = vsel %vm1908_vm8, %v4117_v30, %v4119_v31  ;;  %v4128_v50 = vsel %vm1908_vm8, %v4119_v31, %v7981_v21  ;;  %v4027_v30 = vadd.f32 %v4015_v8, %v7975_v58  ;;  %v9108_v31 = vld [vmem:[#allocation9_spill] sm:$0xff] }
0x1e9c   :  { %v4139_v38 = vadd.f32 %v4127_v7, %v4082_v15 }
0x1e9d   :  { %v4084_v51 = vadd.f32 %v4072_v49, %v4027_v30 }
0x1e9e   :  { %v4115_v54 = vpop.permute.xlu1 %4114 }
0x1e9f   :  { %v4126_v6 = vsel %vm1908_vm8, %v4113_v26, %v4115_v54  ;;  %v9107_v26 = vld [vmem:[#allocation28_spill] sm:$0xff] }
0x1ea0   :  { %v4138_v14 = vadd.f32 %v4126_v6, %v4081_v11 }
0x1ea2   :  { %v4166_v20 = vpop.permute.xlu1 %4165 }
0x1ea6   :  { %v4170_v55 = vpop.permute.xlu1 %4169 }
0x1ea7   :  { %v7984_v48 = vpop.permute.xlu0 %4202 }
0x1eaa   :  { %v4176_v52 = vpop.permute.xlu1 %4175 }
0x1eab   :  { %v4123_v35 = vpop.permute.xlu0 %4122 }
0x1eac   :  { %v4129_v28 = vsel %vm1908_vm8, %v7981_v21, %v4123_v35 }
0x1ead   :  { %v4141_v13 = vadd.f32 %v4129_v28, %v4084_v51 }
0x1eae   :  { %v4172_v59 = vpop.permute.xlu1 %4171 }
0x1eaf   :  { %v4183_v36 = vsel %vm1908_vm8, %v4170_v55, %v4172_v59  ;;  %v4168_v9 = vpop.permute.xlu0 %4167 }
0x1eb0   :  { %v4195_v12 = vadd.f32 %v4183_v36, %v4138_v14  ;;  %v4181_v34 = vsel %vm1908_vm8, %v4166_v20, %v4168_v9  ;;  %v4182_v1 = vsel %vm1908_vm8, %v4168_v9, %v4170_v55  ;;  %v4140_v20 = vadd.f32 %v4128_v50, %v4083_v27 }
0x1eb1   :  { %v4193_v41 = vadd.f32 %v4181_v34, %v4136_v56  ;;  %v4194_v0 = vadd.f32 %v4182_v1, %v4137_v22 }
0x1eb2   :  { %v4207_v47 = vadd.f32 %v7984_v48, %v4195_v12 }
0x1eb3   :  { %v4205_v39 = vadd.f32 %v7984_v48, %v4193_v41  ;;  %v4206_v43 = vadd.f32 %v7984_v48, %v4194_v0  ;;  %v4174_v61 = vpop.permute.xlu0 %4173 }
0x1eb4   :  { %v4215_v40 = vadd.f32 %v4325_v19, %v4207_v47  ;;  %v4184_v5 = vsel %vm1908_vm8, %v4174_v61, %v4176_v52 }
0x1eb5   :  { %v4213_v45 = vadd.f32 %v4326_v3, %v4205_v39  ;;  %v4214_v4 = vadd.f32 %v4206_v43, %v9106_v57  ;;  %v4196_v2 = vadd.f32 %v4184_v5, %v4139_v38 }
0x1eb6   :  { %v4221_v54 = vmul.f32 %v4215_v40, %v9107_v26 }
0x1eb7   :  { %v4219_v55 = vmul.f32 %v4213_v45, %v9108_v31  ;;  %v4220_v44 = vmul.f32 %v4214_v4, %v9109_v17  ;;  %v4208_v10 = vadd.f32 %v7984_v48, %v4196_v2  ;;  %v4178_v60 = vpop.permute.xlu0 %4177 }
0x1eb8   :  { %4234 = vst [vmem:[%s8059_s6 + $0x8] sm:$0xf] %v4221_v54  ;;  %v4185_v58 = vsel %vm1908_vm8, %v4176_v52, %v4178_v60 }
0x1eb9   :  { %v4229_v16 = vcombine.low %v4219_v55, %v4220_v44  ;;  %v4197_v42 = vadd.f32 %v4185_v58, %v4140_v20  ;;  %v4216_v25 = vadd.f32 %v4327_v33, %v4208_v10 }
0x1ebb   :  { %4233 = vst [vmem:[%s8059_s6] sm:$0xff] %v4229_v16  ;;  %v4209_v21 = vadd.f32 %v7984_v48, %v4197_v42  ;;  %v4180_v6 = vpop.permute.xlu0 %4179  ;;  %v4222_v46 = vmul.f32 %v4216_v25, %v9108_v31 }
0x1ebc   :  { %v4186_v35 = vsel %vm1908_vm8, %v4178_v60, %v4180_v6 }
0x1ebd   :  { %v4217_v52 = vadd.f32 %v4209_v21, %v9110_v23  ;;  %v4198_v11 = vadd.f32 %v4186_v35, %v4141_v13 }
0x1ebf   :  { %v4223_v63 = vmul.f32 %v4217_v52, %v9109_v17  ;;  %v4210_v53 = vadd.f32 %v7984_v48, %v4198_v11 }
0x1ec1   :  { %v4230_v37 = vcombine.low %v4222_v46, %v4223_v63  ;;  %v4218_v29 = vadd.f32 %v4328_v24, %v4210_v53 }
0x1ec3   :  { %4235 = vst [vmem:[%s8059_s6 + $0xc] sm:$0xff] %v4230_v37  ;;  %v4224_v14 = vmul.f32 %v4218_v29, %v9107_v26 }
0x1ec5   :  { %4236 = vst [vmem:[%s8059_s6 + $0x14] sm:$0xf] %v4224_v14 }

</bundles_post_ra>
